<compile_context>
chip_gen: v7x
topology: tpu7x:2x2x1
jax: 0.10.0
libtpu: 0.0.40
codegen_flags: <defaults>
</compile_context>

<pallas_src>
import functools

import jax
import jax.numpy as jnp
from jax import lax
from jax.experimental import pallas as pl
from jax.experimental.pallas import tpu as pltpu


# ------------------------------ fused kernel --------------------------------

def _dense_block_kernel(
    x_ref,                       # (1, H, W, Cin)        NHWC input tile
    wl1_ref, bl1_ref,            # (Cin, C2), (1, C2)    left 1x1 (BN folded)
    wl3_ref, bl3_ref,            # (9*C2, Ch), (1, Ch)   left 3x3
    wr1_ref, br1_ref,            # (Cin, C2), (1, C2)    right 1x1
    wr3a_ref, br3a_ref,          # (9*C2, Ch), (1, Ch)   right 3x3 #1
    wr3b_ref, br3b_ref,          # (9*Ch, Ch), (1, Ch)   right 3x3 #2
    o_ref,                       # (1, H, W, Cin + 2*Ch) concat output tile
    pad_big,                     # VMEM (H+2, W+2, C2)   padded intermediate
    pad_small,                   # VMEM (H+2, W+2, Ch)
    patch_big,                   # VMEM (H*W, 9*C2)      im2col patches
    patch_small,                 # VMEM (H*W, 9*Ch)
):
    _, H, W, Cin = x_ref.shape
    C2 = wl1_ref.shape[1]
    Ch = wl3_ref.shape[1]
    HW = H * W

    # (H, W, Cin) -> (H*W, Cin): merges leading dims only, minor dim untouched.
    xm = x_ref[0].reshape(HW, Cin)

    def conv1x1(w_ref, b_ref):
        y = jnp.dot(xm, w_ref[...], preferred_element_type=jnp.float32)
        return jnp.maximum(y + b_ref[...], 0.0)                  # (HW, C2)

    def conv3x3(y, cin, pad_ref, patch_ref, w_ref, b_ref):
        # Zero padding folded into the kernel: pad=1 border in VMEM scratch.
        pad_ref[...] = jnp.zeros_like(pad_ref)
        pad_ref[1:H + 1, 1:W + 1, :] = y.reshape(H, W, cin)
        # im2col: assemble (HW, 9*cin) patch matrix, then ONE MXU matmul
        # (K = 9*cin) instead of nine K=cin matmuls.
        for dy in range(3):
            for dx in range(3):
                t = dy * 3 + dx
                patch_ref[:, t * cin:(t + 1) * cin] = (
                    pad_ref[dy:dy + H, dx:dx + W, :].reshape(HW, cin))
        z = jnp.dot(patch_ref[...], w_ref[...],
                    preferred_element_type=jnp.float32)
        return jnp.maximum(z + b_ref[...], 0.0)                  # (HW, Cout)

    # left way : 1x1 -> 3x3
    left = conv1x1(wl1_ref, bl1_ref)
    left = conv3x3(left, C2, pad_big, patch_big, wl3_ref, bl3_ref)

    # right way : 1x1 -> 3x3 -> 3x3  (scratches reused; trace order keeps deps)
    right = conv1x1(wr1_ref, br1_ref)
    right = conv3x3(right, C2, pad_big, patch_big, wr3a_ref, br3a_ref)
    right = conv3x3(right, Ch, pad_small, patch_small, wr3b_ref, br3b_ref)

    # channel concat [x, left, right] written straight into the output tile
    o_ref[0, :, :, 0:Cin] = x_ref[0].astype(o_ref.dtype)
    o_ref[0, :, :, Cin:Cin + Ch] = left.reshape(H, W, Ch).astype(o_ref.dtype)
    o_ref[0, :, :, Cin + Ch:Cin + 2 * Ch] = (
        right.reshape(H, W, Ch).astype(o_ref.dtype))


def _dense_block_pallas(x_nhwc, wl1, bl1, wl3, bl3, wr1, br1,
                        wr3a, br3a, wr3b, br3b):
    N, H, W, Cin = x_nhwc.shape
    C2 = wl1.shape[1]
    Ch = wl3.shape[1]
    C_total = Cin + 2 * Ch

    const = lambda n: (0, 0)
    in_specs = [
        pl.BlockSpec((1, H, W, Cin), lambda n: (n, 0, 0, 0)),
        pl.BlockSpec((Cin, C2), const), pl.BlockSpec((1, C2), const),
        pl.BlockSpec((9 * C2, Ch), const), pl.BlockSpec((1, Ch), const),
        pl.BlockSpec((Cin, C2), const), pl.BlockSpec((1, C2), const),
        pl.BlockSpec((9 * C2, Ch), const), pl.BlockSpec((1, Ch), const),
        pl.BlockSpec((9 * Ch, Ch), const), pl.BlockSpec((1, Ch), const),
    ]
    return pl.pallas_call(
        _dense_block_kernel,
        out_shape=jax.ShapeDtypeStruct((N, H, W, C_total), x_nhwc.dtype),
        grid=(N,),
        in_specs=in_specs,
        out_specs=pl.BlockSpec((1, H, W, C_total), lambda n: (n, 0, 0, 0)),
        scratch_shapes=[
            pltpu.VMEM((H + 2, W + 2, C2), jnp.float32),
            pltpu.VMEM((H + 2, W + 2, Ch), jnp.float32),
            pltpu.VMEM((H * W, 9 * C2), jnp.float32),
            pltpu.VMEM((H * W, 9 * Ch), jnp.float32),
        ],
        compiler_params=pltpu.CompilerParams(
            dimension_semantics=("parallel",),          # 2 TCs on v7x
            vmem_limit_bytes=32 * 1024 * 1024,          # safe on v5e/v6e/v7x
        ),
    )(x_nhwc, wl1, bl1, wl3, bl3, wr1, br1, wr3a, br3a, wr3b, br3b)


# --------------------------- parameter handling -----------------------------

def _bn_scale_bias(bn, eps=1e-5):
    scale = bn["gamma"] / jnp.sqrt(bn["var"] + eps)
    bias = bn["beta"] - bn["mean"] * scale
    return scale, bias


def _fold_1x1(p):
    """(O,I,1,1) conv weight + BN -> (I,O) weight with scale folded, (1,O) bias."""
    s, b = _bn_scale_bias(p["bn"])
    w = jnp.transpose(p["w"][:, :, 0, 0], (1, 0)) * s[None, :]
    return w.astype(jnp.float32), b.reshape(1, -1).astype(jnp.float32)


def _fold_3x3(p):
    """(O,I,3,3) conv weight + BN -> (9*I,O) tap-major weight, (1,O) bias."""
    s, b = _bn_scale_bias(p["bn"])
    o, i, _, _ = p["w"].shape
    w = jnp.transpose(p["w"], (2, 3, 1, 0)).reshape(9 * i, o) * s[None, :]
    return w.astype(jnp.float32), b.reshape(1, -1).astype(jnp.float32)


def _init_conv_bn(key, cin, cout, k):
    kw, kg, kb, km, kv = jax.random.split(key, 5)
    fan_in = cin * k * k
    w = jax.random.normal(kw, (cout, cin, k, k), jnp.float32) / jnp.sqrt(fan_in)
    bn = {
        "gamma": 1.0 + 0.1 * jax.random.normal(kg, (cout,), jnp.float32),
        "beta": 0.1 * jax.random.normal(kb, (cout,), jnp.float32),
        "mean": 0.1 * jax.random.normal(km, (cout,), jnp.float32),
        "var": 0.5 + jnp.abs(jax.random.normal(kv, (cout,), jnp.float32)),
    }
    return {"w": w, "bn": bn}


def init_dense_layer_params(key, nin, growth_rate):
    g2, gh = growth_rate * 2, growth_rate // 2
    keys = jax.random.split(key, 5)
    return {
        "l_conv1": _init_conv_bn(keys[0], nin, g2, 1),
        "l_conv3": _init_conv_bn(keys[1], g2, gh, 3),
        "r_conv1": _init_conv_bn(keys[2], nin, g2, 1),
        "r_conv3a": _init_conv_bn(keys[3], g2, gh, 3),
        "r_conv3b": _init_conv_bn(keys[4], gh, gh, 3),
    }


# ----------------------------- dense_layer ----------------------------------

def dense_layer_forward(params, x_nchw, drop_rate=0.2):
    del drop_rate                              # inference: dropout == identity
    x = jnp.transpose(x_nchw, (0, 2, 3, 1))    # NCHW -> NHWC (channels on lanes)

    wl1, bl1 = _fold_1x1(params["l_conv1"])
    wl3, bl3 = _fold_3x3(params["l_conv3"])
    wr1, br1 = _fold_1x1(params["r_conv1"])
    wr3a, br3a = _fold_3x3(params["r_conv3a"])
    wr3b, br3b = _fold_3x3(params["r_conv3b"])

    out = _dense_block_pallas(x, wl1, bl1, wl3, bl3, wr1, br1,
                              wr3a, br3a, wr3b, br3b)
    return jnp.transpose(out, (0, 3, 1, 2))    # NHWC -> NCHW


# ------------------------- pure-JAX reference check --------------------------

def _ref_conv_bn_relu(x, w_oihw, bn, pad):
    w_hwio = jnp.transpose(w_oihw, (2, 3, 1, 0))
    y = lax.conv_general_dilated(
        x, w_hwio, window_strides=(1, 1),
        padding=[(pad, pad), (pad, pad)],
        dimension_numbers=("NHWC", "HWIO", "NHWC"),
        precision=lax.Precision.HIGHEST)
    s, b = _bn_scale_bias(bn)
    return jnp.maximum(y * s + b, 0.0)


def dense_layer_reference(params, x_nchw):
    x = jnp.transpose(x_nchw, (0, 2, 3, 1))
    l = _ref_conv_bn_relu(x, params["l_conv1"]["w"], params["l_conv1"]["bn"], 0)
    l = _ref_conv_bn_relu(l, params["l_conv3"]["w"], params["l_conv3"]["bn"], 1)
    r = _ref_conv_bn_relu(x, params["r_conv1"]["w"], params["r_conv1"]["bn"], 0)
    r = _ref_conv_bn_relu(r, params["r_conv3a"]["w"], params["r_conv3a"]["bn"], 1)
    r = _ref_conv_bn_relu(r, params["r_conv3b"]["w"], params["r_conv3b"]["bn"], 1)
    return jnp.transpose(jnp.concatenate([x, l, r], axis=-1), (0, 3, 1, 2))


# --------------------------------- main --------------------------------------

if __name__ == "__main__":
    nin, growth_rate = 4, 4              # out channels = nin + growth_rate = 8
    N, H, W = 2, 16, 16

    key = jax.random.PRNGKey(0)
    kx, kp = jax.random.split(key)
    x = jax.random.normal(kx, (N, nin, H, W), jnp.float32)   # NCHW like PyTorch
    params = init_dense_layer_params(kp, nin, growth_rate)

    fwd = jax.jit(functools.partial(dense_layer_forward, params))
    out = jax.block_until_ready(fwd(x))

    c_total = nin + 2 * (growth_rate // 2)
    assert out.shape == (N, c_total, H, W), out.shape
    ref = dense_layer_reference(params, x)
    err = float(jnp.max(jnp.abs(out - ref)))
    assert jnp.allclose(out, ref, rtol=1e-4, atol=2e-5), err

    print("KERNEL_OK")
</pallas_src>

<mosaic_0001>
module attributes {stable_mosaic.version = 11 : i64} {
  func.func @_dense_block_kernel(%arg0: i32, %arg1: memref<1x16x16x4xf32, #tpu.memory_space<vmem>>, %arg2: memref<4x8xf32, #tpu.memory_space<vmem>>, %arg3: memref<1x8xf32, #tpu.memory_space<vmem>>, %arg4: memref<72x2xf32, #tpu.memory_space<vmem>>, %arg5: memref<1x2xf32, #tpu.memory_space<vmem>>, %arg6: memref<4x8xf32, #tpu.memory_space<vmem>>, %arg7: memref<1x8xf32, #tpu.memory_space<vmem>>, %arg8: memref<72x2xf32, #tpu.memory_space<vmem>>, %arg9: memref<1x2xf32, #tpu.memory_space<vmem>>, %arg10: memref<18x2xf32, #tpu.memory_space<vmem>>, %arg11: memref<1x2xf32, #tpu.memory_space<vmem>>, %arg12: memref<1x16x16x8xf32, #tpu.memory_space<vmem>>, %arg13: memref<18x18x8xf32, #tpu.memory_space<vmem>>, %arg14: memref<18x18x2xf32, #tpu.memory_space<vmem>>, %arg15: memref<256x72xf32, #tpu.memory_space<vmem>>, %arg16: memref<256x18xf32, #tpu.memory_space<vmem>>) attributes {dimension_semantics = [#tpu.dimension_semantics<parallel>], iteration_bounds = array<i64: 2>, scalar_prefetch = 0 : i64, scratch_operands = 4 : i64, tpu.core_type = #tpu.core_type<tc>, window_params = [{transform_indices = @transform_0, window_bounds = array<i64: 1, 16, 16, 4>}, {pipeline_mode = #tpu.pipeline_mode<synchronous>, transform_indices = @transform_1, window_bounds = array<i64: 4, 8>}, {pipeline_mode = #tpu.pipeline_mode<synchronous>, transform_indices = @transform_2, window_bounds = array<i64: 1, 8>}, {pipeline_mode = #tpu.pipeline_mode<synchronous>, transform_indices = @transform_3, window_bounds = array<i64: 72, 2>}, {pipeline_mode = #tpu.pipeline_mode<synchronous>, transform_indices = @transform_4, window_bounds = array<i64: 1, 2>}, {pipeline_mode = #tpu.pipeline_mode<synchronous>, transform_indices = @transform_5, window_bounds = array<i64: 4, 8>}, {pipeline_mode = #tpu.pipeline_mode<synchronous>, transform_indices = @transform_6, window_bounds = array<i64: 1, 8>}, {pipeline_mode = #tpu.pipeline_mode<synchronous>, transform_indices = @transform_7, window_bounds = array<i64: 72, 2>}, {pipeline_mode = #tpu.pipeline_mode<synchronous>, transform_indices = @transform_8, window_bounds = array<i64: 1, 2>}, {pipeline_mode = #tpu.pipeline_mode<synchronous>, transform_indices = @transform_9, window_bounds = array<i64: 18, 2>}, {pipeline_mode = #tpu.pipeline_mode<synchronous>, transform_indices = @transform_10, window_bounds = array<i64: 1, 2>}, {transform_indices = @transform_11, window_bounds = array<i64: 1, 16, 16, 8>}]} {
    %c0 = arith.constant 0 : index
    %c0_0 = arith.constant 0 : index
    %c0_1 = arith.constant 0 : index
    %c0_2 = arith.constant 0 : index
    %0 = vector.load %arg1[%c0, %c0_0, %c0_1, %c0_2] : memref<1x16x16x4xf32, #tpu.memory_space<vmem>>, vector<1x16x16x4xf32>
    %1 = vector.shape_cast %0 : vector<1x16x16x4xf32> to vector<16x16x4xf32>
    %2 = vector.shape_cast %1 : vector<16x16x4xf32> to vector<256x4xf32>
    %c0_3 = arith.constant 0 : index
    %c0_4 = arith.constant 0 : index
    %3 = vector.load %arg2[%c0_3, %c0_4] : memref<4x8xf32, #tpu.memory_space<vmem>>, vector<4x8xf32>
    %cst = arith.constant dense<0.000000e+00> : vector<256x8xf32>
    %4 = tpu.matmul %2, %3, %cst {dimension_numbers = #tpu.dot_dimension_numbers<[1], [0], [0], [1], [0, 0, 1, 1], [], []>} : vector<256x4xf32>, vector<4x8xf32>, vector<256x8xf32> -> vector<256x8xf32>
    %c0_5 = arith.constant 0 : index
    %c0_6 = arith.constant 0 : index
    %5 = vector.load %arg3[%c0_5, %c0_6] : memref<1x8xf32, #tpu.memory_space<vmem>>, vector<1x8xf32>
    %6 = vector.broadcast %5 : vector<1x8xf32> to vector<256x8xf32>
    %7 = arith.addf %4, %6 : vector<256x8xf32>
    %cst_7 = arith.constant 0.000000e+00 : f32
    %8 = vector.broadcast %cst_7 : f32 to vector<256x8xf32>
    %9 = arith.maximumf %7, %8 : vector<256x8xf32>
    %cst_8 = arith.constant 0.000000e+00 : f32
    %10 = vector.broadcast %cst_8 : f32 to vector<18x18x8xf32>
    %c0_9 = arith.constant 0 : index
    %c0_10 = arith.constant 0 : index
    %c0_11 = arith.constant 0 : index
    %11 = vector.load %arg13[%c0_9, %c0_10, %c0_11] : memref<18x18x8xf32, #tpu.memory_space<vmem>>, vector<18x18x8xf32>
    tpu.vector_store %arg13[%c0_9, %c0_10, %c0_11], %10 {strides = array<i32>} : memref<18x18x8xf32, #tpu.memory_space<vmem>>, vector<18x18x8xf32>,
    %12 = vector.shape_cast %9 : vector<256x8xf32> to vector<16x16x8xf32>
    %c1 = arith.constant 1 : index
    %c1_12 = arith.constant 1 : index
    %c0_13 = arith.constant 0 : index
    %13 = vector.load %arg13[%c1, %c1_12, %c0_13] : memref<18x18x8xf32, #tpu.memory_space<vmem>>, vector<16x16x8xf32>
    tpu.vector_store %arg13[%c1, %c1_12, %c0_13], %12 {strides = array<i32>} : memref<18x18x8xf32, #tpu.memory_space<vmem>>, vector<16x16x8xf32>,
    %c0_14 = arith.constant 0 : index
    %c0_15 = arith.constant 0 : index
    %c0_16 = arith.constant 0 : index
    %14 = vector.load %arg13[%c0_14, %c0_15, %c0_16] : memref<18x18x8xf32, #tpu.memory_space<vmem>>, vector<16x16x8xf32>
    %15 = vector.shape_cast %14 : vector<16x16x8xf32> to vector<256x8xf32>
    %c0_17 = arith.constant 0 : index
    %c0_18 = arith.constant 0 : index
    %16 = vector.load %arg15[%c0_17, %c0_18] : memref<256x72xf32, #tpu.memory_space<vmem>>, vector<256x8xf32>
    tpu.vector_store %arg15[%c0_17, %c0_18], %15 {strides = array<i32>} : memref<256x72xf32, #tpu.memory_space<vmem>>, vector<256x8xf32>,
    %c0_19 = arith.constant 0 : index
    %c1_20 = arith.constant 1 : index
    %c0_21 = arith.constant 0 : index
    %17 = vector.load %arg13[%c0_19, %c1_20, %c0_21] : memref<18x18x8xf32, #tpu.memory_space<vmem>>, vector<16x16x8xf32>
    %18 = vector.shape_cast %17 : vector<16x16x8xf32> to vector<256x8xf32>
    %c0_22 = arith.constant 0 : index
    %c8 = arith.constant 8 : index
    %19 = vector.load %arg15[%c0_22, %c8] : memref<256x72xf32, #tpu.memory_space<vmem>>, vector<256x8xf32>
    tpu.vector_store %arg15[%c0_22, %c8], %18 {strides = array<i32>} : memref<256x72xf32, #tpu.memory_space<vmem>>, vector<256x8xf32>,
    %c0_23 = arith.constant 0 : index
    %c2 = arith.constant 2 : index
    %c0_24 = arith.constant 0 : index
    %20 = vector.load %arg13[%c0_23, %c2, %c0_24] : memref<18x18x8xf32, #tpu.memory_space<vmem>>, vector<16x16x8xf32>
    %21 = vector.shape_cast %20 : vector<16x16x8xf32> to vector<256x8xf32>
    %c0_25 = arith.constant 0 : index
    %c16 = arith.constant 16 : index
    %22 = vector.load %arg15[%c0_25, %c16] : memref<256x72xf32, #tpu.memory_space<vmem>>, vector<256x8xf32>
    tpu.vector_store %arg15[%c0_25, %c16], %21 {strides = array<i32>} : memref<256x72xf32, #tpu.memory_space<vmem>>, vector<256x8xf32>,
    %c1_26 = arith.constant 1 : index
    %c0_27 = arith.constant 0 : index
    %c0_28 = arith.constant 0 : index
    %23 = vector.load %arg13[%c1_26, %c0_27, %c0_28] : memref<18x18x8xf32, #tpu.memory_space<vmem>>, vector<16x16x8xf32>
    %24 = vector.shape_cast %23 : vector<16x16x8xf32> to vector<256x8xf32>
    %c0_29 = arith.constant 0 : index
    %c24 = arith.constant 24 : index
    %25 = vector.load %arg15[%c0_29, %c24] : memref<256x72xf32, #tpu.memory_space<vmem>>, vector<256x8xf32>
    tpu.vector_store %arg15[%c0_29, %c24], %24 {strides = array<i32>} : memref<256x72xf32, #tpu.memory_space<vmem>>, vector<256x8xf32>,
    %c1_30 = arith.constant 1 : index
    %c1_31 = arith.constant 1 : index
    %c0_32 = arith.constant 0 : index
    %26 = vector.load %arg13[%c1_30, %c1_31, %c0_32] : memref<18x18x8xf32, #tpu.memory_space<vmem>>, vector<16x16x8xf32>
    %27 = vector.shape_cast %26 : vector<16x16x8xf32> to vector<256x8xf32>
    %c0_33 = arith.constant 0 : index
    %c32 = arith.constant 32 : index
    %28 = vector.load %arg15[%c0_33, %c32] : memref<256x72xf32, #tpu.memory_space<vmem>>, vector<256x8xf32>
    tpu.vector_store %arg15[%c0_33, %c32], %27 {strides = array<i32>} : memref<256x72xf32, #tpu.memory_space<vmem>>, vector<256x8xf32>,
    %c1_34 = arith.constant 1 : index
    %c2_35 = arith.constant 2 : index
    %c0_36 = arith.constant 0 : index
    %29 = vector.load %arg13[%c1_34, %c2_35, %c0_36] : memref<18x18x8xf32, #tpu.memory_space<vmem>>, vector<16x16x8xf32>
    %30 = vector.shape_cast %29 : vector<16x16x8xf32> to vector<256x8xf32>
    %c0_37 = arith.constant 0 : index
    %c40 = arith.constant 40 : index
    %31 = vector.load %arg15[%c0_37, %c40] : memref<256x72xf32, #tpu.memory_space<vmem>>, vector<256x8xf32>
    tpu.vector_store %arg15[%c0_37, %c40], %30 {strides = array<i32>} : memref<256x72xf32, #tpu.memory_space<vmem>>, vector<256x8xf32>,
    %c2_38 = arith.constant 2 : index
    %c0_39 = arith.constant 0 : index
    %c0_40 = arith.constant 0 : index
    %32 = vector.load %arg13[%c2_38, %c0_39, %c0_40] : memref<18x18x8xf32, #tpu.memory_space<vmem>>, vector<16x16x8xf32>
    %33 = vector.shape_cast %32 : vector<16x16x8xf32> to vector<256x8xf32>
    %c0_41 = arith.constant 0 : index
    %c48 = arith.constant 48 : index
    %34 = vector.load %arg15[%c0_41, %c48] : memref<256x72xf32, #tpu.memory_space<vmem>>, vector<256x8xf32>
    tpu.vector_store %arg15[%c0_41, %c48], %33 {strides = array<i32>} : memref<256x72xf32, #tpu.memory_space<vmem>>, vector<256x8xf32>,
    %c2_42 = arith.constant 2 : index
    %c1_43 = arith.constant 1 : index
    %c0_44 = arith.constant 0 : index
    %35 = vector.load %arg13[%c2_42, %c1_43, %c0_44] : memref<18x18x8xf32, #tpu.memory_space<vmem>>, vector<16x16x8xf32>
    %36 = vector.shape_cast %35 : vector<16x16x8xf32> to vector<256x8xf32>
    %c0_45 = arith.constant 0 : index
    %c56 = arith.constant 56 : index
    %37 = vector.load %arg15[%c0_45, %c56] : memref<256x72xf32, #tpu.memory_space<vmem>>, vector<256x8xf32>
    tpu.vector_store %arg15[%c0_45, %c56], %36 {strides = array<i32>} : memref<256x72xf32, #tpu.memory_space<vmem>>, vector<256x8xf32>,
    %c2_46 = arith.constant 2 : index
    %c2_47 = arith.constant 2 : index
    %c0_48 = arith.constant 0 : index
    %38 = vector.load %arg13[%c2_46, %c2_47, %c0_48] : memref<18x18x8xf32, #tpu.memory_space<vmem>>, vector<16x16x8xf32>
    %39 = vector.shape_cast %38 : vector<16x16x8xf32> to vector<256x8xf32>
    %c0_49 = arith.constant 0 : index
    %c64 = arith.constant 64 : index
    %40 = vector.load %arg15[%c0_49, %c64] : memref<256x72xf32, #tpu.memory_space<vmem>>, vector<256x8xf32>
    tpu.vector_store %arg15[%c0_49, %c64], %39 {strides = array<i32>} : memref<256x72xf32, #tpu.memory_space<vmem>>, vector<256x8xf32>,
    %c0_50 = arith.constant 0 : index
    %c0_51 = arith.constant 0 : index
    %41 = vector.load %arg15[%c0_50, %c0_51] : memref<256x72xf32, #tpu.memory_space<vmem>>, vector<256x72xf32>
    %c0_52 = arith.constant 0 : index
    %c0_53 = arith.constant 0 : index
    %42 = vector.load %arg4[%c0_52, %c0_53] : memref<72x2xf32, #tpu.memory_space<vmem>>, vector<72x2xf32>
    %cst_54 = arith.constant dense<0.000000e+00> : vector<256x2xf32>
    %43 = tpu.matmul %41, %42, %cst_54 {dimension_numbers = #tpu.dot_dimension_numbers<[1], [0], [0], [1], [0, 0, 1, 1], [], []>} : vector<256x72xf32>, vector<72x2xf32>, vector<256x2xf32> -> vector<256x2xf32>
    %c0_55 = arith.constant 0 : index
    %c0_56 = arith.constant 0 : index
    %44 = vector.load %arg5[%c0_55, %c0_56] : memref<1x2xf32, #tpu.memory_space<vmem>>, vector<1x2xf32>
    %45 = vector.broadcast %44 : vector<1x2xf32> to vector<256x2xf32>
    %46 = arith.addf %43, %45 : vector<256x2xf32>
    %cst_57 = arith.constant 0.000000e+00 : f32
    %47 = vector.broadcast %cst_57 : f32 to vector<256x2xf32>
    %48 = arith.maximumf %46, %47 : vector<256x2xf32>
    %c0_58 = arith.constant 0 : index
    %c0_59 = arith.constant 0 : index
    %49 = vector.load %arg6[%c0_58, %c0_59] : memref<4x8xf32, #tpu.memory_space<vmem>>, vector<4x8xf32>
    %cst_60 = arith.constant dense<0.000000e+00> : vector<256x8xf32>
    %50 = tpu.matmul %2, %49, %cst_60 {dimension_numbers = #tpu.dot_dimension_numbers<[1], [0], [0], [1], [0, 0, 1, 1], [], []>} : vector<256x4xf32>, vector<4x8xf32>, vector<256x8xf32> -> vector<256x8xf32>
    %c0_61 = arith.constant 0 : index
    %c0_62 = arith.constant 0 : index
    %51 = vector.load %arg7[%c0_61, %c0_62] : memref<1x8xf32, #tpu.memory_space<vmem>>, vector<1x8xf32>
    %52 = vector.broadcast %51 : vector<1x8xf32> to vector<256x8xf32>
    %53 = arith.addf %50, %52 : vector<256x8xf32>
    %cst_63 = arith.constant 0.000000e+00 : f32
    %54 = vector.broadcast %cst_63 : f32 to vector<256x8xf32>
    %55 = arith.maximumf %53, %54 : vector<256x8xf32>
    %cst_64 = arith.constant 0.000000e+00 : f32
    %56 = vector.broadcast %cst_64 : f32 to vector<18x18x8xf32>
    %c0_65 = arith.constant 0 : index
    %c0_66 = arith.constant 0 : index
    %c0_67 = arith.constant 0 : index
    %57 = vector.load %arg13[%c0_65, %c0_66, %c0_67] : memref<18x18x8xf32, #tpu.memory_space<vmem>>, vector<18x18x8xf32>
    tpu.vector_store %arg13[%c0_65, %c0_66, %c0_67], %56 {strides = array<i32>} : memref<18x18x8xf32, #tpu.memory_space<vmem>>, vector<18x18x8xf32>,
    %58 = vector.shape_cast %55 : vector<256x8xf32> to vector<16x16x8xf32>
    %c1_68 = arith.constant 1 : index
    %c1_69 = arith.constant 1 : index
    %c0_70 = arith.constant 0 : index
    %59 = vector.load %arg13[%c1_68, %c1_69, %c0_70] : memref<18x18x8xf32, #tpu.memory_space<vmem>>, vector<16x16x8xf32>
    tpu.vector_store %arg13[%c1_68, %c1_69, %c0_70], %58 {strides = array<i32>} : memref<18x18x8xf32, #tpu.memory_space<vmem>>, vector<16x16x8xf32>,
    %c0_71 = arith.constant 0 : index
    %c0_72 = arith.constant 0 : index
    %c0_73 = arith.constant 0 : index
    %60 = vector.load %arg13[%c0_71, %c0_72, %c0_73] : memref<18x18x8xf32, #tpu.memory_space<vmem>>, vector<16x16x8xf32>
    %61 = vector.shape_cast %60 : vector<16x16x8xf32> to vector<256x8xf32>
    %c0_74 = arith.constant 0 : index
    %c0_75 = arith.constant 0 : index
    %62 = vector.load %arg15[%c0_74, %c0_75] : memref<256x72xf32, #tpu.memory_space<vmem>>, vector<256x8xf32>
    tpu.vector_store %arg15[%c0_74, %c0_75], %61 {strides = array<i32>} : memref<256x72xf32, #tpu.memory_space<vmem>>, vector<256x8xf32>,
    %c0_76 = arith.constant 0 : index
    %c1_77 = arith.constant 1 : index
    %c0_78 = arith.constant 0 : index
    %63 = vector.load %arg13[%c0_76, %c1_77, %c0_78] : memref<18x18x8xf32, #tpu.memory_space<vmem>>, vector<16x16x8xf32>
    %64 = vector.shape_cast %63 : vector<16x16x8xf32> to vector<256x8xf32>
    %c0_79 = arith.constant 0 : index
    %c8_80 = arith.constant 8 : index
    %65 = vector.load %arg15[%c0_79, %c8_80] : memref<256x72xf32, #tpu.memory_space<vmem>>, vector<256x8xf32>
    tpu.vector_store %arg15[%c0_79, %c8_80], %64 {strides = array<i32>} : memref<256x72xf32, #tpu.memory_space<vmem>>, vector<256x8xf32>,
    %c0_81 = arith.constant 0 : index
    %c2_82 = arith.constant 2 : index
    %c0_83 = arith.constant 0 : index
    %66 = vector.load %arg13[%c0_81, %c2_82, %c0_83] : memref<18x18x8xf32, #tpu.memory_space<vmem>>, vector<16x16x8xf32>
    %67 = vector.shape_cast %66 : vector<16x16x8xf32> to vector<256x8xf32>
    %c0_84 = arith.constant 0 : index
    %c16_85 = arith.constant 16 : index
    %68 = vector.load %arg15[%c0_84, %c16_85] : memref<256x72xf32, #tpu.memory_space<vmem>>, vector<256x8xf32>
    tpu.vector_store %arg15[%c0_84, %c16_85], %67 {strides = array<i32>} : memref<256x72xf32, #tpu.memory_space<vmem>>, vector<256x8xf32>,
    %c1_86 = arith.constant 1 : index
    %c0_87 = arith.constant 0 : index
    %c0_88 = arith.constant 0 : index
    %69 = vector.load %arg13[%c1_86, %c0_87, %c0_88] : memref<18x18x8xf32, #tpu.memory_space<vmem>>, vector<16x16x8xf32>
    %70 = vector.shape_cast %69 : vector<16x16x8xf32> to vector<256x8xf32>
    %c0_89 = arith.constant 0 : index
    %c24_90 = arith.constant 24 : index
    %71 = vector.load %arg15[%c0_89, %c24_90] : memref<256x72xf32, #tpu.memory_space<vmem>>, vector<256x8xf32>
    tpu.vector_store %arg15[%c0_89, %c24_90], %70 {strides = array<i32>} : memref<256x72xf32, #tpu.memory_space<vmem>>, vector<256x8xf32>,
    %c1_91 = arith.constant 1 : index
    %c1_92 = arith.constant 1 : index
    %c0_93 = arith.constant 0 : index
    %72 = vector.load %arg13[%c1_91, %c1_92, %c0_93] : memref<18x18x8xf32, #tpu.memory_space<vmem>>, vector<16x16x8xf32>
    %73 = vector.shape_cast %72 : vector<16x16x8xf32> to vector<256x8xf32>
    %c0_94 = arith.constant 0 : index
    %c32_95 = arith.constant 32 : index
    %74 = vector.load %arg15[%c0_94, %c32_95] : memref<256x72xf32, #tpu.memory_space<vmem>>, vector<256x8xf32>
    tpu.vector_store %arg15[%c0_94, %c32_95], %73 {strides = array<i32>} : memref<256x72xf32, #tpu.memory_space<vmem>>, vector<256x8xf32>,
    %c1_96 = arith.constant 1 : index
    %c2_97 = arith.constant 2 : index
    %c0_98 = arith.constant 0 : index
    %75 = vector.load %arg13[%c1_96, %c2_97, %c0_98] : memref<18x18x8xf32, #tpu.memory_space<vmem>>, vector<16x16x8xf32>
    %76 = vector.shape_cast %75 : vector<16x16x8xf32> to vector<256x8xf32>
    %c0_99 = arith.constant 0 : index
    %c40_100 = arith.constant 40 : index
    %77 = vector.load %arg15[%c0_99, %c40_100] : memref<256x72xf32, #tpu.memory_space<vmem>>, vector<256x8xf32>
    tpu.vector_store %arg15[%c0_99, %c40_100], %76 {strides = array<i32>} : memref<256x72xf32, #tpu.memory_space<vmem>>, vector<256x8xf32>,
    %c2_101 = arith.constant 2 : index
    %c0_102 = arith.constant 0 : index
    %c0_103 = arith.constant 0 : index
    %78 = vector.load %arg13[%c2_101, %c0_102, %c0_103] : memref<18x18x8xf32, #tpu.memory_space<vmem>>, vector<16x16x8xf32>
    %79 = vector.shape_cast %78 : vector<16x16x8xf32> to vector<256x8xf32>
    %c0_104 = arith.constant 0 : index
    %c48_105 = arith.constant 48 : index
    %80 = vector.load %arg15[%c0_104, %c48_105] : memref<256x72xf32, #tpu.memory_space<vmem>>, vector<256x8xf32>
    tpu.vector_store %arg15[%c0_104, %c48_105], %79 {strides = array<i32>} : memref<256x72xf32, #tpu.memory_space<vmem>>, vector<256x8xf32>,
    %c2_106 = arith.constant 2 : index
    %c1_107 = arith.constant 1 : index
    %c0_108 = arith.constant 0 : index
    %81 = vector.load %arg13[%c2_106, %c1_107, %c0_108] : memref<18x18x8xf32, #tpu.memory_space<vmem>>, vector<16x16x8xf32>
    %82 = vector.shape_cast %81 : vector<16x16x8xf32> to vector<256x8xf32>
    %c0_109 = arith.constant 0 : index
    %c56_110 = arith.constant 56 : index
    %83 = vector.load %arg15[%c0_109, %c56_110] : memref<256x72xf32, #tpu.memory_space<vmem>>, vector<256x8xf32>
    tpu.vector_store %arg15[%c0_109, %c56_110], %82 {strides = array<i32>} : memref<256x72xf32, #tpu.memory_space<vmem>>, vector<256x8xf32>,
    %c2_111 = arith.constant 2 : index
    %c2_112 = arith.constant 2 : index
    %c0_113 = arith.constant 0 : index
    %84 = vector.load %arg13[%c2_111, %c2_112, %c0_113] : memref<18x18x8xf32, #tpu.memory_space<vmem>>, vector<16x16x8xf32>
    %85 = vector.shape_cast %84 : vector<16x16x8xf32> to vector<256x8xf32>
    %c0_114 = arith.constant 0 : index
    %c64_115 = arith.constant 64 : index
    %86 = vector.load %arg15[%c0_114, %c64_115] : memref<256x72xf32, #tpu.memory_space<vmem>>, vector<256x8xf32>
    tpu.vector_store %arg15[%c0_114, %c64_115], %85 {strides = array<i32>} : memref<256x72xf32, #tpu.memory_space<vmem>>, vector<256x8xf32>,
    %c0_116 = arith.constant 0 : index
    %c0_117 = arith.constant 0 : index
    %87 = vector.load %arg15[%c0_116, %c0_117] : memref<256x72xf32, #tpu.memory_space<vmem>>, vector<256x72xf32>
    %c0_118 = arith.constant 0 : index
    %c0_119 = arith.constant 0 : index
    %88 = vector.load %arg8[%c0_118, %c0_119] : memref<72x2xf32, #tpu.memory_space<vmem>>, vector<72x2xf32>
    %cst_120 = arith.constant dense<0.000000e+00> : vector<256x2xf32>
    %89 = tpu.matmul %87, %88, %cst_120 {dimension_numbers = #tpu.dot_dimension_numbers<[1], [0], [0], [1], [0, 0, 1, 1], [], []>} : vector<256x72xf32>, vector<72x2xf32>, vector<256x2xf32> -> vector<256x2xf32>
    %c0_121 = arith.constant 0 : index
    %c0_122 = arith.constant 0 : index
    %90 = vector.load %arg9[%c0_121, %c0_122] : memref<1x2xf32, #tpu.memory_space<vmem>>, vector<1x2xf32>
    %91 = vector.broadcast %90 : vector<1x2xf32> to vector<256x2xf32>
    %92 = arith.addf %89, %91 : vector<256x2xf32>
    %cst_123 = arith.constant 0.000000e+00 : f32
    %93 = vector.broadcast %cst_123 : f32 to vector<256x2xf32>
    %94 = arith.maximumf %92, %93 : vector<256x2xf32>
    %cst_124 = arith.constant 0.000000e+00 : f32
    %95 = vector.broadcast %cst_124 : f32 to vector<18x18x2xf32>
    %c0_125 = arith.constant 0 : index
    %c0_126 = arith.constant 0 : index
    %c0_127 = arith.constant 0 : index
    %96 = vector.load %arg14[%c0_125, %c0_126, %c0_127] : memref<18x18x2xf32, #tpu.memory_space<vmem>>, vector<18x18x2xf32>
    tpu.vector_store %arg14[%c0_125, %c0_126, %c0_127], %95 {strides = array<i32>} : memref<18x18x2xf32, #tpu.memory_space<vmem>>, vector<18x18x2xf32>,
    %97 = vector.shape_cast %94 : vector<256x2xf32> to vector<16x16x2xf32>
    %c1_128 = arith.constant 1 : index
    %c1_129 = arith.constant 1 : index
    %c0_130 = arith.constant 0 : index
    %98 = vector.load %arg14[%c1_128, %c1_129, %c0_130] : memref<18x18x2xf32, #tpu.memory_space<vmem>>, vector<16x16x2xf32>
    tpu.vector_store %arg14[%c1_128, %c1_129, %c0_130], %97 {strides = array<i32>} : memref<18x18x2xf32, #tpu.memory_space<vmem>>, vector<16x16x2xf32>,
    %c0_131 = arith.constant 0 : index
    %c0_132 = arith.constant 0 : index
    %c0_133 = arith.constant 0 : index
    %99 = vector.load %arg14[%c0_131, %c0_132, %c0_133] : memref<18x18x2xf32, #tpu.memory_space<vmem>>, vector<16x16x2xf32>
    %100 = vector.shape_cast %99 : vector<16x16x2xf32> to vector<256x2xf32>
    %c0_134 = arith.constant 0 : index
    %c0_135 = arith.constant 0 : index
    %101 = vector.load %arg16[%c0_134, %c0_135] : memref<256x18xf32, #tpu.memory_space<vmem>>, vector<256x2xf32>
    tpu.vector_store %arg16[%c0_134, %c0_135], %100 {strides = array<i32>} : memref<256x18xf32, #tpu.memory_space<vmem>>, vector<256x2xf32>,
    %c0_136 = arith.constant 0 : index
    %c1_137 = arith.constant 1 : index
    %c0_138 = arith.constant 0 : index
    %102 = vector.load %arg14[%c0_136, %c1_137, %c0_138] : memref<18x18x2xf32, #tpu.memory_space<vmem>>, vector<16x16x2xf32>
    %103 = vector.shape_cast %102 : vector<16x16x2xf32> to vector<256x2xf32>
    %c0_139 = arith.constant 0 : index
    %c2_140 = arith.constant 2 : index
    %104 = vector.load %arg16[%c0_139, %c2_140] : memref<256x18xf32, #tpu.memory_space<vmem>>, vector<256x2xf32>
    tpu.vector_store %arg16[%c0_139, %c2_140], %103 {strides = array<i32>} : memref<256x18xf32, #tpu.memory_space<vmem>>, vector<256x2xf32>,
    %c0_141 = arith.constant 0 : index
    %c2_142 = arith.constant 2 : index
    %c0_143 = arith.constant 0 : index
    %105 = vector.load %arg14[%c0_141, %c2_142, %c0_143] : memref<18x18x2xf32, #tpu.memory_space<vmem>>, vector<16x16x2xf32>
    %106 = vector.shape_cast %105 : vector<16x16x2xf32> to vector<256x2xf32>
    %c0_144 = arith.constant 0 : index
    %c4 = arith.constant 4 : index
    %107 = vector.load %arg16[%c0_144, %c4] : memref<256x18xf32, #tpu.memory_space<vmem>>, vector<256x2xf32>
    tpu.vector_store %arg16[%c0_144, %c4], %106 {strides = array<i32>} : memref<256x18xf32, #tpu.memory_space<vmem>>, vector<256x2xf32>,
    %c1_145 = arith.constant 1 : index
    %c0_146 = arith.constant 0 : index
    %c0_147 = arith.constant 0 : index
    %108 = vector.load %arg14[%c1_145, %c0_146, %c0_147] : memref<18x18x2xf32, #tpu.memory_space<vmem>>, vector<16x16x2xf32>
    %109 = vector.shape_cast %108 : vector<16x16x2xf32> to vector<256x2xf32>
    %c0_148 = arith.constant 0 : index
    %c6 = arith.constant 6 : index
    %110 = vector.load %arg16[%c0_148, %c6] : memref<256x18xf32, #tpu.memory_space<vmem>>, vector<256x2xf32>
    tpu.vector_store %arg16[%c0_148, %c6], %109 {strides = array<i32>} : memref<256x18xf32, #tpu.memory_space<vmem>>, vector<256x2xf32>,
    %c1_149 = arith.constant 1 : index
    %c1_150 = arith.constant 1 : index
    %c0_151 = arith.constant 0 : index
    %111 = vector.load %arg14[%c1_149, %c1_150, %c0_151] : memref<18x18x2xf32, #tpu.memory_space<vmem>>, vector<16x16x2xf32>
    %112 = vector.shape_cast %111 : vector<16x16x2xf32> to vector<256x2xf32>
    %c0_152 = arith.constant 0 : index
    %c8_153 = arith.constant 8 : index
    %113 = vector.load %arg16[%c0_152, %c8_153] : memref<256x18xf32, #tpu.memory_space<vmem>>, vector<256x2xf32>
    tpu.vector_store %arg16[%c0_152, %c8_153], %112 {strides = array<i32>} : memref<256x18xf32, #tpu.memory_space<vmem>>, vector<256x2xf32>,
    %c1_154 = arith.constant 1 : index
    %c2_155 = arith.constant 2 : index
    %c0_156 = arith.constant 0 : index
    %114 = vector.load %arg14[%c1_154, %c2_155, %c0_156] : memref<18x18x2xf32, #tpu.memory_space<vmem>>, vector<16x16x2xf32>
    %115 = vector.shape_cast %114 : vector<16x16x2xf32> to vector<256x2xf32>
    %c0_157 = arith.constant 0 : index
    %c10 = arith.constant 10 : index
    %116 = vector.load %arg16[%c0_157, %c10] : memref<256x18xf32, #tpu.memory_space<vmem>>, vector<256x2xf32>
    tpu.vector_store %arg16[%c0_157, %c10], %115 {strides = array<i32>} : memref<256x18xf32, #tpu.memory_space<vmem>>, vector<256x2xf32>,
    %c2_158 = arith.constant 2 : index
    %c0_159 = arith.constant 0 : index
    %c0_160 = arith.constant 0 : index
    %117 = vector.load %arg14[%c2_158, %c0_159, %c0_160] : memref<18x18x2xf32, #tpu.memory_space<vmem>>, vector<16x16x2xf32>
    %118 = vector.shape_cast %117 : vector<16x16x2xf32> to vector<256x2xf32>
    %c0_161 = arith.constant 0 : index
    %c12 = arith.constant 12 : index
    %119 = vector.load %arg16[%c0_161, %c12] : memref<256x18xf32, #tpu.memory_space<vmem>>, vector<256x2xf32>
    tpu.vector_store %arg16[%c0_161, %c12], %118 {strides = array<i32>} : memref<256x18xf32, #tpu.memory_space<vmem>>, vector<256x2xf32>,
    %c2_162 = arith.constant 2 : index
    %c1_163 = arith.constant 1 : index
    %c0_164 = arith.constant 0 : index
    %120 = vector.load %arg14[%c2_162, %c1_163, %c0_164] : memref<18x18x2xf32, #tpu.memory_space<vmem>>, vector<16x16x2xf32>
    %121 = vector.shape_cast %120 : vector<16x16x2xf32> to vector<256x2xf32>
    %c0_165 = arith.constant 0 : index
    %c14 = arith.constant 14 : index
    %122 = vector.load %arg16[%c0_165, %c14] : memref<256x18xf32, #tpu.memory_space<vmem>>, vector<256x2xf32>
    tpu.vector_store %arg16[%c0_165, %c14], %121 {strides = array<i32>} : memref<256x18xf32, #tpu.memory_space<vmem>>, vector<256x2xf32>,
    %c2_166 = arith.constant 2 : index
    %c2_167 = arith.constant 2 : index
    %c0_168 = arith.constant 0 : index
    %123 = vector.load %arg14[%c2_166, %c2_167, %c0_168] : memref<18x18x2xf32, #tpu.memory_space<vmem>>, vector<16x16x2xf32>
    %124 = vector.shape_cast %123 : vector<16x16x2xf32> to vector<256x2xf32>
    %c0_169 = arith.constant 0 : index
    %c16_170 = arith.constant 16 : index
    %125 = vector.load %arg16[%c0_169, %c16_170] : memref<256x18xf32, #tpu.memory_space<vmem>>, vector<256x2xf32>
    tpu.vector_store %arg16[%c0_169, %c16_170], %124 {strides = array<i32>} : memref<256x18xf32, #tpu.memory_space<vmem>>, vector<256x2xf32>,
    %c0_171 = arith.constant 0 : index
    %c0_172 = arith.constant 0 : index
    %126 = vector.load %arg16[%c0_171, %c0_172] : memref<256x18xf32, #tpu.memory_space<vmem>>, vector<256x18xf32>
    %c0_173 = arith.constant 0 : index
    %c0_174 = arith.constant 0 : index
    %127 = vector.load %arg10[%c0_173, %c0_174] : memref<18x2xf32, #tpu.memory_space<vmem>>, vector<18x2xf32>
    %cst_175 = arith.constant dense<0.000000e+00> : vector<256x2xf32>
    %128 = tpu.matmul %126, %127, %cst_175 {dimension_numbers = #tpu.dot_dimension_numbers<[1], [0], [0], [1], [0, 0, 1, 1], [], []>} : vector<256x18xf32>, vector<18x2xf32>, vector<256x2xf32> -> vector<256x2xf32>
    %c0_176 = arith.constant 0 : index
    %c0_177 = arith.constant 0 : index
    %129 = vector.load %arg11[%c0_176, %c0_177] : memref<1x2xf32, #tpu.memory_space<vmem>>, vector<1x2xf32>
    %130 = vector.broadcast %129 : vector<1x2xf32> to vector<256x2xf32>
    %131 = arith.addf %128, %130 : vector<256x2xf32>
    %cst_178 = arith.constant 0.000000e+00 : f32
    %132 = vector.broadcast %cst_178 : f32 to vector<256x2xf32>
    %133 = arith.maximumf %131, %132 : vector<256x2xf32>
    %c0_179 = arith.constant 0 : index
    %c0_180 = arith.constant 0 : index
    %c0_181 = arith.constant 0 : index
    %c0_182 = arith.constant 0 : index
    %134 = vector.load %arg1[%c0_179, %c0_180, %c0_181, %c0_182] : memref<1x16x16x4xf32, #tpu.memory_space<vmem>>, vector<1x16x16x4xf32>
    %135 = vector.shape_cast %134 : vector<1x16x16x4xf32> to vector<16x16x4xf32>
    %c0_183 = arith.constant 0 : index
    %c0_184 = arith.constant 0 : index
    %c0_185 = arith.constant 0 : index
    %c0_186 = arith.constant 0 : index
    %136 = vector.load %arg12[%c0_183, %c0_184, %c0_185, %c0_186] : memref<1x16x16x8xf32, #tpu.memory_space<vmem>>, vector<1x16x16x4xf32>
    %137 = vector.shape_cast %136 : vector<1x16x16x4xf32> to vector<16x16x4xf32>
    %138 = vector.shape_cast %135 : vector<16x16x4xf32> to vector<1x16x16x4xf32>
    tpu.vector_store %arg12[%c0_183, %c0_184, %c0_185, %c0_186], %138 {strides = array<i32>} : memref<1x16x16x8xf32, #tpu.memory_space<vmem>>, vector<1x16x16x4xf32>,
    %139 = vector.shape_cast %48 : vector<256x2xf32> to vector<16x16x2xf32>
    %c0_187 = arith.constant 0 : index
    %c0_188 = arith.constant 0 : index
    %c0_189 = arith.constant 0 : index
    %c4_190 = arith.constant 4 : index
    %140 = vector.load %arg12[%c0_187, %c0_188, %c0_189, %c4_190] : memref<1x16x16x8xf32, #tpu.memory_space<vmem>>, vector<1x16x16x2xf32>
    %141 = vector.shape_cast %140 : vector<1x16x16x2xf32> to vector<16x16x2xf32>
    %142 = vector.shape_cast %139 : vector<16x16x2xf32> to vector<1x16x16x2xf32>
    tpu.vector_store %arg12[%c0_187, %c0_188, %c0_189, %c4_190], %142 {strides = array<i32>} : memref<1x16x16x8xf32, #tpu.memory_space<vmem>>, vector<1x16x16x2xf32>,
    %143 = vector.shape_cast %133 : vector<256x2xf32> to vector<16x16x2xf32>
    %c0_191 = arith.constant 0 : index
    %c0_192 = arith.constant 0 : index
    %c0_193 = arith.constant 0 : index
    %c6_194 = arith.constant 6 : index
    %144 = vector.load %arg12[%c0_191, %c0_192, %c0_193, %c6_194] : memref<1x16x16x8xf32, #tpu.memory_space<vmem>>, vector<1x16x16x2xf32>
    %145 = vector.shape_cast %144 : vector<1x16x16x2xf32> to vector<16x16x2xf32>
    %146 = vector.shape_cast %143 : vector<16x16x2xf32> to vector<1x16x16x2xf32>
    tpu.vector_store %arg12[%c0_191, %c0_192, %c0_193, %c6_194], %146 {strides = array<i32>} : memref<1x16x16x8xf32, #tpu.memory_space<vmem>>, vector<1x16x16x2xf32>,
    return
  }
  func.func @transform_0(%arg0: i32) -> (i32, i32, i32, i32) {
    %c0_i32 = arith.constant 0 : i32
    %c0_i32_0 = arith.constant 0 : i32
    %c0_i32_1 = arith.constant 0 : i32
    %c0_i32_2 = arith.constant 0 : i32
    return %arg0, %c0_i32, %c0_i32_0, %c0_i32_1 : i32, i32, i32, i32
  }
  func.func @transform_1(%arg0: i32) -> (i32, i32) {
    %c0_i32 = arith.constant 0 : i32
    %c0_i32_0 = arith.constant 0 : i32
    %c0_i32_1 = arith.constant 0 : i32
    return %c0_i32, %c0_i32_0 : i32, i32
  }
  func.func @transform_2(%arg0: i32) -> (i32, i32) {
    %c0_i32 = arith.constant 0 : i32
    %c0_i32_0 = arith.constant 0 : i32
    %c0_i32_1 = arith.constant 0 : i32
    return %c0_i32, %c0_i32_0 : i32, i32
  }
  func.func @transform_3(%arg0: i32) -> (i32, i32) {
    %c0_i32 = arith.constant 0 : i32
    %c0_i32_0 = arith.constant 0 : i32
    %c0_i32_1 = arith.constant 0 : i32
    return %c0_i32, %c0_i32_0 : i32, i32
  }
  func.func @transform_4(%arg0: i32) -> (i32, i32) {
    %c0_i32 = arith.constant 0 : i32
    %c0_i32_0 = arith.constant 0 : i32
    %c0_i32_1 = arith.constant 0 : i32
    return %c0_i32, %c0_i32_0 : i32, i32
  }
  func.func @transform_5(%arg0: i32) -> (i32, i32) {
    %c0_i32 = arith.constant 0 : i32
    %c0_i32_0 = arith.constant 0 : i32
    %c0_i32_1 = arith.constant 0 : i32
    return %c0_i32, %c0_i32_0 : i32, i32
  }
  func.func @transform_6(%arg0: i32) -> (i32, i32) {
    %c0_i32 = arith.constant 0 : i32
    %c0_i32_0 = arith.constant 0 : i32
    %c0_i32_1 = arith.constant 0 : i32
    return %c0_i32, %c0_i32_0 : i32, i32
  }
  func.func @transform_7(%arg0: i32) -> (i32, i32) {
    %c0_i32 = arith.constant 0 : i32
    %c0_i32_0 = arith.constant 0 : i32
    %c0_i32_1 = arith.constant 0 : i32
    return %c0_i32, %c0_i32_0 : i32, i32
  }
  func.func @transform_8(%arg0: i32) -> (i32, i32) {
    %c0_i32 = arith.constant 0 : i32
    %c0_i32_0 = arith.constant 0 : i32
    %c0_i32_1 = arith.constant 0 : i32
    return %c0_i32, %c0_i32_0 : i32, i32
  }
  func.func @transform_9(%arg0: i32) -> (i32, i32) {
    %c0_i32 = arith.constant 0 : i32
    %c0_i32_0 = arith.constant 0 : i32
    %c0_i32_1 = arith.constant 0 : i32
    return %c0_i32, %c0_i32_0 : i32, i32
  }
  func.func @transform_10(%arg0: i32) -> (i32, i32) {
    %c0_i32 = arith.constant 0 : i32
    %c0_i32_0 = arith.constant 0 : i32
    %c0_i32_1 = arith.constant 0 : i32
    return %c0_i32, %c0_i32_0 : i32, i32
  }
  func.func @transform_11(%arg0: i32) -> (i32, i32, i32, i32) {
    %c0_i32 = arith.constant 0 : i32
    %c0_i32_0 = arith.constant 0 : i32
    %c0_i32_1 = arith.constant 0 : i32
    %c0_i32_2 = arith.constant 0 : i32
    return %arg0, %c0_i32, %c0_i32_0, %c0_i32_1 : i32, i32, i32, i32
  }
}

</mosaic_0001>

<bundles_post_ra>
// kernel: dense_layer_forward.1
= control target key start
LH: loop header
LB: loop body
LE: loop exit
PB: predicated region body
PF: predicated region fallthrough
CT: control target
= control target key end

     0   :  { %s8602_s17 = smov 0   ;;  %s12840_s0 = inlined_call_operand.vmem [shape: f32[2,16,16,4], index: 0, kind: input, shape index: {}]   ;;  %s12841_s1 = inlined_call_operand.vmem [shape: f32[4,8], index: 1, kind: input, shape index: {}]   ;;  %s12842_s2 = inlined_call_operand.vmem [shape: f32[1,8], index: 2, kind: input, shape index: {}]   ;;  %s12843_s3 = inlined_call_operand.vmem [shape: f32[72,2], index: 3, kind: input, shape index: {}]   ;;  %s12844_s4 = inlined_call_operand.vmem [shape: f32[1,2], index: 4, kind: input, shape index: {}]   ;;  %s12845_s5 = inlined_call_operand.vmem [shape: f32[4,8], index: 5, kind: input, shape index: {}]   ;;  %s12846_s6 = inlined_call_operand.vmem [shape: f32[1,8], index: 6, kind: input, shape index: {}]   ;;  %s12847_s7 = inlined_call_operand.vmem [shape: f32[72,2], index: 7, kind: input, shape index: {}]   ;;  %s12848_s8 = inlined_call_operand.vmem [shape: f32[1,2], index: 8, kind: input, shape index: {}]   ;;  %s12849_s9 = inlined_call_operand.vmem [shape: f32[18,2], index: 9, kind: input, shape index: {}]   ;;  %s12850_s10 = inlined_call_operand.vmem [shape: f32[1,2], index: 10, kind: input, shape index: {}]   ;;  %s12851_s11 = inlined_call_operand.vmem [shape: f32[2,16,16,8], index: 11, kind: output, shape index: {}]  }
   0x1 LB: > { %s7777_s18 = sadd.s32 4294967295, %s8525_s17   ;;  %p7781_p0 = scmp.ge.s32.totalorder %s8525_s17, 1  ;;  %s8525_s17 = sphi %s8602_s17, %s21_s17  }
   0x2   : > { %p337_p1 = scmp.lt.s32.totalorder %s8525_s17, 3 }
   0x4   : > { %p338_p2 = pnand %p7781_p0, %p337_p1 }
   0x6   : > { %341 = sbr.rel (%p338_p2) target bundleno = 2509 (0x9cd), region = 64 }
   0xd   : > { %v419_v0 = vld [vmem:[%s12841_s1] sm:$0xf]  ;;  %vm524_vm0 = vcmask 1043456   ;;  %p377_p3 = scmp.lt.s32.totalorder %s7777_s18, 1  ;;  %vm427_vm1 = vcmask 31744   ;;  %vm785_vm2 = vcmask 64512  }
   0xe   : > { %8141 = vmatprep.subr.msk.mxu0 %vm524_vm0, %v419_v0  ;;  %8463 = vmatprep.subr.msk.mxu1 %vm524_vm0, %v419_v0  ;;  %v12852_v29 = vmov 0.0   ;;  %vm788_vm3 = vcmask 58368   ;;  %s8528_s25 = smov 8   ;;  %s8529_s26 = smov 16   ;;  %vm1098_vm4 = vcmask 130112   ;;  %vm1291_vm5 = vcmask 195712  }
   0xf   : > { %8142 = vmatpush3.msk.msra.mxu0 %vm524_vm0, %v419_v0  ;;  %8464 = vmatpush3.msk.msra.mxu1 %vm524_vm0, %v419_v0  ;;  %s13118_s18 = smov (!%p377_p3, %s7777_s18), 1  ;;  %791 = vst.msk [vmem:[#allocation2 + $0x20] sm:$0xff] %vm785_vm2, %v12852_v29  ;;  %786 = vst.msk [vmem:[#allocation2] sm:$0xff] %vm785_vm2, %v12852_v29  ;;  %v8823_v44 = vld [vmem:[%s12842_s2] ss:$0 sm:$0xff]  ;;  %s8530_s29 = smov 24  }
  0x10   : > { %s7956_s21 = sshll.u32 %s13118_s18, 8  ;;  %787 = vst.msk [vmem:[#allocation2 + $0x8] sm:$0xff] %vm785_vm2, %v12852_v29  ;;  %790 = vst.msk [vmem:[#allocation2 + $0x18] sm:$0xff] %vm785_vm2, %v12852_v29  ;;  %s8531_s30 = smov 32   ;;  %vm1484_vm6 = vcmask 261312   ;;  %vm1677_vm7 = vcmask 326912  }
  0x11   : > { %s8625_s24 = scalar_lea.vmem %s12840_s0, %s7956_s21  ;;  %793 = vst.msk [vmem:[#allocation2 + $0x30] sm:$0xff] %vm785_vm2, %v12852_v29  ;;  %794 = vst.msk [vmem:[#allocation2 + $0x38] sm:$0xff] %vm785_vm2, %v12852_v29  ;;  %s8532_s12 = smov 40   ;;  %vm1870_vm8 = vcmask 392512   ;;  %vm2064_vm9 = vcmask 458112   ;;  %vm2257_vm10 = vcmask 523712  }
  0x12   : > { %v8628_v1 = vld [vmem:[%s8625_s24] sm:$0xff]  ;;  %v388_v3 = vld [vmem:[%s8625_s24 + $0x8] sm:$0xff]  ;;  %v389_v5 = vld [vmem:[%s8625_s24 + $0x10] sm:$0xff]  ;;  %796 = vst.msk [vmem:[#allocation2 + $0x48] sm:$0xff] %vm785_vm2, %v12852_v29  ;;  %s8533_s15 = smov 48   ;;  %s8534_s20 = smov 56  }
  0x13   : > { %v403_v2 = vld [vmem:[%s8625_s24 + $0x80] sm:$0xff]  ;;  %8143 = vmatprep.mubr.msk.f32.mxu0 %vm427_vm1, %v8628_v1  ;;  %v404_v4 = vld [vmem:[%s8625_s24 + $0x88] sm:$0xff]  ;;  %v405_v6 = vld [vmem:[%s8625_s24 + $0x90] sm:$0xff]  ;;  %797 = vst.msk [vmem:[#allocation2 + $0x50] sm:$0xff] %vm785_vm2, %v12852_v29  ;;  %s8535_s27 = smov 64   ;;  %vm2450_vm11 = vcmask 589312  }
  0x14   : > { %8167 = vmatprep.mubr.msk.f32.mxu1 %vm427_vm1, %v403_v2  ;;  %8144 = vmatmul.mubr.msk.f32.vlgmr.msra.gmra.mrb[0].mxu0 %vm427_vm1, %v388_v3  ;;  %v390_v7 = vld [vmem:[%s8625_s24 + $0x18] sm:$0xff]  ;;  %v391_v9 = vld [vmem:[%s8625_s24 + $0x20] sm:$0xff]  ;;  %v392_v11 = vld [vmem:[%s8625_s24 + $0x28] sm:$0xff]  ;;  %799 = vst.msk [vmem:[#allocation2 + $0x60] sm:$0xff] %vm785_vm2, %v12852_v29  ;;  %vm2531_vm12 = vcmask 588800   ;;  %vm5240_vm13 = vcmask 15360  }
  0x15   : > { %8168 = vmatmul.mubr.msk.f32.vlgmr.msra.gmra.mrb[0].mxu1 %vm427_vm1, %v404_v4  ;;  %8146 = vmatprep.mubr.msk.f32.mxu0 %vm427_vm1, %v389_v5  ;;  %v406_v8 = vld [vmem:[%s8625_s24 + $0x98] sm:$0xff]  ;;  %v407_v10 = vld [vmem:[%s8625_s24 + $0xa0] sm:$0xff]  ;;  %v408_v12 = vld [vmem:[%s8625_s24 + $0xa8] sm:$0xff]  ;;  %800 = vst.msk [vmem:[#allocation2 + $0x68] sm:$0xff] %vm785_vm2, %v12852_v29  ;;  %vm5243_vm14 = vcmask 9216   ;;  %vm5553_vm15 = vcmask 31760  }
  0x16   : > { %8170 = vmatprep.mubr.msk.f32.mxu1 %vm427_vm1, %v405_v6  ;;  %v393_v13 = vld [vmem:[%s8625_s24 + $0x30] sm:$0xff]  ;;  %v394_v15 = vld [vmem:[%s8625_s24 + $0x38] sm:$0xff]  ;;  %v395_v17 = vld [vmem:[%s8625_s24 + $0x40] sm:$0xff]  ;;  %802 = vst.msk [vmem:[#allocation2 + $0x78] sm:$0xff] %vm785_vm2, %v12852_v29  ;;  %s8537_s19 = smov 4   ;;  %s8538_s22 = smov 6  }
  0x17   : > { %v409_v14 = vld [vmem:[%s8625_s24 + $0xb0] sm:$0xff]  ;;  %v410_v16 = vld [vmem:[%s8625_s24 + $0xb8] sm:$0xff]  ;;  %v411_v18 = vld [vmem:[%s8625_s24 + $0xc0] sm:$0xff]  ;;  %803 = vst.msk [vmem:[#allocation2 + $0x80] sm:$0xff] %vm785_vm2, %v12852_v29  ;;  %s8539_s23 = smov 10   ;;  %s8541_s13 = smov 14  }
  0x18   : > { %8147 = vmatmul.mubr.msk.f32.gmra.mrb[2].mxu0 %vm427_vm1, %v390_v7  ;;  %v396_v19 = vld [vmem:[%s8625_s24 + $0x48] sm:$0xff]  ;;  %v397_v21 = vld [vmem:[%s8625_s24 + $0x50] sm:$0xff]  ;;  %v398_v23 = vld [vmem:[%s8625_s24 + $0x58] sm:$0xff]  ;;  %805 = vst.msk [vmem:[#allocation2 + $0x90] sm:$0xff] %vm785_vm2, %v12852_v29 }
  0x19   : > { %8171 = vmatmul.mubr.msk.f32.gmra.mrb[2].mxu1 %vm427_vm1, %v406_v8  ;;  %8149 = vmatprep.mubr.msk.f32.mxu0 %vm427_vm1, %v391_v9  ;;  %v412_v20 = vld [vmem:[%s8625_s24 + $0xc8] sm:$0xff]  ;;  %v413_v22 = vld [vmem:[%s8625_s24 + $0xd0] sm:$0xff]  ;;  %v414_v24 = vld [vmem:[%s8625_s24 + $0xd8] sm:$0xff]  ;;  %806 = vst.msk [vmem:[#allocation2 + $0x98] sm:$0xff] %vm785_vm2, %v12852_v29 }
  0x1a   : > { %8173 = vmatprep.mubr.msk.f32.mxu1 %vm427_vm1, %v407_v10  ;;  %v399_v25 = vld [vmem:[%s8625_s24 + $0x60] sm:$0xff]  ;;  %v400_v27 = vld [vmem:[%s8625_s24 + $0x68] sm:$0xff]  ;;  %808 = vst.msk [vmem:[#allocation2 + $0xa8] sm:$0xff] %vm785_vm2, %v12852_v29  ;;  %809 = vst.msk [vmem:[#allocation2 + $0xb0] sm:$0xff] %vm785_vm2, %v12852_v29 }
  0x1b   : > { %v415_v26 = vld [vmem:[%s8625_s24 + $0xe0] sm:$0xff]  ;;  %v416_v28 = vld [vmem:[%s8625_s24 + $0xe8] sm:$0xff]  ;;  %811 = vst.msk [vmem:[#allocation2 + $0xc0] sm:$0xff] %vm785_vm2, %v12852_v29  ;;  %812 = vst.msk [vmem:[#allocation2 + $0xc8] sm:$0xff] %vm785_vm2, %v12852_v29 }
  0x1c   : > { %8150 = vmatmul.mubr.msk.f32.gmra.mrb[4].mxu0 %vm427_vm1, %v392_v11  ;;  %814 = vst.msk [vmem:[#allocation2 + $0xd8] sm:$0xff] %vm785_vm2, %v12852_v29  ;;  %815 = vst.msk [vmem:[#allocation2 + $0xe0] sm:$0xff] %vm785_vm2, %v12852_v29  ;;  %v938_v30 = vld [vmem:[#allocation2 + $0x1] sm:$0xff]  ;;  %v401_v34 = vld [vmem:[%s8625_s24 + $0x70] sm:$0xff] }
  0x1d   : > { %8174 = vmatmul.mubr.msk.f32.gmra.mrb[4].mxu1 %vm427_vm1, %v408_v12  ;;  %8152 = vmatprep.mubr.msk.f32.mxu0 %vm427_vm1, %v393_v13  ;;  %817 = vst.msk [vmem:[#allocation2 + $0xf0] sm:$0xff] %vm785_vm2, %v12852_v29  ;;  %818 = vst.msk [vmem:[#allocation2 + $0xf8] sm:$0xff] %vm785_vm2, %v12852_v29  ;;  %v1131_v33 = vld [vmem:[#allocation2 + $0x2] sm:$0xff]  ;;  %v402_v35 = vld [vmem:[%s8625_s24 + $0x78] sm:$0xff] }
  0x1e   : > { %8176 = vmatprep.mubr.msk.f32.mxu1 %vm427_vm1, %v409_v14  ;;  %820 = vst.msk [vmem:[#allocation2 + $0x108] sm:$0xff] %vm785_vm2, %v12852_v29  ;;  %821 = vst.msk [vmem:[#allocation2 + $0x110] sm:$0xff] %vm785_vm2, %v12852_v29  ;;  %1002 = vrot.lane.b32.xlu0 %v938_v30, %s8528_s25  ;;  %v417_v36 = vld [vmem:[%s8625_s24 + $0xf0] sm:$0xff]  ;;  %v418_v37 = vld [vmem:[%s8625_s24 + $0xf8] sm:$0xff] }
  0x1f   : > { %823 = vst.msk [vmem:[#allocation2 + $0x120] sm:$0xff] %vm785_vm2, %v12852_v29  ;;  %824 = vst.msk [vmem:[#allocation2 + $0x128] sm:$0xff] %vm785_vm2, %v12852_v29  ;;  %v874_v38 = vld [vmem:[#allocation2] sm:$0xff]  ;;  %v875_v40 = vld [vmem:[#allocation2 + $0x8] sm:$0xff] }
  0x20   : > { %8153 = vmatmul.mubr.msk.f32.gmra.mrb[6].mxu0 %vm427_vm1, %v394_v15  ;;  %826 = vst.msk [vmem:[#allocation2 + $0x138] sm:$0xff] %vm785_vm2, %v12852_v29  ;;  %827 = vst.msk [vmem:[#allocation2 + $0x140] sm:$0xff] %vm785_vm2, %v12852_v29 }
  0x21   : > { %8177 = vmatmul.mubr.msk.f32.gmra.mrb[6].mxu1 %vm427_vm1, %v410_v16  ;;  %8155 = vmatprep.mubr.msk.f32.mxu0 %vm427_vm1, %v395_v17  ;;  %829 = vst.msk [vmem:[#allocation2 + $0x150] sm:$0xff] %vm785_vm2, %v12852_v29  ;;  %830 = vst.msk [vmem:[#allocation2 + $0x158] sm:$0xff] %vm785_vm2, %v12852_v29 }
  0x22   : > { %8179 = vmatprep.mubr.msk.f32.mxu1 %vm427_vm1, %v411_v18  ;;  %832 = vst.msk [vmem:[#allocation2 + $0x168] sm:$0xff] %vm785_vm2, %v12852_v29  ;;  %833 = vst.msk [vmem:[#allocation2 + $0x170] sm:$0xff] %vm785_vm2, %v12852_v29 }
  0x23   : > { %835 = vst.msk [vmem:[#allocation2 + $0x180] sm:$0xff] %vm785_vm2, %v12852_v29  ;;  %836 = vst.msk [vmem:[#allocation2 + $0x188] sm:$0xff] %vm785_vm2, %v12852_v29 }
  0x24   : > { %8156 = vmatmul.mubr.msk.f32.gmra.mrb[8].mxu0 %vm427_vm1, %v396_v19  ;;  %838 = vst.msk [vmem:[#allocation2 + $0x198] sm:$0xff] %vm785_vm2, %v12852_v29  ;;  %839 = vst.msk [vmem:[#allocation2 + $0x1a0] sm:$0xff] %vm785_vm2, %v12852_v29 }
  0x25   : > { %8180 = vmatmul.mubr.msk.f32.gmra.mrb[8].mxu1 %vm427_vm1, %v412_v20  ;;  %8158 = vmatprep.mubr.msk.f32.mxu0 %vm427_vm1, %v397_v21  ;;  %792 = vst.msk [vmem:[#allocation2 + $0x28] sm:$0x3] %vm788_vm3, %v12852_v29  ;;  %789 = vst.msk [vmem:[#allocation2 + $0x10] sm:$0x3] %vm788_vm3, %v12852_v29 }
  0x26   : > { %8182 = vmatprep.mubr.msk.f32.mxu1 %vm427_vm1, %v413_v22  ;;  %795 = vst.msk [vmem:[#allocation2 + $0x40] sm:$0x3] %vm788_vm3, %v12852_v29  ;;  %798 = vst.msk [vmem:[#allocation2 + $0x58] sm:$0x3] %vm788_vm3, %v12852_v29 }
  0x27   : > { %801 = vst.msk [vmem:[#allocation2 + $0x70] sm:$0x3] %vm788_vm3, %v12852_v29  ;;  %804 = vst.msk [vmem:[#allocation2 + $0x88] sm:$0x3] %vm788_vm3, %v12852_v29 }
  0x28   : > { %8159 = vmatmul.mubr.msk.f32.gmra.mrb[10].mxu0 %vm427_vm1, %v398_v23  ;;  %807 = vst.msk [vmem:[#allocation2 + $0xa0] sm:$0x3] %vm788_vm3, %v12852_v29  ;;  %810 = vst.msk [vmem:[#allocation2 + $0xb8] sm:$0x3] %vm788_vm3, %v12852_v29 }
  0x29   : > { %8183 = vmatmul.mubr.msk.f32.gmra.mrb[10].mxu1 %vm427_vm1, %v414_v24  ;;  %8161 = vmatprep.mubr.msk.f32.mxu0 %vm427_vm1, %v399_v25  ;;  %813 = vst.msk [vmem:[#allocation2 + $0xd0] sm:$0x3] %vm788_vm3, %v12852_v29  ;;  %816 = vst.msk [vmem:[#allocation2 + $0xe8] sm:$0x3] %vm788_vm3, %v12852_v29 }
  0x2a   : > { %8185 = vmatprep.mubr.msk.f32.mxu1 %vm427_vm1, %v415_v26  ;;  %819 = vst.msk [vmem:[#allocation2 + $0x100] sm:$0x3] %vm788_vm3, %v12852_v29  ;;  %822 = vst.msk [vmem:[#allocation2 + $0x118] sm:$0x3] %vm788_vm3, %v12852_v29 }
  0x2b   : > { %825 = vst.msk [vmem:[#allocation2 + $0x130] sm:$0x3] %vm788_vm3, %v12852_v29  ;;  %828 = vst.msk [vmem:[#allocation2 + $0x148] sm:$0x3] %vm788_vm3, %v12852_v29 }
  0x2c   : > { %8162 = vmatmul.mubr.msk.f32.gmra.mrb[12].mxu0 %vm427_vm1, %v400_v27  ;;  %831 = vst.msk [vmem:[#allocation2 + $0x160] sm:$0x3] %vm788_vm3, %v12852_v29  ;;  %834 = vst.msk [vmem:[#allocation2 + $0x178] sm:$0x3] %vm788_vm3, %v12852_v29  ;;  %v939_v31 = vld [vmem:[#allocation2 + $0x9] sm:$0xff] }
  0x2d   : > { %8186 = vmatmul.mubr.msk.f32.gmra.mrb[12].mxu1 %vm427_vm1, %v416_v28  ;;  %837 = vst.msk [vmem:[#allocation2 + $0x190] sm:$0x3] %vm788_vm3, %v12852_v29  ;;  %840 = vst.msk [vmem:[#allocation2 + $0x1a8] sm:$0x3] %vm788_vm3, %v12852_v29  ;;  %1004 = vrot.lane.b32.xlu0 %v939_v31, %s8528_s25  ;;  %v1132_v32 = vld [vmem:[#allocation2 + $0xa] sm:$0xff] }
  0x2e   : > { %1197 = vrot.lane.b32.xlu1 %v1132_v32, %s8529_s26  ;;  %3155 = vst.msk [vmem:[#allocation2 + $0x10] sm:$0x3] %vm788_vm3, %v12852_v29  ;;  %8164 = vmatprep.mubr.msk.f32.mxu0 %vm427_vm1, %v401_v34 }
  0x2f   : > { %8188 = vmatprep.mubr.msk.f32.mxu1 %vm427_vm1, %v417_v36  ;;  %906 = vst.msk [vmem:[#allocation4] sm:$0xff] %vm785_vm2, %v874_v38  ;;  %3153 = vst.msk [vmem:[#allocation2] sm:$0xff] %vm785_vm2, %v12852_v29 }
  0x30   : > { %8165 = vmatmul.mubr.msk.f32.gmra.mrb[14].mxu0 %vm427_vm1, %v402_v35  ;;  %907 = vst.msk [vmem:[#allocation4 + $0x8] sm:$0xff] %vm785_vm2, %v875_v40  ;;  %3154 = vst.msk [vmem:[#allocation2 + $0x8] sm:$0xff] %vm785_vm2, %v12852_v29 }
  0x31   : > { %1195 = vrot.lane.b32.xlu0 %v1131_v33, %s8529_s26  ;;  %8259 = vmatprep.mubr.msk.f32.mxu0 %vm427_vm1, %v8628_v1 }
  0x32   : > { %8189 = vmatmul.mubr.msk.f32.gmra.mrb[14].mxu1 %vm427_vm1, %v418_v37 }
  0x90   : > { %v1003_v39 = vpop.permute.xlu0 %1002 }
  0x91   : > { %1099 = vst.msk [vmem:[#allocation4] sm:$0xff] %vm1098_vm4, %v1003_v39 }
  0x9f   : > { %v1005_v41 = vpop.permute.xlu0 %1004 }
  0xa0   : > { %1100 = vst.msk [vmem:[#allocation4 + $0x8] sm:$0xff] %vm1098_vm4, %v1005_v41  ;;  %v1198_v42 = vpop.permute.xlu1 %1197 }
  0xa1   : > { %1293 = vst.msk [vmem:[#allocation4 + $0x8] sm:$0xff] %vm1291_vm5, %v1198_v42 }
  0xa3   : > { %v1196_v43 = vpop.permute.xlu0 %1195 }
  0xa4   : > { %1292 = vst.msk [vmem:[#allocation4] sm:$0xff] %vm1291_vm5, %v1196_v43 }
  0xe7   : > { %v8145_v45 = vpop.f32.mrb[0].mxu0 }
  0xe8   : > { %v8169_v46 = vpop.f32.mrb[0].mxu1  ;;  %v600_v47 = vadd.f32 %v8145_v45, %v8823_v44  ;;  %v594_v49 = vpop.f32.mrb[1].mxu0 }
  0xe9   : > { %v680_v48 = vadd.f32 %v8169_v46, %v8823_v44  ;;  %v674_v50 = vpop.f32.mrb[1].mxu1  ;;  %v595_v51 = vadd.f32 %v8823_v44, %v594_v49 }
  0xea   : > { %v675_v52 = vadd.f32 %v8823_v44, %v674_v50  ;;  %v754_v53 = vmax.f32 %v600_v47, 0.0 }
  0xeb   : > { %v770_v54 = vmax.f32 %v680_v48, 0.0  ;;  %v753_v55 = vmax.f32 %v595_v51, 0.0  ;;  %v8148_v57 = vpop.f32.mrb[2].mxu0 }
  0xec   : > { %v769_v56 = vmax.f32 %v675_v52, 0.0  ;;  %v8172_v58 = vpop.f32.mrb[2].mxu1  ;;  %843 = vst.msk [vmem:[#allocation2 + $0x21] sm:$0xff] %vm785_vm2, %v754_v53  ;;  %v610_v59 = vadd.f32 %v8148_v57, %v8823_v44  ;;  %v604_v60 = vpop.f32.mrb[3].mxu0 }
  0xed   : > { %859 = vst.msk [vmem:[#allocation2 + $0xe1] sm:$0xff] %vm785_vm2, %v770_v54  ;;  %v690_v61 = vadd.f32 %v8172_v58, %v8823_v44  ;;  %v684_v62 = vpop.f32.mrb[3].mxu1  ;;  %842 = vst.msk [vmem:[#allocation2 + $0x19] sm:$0xff] %vm785_vm2, %v753_v55  ;;  %v605_v63 = vadd.f32 %v8823_v44, %v604_v60 }
  0xee   : > { %858 = vst.msk [vmem:[#allocation2 + $0xd9] sm:$0xff] %vm785_vm2, %v769_v56  ;;  %v685_v0 = vadd.f32 %v8823_v44, %v684_v62  ;;  %v756_v1 = vmax.f32 %v610_v59, 0.0 }
  0xef   : > { %v772_v2 = vmax.f32 %v690_v61, 0.0  ;;  %v755_v3 = vmax.f32 %v605_v63, 0.0  ;;  %v8151_v5 = vpop.f32.mrb[4].mxu0 }
  0xf0   : > { %v771_v4 = vmax.f32 %v685_v0, 0.0  ;;  %v8175_v6 = vpop.f32.mrb[4].mxu1  ;;  %845 = vst.msk [vmem:[#allocation2 + $0x39] sm:$0xff] %vm785_vm2, %v756_v1  ;;  %v620_v7 = vadd.f32 %v8151_v5, %v8823_v44  ;;  %v614_v8 = vpop.f32.mrb[5].mxu0 }
  0xf1   : > { %861 = vst.msk [vmem:[#allocation2 + $0xf9] sm:$0xff] %vm785_vm2, %v772_v2  ;;  %v700_v9 = vadd.f32 %v8175_v6, %v8823_v44  ;;  %v694_v10 = vpop.f32.mrb[5].mxu1  ;;  %844 = vst.msk [vmem:[#allocation2 + $0x31] sm:$0xff] %vm785_vm2, %v755_v3  ;;  %v615_v11 = vadd.f32 %v8823_v44, %v614_v8 }
  0xf2   : > { %860 = vst.msk [vmem:[#allocation2 + $0xf1] sm:$0xff] %vm785_vm2, %v771_v4  ;;  %v695_v12 = vadd.f32 %v8823_v44, %v694_v10  ;;  %v758_v13 = vmax.f32 %v620_v7, 0.0 }
  0xf3   : > { %v774_v14 = vmax.f32 %v700_v9, 0.0  ;;  %v8845_v15 = vld [vmem:[#allocation2 + $0x21] sm:$0xff]  ;;  %v757_v17 = vmax.f32 %v615_v11, 0.0  ;;  %v8154_v19 = vpop.f32.mrb[6].mxu0 }
  0xf4   : > { %v8847_v16 = vld [vmem:[#allocation2 + $0x22] sm:$0xff]  ;;  %v773_v18 = vmax.f32 %v695_v12, 0.0  ;;  %1008 = vrot.lane.b32.xlu1 %v8845_v15, %s8528_s25  ;;  %847 = vst.msk [vmem:[#allocation2 + $0x51] sm:$0xff] %vm785_vm2, %v758_v13  ;;  %v630_v22 = vadd.f32 %v8154_v19, %v8823_v44  ;;  %v624_v23 = vpop.f32.mrb[7].mxu0  ;;  %v8178_v24 = vpop.f32.mrb[6].mxu1  ;;  %v8862_v25 = vld [vmem:[#allocation2 + $0x1a] sm:$0xff] }
  0xf5   : > { %v8851_v20 = vld [vmem:[#allocation2 + $0xd9] sm:$0xff]  ;;  %v8853_v21 = vld [vmem:[#allocation2 + $0xe1] sm:$0xff]  ;;  %3158 = vst.msk [vmem:[#allocation2 + $0x28] sm:$0x3] %vm788_vm3, %v12852_v29  ;;  %v625_v28 = vadd.f32 %v8823_v44, %v624_v23  ;;  %v710_v30 = vadd.f32 %v8178_v24, %v8823_v44  ;;  %v704_v31 = vpop.f32.mrb[7].mxu1 }
  0xf6   : > { %863 = vst.msk [vmem:[#allocation2 + $0x111] sm:$0xff] %vm785_vm2, %v774_v14  ;;  %1038 = vrot.lane.b32.xlu0 %v8851_v20, %s8528_s25  ;;  %v8864_v26 = vld [vmem:[#allocation2 + $0x18] sm:$0xff]  ;;  %846 = vst.msk [vmem:[#allocation2 + $0x49] sm:$0xff] %vm785_vm2, %v757_v17  ;;  %v8874_v33 = vld [vmem:[#allocation2 + $0x20] sm:$0xff]  ;;  %v760_v35 = vmax.f32 %v630_v22, 0.0  ;;  %v705_v36 = vadd.f32 %v8823_v44, %v704_v31 }
  0xf7   : > { %v8866_v27 = vld [vmem:[#allocation2 + $0xd8] sm:$0xff]  ;;  %862 = vst.msk [vmem:[#allocation2 + $0x109] sm:$0xff] %vm785_vm2, %v773_v18  ;;  %v8876_v34 = vld [vmem:[#allocation2 + $0xe0] sm:$0xff]  ;;  %908 = vst.msk [vmem:[#allocation4 + $0x10] sm:$0xff] %vm785_vm2, %v8864_v26  ;;  %v759_v37 = vmax.f32 %v625_v28, 0.0  ;;  %v776_v38 = vmax.f32 %v710_v30, 0.0 }
  0xf8   : > { %v8872_v32 = vld [vmem:[#allocation2 + $0x19] sm:$0xff]  ;;  %924 = vst.msk [vmem:[#allocation4 + $0x90] sm:$0xff] %vm785_vm2, %v8866_v27  ;;  %909 = vst.msk [vmem:[#allocation4 + $0x18] sm:$0xff] %vm785_vm2, %v8874_v33  ;;  %v8157_v39 = vpop.f32.mrb[8].mxu0  ;;  %1040 = vrot.lane.b32.xlu1 %v8853_v21, %s8528_s25  ;;  %v775_v40 = vmax.f32 %v705_v36, 0.0  ;;  %v8181_v43 = vpop.f32.mrb[8].mxu1 }
  0xf9   : > { %3157 = vst.msk [vmem:[#allocation2 + $0x20] sm:$0xff] %vm785_vm2, %v12852_v29  ;;  %925 = vst.msk [vmem:[#allocation4 + $0x98] sm:$0xff] %vm785_vm2, %v8876_v34  ;;  %v640_v41 = vadd.f32 %v8157_v39, %v8823_v44  ;;  %v634_v42 = vpop.f32.mrb[9].mxu0  ;;  %v8897_v45 = vld [vmem:[#allocation2 + $0x30] sm:$0xff]  ;;  %v720_v47 = vadd.f32 %v8181_v43, %v8823_v44  ;;  %v714_v48 = vpop.f32.mrb[9].mxu1  ;;  %v8905_v50 = vld [vmem:[#allocation2 + $0x38] sm:$0xff] }
  0xfa   : > { %3156 = vst.msk [vmem:[#allocation2 + $0x18] sm:$0xff] %vm785_vm2, %v12852_v29  ;;  %849 = vst.msk [vmem:[#allocation2 + $0x69] sm:$0xff] %vm785_vm2, %v760_v35  ;;  %1199 = vrot.lane.b32.xlu0 %v8862_v25, %s8529_s26  ;;  %v635_v46 = vadd.f32 %v8823_v44, %v634_v42  ;;  %v8903_v49 = vld [vmem:[#allocation2 + $0xf0] sm:$0xff]  ;;  %v8907_v51 = vld [vmem:[#allocation2 + $0xf8] sm:$0xff]  ;;  %v715_v53 = vadd.f32 %v8823_v44, %v714_v48 }
  0xfb   : > { %848 = vst.msk [vmem:[#allocation2 + $0x61] sm:$0xff] %vm785_vm2, %v759_v37  ;;  %865 = vst.msk [vmem:[#allocation2 + $0x129] sm:$0xff] %vm785_vm2, %v776_v38  ;;  %v762_v52 = vmax.f32 %v640_v41, 0.0  ;;  %v778_v55 = vmax.f32 %v720_v47, 0.0  ;;  %v1149_v56 = vld [vmem:[#allocation2 + $0xda] sm:$0xff]  ;;  %v1150_v62 = vld [vmem:[#allocation2 + $0xe2] sm:$0xff] }
  0xfc   : > { %864 = vst.msk [vmem:[#allocation2 + $0x121] sm:$0xff] %vm785_vm2, %v775_v40  ;;  %910 = vst.msk [vmem:[#allocation4 + $0x20] sm:$0xff] %vm785_vm2, %v8897_v45  ;;  %v761_v54 = vmax.f32 %v635_v46, 0.0  ;;  %1201 = vrot.lane.b32.xlu1 %v8847_v16, %s8529_s26  ;;  %v777_v57 = vmax.f32 %v715_v53, 0.0  ;;  %v8160_v7 = vpop.f32.mrb[10].mxu0  ;;  %v8990_v10 = vld [vmem:[#allocation2 + $0xf1] sm:$0xff] }
  0xfd   : > { %926 = vst.msk [vmem:[#allocation4 + $0xa0] sm:$0xff] %vm785_vm2, %v8903_v49  ;;  %911 = vst.msk [vmem:[#allocation4 + $0x28] sm:$0xff] %vm785_vm2, %v8905_v50  ;;  %v8923_v58 = vld [vmem:[#allocation2 + $0x48] sm:$0xff]  ;;  %v8929_v60 = vld [vmem:[#allocation2 + $0x50] sm:$0xff]  ;;  %v650_v8 = vadd.f32 %v8160_v7, %v8823_v44  ;;  %v644_v9 = vpop.f32.mrb[11].mxu0  ;;  %v8184_v30 = vpop.f32.mrb[10].mxu1 }
  0xfe   : > { %927 = vst.msk [vmem:[#allocation4 + $0xa8] sm:$0xff] %vm785_vm2, %v8907_v51  ;;  %851 = vst.msk [vmem:[#allocation2 + $0x81] sm:$0xff] %vm785_vm2, %v762_v52  ;;  %1231 = vrot.lane.b32.xlu0 %v1149_v56, %s8529_s26  ;;  %v8927_v59 = vld [vmem:[#allocation2 + $0x108] sm:$0xff]  ;;  %v8931_v61 = vld [vmem:[#allocation2 + $0x110] sm:$0xff]  ;;  %v645_v13 = vadd.f32 %v8823_v44, %v644_v9  ;;  %v730_v41 = vadd.f32 %v8184_v30, %v8823_v44  ;;  %v724_v42 = vpop.f32.mrb[11].mxu1 }
  0xff   : > { %850 = vst.msk [vmem:[#allocation2 + $0x79] sm:$0xff] %vm785_vm2, %v761_v54  ;;  %867 = vst.msk [vmem:[#allocation2 + $0x141] sm:$0xff] %vm785_vm2, %v778_v55  ;;  %v8992_v11 = vld [vmem:[#allocation2 + $0xf2] sm:$0xff]  ;;  %v764_v12 = vmax.f32 %v650_v8, 0.0  ;;  %v8995_v14 = vld [vmem:[#allocation2 + $0xda] sm:$0xff]  ;;  %v725_v8 = vadd.f32 %v8823_v44, %v724_v42 }
 0x100   : > { %866 = vst.msk [vmem:[#allocation2 + $0x139] sm:$0xff] %vm785_vm2, %v777_v57  ;;  %912 = vst.msk [vmem:[#allocation4 + $0x30] sm:$0xff] %vm785_vm2, %v8923_v58  ;;  %1233 = vrot.lane.b32.xlu1 %v1150_v62, %s8529_s26  ;;  %v8999_v17 = vld [vmem:[#allocation2 + $0xd8] sm:$0xff]  ;;  %v9005_v19 = vld [vmem:[#allocation2 + $0x109] sm:$0xff]  ;;  %v763_v28 = vmax.f32 %v645_v13, 0.0 }
 0x101   : > { %928 = vst.msk [vmem:[#allocation4 + $0xb0] sm:$0xff] %vm785_vm2, %v8927_v59  ;;  %913 = vst.msk [vmem:[#allocation4 + $0x38] sm:$0xff] %vm785_vm2, %v8929_v60  ;;  %v9001_v18 = vld [vmem:[#allocation2 + $0xf9] sm:$0xff]  ;;  %v9011_v22 = vld [vmem:[#allocation2 + $0x10a] sm:$0xff] }
 0x102   : > { %929 = vst.msk [vmem:[#allocation4 + $0xb8] sm:$0xff] %vm785_vm2, %v8931_v61  ;;  %1388 = vrot.lane.b32.xlu0 %v8864_v26, %s8530_s29  ;;  %v8945_v63 = vld [vmem:[#allocation2 + $0x60] sm:$0xff]  ;;  %v8949_v1 = vld [vmem:[#allocation2 + $0x68] sm:$0xff]  ;;  %12885 = vst [vmem:[#allocation7_spill] sm:$0xff] %v8999_v17 }
 0x103   : > { %v8947_v0 = vld [vmem:[#allocation2 + $0x120] sm:$0xff]  ;;  %12884 = vst [vmem:[#allocation6_spill] sm:$0xff] %v8949_v1  ;;  %914 = vst.msk [vmem:[#allocation4 + $0x40] sm:$0xff] %vm785_vm2, %v8945_v63  ;;  %v8953_v2 = vld [vmem:[#allocation2 + $0x128] sm:$0xff] }
 0x104   : > { %930 = vst.msk [vmem:[#allocation4 + $0xc0] sm:$0xff] %vm785_vm2, %v8947_v0  ;;  %915 = vst.msk [vmem:[#allocation4 + $0x48] sm:$0xff] %vm785_vm2, %v8949_v1  ;;  %1583 = vrot.lane.b32.xlu1 %v8845_v15, %s8531_s30  ;;  %v8997_v15 = vld [vmem:[#allocation2 + $0xf2] sm:$0xff]  ;;  %v9013_v23 = vld [vmem:[#allocation2 + $0xfa] sm:$0xff] }
 0x105   : > { %931 = vst.msk [vmem:[#allocation4 + $0xc8] sm:$0xff] %vm785_vm2, %v8953_v2  ;;  %12887 = vst [vmem:[#allocation9_spill] sm:$0xff] %v9011_v22  ;;  %v9015_v24 = vld [vmem:[#allocation2 + $0xf0] sm:$0xff]  ;;  %v9017_v26 = vld [vmem:[#allocation2 + $0xe0] sm:$0xff] }
 0x106   : > { %1420 = vrot.lane.b32.xlu0 %v8866_v27, %s8530_s29  ;;  %v8965_v3 = vld [vmem:[#allocation2 + $0x78] sm:$0xff]  ;;  %v8969_v5 = vld [vmem:[#allocation2 + $0x80] sm:$0xff]  ;;  %12888 = vst [vmem:[#allocation10_spill] sm:$0xff] %v9013_v23  ;;  %12889 = vst [vmem:[#allocation11_spill] sm:$0xff] %v9015_v24 }
 0x107   : > { %v8967_v4 = vld [vmem:[#allocation2 + $0x138] sm:$0xff]  ;;  %916 = vst.msk [vmem:[#allocation4 + $0x50] sm:$0xff] %vm785_vm2, %v8965_v3  ;;  %v8973_v6 = vld [vmem:[#allocation2 + $0x140] sm:$0xff]  ;;  %917 = vst.msk [vmem:[#allocation4 + $0x58] sm:$0xff] %vm785_vm2, %v8969_v5 }
 0x108   : > { %932 = vst.msk [vmem:[#allocation4 + $0xd0] sm:$0xff] %vm785_vm2, %v8967_v4  ;;  %1615 = vrot.lane.b32.xlu1 %v8853_v21, %s8531_s30  ;;  %933 = vst.msk [vmem:[#allocation4 + $0xd8] sm:$0xff] %vm785_vm2, %v8973_v6  ;;  %v9009_v21 = vld [vmem:[#allocation2 + $0xe2] sm:$0xff]  ;;  %v9022_v31 = vld [vmem:[#allocation2 + $0xf8] sm:$0xff] }
 0x109   : > { %12886 = vst [vmem:[#allocation8_spill] sm:$0xff] %v9009_v21  ;;  %12890 = vst [vmem:[#allocation12_spill] sm:$0xff] %v9017_v26  ;;  %v9019_v27 = vld [vmem:[#allocation2 + $0x108] sm:$0xff]  ;;  %v9024_v35 = vld [vmem:[#allocation2 + $0xd9] sm:$0xff] }
 0x10a   : > { %1581 = vrot.lane.b32.xlu0 %v8872_v32, %s8531_s30  ;;  %12891 = vst [vmem:[#allocation13_spill] sm:$0xff] %v9019_v27  ;;  %853 = vst.msk [vmem:[#allocation2 + $0x99] sm:$0xff] %vm785_vm2, %v764_v12  ;;  %v9026_v36 = vld [vmem:[#allocation2 + $0xf1] sm:$0xff]  ;;  %v9049_v52 = vld [vmem:[#allocation2 + $0x109] sm:$0xff] }
 0x10b   : > { %12892 = vst [vmem:[#allocation14_spill] sm:$0xff] %v9022_v31  ;;  %12893 = vst [vmem:[#allocation15_spill] sm:$0xff] %v9024_v35  ;;  %v9030_v37 = vld [vmem:[#allocation2 + $0x31] sm:$0xff]  ;;  %v9051_v53 = vld [vmem:[#allocation2 + $0xf9] sm:$0xff] }
 0x10c   : > { %1776 = vrot.lane.b32.xlu1 %v8847_v16, %s8532_s12  ;;  %v9003_v16 = vld [vmem:[#allocation2 + $0xfa] sm:$0xff]  ;;  %12894 = vst [vmem:[#allocation16_spill] sm:$0xff] %v9026_v36  ;;  %v9032_v38 = vld [vmem:[#allocation2 + $0x32] sm:$0xff]  ;;  %12900 = vst [vmem:[#allocation22_spill] sm:$0xff] %v9049_v52 }
 0x10d   : > { %v9034_v39 = vld [vmem:[#allocation2 + $0x111] sm:$0xff]  ;;  %12901 = vst [vmem:[#allocation23_spill] sm:$0xff] %v9051_v53  ;;  %3180 = vst.msk [vmem:[#allocation2 + $0xd8] sm:$0xff] %vm785_vm2, %v12852_v29  ;;  %v9059_v54 = vld [vmem:[#allocation2 + $0x39] sm:$0xff]  ;;  %v12908_v53 = vmov 0.0  }
 0x10e   : > { %1613 = vrot.lane.b32.xlu0 %v8851_v20, %s8531_s30  ;;  %v9007_v20 = vld [vmem:[#allocation2 + $0x10a] sm:$0xff]  ;;  %v9036_v40 = vld [vmem:[#allocation2 + $0x112] sm:$0xff]  ;;  %3183 = vst.msk [vmem:[#allocation2 + $0xf0] sm:$0xff] %vm785_vm2, %v12852_v29  ;;  %v9061_v55 = vld [vmem:[#allocation2 + $0x3a] sm:$0xff] }
 0x10f   : > { %v9039_v43 = vld [vmem:[#allocation2 + $0x112] sm:$0xff]  ;;  %v9063_v56 = vld [vmem:[#allocation2 + $0x49] sm:$0xff]  ;;  %v9067_v62 = vld [vmem:[#allocation2 + $0x61] sm:$0xff]  ;;  %852 = vst.msk [vmem:[#allocation2 + $0x91] sm:$0xff] %vm785_vm2, %v763_v28 }
 0x110   : > { %1006 = vrot.lane.b32.xlu1 %v8872_v32, %s8528_s25  ;;  %12895 = vst [vmem:[#allocation17_spill] sm:$0xff] %v9039_v43  ;;  %v9041_v46 = vld [vmem:[#allocation2 + $0x30] sm:$0xff]  ;;  %v9047_v32 = vld [vmem:[#allocation2 + $0xe1] sm:$0xff]  ;;  %v9075_v12 = vld [vmem:[#allocation2 + $0x38] sm:$0xff] }
 0x111   : > { %12896 = vst [vmem:[#allocation18_spill] sm:$0xff] %v9041_v46  ;;  %v9043_v47 = vld [vmem:[#allocation2 + $0x110] sm:$0xff]  ;;  %12899 = vst [vmem:[#allocation21_spill] sm:$0xff] %v9047_v32  ;;  %v9069_v7 = vld [vmem:[#allocation2 + $0x62] sm:$0xff] }
 0x112   : > { %12897 = vst [vmem:[#allocation19_spill] sm:$0xff] %v9043_v47  ;;  %v9045_v48 = vld [vmem:[#allocation2 + $0x31] sm:$0xff]  ;;  %1774 = vrot.lane.b32.xlu0 %v8862_v25, %s8532_s12  ;;  %v9073_v9 = vld [vmem:[#allocation2 + $0x48] sm:$0xff]  ;;  %12903 = vst [vmem:[#allocation25_spill] sm:$0xff] %v9075_v12 }
 0x113   : > { %12898 = vst [vmem:[#allocation20_spill] sm:$0xff] %v9045_v48  ;;  %v9065_v57 = vld [vmem:[#allocation2 + $0x4a] sm:$0xff]  ;;  %12902 = vst [vmem:[#allocation24_spill] sm:$0xff] %v9073_v9  ;;  %v9077_v25 = vld [vmem:[#allocation2 + $0x60] sm:$0xff] }
 0x114   : > { %12904 = vst [vmem:[#allocation26_spill] sm:$0xff] %v9077_v25  ;;  %v9079_v13 = vld [vmem:[#allocation2 + $0x49] sm:$0xff]  ;;  %v9081_v30 = vld [vmem:[#allocation2 + $0x39] sm:$0xff]  ;;  %v9083_v29 = vld [vmem:[#allocation2 + $0x61] sm:$0xff]  ;;  %v779_v25 = vmax.f32 %v725_v8, 0.0  ;;  %1390 = vrot.lane.b32.xlu1 %v8874_v33, %s8530_s29 }
 0x115   : > { %12905 = vst [vmem:[#allocation27_spill] sm:$0xff] %v9079_v13  ;;  %12906 = vst [vmem:[#allocation28_spill] sm:$0xff] %v9081_v30  ;;  %v9095_v28 = vld [vmem:[#allocation2 + $0x51] sm:$0xff]  ;;  %v9099_v52 = vld [vmem:[#allocation2 + $0x121] sm:$0xff] }
 0x116   : > { %12907 = vst [vmem:[#allocation29_spill] sm:$0xff] %v9083_v29  ;;  %3182 = vst.msk [vmem:[#allocation2 + $0xe8] sm:$0x3] %vm788_vm3, %v12908_v53  ;;  %v9097_v42 = vld [vmem:[#allocation2 + $0x52] sm:$0xff]  ;;  %v9101_v32 = vld [vmem:[#allocation2 + $0x69] sm:$0xff]  ;;  %v780_v29 = vmax.f32 %v730_v41, 0.0  ;;  %1010 = vrot.lane.b32.xlu0 %v9030_v37, %s8528_s25 }
 0x117   : > { %3181 = vst.msk [vmem:[#allocation2 + $0xe0] sm:$0xff] %vm785_vm2, %v12908_v53  ;;  %3186 = vst.msk [vmem:[#allocation2 + $0x108] sm:$0xff] %vm785_vm2, %v12908_v53  ;;  %v9103_v36 = vld [vmem:[#allocation2 + $0x122] sm:$0xff]  ;;  %v9105_v35 = vld [vmem:[#allocation2 + $0x6a] sm:$0xff] }
 0x118   : > { %3185 = vst.msk [vmem:[#allocation2 + $0x100] sm:$0x3] %vm788_vm3, %v12908_v53  ;;  %v9107_v30 = vld [vmem:[#allocation2 + $0x50] sm:$0xff]  ;;  %v9109_v13 = vld [vmem:[#allocation2 + $0x120] sm:$0xff]  ;;  %v9125_v41 = vld [vmem:[#allocation2 + $0x128] sm:$0xff]  ;;  %1422 = vrot.lane.b32.xlu1 %v8876_v34, %s8530_s29 }
 0x119   : > { %3184 = vst.msk [vmem:[#allocation2 + $0xf8] sm:$0xff] %vm785_vm2, %v12908_v53  ;;  %12909 = vst [vmem:[#allocation30_spill] sm:$0xff] %v9107_v30  ;;  %v9111_v48 = vld [vmem:[#allocation2 + $0x51] sm:$0xff]  ;;  %v9113_v47 = vld [vmem:[#allocation2 + $0x69] sm:$0xff] }
 0x11a   : > { %12910 = vst [vmem:[#allocation31_spill] sm:$0xff] %v9109_v13  ;;  %12911 = vst [vmem:[#allocation32_spill] sm:$0xff] %v9111_v48  ;;  %v9115_v31 = vld [vmem:[#allocation2 + $0x121] sm:$0xff]  ;;  %v9117_v27 = vld [vmem:[#allocation2 + $0x111] sm:$0xff]  ;;  %1042 = vrot.lane.b32.xlu0 %v8990_v10, %s8528_s25 }
 0x11b   : > { %12912 = vst [vmem:[#allocation33_spill] sm:$0xff] %v9113_v47  ;;  %12913 = vst [vmem:[#allocation34_spill] sm:$0xff] %v9115_v31  ;;  %v9119_v26 = vld [vmem:[#allocation2 + $0x32] sm:$0xff]  ;;  %v9121_v24 = vld [vmem:[#allocation2 + $0x129] sm:$0xff] }
 0x11c   : > { %12914 = vst [vmem:[#allocation35_spill] sm:$0xff] %v9117_v27  ;;  %12915 = vst [vmem:[#allocation36_spill] sm:$0xff] %v9119_v26  ;;  %v9123_v17 = vld [vmem:[#allocation2 + $0x12a] sm:$0xff]  ;;  %v9131_v48 = vld [vmem:[#allocation2 + $0x3a] sm:$0xff]  ;;  %1012 = vrot.lane.b32.xlu1 %v9059_v54, %s8528_s25 }
 0x11d   : > { %12916 = vst [vmem:[#allocation37_spill] sm:$0xff] %v9125_v41  ;;  %3159 = vst.msk [vmem:[#allocation2 + $0x30] sm:$0xff] %vm785_vm2, %v12908_v53  ;;  %v9129_v13 = vld [vmem:[#allocation2 + $0x4a] sm:$0xff]  ;;  %v9133_v47 = vld [vmem:[#allocation2 + $0x62] sm:$0xff] }
 0x11e   : > { %12917 = vst [vmem:[#allocation38_spill] sm:$0xff] %v9129_v13  ;;  %12918 = vst [vmem:[#allocation39_spill] sm:$0xff] %v9131_v48  ;;  %v9141_v8 = vld [vmem:[#allocation2 + $0x79] sm:$0xff]  ;;  %v9143_v26 = vld [vmem:[#allocation2 + $0x81] sm:$0xff]  ;;  %1203 = vrot.lane.b32.xlu0 %v9032_v38, %s8529_s26 }
 0x11f   : > { %12919 = vst [vmem:[#allocation40_spill] sm:$0xff] %v9133_v47  ;;  %3188 = vst.msk [vmem:[#allocation2 + $0x118] sm:$0x3] %vm788_vm3, %v12908_v53  ;;  %v9145_v27 = vld [vmem:[#allocation2 + $0x7a] sm:$0xff]  ;;  %v9147_v13 = vld [vmem:[#allocation2 + $0x82] sm:$0xff] }
 0x120   : > { %3187 = vst.msk [vmem:[#allocation2 + $0x110] sm:$0xff] %vm785_vm2, %v12908_v53  ;;  %869 = vst.msk [vmem:[#allocation2 + $0x159] sm:$0xff] %vm785_vm2, %v780_v29  ;;  %v9158_v33 = vld [vmem:[#allocation2 + $0x52] sm:$0xff]  ;;  %v9160_v47 = vld [vmem:[#allocation2 + $0x6a] sm:$0xff]  ;;  %1044 = vrot.lane.b32.xlu1 %v9001_v18, %s8528_s25 }
 0x121   : > { %3162 = vst.msk [vmem:[#allocation2 + $0x48] sm:$0xff] %vm785_vm2, %v12908_v53  ;;  %3160 = vst.msk [vmem:[#allocation2 + $0x38] sm:$0xff] %vm785_vm2, %v12908_v53  ;;  %v9162_v48 = vld [vmem:[#allocation2 + $0x122] sm:$0xff]  ;;  %v9167_v29 = vld [vmem:[#allocation2 + $0x79] sm:$0xff] }
 0x122   : > { %3161 = vst.msk [vmem:[#allocation2 + $0x40] sm:$0x3] %vm788_vm3, %v12908_v53  ;;  %12920 = vst [vmem:[#allocation41_spill] sm:$0xff] %v9158_v33  ;;  %v9169_v31 = vld [vmem:[#allocation2 + $0x129] sm:$0xff]  ;;  %v9217_v30 = vld [vmem:[#allocation2 + $0x141] sm:$0xff]  ;;  %1235 = vrot.lane.b32.xlu0 %v8992_v11, %s8529_s26  ;;  %v8163_v11 = vpop.f32.mrb[12].mxu0 }
 0x123   : > { %3165 = vst.msk [vmem:[#allocation2 + $0x60] sm:$0xff] %vm785_vm2, %v12908_v53  ;;  %12921 = vst [vmem:[#allocation42_spill] sm:$0xff] %v9160_v47  ;;  %v9185_v47 = vld [vmem:[#allocation2 + $0x7a] sm:$0xff]  ;;  %v9187_v33 = vld [vmem:[#allocation2 + $0x82] sm:$0xff] }
 0x124   : > { %12922 = vst [vmem:[#allocation43_spill] sm:$0xff] %v9162_v48  ;;  %868 = vst.msk [vmem:[#allocation2 + $0x151] sm:$0xff] %vm785_vm2, %v779_v25  ;;  %v9181_v25 = vld [vmem:[#allocation2 + $0x12a] sm:$0xff]  ;;  %v9183_v48 = vld [vmem:[#allocation2 + $0x81] sm:$0xff]  ;;  %1205 = vrot.lane.b32.xlu1 %v9061_v55, %s8529_s26 }
 0x125   : > { %12923 = vst [vmem:[#allocation44_spill] sm:$0xff] %v9167_v29  ;;  %12924 = vst [vmem:[#allocation45_spill] sm:$0xff] %v9169_v31  ;;  %v9209_v31 = vld [vmem:[#allocation2 + $0x138] sm:$0xff]  ;;  %v9215_v41 = vld [vmem:[#allocation2 + $0x142] sm:$0xff] }
 0x126   : > { %3164 = vst.msk [vmem:[#allocation2 + $0x58] sm:$0x3] %vm788_vm3, %v12908_v53  ;;  %3167 = vst.msk [vmem:[#allocation2 + $0x70] sm:$0x3] %vm788_vm3, %v12908_v53  ;;  %v9213_v29 = vld [vmem:[#allocation2 + $0x13a] sm:$0xff]  ;;  %v9221_v34 = vld [vmem:[#allocation2 + $0x142] sm:$0xff]  ;;  %1392 = vrot.lane.b32.xlu0 %v8897_v45, %s8530_s29  ;;  %v660_v45 = vadd.f32 %v8163_v11, %v8823_v44 }
 0x127   : > { %3163 = vst.msk [vmem:[#allocation2 + $0x50] sm:$0xff] %vm785_vm2, %v12908_v53  ;;  %3166 = vst.msk [vmem:[#allocation2 + $0x68] sm:$0xff] %vm785_vm2, %v12908_v53 }
 0x128   : > { %3189 = vst.msk [vmem:[#allocation2 + $0x120] sm:$0xff] %vm785_vm2, %v12908_v53  ;;  %12925 = vst [vmem:[#allocation46_spill] sm:$0xff] %v9181_v25  ;;  %v9203_v25 = vld [vmem:[#allocation2 + $0x139] sm:$0xff]  ;;  %1237 = vrot.lane.b32.xlu1 %v9003_v16, %s8529_s26  ;;  %v766_v9 = vmax.f32 %v660_v45, 0.0  ;;  %v8187_v16 = vpop.f32.mrb[12].mxu1 }
 0x129   : > { %12926 = vst [vmem:[#allocation47_spill] sm:$0xff] %v9183_v48  ;;  %12927 = vst [vmem:[#allocation48_spill] sm:$0xff] %v9185_v47  ;;  %v9207_v47 = vld [vmem:[#allocation2 + $0x13a] sm:$0xff]  ;;  %v734_v46 = vpop.f32.mrb[13].mxu1 }
 0x12a   : > { %12928 = vst [vmem:[#allocation49_spill] sm:$0xff] %v9187_v33  ;;  %3191 = vst.msk [vmem:[#allocation2 + $0x130] sm:$0x3] %vm788_vm3, %v12908_v53  ;;  %v9205_v33 = vld [vmem:[#allocation2 + $0x141] sm:$0xff]  ;;  %v9211_v48 = vld [vmem:[#allocation2 + $0x139] sm:$0xff]  ;;  %1424 = vrot.lane.b32.xlu0 %v8903_v49, %s8530_s29 }
 0x12b   : > { %3190 = vst.msk [vmem:[#allocation2 + $0x128] sm:$0xff] %vm785_vm2, %v12908_v53  ;;  %3168 = vst.msk [vmem:[#allocation2 + $0x78] sm:$0xff] %vm785_vm2, %v12908_v53 }
 0x12c   : > { %3170 = vst.msk [vmem:[#allocation2 + $0x88] sm:$0x3] %vm788_vm3, %v12908_v53  ;;  %12929 = vst [vmem:[#allocation50_spill] sm:$0xff] %v9209_v31  ;;  %1587 = vrot.lane.b32.xlu1 %v9059_v54, %s8531_s30  ;;  %v654_v31 = vpop.f32.mrb[13].mxu0  ;;  %v740_v54 = vadd.f32 %v8187_v16, %v8823_v44  ;;  %v9293_v16 = vld [vmem:[#allocation2 + $0x9a] sm:$0xff] }
 0x12d   : > { %3169 = vst.msk [vmem:[#allocation2 + $0x80] sm:$0xff] %vm785_vm2, %v12908_v53  ;;  %12930 = vst [vmem:[#allocation51_spill] sm:$0xff] %v9211_v48  ;;  %v9247_v48 = vld [vmem:[#allocation2 + $0x158] sm:$0xff]  ;;  %v655_v12 = vadd.f32 %v8823_v44, %v654_v31 }
 0x12e   : > { %12931 = vst [vmem:[#allocation52_spill] sm:$0xff] %v9213_v29  ;;  %12932 = vst [vmem:[#allocation53_spill] sm:$0xff] %v9217_v30  ;;  %v9233_v29 = vld [vmem:[#allocation2 + $0x90] sm:$0xff]  ;;  %v9235_v30 = vld [vmem:[#allocation2 + $0x98] sm:$0xff]  ;;  %1585 = vrot.lane.b32.xlu0 %v9030_v37, %s8531_s30  ;;  %v735_v37 = vadd.f32 %v8823_v44, %v734_v46  ;;  %v782_v11 = vmax.f32 %v740_v54, 0.0 }
 0x12f   : > { %3192 = vst.msk [vmem:[#allocation2 + $0x138] sm:$0xff] %vm785_vm2, %v12908_v53  ;;  %12933 = vst [vmem:[#allocation54_spill] sm:$0xff] %v9221_v34  ;;  %v9245_v34 = vld [vmem:[#allocation2 + $0x150] sm:$0xff]  ;;  %v765_v49 = vmax.f32 %v655_v12, 0.0  ;;  %v9277_v31 = vld [vmem:[#allocation2 + $0x99] sm:$0xff] }
 0x130   : > { %3194 = vst.msk [vmem:[#allocation2 + $0x148] sm:$0x3] %vm788_vm3, %v12908_v53  ;;  %1619 = vrot.lane.b32.xlu1 %v9001_v18, %s8531_s30  ;;  %v9275_v18 = vld [vmem:[#allocation2 + $0x91] sm:$0xff]  ;;  %v781_v45 = vmax.f32 %v735_v37, 0.0  ;;  %v9283_v12 = vld [vmem:[#allocation2 + $0x9a] sm:$0xff]  ;;  %12937 = vst [vmem:[#allocation58_spill] sm:$0xff] %v9293_v16 }
 0x131   : > { %3193 = vst.msk [vmem:[#allocation2 + $0x140] sm:$0xff] %vm785_vm2, %v12908_v53  ;;  %918 = vst.msk [vmem:[#allocation4 + $0x60] sm:$0xff] %vm785_vm2, %v9233_v29  ;;  %v9286_v46 = vld [vmem:[#allocation2 + $0x91] sm:$0xff]  ;;  %v9311_v37 = vld [vmem:[#allocation2 + $0x15a] sm:$0xff] }
 0x132   : > { %919 = vst.msk [vmem:[#allocation4 + $0x68] sm:$0xff] %vm785_vm2, %v9235_v30  ;;  %934 = vst.msk [vmem:[#allocation4 + $0xe0] sm:$0xff] %vm785_vm2, %v9245_v34  ;;  %1617 = vrot.lane.b32.xlu0 %v8990_v10, %s8531_s30  ;;  %v9281_v10 = vld [vmem:[#allocation2 + $0x92] sm:$0xff] }
 0x133   : > { %935 = vst.msk [vmem:[#allocation4 + $0xe8] sm:$0xff] %vm785_vm2, %v9247_v48  ;;  %855 = vst.msk [vmem:[#allocation2 + $0xb1] sm:$0xff] %vm785_vm2, %v766_v9  ;;  %v9289_v9 = vld [vmem:[#allocation2 + $0x99] sm:$0xff] }
 0x134   : > { %854 = vst.msk [vmem:[#allocation2 + $0xa9] sm:$0xff] %vm785_vm2, %v765_v49  ;;  %1780 = vrot.lane.b32.xlu1 %v9061_v55, %s8532_s12  ;;  %871 = vst.msk [vmem:[#allocation2 + $0x171] sm:$0xff] %vm785_vm2, %v782_v11  ;;  %v9291_v55 = vld [vmem:[#allocation2 + $0x92] sm:$0xff] }
 0x135   : > { %12934 = vst [vmem:[#allocation55_spill] sm:$0xff] %v9286_v46  ;;  %870 = vst.msk [vmem:[#allocation2 + $0x169] sm:$0xff] %vm785_vm2, %v781_v45  ;;  %v9307_v49 = vld [vmem:[#allocation2 + $0x159] sm:$0xff]  ;;  %v9313_v11 = vld [vmem:[#allocation2 + $0x151] sm:$0xff] }
 0x136   : > { %1778 = vrot.lane.b32.xlu0 %v9032_v38, %s8532_s12  ;;  %12935 = vst [vmem:[#allocation56_spill] sm:$0xff] %v9289_v9  ;;  %12936 = vst [vmem:[#allocation57_spill] sm:$0xff] %v9291_v55  ;;  %v9305_v38 = vld [vmem:[#allocation2 + $0x151] sm:$0xff]  ;;  %v9315_v45 = vld [vmem:[#allocation2 + $0x159] sm:$0xff] }
 0x137   : > { %3171 = vst.msk [vmem:[#allocation2 + $0x90] sm:$0xff] %vm785_vm2, %v12908_v53  ;;  %3172 = vst.msk [vmem:[#allocation2 + $0x98] sm:$0xff] %vm785_vm2, %v12908_v53  ;;  %v9309_v54 = vld [vmem:[#allocation2 + $0x152] sm:$0xff]  ;;  %v9319_v55 = vld [vmem:[#allocation2 + $0x15a] sm:$0xff] }
 0x138   : > { %3173 = vst.msk [vmem:[#allocation2 + $0xa0] sm:$0x3] %vm788_vm3, %v12908_v53  ;;  %1394 = vrot.lane.b32.xlu1 %v8905_v50, %s8530_s29  ;;  %12938 = vst [vmem:[#allocation59_spill] sm:$0xff] %v9313_v11  ;;  %v9317_v16 = vld [vmem:[#allocation2 + $0x152] sm:$0xff] }
 0x139   : > { %12939 = vst [vmem:[#allocation60_spill] sm:$0xff] %v9315_v45  ;;  %12940 = vst [vmem:[#allocation61_spill] sm:$0xff] %v9317_v16  ;;  %v8166_v45 = vpop.f32.mrb[14].mxu0 }
 0x13a   : > { %1014 = vrot.lane.b32.xlu0 %v9063_v56, %s8528_s25  ;;  %12941 = vst [vmem:[#allocation62_spill] sm:$0xff] %v9319_v55  ;;  %3195 = vst.msk [vmem:[#allocation2 + $0x150] sm:$0xff] %vm785_vm2, %v12908_v53  ;;  %v664_v11 = vpop.f32.mrb[15].mxu0 }
 0x13b   : > { %3197 = vst.msk [vmem:[#allocation2 + $0x160] sm:$0x3] %vm788_vm3, %v12908_v53  ;;  %v9333_v50 = vld [vmem:[#allocation2 + $0xa8] sm:$0xff]  ;;  %v9335_v55 = vld [vmem:[#allocation2 + $0xb0] sm:$0xff]  ;;  %v665_v9 = vadd.f32 %v8823_v44, %v664_v11 }
 0x13c   : > { %1426 = vrot.lane.b32.xlu1 %v8907_v51, %s8530_s29  ;;  %3196 = vst.msk [vmem:[#allocation2 + $0x158] sm:$0xff] %vm785_vm2, %v12908_v53  ;;  %920 = vst.msk [vmem:[#allocation4 + $0x70] sm:$0xff] %vm785_vm2, %v9333_v50  ;;  %v9345_v51 = vld [vmem:[#allocation2 + $0x168] sm:$0xff]  ;;  %v9347_v16 = vld [vmem:[#allocation2 + $0x170] sm:$0xff] }
 0x13d   : > { %921 = vst.msk [vmem:[#allocation4 + $0x78] sm:$0xff] %vm785_vm2, %v9335_v55  ;;  %936 = vst.msk [vmem:[#allocation4 + $0xf0] sm:$0xff] %vm785_vm2, %v9345_v51  ;;  %v767_v43 = vmax.f32 %v665_v9, 0.0  ;;  %v9383_v9 = vld [vmem:[#allocation2 + $0xaa] sm:$0xff]  ;;  %v9415_v21 = vld [vmem:[#allocation2 + $0x172] sm:$0xff] }
 0x13e   : > { %1046 = vrot.lane.b32.xlu0 %v9005_v19, %s8528_s25  ;;  %937 = vst.msk [vmem:[#allocation4 + $0xf8] sm:$0xff] %vm785_vm2, %v9347_v16  ;;  %12942 = vst [vmem:[#allocation63_spill] sm:$0xff] %v9383_v9  ;;  %v9400_v11 = vld [vmem:[#allocation2 + $0x171] sm:$0xff]  ;;  %v9405_v9 = vld [vmem:[#allocation2 + $0x169] sm:$0xff] }
 0x13f   : > { %856 = vst.msk [vmem:[#allocation2 + $0xc1] sm:$0xff] %vm785_vm2, %v767_v43  ;;  %v9398_v43 = vld [vmem:[#allocation2 + $0x169] sm:$0xff]  ;;  %12944 = vst [vmem:[#allocation65_spill] sm:$0xff] %v9405_v9  ;;  %v9411_v22 = vld [vmem:[#allocation2 + $0x171] sm:$0xff] }
 0x140   : > { %1016 = vrot.lane.b32.xlu1 %v9095_v28, %s8528_s25  ;;  %v9407_v23 = vld [vmem:[#allocation2 + $0x16a] sm:$0xff]  ;;  %12946 = vst [vmem:[#allocation67_spill] sm:$0xff] %v9411_v22  ;;  %12947 = vst [vmem:[#allocation68_spill] sm:$0xff] %v9415_v21 }
 0x141   : > { %12945 = vst [vmem:[#allocation66_spill] sm:$0xff] %v9407_v23 }
 0x142   : > { %1207 = vrot.lane.b32.xlu0 %v9065_v57, %s8529_s26 }
 0x144   : > { %1048 = vrot.lane.b32.xlu1 %v9034_v39, %s8528_s25 }
 0x146   : > { %1239 = vrot.lane.b32.xlu0 %v9007_v20, %s8529_s26  ;;  %v670_v20 = vadd.f32 %v8166_v45, %v8823_v44 }
 0x148   : > { %1209 = vrot.lane.b32.xlu1 %v9097_v42, %s8529_s26  ;;  %v768_v46 = vmax.f32 %v670_v20, 0.0  ;;  %v9403_v20 = vld [vmem:[#allocation2 + $0x16a] sm:$0xff] }
 0x149   : > { %3198 = vst.msk [vmem:[#allocation2 + $0x168] sm:$0xff] %vm785_vm2, %v12908_v53 }
 0x14a   : > { %1396 = vrot.lane.b32.xlu0 %v8923_v58, %s8530_s29  ;;  %857 = vst.msk [vmem:[#allocation2 + $0xc9] sm:$0xff] %vm785_vm2, %v768_v46  ;;  %v9375_v58 = vld [vmem:[#allocation2 + $0xa9] sm:$0xff]  ;;  %v8190_v46 = vpop.f32.mrb[14].mxu1 }
 0x14c   : > { %1241 = vrot.lane.b32.xlu1 %v9036_v40, %s8529_s26  ;;  %v9379_v40 = vld [vmem:[#allocation2 + $0xaa] sm:$0xff] }
 0x14d   : > { %3174 = vst.msk [vmem:[#allocation2 + $0xa8] sm:$0xff] %vm785_vm2, %v12908_v53 }
 0x14e   : > { %1428 = vrot.lane.b32.xlu0 %v8927_v59, %s8530_s29  ;;  %v9377_v59 = vld [vmem:[#allocation2 + $0xb1] sm:$0xff] }
 0x150   : > { %1591 = vrot.lane.b32.xlu1 %v9095_v28, %s8531_s30  ;;  %v9381_v28 = vld [vmem:[#allocation2 + $0xb2] sm:$0xff] }
 0x152   : > { %1589 = vrot.lane.b32.xlu0 %v9063_v56, %s8531_s30  ;;  %v9385_v56 = vld [vmem:[#allocation2 + $0xb2] sm:$0xff] }
 0x153   : > { %12943 = vst [vmem:[#allocation64_spill] sm:$0xff] %v9385_v56  ;;  %3176 = vst.msk [vmem:[#allocation2 + $0xb8] sm:$0x3] %vm788_vm3, %v12908_v53 }
 0x154   : > { %1623 = vrot.lane.b32.xlu1 %v9034_v39, %s8531_s30  ;;  %3175 = vst.msk [vmem:[#allocation2 + $0xb0] sm:$0xff] %vm785_vm2, %v12908_v53  ;;  %v744_v39 = vpop.f32.mrb[15].mxu1 }
 0x155   : > { %v745_v45 = vadd.f32 %v8823_v44, %v744_v39 }
 0x156   : > { %1621 = vrot.lane.b32.xlu0 %v9005_v19, %s8531_s30  ;;  %v750_v19 = vadd.f32 %v8190_v46, %v8823_v44  ;;  %v9427_v44 = vld [vmem:[#allocation2 + $0xc0] sm:$0xff] }
 0x157   : > { %v783_v46 = vmax.f32 %v745_v45, 0.0  ;;  %922 = vst.msk [vmem:[#allocation4 + $0x80] sm:$0xff] %vm785_vm2, %v9427_v44 }
 0x158   : > { %1398 = vrot.lane.b32.xlu1 %v8929_v60, %s8530_s29  ;;  %v784_v56 = vmax.f32 %v750_v19, 0.0  ;;  %v9409_v60 = vld [vmem:[#allocation2 + $0x172] sm:$0xff]  ;;  %v9431_v19 = vld [vmem:[#allocation2 + $0xc8] sm:$0xff] }
 0x159   : > { %3200 = vst.msk [vmem:[#allocation2 + $0x178] sm:$0x3] %vm788_vm3, %v12908_v53 }
 0x15a   : > { %1018 = vrot.lane.b32.xlu0 %v9067_v62, %s8528_s25  ;;  %873 = vst.msk [vmem:[#allocation2 + $0x189] sm:$0xff] %vm785_vm2, %v784_v56  ;;  %3199 = vst.msk [vmem:[#allocation2 + $0x170] sm:$0xff] %vm785_vm2, %v12908_v53 }
 0x15b   : > { %872 = vst.msk [vmem:[#allocation2 + $0x181] sm:$0xff] %vm785_vm2, %v783_v46  ;;  %923 = vst.msk [vmem:[#allocation4 + $0x88] sm:$0xff] %vm785_vm2, %v9431_v19 }
 0x15c   : > { %1430 = vrot.lane.b32.xlu1 %v8931_v61, %s8530_s29 }
 0x15e   : > { %1050 = vrot.lane.b32.xlu0 %v9099_v52, %s8528_s25 }
 0x160   : > { %1020 = vrot.lane.b32.xlu1 %v9101_v32, %s8528_s25 }
 0x161   : > { %v9503_v21 = vld [vmem:[#allocation2 + $0x189] sm:$0xff] }
 0x162   : > { %1211 = vrot.lane.b32.xlu0 %v9069_v7, %s8529_s26  ;;  %v9505_v23 = vld [vmem:[#allocation2 + $0x181] sm:$0xff]  ;;  %v9515_v22 = vld [vmem:[#allocation2 + $0x18a] sm:$0xff] }
 0x163   : > { %12951 = vst [vmem:[#allocation72_spill] sm:$0xff] %v9515_v22  ;;  %3203 = vst.msk [vmem:[#allocation2 + $0x190] sm:$0x3] %vm788_vm3, %v12908_v53 }
 0x164   : > { %1052 = vrot.lane.b32.xlu1 %v9121_v24, %s8528_s25 }
 0x166   : > { %1243 = vrot.lane.b32.xlu0 %v9103_v36, %s8529_s26  ;;  %v1009_v61 = vpop.permute.xlu1 %1008 }
 0x167   : > { %1102 = vst.msk [vmem:[#allocation4 + $0x18] sm:$0xff] %vm1098_vm4, %v1009_v61 }
 0x168   : > { %v1039_v56 = vpop.permute.xlu0 %1038  ;;  %1213 = vrot.lane.b32.xlu1 %v9105_v35, %s8529_s26 }
 0x169   : > { %1117 = vst.msk [vmem:[#allocation4 + $0x90] sm:$0xff] %vm1098_vm4, %v1039_v56 }
 0x16a   : > { %1400 = vrot.lane.b32.xlu0 %v8945_v63, %s8530_s29  ;;  %v1041_v39 = vpop.permute.xlu1 %1040  ;;  %v2885_v63 = vld [vmem:[%s12845_s5] sm:$0xf] }
 0x16b   : > { %1118 = vst.msk [vmem:[#allocation4 + $0x98] sm:$0xff] %vm1098_vm4, %v1041_v39  ;;  %8257 = vmatprep.subr.msk.mxu0 %vm524_vm0, %v2885_v63  ;;  %v8488_v39 = vld [vmem:[%s8625_s24 + $0x8] sm:$0xff] }
 0x16c   : > { %v9450_v45 = vpop.permute.xlu0 %1199  ;;  %1245 = vrot.lane.b32.xlu1 %v9123_v17, %s8529_s26  ;;  %8258 = vmatpush3.msk.msra.mxu0 %vm524_vm0, %v2885_v63  ;;  %vm5746_vm0 = vcmask 48160  }
 0x16d   : > { %8260 = vmatmul.mubr.msk.f32.vlgmr.msra.gmra.mrb[16].mxu0 %vm427_vm1, %v8488_v39  ;;  %v9487_v39 = vld [vmem:[#allocation2 + $0xca] sm:$0xff] }
 0x16e   : > { %1432 = vrot.lane.b32.xlu0 %v8947_v0, %s8530_s29  ;;  %v1202_v46 = vpop.permute.xlu1 %1201  ;;  %12949 = vst [vmem:[#allocation70_spill] sm:$0xff] %v9487_v39  ;;  %v9511_v39 = vld [vmem:[#allocation2 + $0x188] sm:$0xff] }
 0x16f   : > { %1295 = vst.msk [vmem:[#allocation4 + $0x18] sm:$0xff] %vm1291_vm5, %v1202_v46  ;;  %v9479_v46 = vld [vmem:[#allocation2 + $0xc2] sm:$0xff] }
 0x170   : > { %v1232_v61 = vpop.permute.xlu0 %1231  ;;  %1595 = vrot.lane.b32.xlu1 %v9101_v32, %s8531_s30  ;;  %v8489_v32 = vld [vmem:[%s8625_s24 + $0x10] sm:$0xff] }
 0x171   : > { %1310 = vst.msk [vmem:[#allocation4 + $0x90] sm:$0xff] %vm1291_vm5, %v1232_v61  ;;  %8262 = vmatprep.mubr.msk.f32.mxu0 %vm427_vm1, %v8489_v32  ;;  %v9481_v61 = vld [vmem:[#allocation2 + $0xc9] sm:$0xff]  ;;  %v8490_v32 = vld [vmem:[%s8625_s24 + $0x18] sm:$0xff] }
 0x172   : > { %1593 = vrot.lane.b32.xlu0 %v9067_v62, %s8531_s30  ;;  %v1234_v0 = vpop.permute.xlu1 %1233  ;;  %v9477_v62 = vld [vmem:[#allocation2 + $0xc1] sm:$0xff]  ;;  %8263 = vmatmul.mubr.msk.f32.gmra.mrb[18].mxu0 %vm427_vm1, %v8490_v32 }
 0x173   : > { %1311 = vst.msk [vmem:[#allocation4 + $0x98] sm:$0xff] %vm1291_vm5, %v1234_v0  ;;  %v9483_v0 = vld [vmem:[#allocation2 + $0xca] sm:$0xff]  ;;  %v8491_v32 = vld [vmem:[%s8625_s24 + $0x20] sm:$0xff] }
 0x174   : > { %v1389_v56 = vpop.permute.xlu0 %1388  ;;  %1627 = vrot.lane.b32.xlu1 %v9121_v24, %s8531_s30  ;;  %3179 = vst.msk [vmem:[#allocation2 + $0xd0] sm:$0x3] %vm788_vm3, %v12908_v53  ;;  %8265 = vmatprep.mubr.msk.f32.mxu0 %vm427_vm1, %v8491_v32 }
 0x175   : > { %1485 = vst.msk [vmem:[#allocation4] sm:$0xff] %vm1484_vm6, %v1389_v56  ;;  %v9485_v56 = vld [vmem:[#allocation2 + $0xc2] sm:$0xff] }
 0x176   : > { %1625 = vrot.lane.b32.xlu0 %v9099_v52, %s8531_s30  ;;  %v1584_v63 = vpop.permute.xlu1 %1583  ;;  %12948 = vst [vmem:[#allocation69_spill] sm:$0xff] %v9485_v56  ;;  %3177 = vst.msk [vmem:[#allocation2 + $0xc0] sm:$0xff] %vm785_vm2, %v12908_v53  ;;  %v9501_v52 = vld [vmem:[#allocation2 + $0x180] sm:$0xff] }
 0x177   : > { %3178 = vst.msk [vmem:[#allocation2 + $0xc8] sm:$0xff] %vm785_vm2, %v12908_v53  ;;  %v9513_v56 = vld [vmem:[#allocation2 + $0x182] sm:$0xff] }
 0x178   : > { %v9489_v24 = vpop.permute.xlu0 %1420  ;;  %1402 = vrot.lane.b32.xlu1 %v8949_v1, %s8530_s29  ;;  %3201 = vst.msk [vmem:[#allocation2 + $0x180] sm:$0xff] %vm785_vm2, %v12908_v53  ;;  %3202 = vst.msk [vmem:[#allocation2 + $0x188] sm:$0xff] %vm785_vm2, %v12908_v53  ;;  %v8494_v53 = vld [vmem:[%s8625_s24 + $0x38] sm:$0xff] }
 0x179   : > { %12950 = vst [vmem:[#allocation71_spill] sm:$0xff] %v9489_v24  ;;  %v8492_v24 = vld [vmem:[%s8625_s24 + $0x28] sm:$0xff] }
 0x17a   : > { %1022 = vrot.lane.b32.xlu0 %v9141_v8, %s8528_s25  ;;  %v9517_v9 = vpop.permute.xlu1 %1615  ;;  %8266 = vmatmul.mubr.msk.f32.gmra.mrb[20].mxu0 %vm427_vm1, %v8492_v24  ;;  %v8495_v24 = vld [vmem:[%s8625_s24 + $0x40] sm:$0xff] }
 0x17b   : > { %12952 = vst [vmem:[#allocation73_spill] sm:$0xff] %v9517_v9  ;;  %v8493_v9 = vld [vmem:[%s8625_s24 + $0x30] sm:$0xff] }
 0x17c   : > { %v1582_v32 = vpop.permute.xlu0 %1581  ;;  %1434 = vrot.lane.b32.xlu1 %v8953_v2, %s8530_s29  ;;  %8268 = vmatprep.mubr.msk.f32.mxu0 %vm427_vm1, %v8493_v9 }
 0x17d   : > { %1678 = vst.msk [vmem:[#allocation4] sm:$0xff] %vm1677_vm7, %v1582_v32  ;;  %v8496_v32 = vld [vmem:[%s8625_s24 + $0x48] sm:$0xff] }
 0x17e   : > { %1054 = vrot.lane.b32.xlu0 %v9203_v25, %s8528_s25  ;;  %v1777_v1 = vpop.permute.xlu1 %1776  ;;  %8269 = vmatmul.mubr.msk.f32.gmra.mrb[22].mxu0 %vm427_vm1, %v8494_v53  ;;  %v8497_v53 = vld [vmem:[%s8625_s24 + $0x50] sm:$0xff] }
 0x17f   : > { %8271 = vmatprep.mubr.msk.f32.mxu0 %vm427_vm1, %v8495_v24 }
 0x180   : > { %v9534_v22 = vpop.permute.xlu0 %1613  ;;  %1024 = vrot.lane.b32.xlu1 %v9143_v26, %s8528_s25 }
 0x182   : > { %1215 = vrot.lane.b32.xlu0 %v9145_v27, %s8529_s26  ;;  %v1007_v2 = vpop.permute.xlu1 %1006  ;;  %8272 = vmatmul.mubr.msk.f32.gmra.mrb[24].mxu0 %vm427_vm1, %v8496_v32  ;;  %v8498_v32 = vld [vmem:[%s8625_s24 + $0x58] sm:$0xff] }
 0x183   : > { %1101 = vst.msk [vmem:[#allocation4 + $0x10] sm:$0xff] %vm1098_vm4, %v1007_v2  ;;  %8274 = vmatprep.mubr.msk.f32.mxu0 %vm427_vm1, %v8497_v53 }
 0x184   : > { %v1775_v9 = vpop.permute.xlu0 %1774  ;;  %1294 = vst.msk [vmem:[#allocation4 + $0x10] sm:$0xff] %vm1291_vm5, %v9450_v45  ;;  %1056 = vrot.lane.b32.xlu1 %v9205_v33, %s8528_s25  ;;  %v8499_v45 = vld [vmem:[%s8625_s24 + $0x60] sm:$0xff] }
 0x185   : > { %1871 = vst.msk [vmem:[#allocation4] sm:$0xff] %vm1870_vm8, %v1775_v9 }
 0x186   : > { %1247 = vrot.lane.b32.xlu0 %v9207_v47, %s8529_s26  ;;  %v1391_v24 = vpop.permute.xlu1 %1390  ;;  %8275 = vmatmul.mubr.msk.f32.gmra.mrb[26].mxu0 %vm427_vm1, %v8498_v32  ;;  %v8502_v32 = vld [vmem:[%s8625_s24 + $0x78] sm:$0xff] }
 0x187   : > { %1486 = vst.msk [vmem:[#allocation4 + $0x8] sm:$0xff] %vm1484_vm6, %v1391_v24  ;;  %8277 = vmatprep.mubr.msk.f32.mxu0 %vm427_vm1, %v8499_v45  ;;  %v8500_v24 = vld [vmem:[%s8625_s24 + $0x68] sm:$0xff]  ;;  %v8503_v45 = vld [vmem:[%s8625_s24 + $0x80] sm:$0xff] }
 0x188   : > { %v1011_v2 = vpop.permute.xlu0 %1010  ;;  %1679 = vst.msk [vmem:[#allocation4 + $0x8] sm:$0xff] %vm1677_vm7, %v1584_v63  ;;  %1217 = vrot.lane.b32.xlu1 %v9147_v13, %s8529_s26  ;;  %v8501_v63 = vld [vmem:[%s8625_s24 + $0x70] sm:$0xff] }
 0x189   : > { %1103 = vst.msk [vmem:[#allocation4 + $0x20] sm:$0xff] %vm1098_vm4, %v1011_v2 }
 0x18a   : > { %1872 = vst.msk [vmem:[#allocation4 + $0x8] sm:$0xff] %vm1870_vm8, %v1777_v1  ;;  %1404 = vrot.lane.b32.xlu0 %v8965_v3, %s8530_s29  ;;  %v9568_v9 = vpop.permute.xlu1 %1422  ;;  %8278 = vmatmul.mubr.msk.f32.gmra.mrb[28].mxu0 %vm427_vm1, %v8500_v24  ;;  %v8504_v24 = vld [vmem:[%s8625_s24 + $0x88] sm:$0xff] }
 0x18b   : > { %8280 = vmatprep.mubr.msk.f32.mxu0 %vm427_vm1, %v8501_v63 }
 0x18c   : > { %v1043_v53 = vpop.permute.xlu0 %1042  ;;  %1249 = vrot.lane.b32.xlu1 %v9215_v41, %s8529_s26 }
 0x18d   : > { %1119 = vst.msk [vmem:[#allocation4 + $0xa0] sm:$0xff] %vm1098_vm4, %v1043_v53 }
 0x18e   : > { %1436 = vrot.lane.b32.xlu0 %v8967_v4, %s8530_s29  ;;  %v1013_v1 = vpop.permute.xlu1 %1012  ;;  %8281 = vmatmul.mubr.msk.f32.gmra.mrb[30].mxu0 %vm427_vm1, %v8502_v32  ;;  %v8508_v32 = vld [vmem:[%s8625_s24 + $0xa8] sm:$0xff] }
 0x18f   : > { %1104 = vst.msk [vmem:[#allocation4 + $0x28] sm:$0xff] %vm1098_vm4, %v1013_v1  ;;  %8283 = vmatprep.mubr.msk.f32.mxu0 %vm427_vm1, %v8503_v45  ;;  %v8506_v1 = vld [vmem:[%s8625_s24 + $0x98] sm:$0xff]  ;;  %v8509_v45 = vld [vmem:[%s8625_s24 + $0xb0] sm:$0xff] }
 0x190   : > { %v1204_v2 = vpop.permute.xlu0 %1203  ;;  %1599 = vrot.lane.b32.xlu1 %v9143_v26, %s8531_s30  ;;  %v8505_v26 = vld [vmem:[%s8625_s24 + $0x90] sm:$0xff] }
 0x191   : > { %1296 = vst.msk [vmem:[#allocation4 + $0x20] sm:$0xff] %vm1291_vm5, %v1204_v2 }
 0x192   : > { %1597 = vrot.lane.b32.xlu0 %v9141_v8, %s8531_s30  ;;  %v1045_v4 = vpop.permute.xlu1 %1044  ;;  %8284 = vmatmul.mubr.msk.f32.gmra.mrb[32].mxu0 %vm427_vm1, %v8504_v24  ;;  %v8510_v24 = vld [vmem:[%s8625_s24 + $0xb8] sm:$0xff] }
 0x193   : > { %1120 = vst.msk [vmem:[#allocation4 + $0xa8] sm:$0xff] %vm1098_vm4, %v1045_v4  ;;  %8286 = vmatprep.mubr.msk.f32.mxu0 %vm427_vm1, %v8505_v26  ;;  %v8511_v26 = vld [vmem:[%s8625_s24 + $0xc0] sm:$0xff] }
 0x194   : > { %v1236_v53 = vpop.permute.xlu0 %1235  ;;  %1631 = vrot.lane.b32.xlu1 %v9205_v33, %s8531_s30  ;;  %v8507_v33 = vld [vmem:[%s8625_s24 + $0xa0] sm:$0xff] }
 0x195   : > { %1312 = vst.msk [vmem:[#allocation4 + $0xa0] sm:$0xff] %vm1291_vm5, %v1236_v53 }
 0x196   : > { %1629 = vrot.lane.b32.xlu0 %v9203_v25, %s8531_s30  ;;  %v1206_v8 = vpop.permute.xlu1 %1205  ;;  %8287 = vmatmul.mubr.msk.f32.gmra.mrb[34].mxu0 %vm427_vm1, %v8506_v1  ;;  %v8512_v1 = vld [vmem:[%s8625_s24 + $0xc8] sm:$0xff] }
 0x197   : > { %1297 = vst.msk [vmem:[#allocation4 + $0x28] sm:$0xff] %vm1291_vm5, %v1206_v8  ;;  %8289 = vmatprep.mubr.msk.f32.mxu0 %vm427_vm1, %v8507_v33  ;;  %v8513_v33 = vld [vmem:[%s8625_s24 + $0xd0] sm:$0xff] }
 0x198   : > { %v1393_v63 = vpop.permute.xlu0 %1392  ;;  %1406 = vrot.lane.b32.xlu1 %v8969_v5, %s8530_s29 }
 0x199   : > { %1487 = vst.msk [vmem:[#allocation4 + $0x10] sm:$0xff] %vm1484_vm6, %v1393_v63 }
 0x19a   : > { %1026 = vrot.lane.b32.xlu0 %v9275_v18, %s8528_s25  ;;  %v1238_v25 = vpop.permute.xlu1 %1237  ;;  %8290 = vmatmul.mubr.msk.f32.gmra.mrb[36].mxu0 %vm427_vm1, %v8508_v32  ;;  %v8514_v32 = vld [vmem:[%s8625_s24 + $0xd8] sm:$0xff] }
 0x19b   : > { %1313 = vst.msk [vmem:[#allocation4 + $0xa8] sm:$0xff] %vm1291_vm5, %v1238_v25  ;;  %8292 = vmatprep.mubr.msk.f32.mxu0 %vm427_vm1, %v8509_v45  ;;  %v8515_v45 = vld [vmem:[%s8625_s24 + $0xe0] sm:$0xff] }
 0x19c   : > { %v1425_v2 = vpop.permute.xlu0 %1424  ;;  %1438 = vrot.lane.b32.xlu1 %v8973_v6, %s8530_s29 }
 0x19d   : > { %1503 = vst.msk [vmem:[#allocation4 + $0x90] sm:$0xff] %vm1484_vm6, %v1425_v2 }
 0x19e   : > { %1058 = vrot.lane.b32.xlu0 %v9305_v38, %s8528_s25  ;;  %v1588_v4 = vpop.permute.xlu1 %1587  ;;  %8293 = vmatmul.mubr.msk.f32.gmra.mrb[38].mxu0 %vm427_vm1, %v8510_v24 }
 0x19f   : > { %8295 = vmatprep.mubr.msk.f32.mxu0 %vm427_vm1, %v8511_v26  ;;  %v8516_v26 = vld [vmem:[%s8625_s24 + $0xe8] sm:$0xff] }
 0x1a0   : > { %v1586_v53 = vpop.permute.xlu0 %1585  ;;  %1028 = vrot.lane.b32.xlu1 %v9277_v31, %s8528_s25 }
 0x1a1   : > { %1680 = vst.msk [vmem:[#allocation4 + $0x10] sm:$0xff] %vm1677_vm7, %v1586_v53 }
 0x1a2   : > { %1219 = vrot.lane.b32.xlu0 %v9281_v10, %s8529_s26  ;;  %v1620_v8 = vpop.permute.xlu1 %1619  ;;  %8296 = vmatmul.mubr.msk.f32.gmra.mrb[40].mxu0 %vm427_vm1, %v8512_v1 }
 0x1a3   : > { %8298 = vmatprep.mubr.msk.f32.mxu0 %vm427_vm1, %v8513_v33 }
 0x1a4   : > { %v1618_v63 = vpop.permute.xlu0 %1617  ;;  %1060 = vrot.lane.b32.xlu1 %v9307_v49, %s8528_s25 }
 0x1a5   : > { %1696 = vst.msk [vmem:[#allocation4 + $0x90] sm:$0xff] %vm1677_vm7, %v1618_v63  ;;  %v8517_v63 = vld [vmem:[%s8625_s24 + $0xf0] sm:$0xff] }
 0x1a6   : > { %1251 = vrot.lane.b32.xlu0 %v9309_v54, %s8529_s26  ;;  %v1781_v25 = vpop.permute.xlu1 %1780  ;;  %8299 = vmatmul.mubr.msk.f32.gmra.mrb[42].mxu0 %vm427_vm1, %v8514_v32 }
 0x1a7   : > { %8301 = vmatprep.mubr.msk.f32.mxu0 %vm427_vm1, %v8515_v45 }
 0x1a8   : > { %v1779_v2 = vpop.permute.xlu0 %1778  ;;  %1221 = vrot.lane.b32.xlu1 %v9283_v12, %s8529_s26 }
 0x1a9   : > { %1873 = vst.msk [vmem:[#allocation4 + $0x10] sm:$0xff] %vm1870_vm8, %v1779_v2  ;;  %v8518_v2 = vld [vmem:[%s8625_s24 + $0xf8] sm:$0xff] }
 0x1aa   : > { %1408 = vrot.lane.b32.xlu0 %v9233_v29, %s8530_s29  ;;  %v1395_v53 = vpop.permute.xlu1 %1394  ;;  %8302 = vmatmul.mubr.msk.f32.gmra.mrb[44].mxu0 %vm427_vm1, %v8516_v26 }
 0x1ab   : > { %1488 = vst.msk [vmem:[#allocation4 + $0x18] sm:$0xff] %vm1484_vm6, %v1395_v53  ;;  %8304 = vmatprep.mubr.msk.f32.mxu0 %vm427_vm1, %v8517_v63 }
 0x1ac   : > { %v1015_v24 = vpop.permute.xlu0 %1014  ;;  %1681 = vst.msk [vmem:[#allocation4 + $0x18] sm:$0xff] %vm1677_vm7, %v1588_v4  ;;  %1253 = vrot.lane.b32.xlu1 %v9311_v37, %s8529_s26 }
 0x1ad   : > { %1105 = vst.msk [vmem:[#allocation4 + $0x30] sm:$0xff] %vm1098_vm4, %v1015_v24 }
 0x1ae   : > { %1874 = vst.msk [vmem:[#allocation4 + $0x18] sm:$0xff] %vm1870_vm8, %v1781_v25  ;;  %1440 = vrot.lane.b32.xlu0 %v9245_v34, %s8530_s29  ;;  %v1427_v1 = vpop.permute.xlu1 %1426  ;;  %8305 = vmatmul.mubr.msk.f32.gmra.mrb[46].mxu0 %vm427_vm1, %v8518_v2 }
 0x1af   : > { %1504 = vst.msk [vmem:[#allocation4 + $0x98] sm:$0xff] %vm1484_vm6, %v1427_v1 }
 0x1b0   : > { %v1047_v33 = vpop.permute.xlu0 %1046  ;;  %1697 = vst.msk [vmem:[#allocation4 + $0x98] sm:$0xff] %vm1677_vm7, %v1620_v8  ;;  %1603 = vrot.lane.b32.xlu1 %v9277_v31, %s8531_s30 }
 0x1b1   : > { %1121 = vst.msk [vmem:[#allocation4 + $0xb0] sm:$0xff] %vm1098_vm4, %v1047_v33 }
 0x1b2   : > { %1601 = vrot.lane.b32.xlu0 %v9275_v18, %s8531_s30  ;;  %v1017_v4 = vpop.permute.xlu1 %1016 }
 0x1b3   : > { %1106 = vst.msk [vmem:[#allocation4 + $0x38] sm:$0xff] %vm1098_vm4, %v1017_v4 }
 0x1b4   : > { %v1208_v25 = vpop.permute.xlu0 %1207  ;;  %1635 = vrot.lane.b32.xlu1 %v9307_v49, %s8531_s30 }
 0x1b5   : > { %1298 = vst.msk [vmem:[#allocation4 + $0x30] sm:$0xff] %vm1291_vm5, %v1208_v25 }
 0x1b6   : > { %1633 = vrot.lane.b32.xlu0 %v9305_v38, %s8531_s30  ;;  %v1049_v8 = vpop.permute.xlu1 %1048 }
 0x1b7   : > { %1122 = vst.msk [vmem:[#allocation4 + $0xb8] sm:$0xff] %vm1098_vm4, %v1049_v8 }
 0x1b8   : > { %v1240_v32 = vpop.permute.xlu0 %1239  ;;  %1410 = vrot.lane.b32.xlu1 %v9235_v30, %s8530_s29 }
 0x1b9   : > { %1314 = vst.msk [vmem:[#allocation4 + $0xb0] sm:$0xff] %vm1291_vm5, %v1240_v32 }
 0x1ba   : > { %1030 = vrot.lane.b32.xlu0 %v9375_v58, %s8528_s25  ;;  %v1210_v18 = vpop.permute.xlu1 %1209 }
 0x1bb   : > { %1299 = vst.msk [vmem:[#allocation4 + $0x38] sm:$0xff] %vm1291_vm5, %v1210_v18 }
 0x1bc   : > { %v1397_v31 = vpop.permute.xlu0 %1396  ;;  %1442 = vrot.lane.b32.xlu1 %v9247_v48, %s8530_s29 }
 0x1bd   : > { %1489 = vst.msk [vmem:[#allocation4 + $0x20] sm:$0xff] %vm1484_vm6, %v1397_v31 }
 0x1be   : > { %1062 = vrot.lane.b32.xlu0 %v9398_v43, %s8528_s25  ;;  %v1242_v38 = vpop.permute.xlu1 %1241 }
 0x1bf   : > { %1315 = vst.msk [vmem:[#allocation4 + $0xb8] sm:$0xff] %vm1291_vm5, %v1242_v38 }
 0x1c0   : > { %v1429_v49 = vpop.permute.xlu0 %1428  ;;  %1032 = vrot.lane.b32.xlu1 %v9377_v59, %s8528_s25 }
 0x1c1   : > { %1505 = vst.msk [vmem:[#allocation4 + $0xa0] sm:$0xff] %vm1484_vm6, %v1429_v49 }
 0x1c2   : > { %1223 = vrot.lane.b32.xlu0 %v9379_v40, %s8529_s26  ;;  %v1592_v45 = vpop.permute.xlu1 %1591 }
 0x1c4   : > { %v1590_v53 = vpop.permute.xlu0 %1589  ;;  %1064 = vrot.lane.b32.xlu1 %v9400_v11, %s8528_s25 }
 0x1c5   : > { %1682 = vst.msk [vmem:[#allocation4 + $0x20] sm:$0xff] %vm1677_vm7, %v1590_v53 }
 0x1c6   : > { %1255 = vrot.lane.b32.xlu0 %v9403_v20, %s8529_s26  ;;  %v1624_v24 = vpop.permute.xlu1 %1623 }
 0x1c8   : > { %v1622_v26 = vpop.permute.xlu0 %1621  ;;  %1225 = vrot.lane.b32.xlu1 %v9381_v28, %s8529_s26 }
 0x1c9   : > { %1698 = vst.msk [vmem:[#allocation4 + $0xa0] sm:$0xff] %vm1677_vm7, %v1622_v26 }
 0x1ca   : > { %1412 = vrot.lane.b32.xlu0 %v9333_v50, %s8530_s29  ;;  %v1399_v63 = vpop.permute.xlu1 %1398 }
 0x1cb   : > { %1490 = vst.msk [vmem:[#allocation4 + $0x28] sm:$0xff] %vm1484_vm6, %v1399_v63 }
 0x1cc   : > { %v1019_v1 = vpop.permute.xlu0 %1018  ;;  %1683 = vst.msk [vmem:[#allocation4 + $0x28] sm:$0xff] %vm1677_vm7, %v1592_v45  ;;  %1257 = vrot.lane.b32.xlu1 %v9409_v60, %s8529_s26 }
 0x1cd   : > { %1107 = vst.msk [vmem:[#allocation4 + $0x40] sm:$0xff] %vm1098_vm4, %v1019_v1 }
 0x1ce   : > { %1444 = vrot.lane.b32.xlu0 %v9345_v51, %s8530_s29  ;;  %v1431_v33 = vpop.permute.xlu1 %1430 }
 0x1cf   : > { %1506 = vst.msk [vmem:[#allocation4 + $0xa8] sm:$0xff] %vm1484_vm6, %v1431_v33 }
 0x1d0   : > { %v1051_v2 = vpop.permute.xlu0 %1050  ;;  %1699 = vst.msk [vmem:[#allocation4 + $0xa8] sm:$0xff] %vm1677_vm7, %v1624_v24  ;;  %1607 = vrot.lane.b32.xlu1 %v9377_v59, %s8531_s30 }
 0x1d1   : > { %1123 = vst.msk [vmem:[#allocation4 + $0xc0] sm:$0xff] %vm1098_vm4, %v1051_v2 }
 0x1d2   : > { %1605 = vrot.lane.b32.xlu0 %v9375_v58, %s8531_s30  ;;  %v1021_v4 = vpop.permute.xlu1 %1020 }
 0x1d3   : > { %1108 = vst.msk [vmem:[#allocation4 + $0x48] sm:$0xff] %vm1098_vm4, %v1021_v4 }
 0x1d4   : > { %v1212_v25 = vpop.permute.xlu0 %1211  ;;  %1639 = vrot.lane.b32.xlu1 %v9400_v11, %s8531_s30 }
 0x1d5   : > { %1300 = vst.msk [vmem:[#allocation4 + $0x40] sm:$0xff] %vm1291_vm5, %v1212_v25 }
 0x1d6   : > { %1637 = vrot.lane.b32.xlu0 %v9398_v43, %s8531_s30  ;;  %v1053_v8 = vpop.permute.xlu1 %1052 }
 0x1d7   : > { %1124 = vst.msk [vmem:[#allocation4 + $0xc8] sm:$0xff] %vm1098_vm4, %v1053_v8 }
 0x1d8   : > { %v1244_v32 = vpop.permute.xlu0 %1243  ;;  %1414 = vrot.lane.b32.xlu1 %v9335_v55, %s8530_s29 }
 0x1d9   : > { %1316 = vst.msk [vmem:[#allocation4 + $0xc0] sm:$0xff] %vm1291_vm5, %v1244_v32 }
 0x1da   : > { %1034 = vrot.lane.b32.xlu0 %v9477_v62, %s8528_s25  ;;  %v1214_v18 = vpop.permute.xlu1 %1213 }
 0x1db   : > { %1301 = vst.msk [vmem:[#allocation4 + $0x48] sm:$0xff] %vm1291_vm5, %v1214_v18  ;;  %v12954_v18 = vld [vmem:[#allocation9_spill] sm:$0xff] }
 0x1dc   : > { %v1401_v31 = vpop.permute.xlu0 %1400  ;;  %1446 = vrot.lane.b32.xlu1 %v9347_v16, %s8530_s29 }
 0x1dd   : > { %1491 = vst.msk [vmem:[#allocation4 + $0x30] sm:$0xff] %vm1484_vm6, %v1401_v31 }
 0x1de   : > { %1227 = vrot.lane.b32.xlu0 %v9479_v46, %s8529_s26  ;;  %v1246_v43 = vpop.permute.xlu1 %1245 }
 0x1df   : > { %1317 = vst.msk [vmem:[#allocation4 + $0xc8] sm:$0xff] %vm1291_vm5, %v1246_v43  ;;  %v12955_v43 = vld [vmem:[#allocation10_spill] sm:$0xff] }
 0x1e0   : > { %v1433_v11 = vpop.permute.xlu0 %1432  ;;  %1036 = vrot.lane.b32.xlu1 %v9481_v61, %s8528_s25 }
 0x1e1   : > { %1507 = vst.msk [vmem:[#allocation4 + $0xb0] sm:$0xff] %vm1484_vm6, %v1433_v11 }
 0x1e2   : > { %1416 = vrot.lane.b32.xlu0 %v9427_v44, %s8530_s29  ;;  %v1596_v38 = vpop.permute.xlu1 %1595 }
 0x1e4   : > { %v1594_v49 = vpop.permute.xlu0 %1593  ;;  %1229 = vrot.lane.b32.xlu1 %v9483_v0, %s8529_s26 }
 0x1e5   : > { %1684 = vst.msk [vmem:[#allocation4 + $0x30] sm:$0xff] %vm1677_vm7, %v1594_v49  ;;  %v12956_v49 = vld [vmem:[#allocation17_spill] sm:$0xff] }
 0x1e6   : > { %1448 = vrot.lane.b32.xlu0 %v9501_v52, %s8530_s29  ;;  %v1628_v45 = vpop.permute.xlu1 %1627 }
 0x1e8   : > { %v1626_v53 = vpop.permute.xlu0 %1625  ;;  %1611 = vrot.lane.b32.xlu1 %v9481_v61, %s8531_s30 }
 0x1e9   : > { %1700 = vst.msk [vmem:[#allocation4 + $0xb0] sm:$0xff] %vm1677_vm7, %v1626_v53 }
 0x1ea   : > { %1609 = vrot.lane.b32.xlu0 %v9477_v62, %s8531_s30  ;;  %v1403_v24 = vpop.permute.xlu1 %1402 }
 0x1eb   : > { %1492 = vst.msk [vmem:[#allocation4 + $0x38] sm:$0xff] %vm1484_vm6, %v1403_v24 }
 0x1ec   : > { %v1023_v26 = vpop.permute.xlu0 %1022  ;;  %1685 = vst.msk [vmem:[#allocation4 + $0x38] sm:$0xff] %vm1677_vm7, %v1596_v38  ;;  %1643 = vrot.lane.b32.xlu1 %v9503_v21, %s8531_s30 }
 0x1ed   : > { %1109 = vst.msk [vmem:[#allocation4 + $0x50] sm:$0xff] %vm1098_vm4, %v1023_v26 }
 0x1ee   : > { %1641 = vrot.lane.b32.xlu0 %v9505_v23, %s8531_s30  ;;  %v1435_v63 = vpop.permute.xlu1 %1434 }
 0x1ef   : > { %1508 = vst.msk [vmem:[#allocation4 + $0xb8] sm:$0xff] %vm1484_vm6, %v1435_v63 }
 0x1f0   : > { %v1055_v1 = vpop.permute.xlu0 %1054  ;;  %1701 = vst.msk [vmem:[#allocation4 + $0xb8] sm:$0xff] %vm1677_vm7, %v1628_v45  ;;  %1418 = vrot.lane.b32.xlu1 %v9431_v19, %s8530_s29 }
 0x1f1   : > { %1125 = vst.msk [vmem:[#allocation4 + $0xd0] sm:$0xff] %vm1098_vm4, %v1055_v1  ;;  %v12959_v1 = vld [vmem:[#allocation24_spill] sm:$0xff] }
 0x1f2   : > { %1782 = vrot.lane.b32.xlu0 %v9065_v57, %s8532_s12  ;;  %v1025_v33 = vpop.permute.xlu1 %1024 }
 0x1f3   : > { %1110 = vst.msk [vmem:[#allocation4 + $0x58] sm:$0xff] %vm1098_vm4, %v1025_v33 }
 0x1f4   : > { %v1216_v2 = vpop.permute.xlu0 %1215  ;;  %1450 = vrot.lane.b32.xlu1 %v9511_v39, %s8530_s29 }
 0x1f5   : > { %1302 = vst.msk [vmem:[#allocation4 + $0x50] sm:$0xff] %vm1291_vm5, %v1216_v2  ;;  %v12960_v2 = vld [vmem:[#allocation25_spill] sm:$0xff] }
 0x1f6   : > { %1786 = vrot.lane.b32.xlu0 %v9069_v7, %s8532_s12  ;;  %v1057_v4 = vpop.permute.xlu1 %1056 }
 0x1f7   : > { %1126 = vst.msk [vmem:[#allocation4 + $0xd8] sm:$0xff] %vm1098_vm4, %v1057_v4  ;;  %v12961_v4 = vld [vmem:[#allocation26_spill] sm:$0xff] }
 0x1f8   : > { %v1248_v25 = vpop.permute.xlu0 %1247  ;;  %1784 = vrot.lane.b32.xlu1 %v9097_v42, %s8532_s12 }
 0x1f9   : > { %1318 = vst.msk [vmem:[#allocation4 + $0xd0] sm:$0xff] %vm1291_vm5, %v1248_v25 }
 0x1fa   : > { %1790 = vrot.lane.b32.xlu0 %v9145_v27, %s8532_s12  ;;  %v1218_v57 = vpop.permute.xlu1 %1217 }
 0x1fb   : > { %1303 = vst.msk [vmem:[#allocation4 + $0x58] sm:$0xff] %vm1291_vm5, %v1218_v57 }
 0x1fc   : > { %v1405_v8 = vpop.permute.xlu0 %1404  ;;  %1788 = vrot.lane.b32.xlu1 %v9105_v35, %s8532_s12 }
 0x1fd   : > { %1493 = vst.msk [vmem:[#allocation4 + $0x40] sm:$0xff] %vm1484_vm6, %v1405_v8  ;;  %v12962_v8 = vld [vmem:[#allocation30_spill] sm:$0xff] }
 0x1fe   : > { %1794 = vrot.lane.b32.xlu0 %v9281_v10, %s8532_s12  ;;  %v1250_v7 = vpop.permute.xlu1 %1249 }
 0x1ff   : > { %1319 = vst.msk [vmem:[#allocation4 + $0xd8] sm:$0xff] %vm1291_vm5, %v1250_v7 }
 0x200   : > { %v1437_v32 = vpop.permute.xlu0 %1436  ;;  %1792 = vrot.lane.b32.xlu1 %v9147_v13, %s8532_s12 }
 0x201   : > { %1509 = vst.msk [vmem:[#allocation4 + $0xc0] sm:$0xff] %vm1484_vm6, %v1437_v32 }
 0x202   : > { %1798 = vrot.lane.b32.xlu0 %v9379_v40, %s8532_s12  ;;  %v1600_v27 = vpop.permute.xlu1 %1599 }
 0x204   : > { %v1598_v42 = vpop.permute.xlu0 %1597  ;;  %1796 = vrot.lane.b32.xlu1 %v9283_v12, %s8532_s12 }
 0x205   : > { %1686 = vst.msk [vmem:[#allocation4 + $0x40] sm:$0xff] %vm1677_vm7, %v1598_v42 }
 0x206   : > { %1802 = vrot.lane.b32.xlu0 %v9479_v46, %s8532_s12  ;;  %v1632_v35 = vpop.permute.xlu1 %1631  ;;  %v12953_v46 = vld [vmem:[#allocation8_spill] sm:$0xff] }
 0x208   : > { %v1630_v10 = vpop.permute.xlu0 %1629  ;;  %1800 = vrot.lane.b32.xlu1 %v9381_v28, %s8532_s12 }
 0x209   : > { %1702 = vst.msk [vmem:[#allocation4 + $0xc0] sm:$0xff] %vm1677_vm7, %v1630_v10 }
 0x20a   : > { %1806 = vrot.lane.b32.xlu0 %v8995_v14, %s8532_s12  ;;  %v1407_v13 = vpop.permute.xlu1 %1406 }
 0x20b   : > { %1494 = vst.msk [vmem:[#allocation4 + $0x48] sm:$0xff] %vm1484_vm6, %v1407_v13 }
 0x20c   : > { %v1027_v40 = vpop.permute.xlu0 %1026  ;;  %1687 = vst.msk [vmem:[#allocation4 + $0x48] sm:$0xff] %vm1677_vm7, %v1600_v27  ;;  %1804 = vrot.lane.b32.xlu1 %v9483_v0, %s8532_s12  ;;  %v12963_v27 = vld [vmem:[#allocation6_spill] sm:$0xff] }
 0x20d   : > { %1111 = vst.msk [vmem:[#allocation4 + $0x60] sm:$0xff] %vm1098_vm4, %v1027_v40 }
 0x20e   : > { %1810 = vrot.lane.b32.xlu0 %v8997_v15, %s8532_s12  ;;  %v1439_v12 = vpop.permute.xlu1 %1438 }
 0x20f   : > { %1510 = vst.msk [vmem:[#allocation4 + $0xc8] sm:$0xff] %vm1484_vm6, %v1439_v12 }
 0x210   : > { %v1059_v28 = vpop.permute.xlu0 %1058  ;;  %1703 = vst.msk [vmem:[#allocation4 + $0xc8] sm:$0xff] %vm1677_vm7, %v1632_v35  ;;  %1808 = vrot.lane.b32.xlu1 %v12953_v46, %s8532_s12 }
 0x211   : > { %1127 = vst.msk [vmem:[#allocation4 + $0xe0] sm:$0xff] %vm1098_vm4, %v1059_v28  ;;  %v12967_v28 = vld [vmem:[#allocation13_spill] sm:$0xff] }
 0x212   : > { %1814 = vrot.lane.b32.xlu0 %v12954_v18, %s8532_s12  ;;  %v1029_v31 = vpop.permute.xlu1 %1028 }
 0x213   : > { %1112 = vst.msk [vmem:[#allocation4 + $0x68] sm:$0xff] %vm1098_vm4, %v1029_v31 }
 0x214   : > { %v1220_v0 = vpop.permute.xlu0 %1219  ;;  %1812 = vrot.lane.b32.xlu1 %v12955_v43, %s8532_s12 }
 0x215   : > { %1304 = vst.msk [vmem:[#allocation4 + $0x60] sm:$0xff] %vm1291_vm5, %v1220_v0  ;;  %v12968_v0 = vld [vmem:[#allocation14_spill] sm:$0xff] }
 0x216   : > { %1818 = vrot.lane.b32.xlu0 %v9103_v36, %s8532_s12  ;;  %v1061_v11 = vpop.permute.xlu1 %1060 }
 0x217   : > { %1128 = vst.msk [vmem:[#allocation4 + $0xe8] sm:$0xff] %vm1098_vm4, %v1061_v11  ;;  %v12969_v11 = vld [vmem:[#allocation71_spill] sm:$0xff] }
 0x218   : > { %v1252_v38 = vpop.permute.xlu0 %1251  ;;  %1816 = vrot.lane.b32.xlu1 %v12956_v49, %s8532_s12 }
 0x219   : > { %1320 = vst.msk [vmem:[#allocation4 + $0xe0] sm:$0xff] %vm1291_vm5, %v1252_v38  ;;  %v12970_v38 = vld [vmem:[#allocation31_spill] sm:$0xff] }
 0x21a   : > { %1822 = vrot.lane.b32.xlu0 %v9207_v47, %s8532_s12  ;;  %v1222_v45 = vpop.permute.xlu1 %1221 }
 0x21b   : > { %1305 = vst.msk [vmem:[#allocation4 + $0x68] sm:$0xff] %vm1291_vm5, %v1222_v45 }
 0x21c   : > { %v1409_v53 = vpop.permute.xlu0 %1408  ;;  %1820 = vrot.lane.b32.xlu1 %v9123_v17, %s8532_s12 }
 0x21d   : > { %1495 = vst.msk [vmem:[#allocation4 + $0x50] sm:$0xff] %vm1484_vm6, %v1409_v53 }
 0x21e   : > { %1826 = vrot.lane.b32.xlu0 %v9309_v54, %s8532_s12  ;;  %v1254_v36 = vpop.permute.xlu1 %1253 }
 0x21f   : > { %1321 = vst.msk [vmem:[#allocation4 + $0xe8] sm:$0xff] %vm1291_vm5, %v1254_v36  ;;  %v12971_v36 = vld [vmem:[#allocation19_spill] sm:$0xff] }
 0x220   : > { %v1441_v24 = vpop.permute.xlu0 %1440  ;;  %1824 = vrot.lane.b32.xlu1 %v9215_v41, %s8532_s12  ;;  %v12957_v41 = vld [vmem:[#allocation18_spill] sm:$0xff] }
 0x221   : > { %1511 = vst.msk [vmem:[#allocation4 + $0xd0] sm:$0xff] %vm1484_vm6, %v1441_v24  ;;  %v12972_v24 = vld [vmem:[#allocation50_spill] sm:$0xff] }
 0x222   : > { %1830 = vrot.lane.b32.xlu0 %v9403_v20, %s8532_s12  ;;  %v1604_v47 = vpop.permute.xlu1 %1603 }
 0x224   : > { %v1602_v26 = vpop.permute.xlu0 %1601  ;;  %1828 = vrot.lane.b32.xlu1 %v9311_v37, %s8532_s12  ;;  %v12958_v37 = vld [vmem:[#allocation72_spill] sm:$0xff] }
 0x225   : > { %1688 = vst.msk [vmem:[#allocation4 + $0x50] sm:$0xff] %vm1677_vm7, %v1602_v26 }
 0x226   : > { %1834 = vrot.lane.b32.xlu0 %v9513_v56, %s8532_s12  ;;  %v1636_v17 = vpop.permute.xlu1 %1635 }
 0x228   : > { %v1634_v54 = vpop.permute.xlu0 %1633  ;;  %1832 = vrot.lane.b32.xlu1 %v9409_v60, %s8532_s12 }
 0x229   : > { %1704 = vst.msk [vmem:[#allocation4 + $0xd0] sm:$0xff] %vm1677_vm7, %v1634_v54 }
 0x22a   : > { %1968 = vrot.lane.b32.xlu0 %v12957_v41, %s8533_s15  ;;  %v1411_v20 = vpop.permute.xlu1 %1410 }
 0x22b   : > { %1496 = vst.msk [vmem:[#allocation4 + $0x58] sm:$0xff] %vm1484_vm6, %v1411_v20 }
 0x22c   : > { %v1031_v63 = vpop.permute.xlu0 %1030  ;;  %1689 = vst.msk [vmem:[#allocation4 + $0x58] sm:$0xff] %vm1677_vm7, %v1604_v47  ;;  %1836 = vrot.lane.b32.xlu1 %v12958_v37, %s8532_s12 }
 0x22d   : > { %1113 = vst.msk [vmem:[#allocation4 + $0x70] sm:$0xff] %vm1098_vm4, %v1031_v63 }
 0x22e   : > { %1972 = vrot.lane.b32.xlu0 %v12959_v1, %s8533_s15  ;;  %v1443_v33 = vpop.permute.xlu1 %1442  ;;  %v9935_v1 = vld [vmem:[%s12846_s6] ss:$0 sm:$0xff] }
 0x22f   : > { %1512 = vst.msk [vmem:[#allocation4 + $0xd8] sm:$0xff] %vm1484_vm6, %v1443_v33 }
 0x230   : > { %v1063_v60 = vpop.permute.xlu0 %1062  ;;  %1705 = vst.msk [vmem:[#allocation4 + $0xd8] sm:$0xff] %vm1677_vm7, %v1636_v17  ;;  %1970 = vrot.lane.b32.xlu1 %v12960_v2, %s8533_s15  ;;  %v12974_v17 = vld [vmem:[#allocation73_spill] sm:$0xff] }
 0x231   : > { %1129 = vst.msk [vmem:[#allocation4 + $0xf0] sm:$0xff] %vm1098_vm4, %v1063_v60  ;;  %v1934_v60 = vld [vmem:[#allocation2 + $0x198] sm:$0xff] }
 0x232   : > { %1976 = vrot.lane.b32.xlu0 %v12961_v4, %s8533_s15  ;;  %v1033_v25 = vpop.permute.xlu1 %1032 }
 0x233   : > { %1114 = vst.msk [vmem:[#allocation4 + $0x78] sm:$0xff] %vm1098_vm4, %v1033_v25 }
 0x234   : > { %v1224_v57 = vpop.permute.xlu0 %1223  ;;  %1974 = vrot.lane.b32.xlu1 %v12962_v8, %s8533_s15 }
 0x235   : > { %1306 = vst.msk [vmem:[#allocation4 + $0x70] sm:$0xff] %vm1291_vm5, %v1224_v57 }
 0x236   : > { %1980 = vrot.lane.b32.xlu0 %v8965_v3, %s8533_s15  ;;  %v1065_v7 = vpop.permute.xlu1 %1064 }
 0x237   : > { %1130 = vst.msk [vmem:[#allocation4 + $0xf8] sm:$0xff] %vm1098_vm4, %v1065_v7  ;;  %v9953_v7 = vld [vmem:[#allocation2 + $0x19a] sm:$0xff] }
 0x238   : > { %v1256_v32 = vpop.permute.xlu0 %1255  ;;  %1978 = vrot.lane.b32.xlu1 %v12963_v27, %s8533_s15  ;;  %v12975_v27 = vmov 0.0  }
 0x239   : > { %1322 = vst.msk [vmem:[#allocation4 + $0xf0] sm:$0xff] %vm1291_vm5, %v1256_v32 }
 0x23a   : > { %1984 = vrot.lane.b32.xlu0 %v9233_v29, %s8533_s15  ;;  %v1226_v42 = vpop.permute.xlu1 %1225 }
 0x23b   : > { %1307 = vst.msk [vmem:[#allocation4 + $0x78] sm:$0xff] %vm1291_vm5, %v1226_v42 }
 0x23c   : > { %v1413_v35 = vpop.permute.xlu0 %1412  ;;  %1982 = vrot.lane.b32.xlu1 %v8969_v5, %s8533_s15  ;;  %v12964_v5 = vld [vmem:[#allocation7_spill] sm:$0xff] }
 0x23d   : > { %1497 = vst.msk [vmem:[#allocation4 + $0x60] sm:$0xff] %vm1484_vm6, %v1413_v35 }
 0x23e   : > { %1988 = vrot.lane.b32.xlu0 %v9333_v50, %s8533_s15  ;;  %v1258_v3 = vpop.permute.xlu1 %1257 }
 0x23f   : > { %1323 = vst.msk [vmem:[#allocation4 + $0xf8] sm:$0xff] %vm1291_vm5, %v1258_v3 }
 0x240   : > { %v1445_v10 = vpop.permute.xlu0 %1444  ;;  %1986 = vrot.lane.b32.xlu1 %v9235_v30, %s8533_s15  ;;  %v12965_v30 = vld [vmem:[#allocation11_spill] sm:$0xff]  ;;  %v8261_v63 = vpop.f32.mrb[16].mxu0 }
 0x241   : > { %1513 = vst.msk [vmem:[#allocation4 + $0xe0] sm:$0xff] %vm1484_vm6, %v1445_v10  ;;  %v2962_v33 = vpop.f32.mrb[17].mxu0 }
 0x242   : > { %1992 = vrot.lane.b32.xlu0 %v9427_v44, %s8533_s15  ;;  %v1608_v29 = vpop.permute.xlu1 %1607 }
 0x244   : > { %v1606_v13 = vpop.permute.xlu0 %1605  ;;  %1990 = vrot.lane.b32.xlu1 %v9335_v55, %s8533_s15  ;;  %v12966_v55 = vld [vmem:[#allocation12_spill] sm:$0xff] }
 0x245   : > { %1690 = vst.msk [vmem:[#allocation4 + $0x60] sm:$0xff] %vm1677_vm7, %v1606_v13  ;;  %v8264_v57 = vpop.f32.mrb[18].mxu0 }
 0x246   : > { %1996 = vrot.lane.b32.xlu0 %v12964_v5, %s8533_s15  ;;  %v1640_v50 = vpop.permute.xlu1 %1639  ;;  %v2972_v8 = vpop.f32.mrb[19].mxu0  ;;  %v12976_v5 = vld [vmem:[#allocation20_spill] sm:$0xff] }
 0x247   : > { %v2973_v32 = vadd.f32 %v9935_v1, %v2972_v8 }
 0x248   : > { %v1638_v40 = vpop.permute.xlu0 %1637  ;;  %1994 = vrot.lane.b32.xlu1 %v9431_v19, %s8533_s15 }
 0x249   : > { %1706 = vst.msk [vmem:[#allocation4 + $0xe0] sm:$0xff] %vm1677_vm7, %v1638_v40  ;;  %v3123_v3 = vmax.f32 %v2973_v32, 0.0 }
 0x24a   : > { %2000 = vrot.lane.b32.xlu0 %v12965_v30, %s8533_s15  ;;  %v1415_v44 = vpop.permute.xlu1 %1414 }
 0x24b   : > { %1498 = vst.msk [vmem:[#allocation4 + $0x68] sm:$0xff] %vm1484_vm6, %v1415_v44 }
 0x24c   : > { %v1035_v12 = vpop.permute.xlu0 %1034  ;;  %1691 = vst.msk [vmem:[#allocation4 + $0x68] sm:$0xff] %vm1677_vm7, %v1608_v29  ;;  %1998 = vrot.lane.b32.xlu1 %v12966_v55, %s8533_s15 }
 0x24d   : > { %1115 = vst.msk [vmem:[#allocation4 + $0x80] sm:$0xff] %vm1098_vm4, %v1035_v12  ;;  %v8267_v10 = vpop.f32.mrb[20].mxu0 }
 0x24e   : > { %2004 = vrot.lane.b32.xlu0 %v12967_v28, %s8533_s15  ;;  %v1447_v31 = vpop.permute.xlu1 %1446  ;;  %v2988_v29 = vadd.f32 %v8267_v10, %v9935_v1  ;;  %v2982_v13 = vpop.f32.mrb[21].mxu0  ;;  %3209 = vst.msk [vmem:[#allocation2 + $0x31] sm:$0xff] %vm785_vm2, %v3123_v3  ;;  %v9974_v28 = vld [vmem:[#allocation2 + $0x1a1] sm:$0xff] }
 0x24f   : > { %1514 = vst.msk [vmem:[#allocation4 + $0xe8] sm:$0xff] %vm1484_vm6, %v1447_v31  ;;  %v2983_v40 = vadd.f32 %v9935_v1, %v2982_v13  ;;  %v12983_v3 = vld [vmem:[#allocation55_spill] sm:$0xff] }
 0x250   : > { %v1228_v19 = vpop.permute.xlu0 %1227  ;;  %1707 = vst.msk [vmem:[#allocation4 + $0xe8] sm:$0xff] %vm1677_vm7, %v1640_v50  ;;  %2002 = vrot.lane.b32.xlu1 %v12968_v0, %s8533_s15  ;;  %v1935_v50 = vld [vmem:[#allocation2 + $0x1a0] sm:$0xff]  ;;  %v3126_v44 = vmax.f32 %v2988_v29, 0.0 }
 0x251   : > { %1308 = vst.msk [vmem:[#allocation4 + $0x80] sm:$0xff] %vm1291_vm5, %v1228_v19  ;;  %v8270_v55 = vpop.f32.mrb[22].mxu0  ;;  %v9978_v0 = vld [vmem:[#allocation2 + $0x1a2] sm:$0xff] }
 0x252   : > { %1501 = vst.msk [vmem:[#allocation4 + $0x80] sm:$0xff] %vm1484_vm6, %v12969_v11  ;;  %2008 = vrot.lane.b32.xlu0 %v12970_v38, %s8533_s15  ;;  %v1037_v45 = vpop.permute.xlu1 %1036  ;;  %v2998_v31 = vadd.f32 %v8270_v55, %v9935_v1  ;;  %v2992_v19 = vpop.f32.mrb[23].mxu0  ;;  %v12977_v11 = vld [vmem:[#allocation27_spill] sm:$0xff] }
 0x253   : > { %1694 = vst.msk [vmem:[#allocation4 + $0x80] sm:$0xff] %vm1677_vm7, %v9534_v22  ;;  %v12973_v22 = vld [vmem:[#allocation37_spill] sm:$0xff]  ;;  %v2993_v38 = vadd.f32 %v9935_v1, %v2992_v19 }
 0x254   : > { %1116 = vst.msk [vmem:[#allocation4 + $0x88] sm:$0xff] %vm1098_vm4, %v1037_v45  ;;  %v1417_v53 = vpop.permute.xlu0 %1416  ;;  %2006 = vrot.lane.b32.xlu1 %v12971_v36, %s8533_s15 }
 0x255   : > { %1499 = vst.msk [vmem:[#allocation4 + $0x70] sm:$0xff] %vm1484_vm6, %v1417_v53  ;;  %v3128_v53 = vmax.f32 %v2998_v31, 0.0 }
 0x256   : > { %2012 = vrot.lane.b32.xlu0 %v12972_v24, %s8533_s15  ;;  %v1230_v47 = vpop.permute.xlu1 %1229  ;;  %3212 = vst.msk [vmem:[#allocation2 + $0x51] sm:$0xff] %vm785_vm2, %v3126_v44  ;;  %v3127_v24 = vmax.f32 %v2993_v38, 0.0 }
 0x257   : > { %1309 = vst.msk [vmem:[#allocation4 + $0x88] sm:$0xff] %vm1291_vm5, %v1230_v47  ;;  %v8273_v47 = vpop.f32.mrb[24].mxu0 }
 0x258   : > { %v1449_v26 = vpop.permute.xlu0 %1448  ;;  %1502 = vst.msk [vmem:[#allocation4 + $0x88] sm:$0xff] %vm1484_vm6, %v9568_v9  ;;  %2010 = vrot.lane.b32.xlu1 %v12973_v22, %s8533_s15  ;;  %v3008_v22 = vadd.f32 %v8273_v47, %v9935_v1 }
 0x259   : > { %1515 = vst.msk [vmem:[#allocation4 + $0xf0] sm:$0xff] %vm1484_vm6, %v1449_v26  ;;  %v12978_v26 = vld [vmem:[#allocation28_spill] sm:$0xff] }
 0x25a   : > { %1695 = vst.msk [vmem:[#allocation4 + $0x88] sm:$0xff] %vm1677_vm7, %v12974_v17  ;;  %2016 = vrot.lane.b32.xlu0 %v9245_v34, %s8533_s15  ;;  %v1612_v54 = vpop.permute.xlu1 %1611  ;;  %v2968_v34 = vadd.f32 %v8261_v63, %v9935_v1  ;;  %v3002_v17 = vpop.f32.mrb[25].mxu0 }
 0x25b   : > { %3206 = vst.msk [vmem:[#allocation2 + $0x1a8] sm:$0x3] %vm788_vm3, %v12975_v27  ;;  %vm7077_vm3 = vcmask 1041408  }
 0x25c   : > { %v1610_v41 = vpop.permute.xlu0 %1609  ;;  %2014 = vrot.lane.b32.xlu1 %v8973_v6, %s8533_s15  ;;  %v2963_v6 = vadd.f32 %v9935_v1, %v2962_v33  ;;  %v3122_v2 = vmax.f32 %v2968_v34, 0.0  ;;  %3214 = vst.msk [vmem:[#allocation2 + $0x69] sm:$0xff] %vm785_vm2, %v3128_v53  ;;  %3213 = vst.msk [vmem:[#allocation2 + $0x61] sm:$0xff] %vm785_vm2, %v3127_v24  ;;  %v8276_v33 = vpop.f32.mrb[26].mxu0 }
 0x25d   : > { %1692 = vst.msk [vmem:[#allocation4 + $0x70] sm:$0xff] %vm1677_vm7, %v1610_v41  ;;  %v3003_v41 = vadd.f32 %v9935_v1, %v3002_v17 }
 0x25e   : > { %2020 = vrot.lane.b32.xlu0 %v9345_v51, %s8533_s15  ;;  %v1644_v9 = vpop.permute.xlu1 %1643  ;;  %v3121_v25 = vmax.f32 %v2963_v6, 0.0  ;;  %3208 = vst.msk [vmem:[#allocation2 + $0x21] sm:$0xff] %vm785_vm2, %v3122_v2  ;;  %v12980_v6 = vld [vmem:[#allocation32_spill] sm:$0xff] }
 0x25f   : > { %v3129_v34 = vmax.f32 %v3003_v41, 0.0  ;;  %v12981_v2 = vld [vmem:[#allocation44_spill] sm:$0xff]  ;;  %v12986_v41 = vld [vmem:[#allocation15_spill] sm:$0xff] }
 0x260   : > { %v1642_v20 = vpop.permute.xlu0 %1641  ;;  %2018 = vrot.lane.b32.xlu1 %v9247_v48, %s8533_s15  ;;  %v9949_v48 = vld [vmem:[#allocation2 + $0x199] sm:$0xff]  ;;  %3207 = vst.msk [vmem:[#allocation2 + $0x19] sm:$0xff] %vm785_vm2, %v3121_v25 }
 0x261   : > { %1708 = vst.msk [vmem:[#allocation4 + $0xf0] sm:$0xff] %vm1677_vm7, %v1642_v20  ;;  %v3130_v20 = vmax.f32 %v3008_v22, 0.0 }
 0x262   : > { %2024 = vrot.lane.b32.xlu0 %v9501_v52, %s8533_s15  ;;  %v1419_v51 = vpop.permute.xlu1 %1418  ;;  %v2978_v52 = vadd.f32 %v8264_v57, %v9935_v1  ;;  %3204 = vst.msk [vmem:[#allocation2 + $0x198] sm:$0xff] %vm785_vm2, %v12975_v27  ;;  %3205 = vst.msk [vmem:[#allocation2 + $0x1a0] sm:$0xff] %vm785_vm2, %v12975_v27 }
 0x263   : > { %1500 = vst.msk [vmem:[#allocation4 + $0x78] sm:$0xff] %vm1484_vm6, %v1419_v51  ;;  %v3018_v51 = vadd.f32 %v8276_v33, %v9935_v1 }
 0x264   : > { %v1783_v4 = vpop.permute.xlu0 %1782  ;;  %1693 = vst.msk [vmem:[#allocation4 + $0x78] sm:$0xff] %vm1677_vm7, %v1612_v54  ;;  %2022 = vrot.lane.b32.xlu1 %v9347_v16, %s8533_s15  ;;  %v3124_v16 = vmax.f32 %v2978_v52, 0.0  ;;  %v12979_v54 = vld [vmem:[#allocation29_spill] sm:$0xff] }
 0x265   : > { %1875 = vst.msk [vmem:[#allocation4 + $0x20] sm:$0xff] %vm1870_vm8, %v1783_v4  ;;  %v3132_v57 = vmax.f32 %v3018_v51, 0.0 }
 0x266   : > { %2028 = vrot.lane.b32.xlu0 %v1934_v60, %s8533_s15  ;;  %v1451_v42 = vpop.permute.xlu1 %1450  ;;  %3210 = vst.msk [vmem:[#allocation2 + $0x39] sm:$0xff] %vm785_vm2, %v3124_v16  ;;  %3216 = vst.msk [vmem:[#allocation2 + $0x81] sm:$0xff] %vm785_vm2, %v3130_v20  ;;  %v3012_v60 = vpop.f32.mrb[27].mxu0 }
 0x267   : > { %1516 = vst.msk [vmem:[#allocation4 + $0xf8] sm:$0xff] %vm1484_vm6, %v1451_v42  ;;  %v3013_v4 = vadd.f32 %v9935_v1, %v3012_v60  ;;  %v8279_v32 = vpop.f32.mrb[28].mxu0  ;;  %v12982_v42 = vld [vmem:[#allocation33_spill] sm:$0xff]  ;;  %v12987_v60 = vld [vmem:[#allocation16_spill] sm:$0xff] }
 0x268   : > { %v1787_v35 = vpop.permute.xlu0 %1786  ;;  %1709 = vst.msk [vmem:[#allocation4 + $0xf8] sm:$0xff] %vm1677_vm7, %v1644_v9  ;;  %2026 = vrot.lane.b32.xlu1 %v9511_v39, %s8533_s15  ;;  %v3125_v39 = vmax.f32 %v2983_v40, 0.0  ;;  %v3028_v16 = vadd.f32 %v8279_v32, %v9935_v1 }
 0x269   : > { %1877 = vst.msk [vmem:[#allocation4 + $0x30] sm:$0xff] %vm1870_vm8, %v1787_v35  ;;  %v3131_v8 = vmax.f32 %v3013_v4, 0.0  ;;  %v3022_v35 = vpop.f32.mrb[29].mxu0 }
 0x26a   : > { %2161 = vrot.lane.b32.xlu0 %v12976_v5, %s8534_s20  ;;  %v1785_v30 = vpop.permute.xlu1 %1784  ;;  %3211 = vst.msk [vmem:[#allocation2 + $0x49] sm:$0xff] %vm785_vm2, %v3125_v39  ;;  %3215 = vst.msk [vmem:[#allocation2 + $0x79] sm:$0xff] %vm785_vm2, %v3129_v34  ;;  %v3023_v10 = vadd.f32 %v9935_v1, %v3022_v35  ;;  %v3134_v13 = vmax.f32 %v3028_v16, 0.0  ;;  %v8282_v40 = vpop.f32.mrb[30].mxu0  ;;  %v12989_v16 = vld [vmem:[#allocation22_spill] sm:$0xff] }
 0x26b   : > { %1876 = vst.msk [vmem:[#allocation4 + $0x28] sm:$0xff] %vm1870_vm8, %v1785_v30  ;;  %v12984_v30 = vld [vmem:[#allocation47_spill] sm:$0xff]  ;;  %v3038_v44 = vadd.f32 %v8282_v40, %v9935_v1 }
 0x26c   : > { %v1791_v12 = vpop.permute.xlu0 %1790  ;;  %2030 = vrot.lane.b32.xlu1 %v1935_v50, %s8533_s15  ;;  %3218 = vst.msk [vmem:[#allocation2 + $0x99] sm:$0xff] %vm785_vm2, %v3132_v57  ;;  %3217 = vst.msk [vmem:[#allocation2 + $0x91] sm:$0xff] %vm785_vm2, %v3131_v8  ;;  %v3133_v50 = vmax.f32 %v3023_v10, 0.0 }
 0x26d   : > { %1879 = vst.msk [vmem:[#allocation4 + $0x40] sm:$0xff] %vm1870_vm8, %v1791_v12  ;;  %v3032_v12 = vpop.f32.mrb[31].mxu0  ;;  %v3136_v31 = vmax.f32 %v3038_v44, 0.0  ;;  %v12991_v44 = vld [vmem:[#allocation34_spill] sm:$0xff] }
 0x26e   : > { %2165 = vrot.lane.b32.xlu0 %v12977_v11, %s8534_s20  ;;  %v1789_v45 = vpop.permute.xlu1 %1788  ;;  %3220 = vst.msk [vmem:[#allocation2 + $0xb1] sm:$0xff] %vm785_vm2, %v3134_v13  ;;  %3219 = vst.msk [vmem:[#allocation2 + $0xa9] sm:$0xff] %vm785_vm2, %v3133_v50  ;;  %v3033_v39 = vadd.f32 %v9935_v1, %v3032_v12  ;;  %v8285_v38 = vpop.f32.mrb[32].mxu0  ;;  %v12990_v50 = vld [vmem:[#allocation23_spill] sm:$0xff] }
 0x26f   : > { %1878 = vst.msk [vmem:[#allocation4 + $0x38] sm:$0xff] %vm1870_vm8, %v1789_v45  ;;  %v12985_v45 = vld [vmem:[#allocation56_spill] sm:$0xff]  ;;  %v3042_v53 = vpop.f32.mrb[33].mxu0 }
 0x270   : > { %v1795_v36 = vpop.permute.xlu0 %1794  ;;  %2163 = vrot.lane.b32.xlu1 %v12978_v26, %s8534_s20  ;;  %v3135_v11 = vmax.f32 %v3033_v39, 0.0  ;;  %3222 = vst.msk [vmem:[#allocation2 + $0xc9] sm:$0xff] %vm785_vm2, %v3136_v31  ;;  %v8288_v17 = vpop.f32.mrb[34].mxu0 }
 0x271   : > { %1881 = vst.msk [vmem:[#allocation4 + $0x50] sm:$0xff] %vm1870_vm8, %v1795_v36  ;;  %v3043_v36 = vadd.f32 %v9935_v1, %v3042_v53  ;;  %v12993_v53 = vld [vmem:[#allocation51_spill] sm:$0xff] }
 0x272   : > { %2169 = vrot.lane.b32.xlu0 %v12979_v54, %s8534_s20  ;;  %v1793_v9 = vpop.permute.xlu1 %1792  ;;  %3221 = vst.msk [vmem:[#allocation2 + $0xc1] sm:$0xff] %vm785_vm2, %v3135_v11  ;;  %v3052_v54 = vpop.f32.mrb[35].mxu0 }
 0x273   : > { %1880 = vst.msk [vmem:[#allocation4 + $0x48] sm:$0xff] %vm1870_vm8, %v1793_v9  ;;  %v3137_v22 = vmax.f32 %v3043_v36, 0.0  ;;  %v3053_v9 = vadd.f32 %v9935_v1, %v3052_v54 }
 0x274   : > { %v1799_v63 = vpop.permute.xlu0 %1798  ;;  %2167 = vrot.lane.b32.xlu1 %v12980_v6, %s8534_s20  ;;  %v8291_v6 = vpop.f32.mrb[36].mxu0 }
 0x275   : > { %1883 = vst.msk [vmem:[#allocation4 + $0x60] sm:$0xff] %vm1870_vm8, %v1799_v63  ;;  %v3139_v33 = vmax.f32 %v3053_v9, 0.0  ;;  %v3062_v51 = vpop.f32.mrb[37].mxu0  ;;  %v2515_v9 = vld [vmem:[%s12843_s3] sm:$0xff] }
 0x276   : > { %2173 = vrot.lane.b32.xlu0 %v12981_v2, %s8534_s20  ;;  %v1797_v25 = vpop.permute.xlu1 %1796  ;;  %3223 = vst.msk [vmem:[#allocation2 + $0xd9] sm:$0xff] %vm785_vm2, %v3137_v22  ;;  %v3063_v2 = vadd.f32 %v9935_v1, %v3062_v51  ;;  %v8294_v8 = vpop.f32.mrb[38].mxu0 }
 0x277   : > { %1882 = vst.msk [vmem:[#allocation4 + $0x58] sm:$0xff] %vm1870_vm8, %v1797_v25  ;;  %v3078_v32 = vadd.f32 %v8294_v8, %v9935_v1 }
 0x278   : > { %v1803_v52 = vpop.permute.xlu0 %1802  ;;  %2171 = vrot.lane.b32.xlu1 %v12982_v42, %s8534_s20  ;;  %3225 = vst.msk [vmem:[#allocation2 + $0xf1] sm:$0xff] %vm785_vm2, %v3139_v33  ;;  %v3072_v42 = vpop.f32.mrb[39].mxu0 }
 0x279   : > { %1885 = vst.msk [vmem:[#allocation4 + $0x70] sm:$0xff] %vm1870_vm8, %v1803_v52  ;;  %v3141_v52 = vmax.f32 %v3063_v2, 0.0  ;;  %v3073_v35 = vadd.f32 %v9935_v1, %v3072_v42  ;;  %v3144_v10 = vmax.f32 %v3078_v32, 0.0  ;;  %v12996_v2 = vld [vmem:[#allocation53_spill] sm:$0xff]  ;;  %v12998_v32 = vld [vmem:[#allocation60_spill] sm:$0xff]  ;;  %v2519_v42 = vld [vmem:[%s12843_s3 + $0x20] sm:$0xff] }
 0x27a   : > { %2177 = vrot.lane.b32.xlu0 %v12983_v3, %s8534_s20  ;;  %v1801_v29 = vpop.permute.xlu1 %1800 }
 0x27b   : > { %1884 = vst.msk [vmem:[#allocation4 + $0x68] sm:$0xff] %vm1870_vm8, %v1801_v29  ;;  %v3143_v13 = vmax.f32 %v3073_v35, 0.0 }
 0x27c   : > { %v1807_v5 = vpop.permute.xlu0 %1806  ;;  %2175 = vrot.lane.b32.xlu1 %v12984_v30, %s8534_s20  ;;  %3227 = vst.msk [vmem:[#allocation2 + $0x109] sm:$0xff] %vm785_vm2, %v3141_v52  ;;  %3230 = vst.msk [vmem:[#allocation2 + $0x129] sm:$0xff] %vm785_vm2, %v3144_v10 }
 0x27d   : > { %1887 = vst.msk [vmem:[#allocation4 + $0x80] sm:$0xff] %vm1870_vm8, %v1807_v5  ;;  %v8297_v5 = vpop.f32.mrb[40].mxu0 }
 0x27e   : > { %2181 = vrot.lane.b32.xlu0 %v9375_v58, %s8534_s20  ;;  %v1805_v55 = vpop.permute.xlu1 %1804  ;;  %v3048_v58 = vadd.f32 %v8285_v38, %v9935_v1  ;;  %v3088_v40 = vadd.f32 %v8297_v5, %v9935_v1  ;;  %v3082_v30 = vpop.f32.mrb[41].mxu0  ;;  %3229 = vst.msk [vmem:[#allocation2 + $0x121] sm:$0xff] %vm785_vm2, %v3143_v13  ;;  %v12992_v38 = vld [vmem:[#allocation35_spill] sm:$0xff]  ;;  %v2521_v13 = vld [vmem:[%s12843_s3 + $0x30] sm:$0xff] }
 0x27f   : > { %1886 = vst.msk [vmem:[#allocation4 + $0x78] sm:$0xff] %vm1870_vm8, %v1805_v55  ;;  %v3083_v12 = vadd.f32 %v9935_v1, %v3082_v30  ;;  %v8300_v11 = vpop.f32.mrb[42].mxu0  ;;  %v2523_v30 = vld [vmem:[%s12843_s3 + $0x40] sm:$0xff] }
 0x280   : > { %v1811_v19 = vpop.permute.xlu0 %1810  ;;  %2179 = vrot.lane.b32.xlu1 %v12985_v45, %s8534_s20  ;;  %v3138_v47 = vmax.f32 %v3048_v58, 0.0  ;;  %v3146_v55 = vmax.f32 %v3088_v40, 0.0  ;;  %v3098_v45 = vadd.f32 %v8300_v11, %v9935_v1  ;;  %v3092_v58 = vpop.f32.mrb[43].mxu0 }
 0x281   : > { %1889 = vst.msk [vmem:[#allocation4 + $0x90] sm:$0xff] %vm1870_vm8, %v1811_v19  ;;  %v3145_v19 = vmax.f32 %v3083_v12, 0.0  ;;  %v3093_v36 = vadd.f32 %v9935_v1, %v3092_v58 }
 0x282   : > { %2185 = vrot.lane.b32.xlu0 %v9477_v62, %s8534_s20  ;;  %v1809_v24 = vpop.permute.xlu1 %1808  ;;  %3224 = vst.msk [vmem:[#allocation2 + $0xe1] sm:$0xff] %vm785_vm2, %v3138_v47  ;;  %v3058_v62 = vadd.f32 %v8288_v17, %v9935_v1  ;;  %3232 = vst.msk [vmem:[#allocation2 + $0x141] sm:$0xff] %vm785_vm2, %v3146_v55  ;;  %v3148_v47 = vmax.f32 %v3098_v45, 0.0  ;;  %v8303_v17 = vpop.f32.mrb[44].mxu0  ;;  %v13005_v45 = vld [vmem:[#allocation48_spill] sm:$0xff] }
 0x283   : > { %1888 = vst.msk [vmem:[#allocation4 + $0x88] sm:$0xff] %vm1870_vm8, %v1809_v24  ;;  %v3147_v22 = vmax.f32 %v3093_v36, 0.0  ;;  %v3108_v54 = vadd.f32 %v8303_v17, %v9935_v1  ;;  %v13006_v36 = vld [vmem:[#allocation42_spill] sm:$0xff]  ;;  %v13009_v17 = vld [vmem:[#allocation63_spill] sm:$0xff] }
 0x284   : > { %v1815_v26 = vpop.permute.xlu0 %1814  ;;  %2183 = vrot.lane.b32.xlu1 %v9377_v59, %s8534_s20  ;;  %v3140_v63 = vmax.f32 %v3058_v62, 0.0  ;;  %v3068_v59 = vadd.f32 %v8291_v6, %v9935_v1  ;;  %3231 = vst.msk [vmem:[#allocation2 + $0x139] sm:$0xff] %vm785_vm2, %v3145_v19  ;;  %v12994_v62 = vld [vmem:[#allocation45_spill] sm:$0xff]  ;;  %3234 = vst.msk [vmem:[#allocation2 + $0x159] sm:$0xff] %vm785_vm2, %v3148_v47  ;;  %v13003_v19 = vld [vmem:[#allocation40_spill] sm:$0xff] }
 0x285   : > { %1891 = vst.msk [vmem:[#allocation4 + $0xa0] sm:$0xff] %vm1870_vm8, %v1815_v26 }
 0x286   : > { %2189 = vrot.lane.b32.xlu0 %v12986_v41, %s8534_s20  ;;  %v1813_v20 = vpop.permute.xlu1 %1812  ;;  %3226 = vst.msk [vmem:[#allocation2 + $0xf9] sm:$0xff] %vm785_vm2, %v3140_v63  ;;  %v3142_v25 = vmax.f32 %v3068_v59, 0.0  ;;  %v3102_v41 = vpop.f32.mrb[45].mxu0  ;;  %v12995_v63 = vld [vmem:[#allocation59_spill] sm:$0xff]  ;;  %3233 = vst.msk [vmem:[#allocation2 + $0x151] sm:$0xff] %vm785_vm2, %v3147_v22  ;;  %v3150_v59 = vmax.f32 %v3108_v54, 0.0 }
 0x287   : > { %1890 = vst.msk [vmem:[#allocation4 + $0x98] sm:$0xff] %vm1870_vm8, %v1813_v20  ;;  %v2516_v20 = vld [vmem:[%s12843_s3 + $0x8] sm:$0xff]  ;;  %v13008_v22 = vld [vmem:[#allocation49_spill] sm:$0xff] }
 0x288   : > { %v1819_v34 = vpop.permute.xlu0 %1818  ;;  %2187 = vrot.lane.b32.xlu1 %v9481_v61, %s8534_s20  ;;  %v12988_v61 = vld [vmem:[#allocation21_spill] sm:$0xff]  ;;  %3228 = vst.msk [vmem:[#allocation2 + $0x111] sm:$0xff] %vm785_vm2, %v3142_v25  ;;  %v8427_v33 = vpack.c.bf16 %v2516_v20, %v2515_v9  ;;  %3236 = vst.msk [vmem:[#allocation2 + $0x171] sm:$0xff] %vm785_vm2, %v3150_v59  ;;  %v13013_v59 = vld [vmem:[#allocation70_spill] sm:$0xff] }
 0x289   : > { %1893 = vst.msk [vmem:[#allocation4 + $0xb0] sm:$0xff] %vm1870_vm8, %v1819_v34  ;;  %v3103_v34 = vadd.f32 %v9935_v1, %v3102_v41  ;;  %v2518_v25 = vld [vmem:[%s12843_s3 + $0x18] sm:$0xff]  ;;  %v13010_v41 = vld [vmem:[#allocation58_spill] sm:$0xff] }
 0x28a   : > { %2193 = vrot.lane.b32.xlu0 %v12987_v60, %s8534_s20  ;;  %v1817_v4 = vpop.permute.xlu1 %1816  ;;  %8428 = vmatprep.subr.bf16.mxu1 %v8427_v33  ;;  %v13011_v9 = vld [vmem:[#allocation69_spill] sm:$0xff] }
 0x28b   : > { %1892 = vst.msk [vmem:[#allocation4 + $0xa8] sm:$0xff] %vm1870_vm8, %v1817_v4  ;;  %v3149_v60 = vmax.f32 %v3103_v34, 0.0  ;;  %8430 = vmatpush3.bf16.msra.mxu1 %v8427_v33  ;;  %v2517_v4 = vld [vmem:[%s12843_s3 + $0x10] sm:$0xff] }
 0x28c   : > { %v1823_v57 = vpop.permute.xlu0 %1822  ;;  %2191 = vrot.lane.b32.xlu1 %v12988_v61, %s8534_s20  ;;  %v8431_v52 = vpack.c.bf16 %v2518_v25, %v2517_v4  ;;  %v13012_v34 = vld [vmem:[#allocation64_spill] sm:$0xff] }
 0x28d   : > { %1895 = vst.msk [vmem:[#allocation4 + $0xc0] sm:$0xff] %vm1870_vm8, %v1823_v57  ;;  %v12997_v57 = vld [vmem:[#allocation65_spill] sm:$0xff] }
 0x28e   : > { %2197 = vrot.lane.b32.xlu0 %v12989_v16, %s8534_s20  ;;  %v1821_v3 = vpop.permute.xlu1 %1820  ;;  %3235 = vst.msk [vmem:[#allocation2 + $0x169] sm:$0xff] %vm785_vm2, %v3149_v60  ;;  %8432 = vmatprep.subr.bf16.mxu1 %v8431_v52  ;;  %v2520_v16 = vld [vmem:[%s12843_s3 + $0x28] sm:$0xff] }
 0x28f   : > { %1894 = vst.msk [vmem:[#allocation4 + $0xb8] sm:$0xff] %vm1870_vm8, %v1821_v3  ;;  %8434 = vmatpush3.bf16.msra.mxu1 %v8431_v52  ;;  %v8435_v35 = vpack.c.bf16 %v2520_v16, %v2519_v42  ;;  %v13017_v52 = vld [vmem:[#allocation61_spill] sm:$0xff] }
 0x290   : > { %v1827_v29 = vpop.permute.xlu0 %1826  ;;  %2195 = vrot.lane.b32.xlu1 %v12990_v50, %s8534_s20 }
 0x291   : > { %1897 = vst.msk [vmem:[#allocation4 + $0xd0] sm:$0xff] %vm1870_vm8, %v1827_v29  ;;  %8436 = vmatprep.subr.bf16.mxu1 %v8435_v35  ;;  %v12999_v29 = vld [vmem:[#allocation67_spill] sm:$0xff] }
 0x292   : > { %2201 = vrot.lane.b32.xlu0 %v12991_v44, %s8534_s20  ;;  %v1825_v39 = vpop.permute.xlu1 %1824  ;;  %v13000_v44 = vld [vmem:[#allocation36_spill] sm:$0xff] }
 0x293   : > { %1896 = vst.msk [vmem:[#allocation4 + $0xc8] sm:$0xff] %vm1870_vm8, %v1825_v39  ;;  %8438 = vmatpush3.bf16.msra.mxu1 %v8435_v35  ;;  %v13020_v35 = vld [vmem:[#allocation62_spill] sm:$0xff] }
 0x294   : > { %v1831_v31 = vpop.permute.xlu0 %1830  ;;  %2199 = vrot.lane.b32.xlu1 %v12992_v38, %s8534_s20  ;;  %v13004_v38 = vld [vmem:[#allocation41_spill] sm:$0xff] }
 0x295   : > { %1899 = vst.msk [vmem:[#allocation4 + $0xe0] sm:$0xff] %vm1870_vm8, %v1831_v31  ;;  %v13002_v31 = vld [vmem:[#allocation39_spill] sm:$0xff] }
 0x296   : > { %2205 = vrot.lane.b32.xlu0 %v12993_v53, %s8534_s20  ;;  %v1829_v24 = vpop.permute.xlu1 %1828 }
 0x297   : > { %1898 = vst.msk [vmem:[#allocation4 + $0xd8] sm:$0xff] %vm1870_vm8, %v1829_v24  ;;  %v13007_v24 = vld [vmem:[#allocation57_spill] sm:$0xff] }
 0x298   : > { %v1835_v26 = vpop.permute.xlu0 %1834  ;;  %2203 = vrot.lane.b32.xlu1 %v12994_v62, %s8534_s20 }
 0x299   : > { %1901 = vst.msk [vmem:[#allocation4 + $0xf0] sm:$0xff] %vm1870_vm8, %v1835_v26 }
 0x29a   : > { %2209 = vrot.lane.b32.xlu0 %v12995_v63, %s8534_s20  ;;  %v1833_v6 = vpop.permute.xlu1 %1832 }
 0x29b   : > { %1900 = vst.msk [vmem:[#allocation4 + $0xe8] sm:$0xff] %vm1870_vm8, %v1833_v6 }
 0x29c   : > { %v1969_v51 = vpop.permute.xlu0 %1968  ;;  %2207 = vrot.lane.b32.xlu1 %v12996_v2, %s8534_s20 }
 0x29d   : > { %2065 = vst.msk [vmem:[#allocation4] sm:$0xff] %vm2064_vm9, %v1969_v51 }
 0x29e   : > { %2213 = vrot.lane.b32.xlu0 %v12997_v57, %s8534_s20  ;;  %v1837_v8 = vpop.permute.xlu1 %1836 }
 0x29f   : > { %1902 = vst.msk [vmem:[#allocation4 + $0xf8] sm:$0xff] %vm1870_vm8, %v1837_v8 }
 0x2a0   : > { %v1973_v61 = vpop.permute.xlu0 %1972  ;;  %2211 = vrot.lane.b32.xlu1 %v12998_v32, %s8534_s20  ;;  %v13019_v32 = vld [vmem:[#allocation66_spill] sm:$0xff] }
 0x2a1   : > { %2067 = vst.msk [vmem:[#allocation4 + $0x10] sm:$0xff] %vm2064_vm9, %v1973_v61  ;;  %v13018_v61 = vld [vmem:[#allocation54_spill] sm:$0xff] }
 0x2a2   : > { %2217 = vrot.lane.b32.xlu0 %v9505_v23, %s8534_s20  ;;  %v1971_v3 = vpop.permute.xlu1 %1970  ;;  %v2522_v23 = vld [vmem:[%s12843_s3 + $0x38] sm:$0xff] }
 0x2a3   : > { %2066 = vst.msk [vmem:[#allocation4 + $0x8] sm:$0xff] %vm2064_vm9, %v1971_v3  ;;  %v8439_v5 = vpack.c.bf16 %v2522_v23, %v2521_v13  ;;  %v3303_v23 = vld [vmem:[#allocation2 + $0x1] sm:$0xff] }
 0x2a4   : > { %v1977_v10 = vpop.permute.xlu0 %1976  ;;  %2215 = vrot.lane.b32.xlu1 %v12999_v29, %s8534_s20  ;;  %v13021_v29 = vld [vmem:[#allocation68_spill] sm:$0xff] }
 0x2a5   : > { %2069 = vst.msk [vmem:[#allocation4 + $0x20] sm:$0xff] %vm2064_vm9, %v1977_v10  ;;  %8440 = vmatprep.subr.bf16.mxu1 %v8439_v5 }
 0x2a6   : > { %2221 = vrot.lane.b32.xlu0 %v9949_v48, %s8534_s20  ;;  %v1975_v50 = vpop.permute.xlu1 %1974  ;;  %8442 = vmatpush3.bf16.msra.mxu1 %v8439_v5 }
 0x2a7   : > { %2068 = vst.msk [vmem:[#allocation4 + $0x18] sm:$0xff] %vm2064_vm9, %v1975_v50  ;;  %8207 = vmatprep.subr.mxu1 %v2523_v30  ;;  %v3305_v50 = vld [vmem:[#allocation2 + $0x19] sm:$0xff] }
 0x2a8   : > { %v1981_v40 = vpop.permute.xlu0 %1980  ;;  %2219 = vrot.lane.b32.xlu1 %v9503_v21, %s8534_s20  ;;  %v13001_v21 = vld [vmem:[#allocation38_spill] sm:$0xff] }
 0x2a9   : > { %2071 = vst.msk [vmem:[#allocation4 + $0x30] sm:$0xff] %vm2064_vm9, %v1981_v40 }
 0x2aa   : > { %2354 = vrot.lane.b32.xlu0 %v13000_v44, %s8535_s27  ;;  %v1979_v48 = vpop.permute.xlu1 %1978  ;;  %8208 = vmatpush3.msra.mxu1 %v2523_v30  ;;  %v3307_v44 = vld [vmem:[#allocation2 + $0x31] sm:$0xff] }
 0x2ab   : > { %2070 = vst.msk [vmem:[#allocation4 + $0x28] sm:$0xff] %vm2064_vm9, %v1979_v48 }
 0x2ac   : > { %v1985_v12 = vpop.permute.xlu0 %1984  ;;  %2223 = vrot.lane.b32.xlu1 %v9974_v28, %s8534_s20 }
 0x2ad   : > { %2073 = vst.msk [vmem:[#allocation4 + $0x40] sm:$0xff] %vm2064_vm9, %v1985_v12  ;;  %v3309_v12 = vld [vmem:[#allocation2 + $0x49] sm:$0xff] }
 0x2ae   : > { %2358 = vrot.lane.b32.xlu0 %v13001_v21, %s8535_s27  ;;  %v1983_v39 = vpop.permute.xlu1 %1982 }
 0x2af   : > { %2072 = vst.msk [vmem:[#allocation4 + $0x38] sm:$0xff] %vm2064_vm9, %v1983_v39 }
 0x2b0   : > { %v1989_v55 = vpop.permute.xlu0 %1988  ;;  %2356 = vrot.lane.b32.xlu1 %v13002_v31, %s8535_s27 }
 0x2b1   : > { %2075 = vst.msk [vmem:[#allocation4 + $0x50] sm:$0xff] %vm2064_vm9, %v1989_v55  ;;  %v3311_v55 = vld [vmem:[#allocation2 + $0x61] sm:$0xff] }
 0x2b2   : > { %2362 = vrot.lane.b32.xlu0 %v13003_v19, %s8535_s27  ;;  %v1987_v11 = vpop.permute.xlu1 %1986  ;;  %v3308_v19 = vld [vmem:[#allocation2 + $0x39] sm:$0xff] }
 0x2b3   : > { %2074 = vst.msk [vmem:[#allocation4 + $0x48] sm:$0xff] %vm2064_vm9, %v1987_v11 }
 0x2b4   : > { %v1993_v28 = vpop.permute.xlu0 %1992  ;;  %2360 = vrot.lane.b32.xlu1 %v13004_v38, %s8535_s27 }
 0x2b5   : > { %2077 = vst.msk [vmem:[#allocation4 + $0x60] sm:$0xff] %vm2064_vm9, %v1993_v28  ;;  %v3313_v28 = vld [vmem:[#allocation2 + $0x79] sm:$0xff] }
 0x2b6   : > { %2366 = vrot.lane.b32.xlu0 %v13005_v45, %s8535_s27  ;;  %v1991_v58 = vpop.permute.xlu1 %1990  ;;  %v3310_v45 = vld [vmem:[#allocation2 + $0x51] sm:$0xff] }
 0x2b7   : > { %2076 = vst.msk [vmem:[#allocation4 + $0x58] sm:$0xff] %vm2064_vm9, %v1991_v58 }
 0x2b8   : > { %v1997_v53 = vpop.permute.xlu0 %1996  ;;  %2364 = vrot.lane.b32.xlu1 %v13006_v36, %s8535_s27 }
 0x2b9   : > { %2079 = vst.msk [vmem:[#allocation4 + $0x70] sm:$0xff] %vm2064_vm9, %v1997_v53  ;;  %v3315_v53 = vld [vmem:[#allocation2 + $0x91] sm:$0xff] }
 0x2ba   : > { %2370 = vrot.lane.b32.xlu0 %v13007_v24, %s8535_s27  ;;  %v1995_v47 = vpop.permute.xlu1 %1994  ;;  %v3312_v24 = vld [vmem:[#allocation2 + $0x69] sm:$0xff] }
 0x2bb   : > { %2078 = vst.msk [vmem:[#allocation4 + $0x68] sm:$0xff] %vm2064_vm9, %v1995_v47 }
 0x2bc   : > { %v2001_v26 = vpop.permute.xlu0 %2000  ;;  %2368 = vrot.lane.b32.xlu1 %v13008_v22, %s8535_s27 }
 0x2bd   : > { %2081 = vst.msk [vmem:[#allocation4 + $0x80] sm:$0xff] %vm2064_vm9, %v2001_v26  ;;  %v3317_v26 = vld [vmem:[#allocation2 + $0xa9] sm:$0xff] }
 0x2be   : > { %2374 = vrot.lane.b32.xlu0 %v13009_v17, %s8535_s27  ;;  %v1999_v62 = vpop.permute.xlu1 %1998  ;;  %v3314_v17 = vld [vmem:[#allocation2 + $0x81] sm:$0xff] }
 0x2bf   : > { %2080 = vst.msk [vmem:[#allocation4 + $0x78] sm:$0xff] %vm2064_vm9, %v1999_v62 }
 0x2c0   : > { %v2005_v54 = vpop.permute.xlu0 %2004  ;;  %2372 = vrot.lane.b32.xlu1 %v13010_v41, %s8535_s27 }
 0x2c1   : > { %2083 = vst.msk [vmem:[#allocation4 + $0x90] sm:$0xff] %vm2064_vm9, %v2005_v54  ;;  %v3319_v54 = vld [vmem:[#allocation2 + $0xc1] sm:$0xff] }
 0x2c2   : > { %2378 = vrot.lane.b32.xlu0 %v13011_v9, %s8535_s27  ;;  %v2003_v20 = vpop.permute.xlu1 %2002  ;;  %v3316_v9 = vld [vmem:[#allocation2 + $0x99] sm:$0xff] }
 0x2c3   : > { %2082 = vst.msk [vmem:[#allocation4 + $0x88] sm:$0xff] %vm2064_vm9, %v2003_v20 }
 0x2c4   : > { %v2009_v63 = vpop.permute.xlu0 %2008  ;;  %2376 = vrot.lane.b32.xlu1 %v13012_v34, %s8535_s27 }
 0x2c5   : > { %2085 = vst.msk [vmem:[#allocation4 + $0xa0] sm:$0xff] %vm2064_vm9, %v2009_v63  ;;  %v3321_v63 = vld [vmem:[#allocation2 + $0xd9] sm:$0xff] }
 0x2c6   : > { %2382 = vrot.lane.b32.xlu0 %v8995_v14, %s8535_s27  ;;  %v2007_v33 = vpop.permute.xlu1 %2006 }
 0x2c7   : > { %2084 = vst.msk [vmem:[#allocation4 + $0x98] sm:$0xff] %vm2064_vm9, %v2007_v33  ;;  %v3318_v33 = vld [vmem:[#allocation2 + $0xb1] sm:$0xff] }
 0x2c8   : > { %v2013_v6 = vpop.permute.xlu0 %2012  ;;  %2380 = vrot.lane.b32.xlu1 %v13013_v59, %s8535_s27  ;;  %v3323_v59 = vld [vmem:[#allocation2 + $0xf1] sm:$0xff] }
 0x2c9   : > { %2087 = vst.msk [vmem:[#allocation4 + $0xb0] sm:$0xff] %vm2064_vm9, %v2013_v6 }
 0x2ca   : > { %2386 = vrot.lane.b32.xlu0 %v8997_v15, %s8535_s27  ;;  %v2011_v51 = vpop.permute.xlu1 %2010  ;;  %v13014_v15 = vld [vmem:[#allocation43_spill] sm:$0xff] }
 0x2cb   : > { %2086 = vst.msk [vmem:[#allocation4 + $0xa8] sm:$0xff] %vm2064_vm9, %v2011_v51 }
 0x2cc   : > { %v2017_v60 = vpop.permute.xlu0 %2016  ;;  %2384 = vrot.lane.b32.xlu1 %v12953_v46, %s8535_s27  ;;  %v13015_v46 = vld [vmem:[#allocation52_spill] sm:$0xff] }
 0x2cd   : > { %2089 = vst.msk [vmem:[#allocation4 + $0xc0] sm:$0xff] %vm2064_vm9, %v2017_v60  ;;  %v3320_v60 = vld [vmem:[#allocation2 + $0xc9] sm:$0xff] }
 0x2ce   : > { %2390 = vrot.lane.b32.xlu0 %v12954_v18, %s8535_s27  ;;  %v2015_v14 = vpop.permute.xlu1 %2014 }
 0x2cf   : > { %2088 = vst.msk [vmem:[#allocation4 + $0xb8] sm:$0xff] %vm2064_vm9, %v2015_v14 }
 0x2d0   : > { %v2021_v2 = vpop.permute.xlu0 %2020  ;;  %2388 = vrot.lane.b32.xlu1 %v12955_v43, %s8535_s27  ;;  %v13016_v43 = vld [vmem:[#allocation46_spill] sm:$0xff] }
 0x2d1   : > { %2091 = vst.msk [vmem:[#allocation4 + $0xd0] sm:$0xff] %vm2064_vm9, %v2021_v2  ;;  %v3325_v2 = vld [vmem:[#allocation2 + $0x109] sm:$0xff] }
 0x2d2   : > { %2394 = vrot.lane.b32.xlu0 %v13014_v15, %s8535_s27  ;;  %v2019_v4 = vpop.permute.xlu1 %2018 }
 0x2d3   : > { %2090 = vst.msk [vmem:[#allocation4 + $0xc8] sm:$0xff] %vm2064_vm9, %v2019_v4  ;;  %v3322_v4 = vld [vmem:[#allocation2 + $0xe1] sm:$0xff] }
 0x2d4   : > { %v2025_v25 = vpop.permute.xlu0 %2024  ;;  %2392 = vrot.lane.b32.xlu1 %v12956_v49, %s8535_s27 }
 0x2d5   : > { %2093 = vst.msk [vmem:[#allocation4 + $0xe0] sm:$0xff] %vm2064_vm9, %v2025_v25 }
 0x2d6   : > { %2398 = vrot.lane.b32.xlu0 %v13015_v46, %s8535_s27  ;;  %v2023_v18 = vpop.permute.xlu1 %2022  ;;  %v3327_v46 = vld [vmem:[#allocation2 + $0x121] sm:$0xff] }
 0x2d7   : > { %2092 = vst.msk [vmem:[#allocation4 + $0xd8] sm:$0xff] %vm2064_vm9, %v2023_v18 }
 0x2d8   : > { %v2029_v57 = vpop.permute.xlu0 %2028  ;;  %2396 = vrot.lane.b32.xlu1 %v13016_v43, %s8535_s27  ;;  %v8306_v43 = vpop.f32.mrb[46].mxu0 }
 0x2d9   : > { %2095 = vst.msk [vmem:[#allocation4 + $0xf0] sm:$0xff] %vm2064_vm9, %v2029_v57  ;;  %v3324_v57 = vld [vmem:[#allocation2 + $0xf9] sm:$0xff] }
 0x2da   : > { %2402 = vrot.lane.b32.xlu0 %v13017_v52, %s8535_s27  ;;  %v2027_v8 = vpop.permute.xlu1 %2026  ;;  %v3118_v52 = vadd.f32 %v8306_v43, %v9935_v1 }
 0x2db   : > { %2094 = vst.msk [vmem:[#allocation4 + $0xe8] sm:$0xff] %vm2064_vm9, %v2027_v8  ;;  %v3112_v8 = vpop.f32.mrb[47].mxu0 }
 0x2dc   : > { %v2162_v49 = vpop.permute.xlu0 %2161  ;;  %2400 = vrot.lane.b32.xlu1 %v13018_v61, %s8535_s27 }
 0x2dd   : > { %2258 = vst.msk [vmem:[#allocation4] sm:$0xff] %vm2257_vm10, %v2162_v49  ;;  %v3113_v49 = vadd.f32 %v9935_v1, %v3112_v8  ;;  %v3331_v1 = vld [vmem:[#allocation2 + $0x151] sm:$0xff]  ;;  %v10409_v8 = vld [vmem:[#allocation2 + $0x7a] sm:$0xff] }
 0x2de   : > { %2406 = vrot.lane.b32.xlu0 %v13019_v32, %s8535_s27  ;;  %v2031_v42 = vpop.permute.xlu1 %2030  ;;  %v3329_v32 = vld [vmem:[#allocation2 + $0x139] sm:$0xff] }
 0x2df   : > { %2096 = vst.msk [vmem:[#allocation4 + $0xf8] sm:$0xff] %vm2064_vm9, %v2031_v42  ;;  %v3152_v42 = vmax.f32 %v3118_v52, 0.0  ;;  %v10403_v52 = vld [vmem:[#allocation2 + $0x90] sm:$0xff] }
 0x2e0   : > { %v2166_v16 = vpop.permute.xlu0 %2165  ;;  %2404 = vrot.lane.b32.xlu1 %v13020_v35, %s8535_s27  ;;  %v3326_v35 = vld [vmem:[#allocation2 + $0x111] sm:$0xff] }
 0x2e1   : > { %2260 = vst.msk [vmem:[#allocation4 + $0x10] sm:$0xff] %vm2257_vm10, %v2166_v16 }
 0x2e2   : > { %2410 = vrot.lane.b32.xlu0 %v9513_v56, %s8535_s27  ;;  %v2164_v3 = vpop.permute.xlu1 %2163  ;;  %3238 = vst.msk [vmem:[#allocation2 + $0x189] sm:$0xff] %vm785_vm2, %v3152_v42 }
 0x2e3   : > { %2259 = vst.msk [vmem:[#allocation4 + $0x8] sm:$0xff] %vm2257_vm10, %v2164_v3  ;;  %v3151_v3 = vmax.f32 %v3113_v49, 0.0 }
 0x2e4   : > { %v2170_v10 = vpop.permute.xlu0 %2169  ;;  %2408 = vrot.lane.b32.xlu1 %v13021_v29, %s8535_s27 }
 0x2e5   : > { %2262 = vst.msk [vmem:[#allocation4 + $0x20] sm:$0xff] %vm2257_vm10, %v2170_v10 }
 0x2e6   : > { %2414 = vrot.lane.b32.xlu0 %v9953_v7, %s8535_s27  ;;  %v2168_v13 = vpop.permute.xlu1 %2167  ;;  %v3304_v7 = vld [vmem:[#allocation2 + $0x9] sm:$0xff]  ;;  %3237 = vst.msk [vmem:[#allocation2 + $0x181] sm:$0xff] %vm785_vm2, %v3151_v3 }
 0x2e7   : > { %2261 = vst.msk [vmem:[#allocation4 + $0x18] sm:$0xff] %vm2257_vm10, %v2168_v13  ;;  %v3328_v13 = vld [vmem:[#allocation2 + $0x129] sm:$0xff] }
 0x2e8   : > { %v2174_v5 = vpop.permute.xlu0 %2173  ;;  %2412 = vrot.lane.b32.xlu1 %v12958_v37, %s8535_s27  ;;  %v10423_v3 = vld [vmem:[#allocation2 + $0xa8] sm:$0xff] }
 0x2e9   : > { %2264 = vst.msk [vmem:[#allocation4 + $0x30] sm:$0xff] %vm2257_vm10, %v2174_v5 }
 0x2ea   : > { %3367 = vrot.lane.b32.xlu0 %v3303_v23, %s8528_s25  ;;  %v2172_v56 = vpop.permute.xlu1 %2171  ;;  %v3239_v23 = vld [vmem:[#allocation2] sm:$0xff] }
 0x2eb   : > { %2263 = vst.msk [vmem:[#allocation4 + $0x28] sm:$0xff] %vm2257_vm10, %v2172_v56  ;;  %v3333_v56 = vld [vmem:[#allocation2 + $0x169] sm:$0xff] }
 0x2ec   : > { %v2178_v40 = vpop.permute.xlu0 %2177  ;;  %2416 = vrot.lane.b32.xlu1 %v9978_v0, %s8535_s27  ;;  %v3306_v0 = vld [vmem:[#allocation2 + $0x21] sm:$0xff] }
 0x2ed   : > { %2266 = vst.msk [vmem:[#allocation4 + $0x40] sm:$0xff] %vm2257_vm10, %v2178_v40 }
 0x2ee   : > { %3371 = vrot.lane.b32.xlu0 %v3305_v50, %s8528_s25  ;;  %v2176_v30 = vpop.permute.xlu1 %2175 }
 0x2ef   : > { %2265 = vst.msk [vmem:[#allocation4 + $0x38] sm:$0xff] %vm2257_vm10, %v2176_v30 }
 0x2f0   : > { %v2182_v37 = vpop.permute.xlu0 %2181  ;;  %3369 = vrot.lane.b32.xlu1 %v3304_v7, %s8528_s25  ;;  %v3330_v7 = vld [vmem:[#allocation2 + $0x141] sm:$0xff] }
 0x2f1   : > { %2268 = vst.msk [vmem:[#allocation4 + $0x50] sm:$0xff] %vm2257_vm10, %v2182_v37 }
 0x2f2   : > { %3375 = vrot.lane.b32.xlu0 %v3307_v44, %s8528_s25  ;;  %v2180_v48 = vpop.permute.xlu1 %2179  ;;  %v3495_v44 = vld [vmem:[#allocation2 + $0x2] sm:$0xff] }
 0x2f3   : > { %2267 = vst.msk [vmem:[#allocation4 + $0x48] sm:$0xff] %vm2257_vm10, %v2180_v48  ;;  %v3332_v48 = vld [vmem:[#allocation2 + $0x159] sm:$0xff] }
 0x2f4   : > { %v2186_v21 = vpop.permute.xlu0 %2185  ;;  %3373 = vrot.lane.b32.xlu1 %v3306_v0, %s8528_s25  ;;  %v3240_v0 = vld [vmem:[#allocation2 + $0x8] sm:$0xff] }
 0x2f5   : > { %2270 = vst.msk [vmem:[#allocation4 + $0x60] sm:$0xff] %vm2257_vm10, %v2186_v21  ;;  %v10314_v21 = vld [vmem:[#allocation2 + $0x18] sm:$0xff] }
 0x2f6   : > { %3379 = vrot.lane.b32.xlu0 %v3309_v12, %s8528_s25  ;;  %v2184_v39 = vpop.permute.xlu1 %2183 }
 0x2f7   : > { %2269 = vst.msk [vmem:[#allocation4 + $0x58] sm:$0xff] %vm2257_vm10, %v2184_v39 }
 0x2f8   : > { %v2190_v31 = vpop.permute.xlu0 %2189  ;;  %3377 = vrot.lane.b32.xlu1 %v3308_v19, %s8528_s25  ;;  %v10323_v19 = vld [vmem:[#allocation2 + $0x171] sm:$0xff] }
 0x2f9   : > { %2272 = vst.msk [vmem:[#allocation4 + $0x70] sm:$0xff] %vm2257_vm10, %v2190_v31 }
 0x2fa   : > { %3383 = vrot.lane.b32.xlu0 %v3311_v55, %s8528_s25  ;;  %v2188_v11 = vpop.permute.xlu1 %2187 }
 0x2fb   : > { %2271 = vst.msk [vmem:[#allocation4 + $0x68] sm:$0xff] %vm2257_vm10, %v2188_v11 }
 0x2fc   : > { %v2194_v38 = vpop.permute.xlu0 %2193  ;;  %3381 = vrot.lane.b32.xlu1 %v3310_v45, %s8528_s25  ;;  %v3496_v45 = vld [vmem:[#allocation2 + $0xa] sm:$0xff] }
 0x2fd   : > { %2274 = vst.msk [vmem:[#allocation4 + $0x80] sm:$0xff] %vm2257_vm10, %v2194_v38  ;;  %v10332_v38 = vld [vmem:[#allocation2 + $0x1a] sm:$0xff] }
 0x2fe   : > { %3387 = vrot.lane.b32.xlu0 %v3313_v28, %s8528_s25  ;;  %v2192_v58 = vpop.permute.xlu1 %2191  ;;  %v10326_v28 = vld [vmem:[#allocation2 + $0x30] sm:$0xff] }
 0x2ff   : > { %2273 = vst.msk [vmem:[#allocation4 + $0x78] sm:$0xff] %vm2257_vm10, %v2192_v58 }
 0x300   : > { %v2198_v36 = vpop.permute.xlu0 %2197  ;;  %3385 = vrot.lane.b32.xlu1 %v3312_v24, %s8528_s25 }
 0x301   : > { %2276 = vst.msk [vmem:[#allocation4 + $0x90] sm:$0xff] %vm2257_vm10, %v2198_v36  ;;  %v10338_v36 = vld [vmem:[#allocation2 + $0x20] sm:$0xff] }
 0x302   : > { %3391 = vrot.lane.b32.xlu0 %v3315_v53, %s8528_s25  ;;  %v2196_v47 = vpop.permute.xlu1 %2195 }
 0x303   : > { %2275 = vst.msk [vmem:[#allocation4 + $0x88] sm:$0xff] %vm2257_vm10, %v2196_v47 }
 0x304   : > { %v2202_v22 = vpop.permute.xlu0 %2201  ;;  %3389 = vrot.lane.b32.xlu1 %v3314_v17, %s8528_s25 }
 0x305   : > { %2278 = vst.msk [vmem:[#allocation4 + $0xa0] sm:$0xff] %vm2257_vm10, %v2202_v22  ;;  %v10349_v22 = vld [vmem:[#allocation2 + $0x32] sm:$0xff] }
 0x306   : > { %3395 = vrot.lane.b32.xlu0 %v3317_v26, %s8528_s25  ;;  %v2200_v62 = vpop.permute.xlu1 %2199  ;;  %v10344_v26 = vld [vmem:[#allocation2 + $0x48] sm:$0xff] }
 0x307   : > { %2277 = vst.msk [vmem:[#allocation4 + $0x98] sm:$0xff] %vm2257_vm10, %v2200_v62 }
 0x308   : > { %v2206_v41 = vpop.permute.xlu0 %2205  ;;  %3393 = vrot.lane.b32.xlu1 %v3316_v9, %s8528_s25  ;;  %v10359_v9 = vld [vmem:[#allocation2 + $0x22] sm:$0xff] }
 0x309   : > { %2280 = vst.msk [vmem:[#allocation4 + $0xb0] sm:$0xff] %vm2257_vm10, %v2206_v41 }
 0x30a   : > { %3399 = vrot.lane.b32.xlu0 %v3319_v54, %s8528_s25  ;;  %v2204_v20 = vpop.permute.xlu1 %2203  ;;  %v10355_v54 = vld [vmem:[#allocation2 + $0x38] sm:$0xff] }
 0x30b   : > { %2279 = vst.msk [vmem:[#allocation4 + $0xa8] sm:$0xff] %vm2257_vm10, %v2204_v20 }
 0x30c   : > { %v2210_v34 = vpop.permute.xlu0 %2209  ;;  %3397 = vrot.lane.b32.xlu1 %v3318_v33, %s8528_s25 }
 0x30d   : > { %2282 = vst.msk [vmem:[#allocation4 + $0xc0] sm:$0xff] %vm2257_vm10, %v2210_v34  ;;  %v10369_v34 = vld [vmem:[#allocation2 + $0x4a] sm:$0xff] }
 0x30e   : > { %3403 = vrot.lane.b32.xlu0 %v3321_v63, %s8528_s25  ;;  %v2208_v6 = vpop.permute.xlu1 %2207  ;;  %v10363_v63 = vld [vmem:[#allocation2 + $0x60] sm:$0xff] }
 0x30f   : > { %2281 = vst.msk [vmem:[#allocation4 + $0xb8] sm:$0xff] %vm2257_vm10, %v2208_v6 }
 0x310   : > { %v2214_v51 = vpop.permute.xlu0 %2213  ;;  %3401 = vrot.lane.b32.xlu1 %v3320_v60, %s8528_s25  ;;  %v10379_v60 = vld [vmem:[#allocation2 + $0x3a] sm:$0xff] }
 0x311   : > { %2284 = vst.msk [vmem:[#allocation4 + $0xd0] sm:$0xff] %vm2257_vm10, %v2214_v51 }
 0x312   : > { %3407 = vrot.lane.b32.xlu0 %v3323_v59, %s8528_s25  ;;  %v2212_v14 = vpop.permute.xlu1 %2211  ;;  %v10375_v59 = vld [vmem:[#allocation2 + $0x50] sm:$0xff] }
 0x313   : > { %2283 = vst.msk [vmem:[#allocation4 + $0xc8] sm:$0xff] %vm2257_vm10, %v2212_v14 }
 0x314   : > { %v2218_v15 = vpop.permute.xlu0 %2217  ;;  %3405 = vrot.lane.b32.xlu1 %v3322_v4, %s8528_s25 }
 0x315   : > { %2286 = vst.msk [vmem:[#allocation4 + $0xe0] sm:$0xff] %vm2257_vm10, %v2218_v15  ;;  %v10389_v15 = vld [vmem:[#allocation2 + $0x62] sm:$0xff] }
 0x316   : > { %3411 = vrot.lane.b32.xlu0 %v3325_v2, %s8528_s25  ;;  %v2216_v25 = vpop.permute.xlu1 %2215  ;;  %v10383_v2 = vld [vmem:[#allocation2 + $0x78] sm:$0xff] }
 0x317   : > { %2285 = vst.msk [vmem:[#allocation4 + $0xd8] sm:$0xff] %vm2257_vm10, %v2216_v25 }
 0x318   : > { %v2222_v18 = vpop.permute.xlu0 %2221  ;;  %3409 = vrot.lane.b32.xlu1 %v3324_v57, %s8528_s25  ;;  %v10399_v57 = vld [vmem:[#allocation2 + $0x52] sm:$0xff] }
 0x319   : > { %2288 = vst.msk [vmem:[#allocation4 + $0xf0] sm:$0xff] %vm2257_vm10, %v2222_v18 }
 0x31a   : > { %3415 = vrot.lane.b32.xlu0 %v3327_v46, %s8528_s25  ;;  %v2220_v61 = vpop.permute.xlu1 %2219  ;;  %v10395_v46 = vld [vmem:[#allocation2 + $0x68] sm:$0xff] }
 0x31b   : > { %2287 = vst.msk [vmem:[#allocation4 + $0xe8] sm:$0xff] %vm2257_vm10, %v2220_v61 }
 0x31c   : > { %v2355_v16 = vpop.permute.xlu0 %2354  ;;  %3413 = vrot.lane.b32.xlu1 %v3326_v35, %s8528_s25 }
 0x31d   : > { %2451 = vst.msk [vmem:[#allocation4] sm:$0xff] %vm2450_vm11, %v2355_v16  ;;  %v10419_v16 = vld [vmem:[#allocation2 + $0x6a] sm:$0xff] }
 0x31e   : > { %3419 = vrot.lane.b32.xlu0 %v3329_v32, %s8528_s25  ;;  %v2224_v10 = vpop.permute.xlu1 %2223  ;;  %v10415_v32 = vld [vmem:[#allocation2 + $0x80] sm:$0xff] }
 0x31f   : > { %2289 = vst.msk [vmem:[#allocation4 + $0xf8] sm:$0xff] %vm2257_vm10, %v2224_v10  ;;  %v10429_v10 = vld [vmem:[#allocation2 + $0x92] sm:$0xff] }
 0x320   : > { %v2359_v29 = vpop.permute.xlu0 %2358  ;;  %3417 = vrot.lane.b32.xlu1 %v3328_v13, %s8528_s25  ;;  %v10435_v13 = vld [vmem:[#allocation2 + $0x98] sm:$0xff] }
 0x321   : > { %2453 = vst.msk [vmem:[#allocation4 + $0x10] sm:$0xff] %vm2450_vm11, %v2359_v29 }
 0x322   : > { %3423 = vrot.lane.b32.xlu0 %v3331_v1, %s8528_s25  ;;  %v2357_v5 = vpop.permute.xlu1 %2356 }
 0x323   : > { %2452 = vst.msk [vmem:[#allocation4 + $0x8] sm:$0xff] %vm2450_vm11, %v2357_v5  ;;  %v10439_v5 = vld [vmem:[#allocation2 + $0x82] sm:$0xff] }
 0x324   : > { %v2363_v50 = vpop.permute.xlu0 %2362  ;;  %v2483_v40 = vld [vmem:[#allocation4] sm:$0xff]  ;;  %3421 = vrot.lane.b32.xlu1 %v3330_v7, %s8528_s25 }
 0x325   : > { %2455 = vst.msk [vmem:[#allocation4 + $0x20] sm:$0xff] %vm2450_vm11, %v2363_v50  ;;  %8209 = vmatprep.mubr.msk.f32.mxu1 %vm2531_vm12, %v2483_v40  ;;  %v10443_v50 = vld [vmem:[#allocation2 + $0xc0] sm:$0xff]  ;;  %v10449_v40 = vld [vmem:[#allocation2 + $0xaa] sm:$0xff] }
 0x326   : > { %3271 = vst.msk [vmem:[#allocation4] sm:$0xff] %vm785_vm2, %v3239_v23  ;;  %3427 = vrot.lane.b32.xlu0 %v3333_v56, %s8528_s25  ;;  %v2361_v30 = vpop.permute.xlu1 %2360 }
 0x327   : > { %2454 = vst.msk [vmem:[#allocation4 + $0x18] sm:$0xff] %vm2450_vm11, %v2361_v30 }
 0x328   : > { %v2367_v37 = vpop.permute.xlu0 %2366  ;;  %v2485_v12 = vld [vmem:[#allocation4 + $0x10] sm:$0xff]  ;;  %3425 = vrot.lane.b32.xlu1 %v3332_v48, %s8528_s25  ;;  %v10459_v48 = vld [vmem:[#allocation2 + $0x9a] sm:$0xff] }
 0x329   : > { %2457 = vst.msk [vmem:[#allocation4 + $0x30] sm:$0xff] %vm2450_vm11, %v2367_v37 }
 0x32a   : > { %3273 = vst.msk [vmem:[#allocation4 + $0x10] sm:$0xff] %vm785_vm2, %v10314_v21  ;;  %3559 = vrot.lane.b32.xlu0 %v3495_v44, %s8529_s26  ;;  %v2365_v39 = vpop.permute.xlu1 %2364  ;;  %v2484_v55 = vld [vmem:[#allocation4 + $0x8] sm:$0xff]  ;;  %v10455_v44 = vld [vmem:[#allocation2 + $0xb0] sm:$0xff] }
 0x32b   : > { %2456 = vst.msk [vmem:[#allocation4 + $0x28] sm:$0xff] %vm2450_vm11, %v2365_v39  ;;  %8210 = vmatmul.mubr.msk.f32.vlgmr.msra.gmra.mrb[16].mxu1 %vm2531_vm12, %v2484_v55  ;;  %v10469_v39 = vld [vmem:[#allocation2 + $0xc2] sm:$0xff] }
 0x32c   : > { %v2371_v31 = vpop.permute.xlu0 %2370  ;;  %v2487_v11 = vld [vmem:[#allocation4 + $0x20] sm:$0xff]  ;;  %3272 = vst.msk [vmem:[#allocation4 + $0x8] sm:$0xff] %vm785_vm2, %v3240_v0  ;;  %3429 = vrot.lane.b32.xlu1 %v10323_v19, %s8528_s25  ;;  %8212 = vmatprep.mubr.msk.f32.mxu1 %vm2531_vm12, %v2485_v12  ;;  %v10463_v0 = vld [vmem:[#allocation2 + $0xd8] sm:$0xff] }
 0x32d   : > { %2459 = vst.msk [vmem:[#allocation4 + $0x40] sm:$0xff] %vm2450_vm11, %v2371_v31 }
 0x32e   : > { %3275 = vst.msk [vmem:[#allocation4 + $0x20] sm:$0xff] %vm785_vm2, %v10326_v28  ;;  %3563 = vrot.lane.b32.xlu0 %v10332_v38, %s8529_s26  ;;  %v2369_v58 = vpop.permute.xlu1 %2368  ;;  %v2486_v53 = vld [vmem:[#allocation4 + $0x18] sm:$0xff] }
 0x32f   : > { %2458 = vst.msk [vmem:[#allocation4 + $0x38] sm:$0xff] %vm2450_vm11, %v2369_v58  ;;  %8213 = vmatmul.mubr.msk.f32.gmra.mrb[18].mxu1 %vm2531_vm12, %v2486_v53  ;;  %v10479_v58 = vld [vmem:[#allocation2 + $0xb2] sm:$0xff] }
 0x330   : > { %v2375_v24 = vpop.permute.xlu0 %2374  ;;  %v2489_v47 = vld [vmem:[#allocation4 + $0x30] sm:$0xff]  ;;  %3274 = vst.msk [vmem:[#allocation4 + $0x18] sm:$0xff] %vm785_vm2, %v10338_v36  ;;  %3561 = vrot.lane.b32.xlu1 %v3496_v45, %s8529_s26  ;;  %8215 = vmatprep.mubr.msk.f32.mxu1 %vm2531_vm12, %v2487_v11  ;;  %v10475_v11 = vld [vmem:[#allocation2 + $0xc8] sm:$0xff] }
 0x331   : > { %2461 = vst.msk [vmem:[#allocation4 + $0x50] sm:$0xff] %vm2450_vm11, %v2375_v24  ;;  %v10483_v24 = vld [vmem:[#allocation2 + $0xf0] sm:$0xff] }
 0x332   : > { %3277 = vst.msk [vmem:[#allocation4 + $0x30] sm:$0xff] %vm785_vm2, %v10344_v26  ;;  %3567 = vrot.lane.b32.xlu0 %v10349_v22, %s8529_s26  ;;  %v2373_v17 = vpop.permute.xlu1 %2372  ;;  %v2488_v62 = vld [vmem:[#allocation4 + $0x28] sm:$0xff] }
 0x333   : > { %2460 = vst.msk [vmem:[#allocation4 + $0x48] sm:$0xff] %vm2450_vm11, %v2373_v17  ;;  %8216 = vmatmul.mubr.msk.f32.gmra.mrb[20].mxu1 %vm2531_vm12, %v2488_v62 }
 0x334   : > { %v2379_v41 = vpop.permute.xlu0 %2378  ;;  %v2491_v20 = vld [vmem:[#allocation4 + $0x40] sm:$0xff]  ;;  %3276 = vst.msk [vmem:[#allocation4 + $0x28] sm:$0xff] %vm785_vm2, %v10355_v54  ;;  %3565 = vrot.lane.b32.xlu1 %v10359_v9, %s8529_s26  ;;  %8218 = vmatprep.mubr.msk.f32.mxu1 %vm2531_vm12, %v2489_v47 }
 0x335   : > { %2463 = vst.msk [vmem:[#allocation4 + $0x60] sm:$0xff] %vm2450_vm11, %v2379_v41  ;;  %v10489_v47 = vld [vmem:[#allocation2 + $0xda] sm:$0xff] }
 0x336   : > { %3279 = vst.msk [vmem:[#allocation4 + $0x40] sm:$0xff] %vm785_vm2, %v10363_v63  ;;  %3571 = vrot.lane.b32.xlu0 %v10369_v34, %s8529_s26  ;;  %v2377_v33 = vpop.permute.xlu1 %2376  ;;  %v2490_v6 = vld [vmem:[#allocation4 + $0x38] sm:$0xff]  ;;  %v10495_v41 = vld [vmem:[#allocation2 + $0xe0] sm:$0xff] }
 0x337   : > { %2462 = vst.msk [vmem:[#allocation4 + $0x58] sm:$0xff] %vm2450_vm11, %v2377_v33  ;;  %8219 = vmatmul.mubr.msk.f32.gmra.mrb[22].mxu1 %vm2531_vm12, %v2490_v6  ;;  %v10499_v33 = vld [vmem:[#allocation2 + $0xca] sm:$0xff] }
 0x338   : > { %v2383_v51 = vpop.permute.xlu0 %2382  ;;  %v2493_v14 = vld [vmem:[#allocation4 + $0x50] sm:$0xff]  ;;  %3278 = vst.msk [vmem:[#allocation4 + $0x38] sm:$0xff] %vm785_vm2, %v10375_v59  ;;  %3569 = vrot.lane.b32.xlu1 %v10379_v60, %s8529_s26  ;;  %8221 = vmatprep.mubr.msk.f32.mxu1 %vm2531_vm12, %v2491_v20 }
 0x339   : > { %2465 = vst.msk [vmem:[#allocation4 + $0x70] sm:$0xff] %vm2450_vm11, %v2383_v51  ;;  %v10503_v51 = vld [vmem:[#allocation2 + $0x108] sm:$0xff] }
 0x33a   : > { %3281 = vst.msk [vmem:[#allocation4 + $0x50] sm:$0xff] %vm785_vm2, %v10383_v2  ;;  %3575 = vrot.lane.b32.xlu0 %v10389_v15, %s8529_s26  ;;  %v2381_v4 = vpop.permute.xlu1 %2380  ;;  %v2492_v25 = vld [vmem:[#allocation4 + $0x48] sm:$0xff] }
 0x33b   : > { %2464 = vst.msk [vmem:[#allocation4 + $0x68] sm:$0xff] %vm2450_vm11, %v2381_v4  ;;  %8222 = vmatmul.mubr.msk.f32.gmra.mrb[24].mxu1 %vm2531_vm12, %v2492_v25 }
 0x33c   : > { %v2387_v18 = vpop.permute.xlu0 %2386  ;;  %v2495_v43 = vld [vmem:[#allocation4 + $0x60] sm:$0xff]  ;;  %3280 = vst.msk [vmem:[#allocation4 + $0x48] sm:$0xff] %vm785_vm2, %v10395_v46  ;;  %3573 = vrot.lane.b32.xlu1 %v10399_v57, %s8529_s26  ;;  %8224 = vmatprep.mubr.msk.f32.mxu1 %vm2531_vm12, %v2493_v14  ;;  %v10509_v14 = vld [vmem:[#allocation2 + $0xf2] sm:$0xff] }
 0x33d   : > { %2467 = vst.msk [vmem:[#allocation4 + $0x80] sm:$0xff] %vm2450_vm11, %v2387_v18  ;;  %v10515_v18 = vld [vmem:[#allocation2 + $0xf8] sm:$0xff] }
 0x33e   : > { %3283 = vst.msk [vmem:[#allocation4 + $0x60] sm:$0xff] %vm785_vm2, %v10403_v52  ;;  %3579 = vrot.lane.b32.xlu0 %v10409_v8, %s8529_s26  ;;  %v2385_v49 = vpop.permute.xlu1 %2384  ;;  %v2494_v61 = vld [vmem:[#allocation4 + $0x58] sm:$0xff] }
 0x33f   : > { %2466 = vst.msk [vmem:[#allocation4 + $0x78] sm:$0xff] %vm2450_vm11, %v2385_v49  ;;  %8225 = vmatmul.mubr.msk.f32.gmra.mrb[26].mxu1 %vm2531_vm12, %v2494_v61  ;;  %v10519_v49 = vld [vmem:[#allocation2 + $0xe2] sm:$0xff] }
 0x340   : > { %v2391_v42 = vpop.permute.xlu0 %2390  ;;  %v2497_v35 = vld [vmem:[#allocation4 + $0x70] sm:$0xff]  ;;  %3282 = vst.msk [vmem:[#allocation4 + $0x58] sm:$0xff] %vm785_vm2, %v10415_v32  ;;  %3577 = vrot.lane.b32.xlu1 %v10419_v16, %s8529_s26  ;;  %8227 = vmatprep.mubr.msk.f32.mxu1 %vm2531_vm12, %v2495_v43 }
 0x341   : > { %2469 = vst.msk [vmem:[#allocation4 + $0x90] sm:$0xff] %vm2450_vm11, %v2391_v42  ;;  %v10523_v42 = vld [vmem:[#allocation2 + $0x120] sm:$0xff] }
 0x342   : > { %3285 = vst.msk [vmem:[#allocation4 + $0x70] sm:$0xff] %vm785_vm2, %v10423_v3  ;;  %3583 = vrot.lane.b32.xlu0 %v10429_v10, %s8529_s26  ;;  %v2389_v1 = vpop.permute.xlu1 %2388  ;;  %v2496_v29 = vld [vmem:[#allocation4 + $0x68] sm:$0xff] }
 0x343   : > { %2468 = vst.msk [vmem:[#allocation4 + $0x88] sm:$0xff] %vm2450_vm11, %v2389_v1  ;;  %8228 = vmatmul.mubr.msk.f32.gmra.mrb[28].mxu1 %vm2531_vm12, %v2496_v29 }
 0x344   : > { %v2395_v23 = vpop.permute.xlu0 %2394  ;;  %v2499_v56 = vld [vmem:[#allocation4 + $0x80] sm:$0xff]  ;;  %3284 = vst.msk [vmem:[#allocation4 + $0x68] sm:$0xff] %vm785_vm2, %v10435_v13  ;;  %3581 = vrot.lane.b32.xlu1 %v10439_v5, %s8529_s26  ;;  %8230 = vmatprep.mubr.msk.f32.mxu1 %vm2531_vm12, %v2497_v35  ;;  %v10529_v35 = vld [vmem:[#allocation2 + $0x10a] sm:$0xff] }
 0x345   : > { %2471 = vst.msk [vmem:[#allocation4 + $0xa0] sm:$0xff] %vm2450_vm11, %v2395_v23  ;;  %v10535_v23 = vld [vmem:[#allocation2 + $0x110] sm:$0xff] }
 0x346   : > { %3287 = vst.msk [vmem:[#allocation4 + $0x80] sm:$0xff] %vm785_vm2, %v10443_v50  ;;  %3587 = vrot.lane.b32.xlu0 %v10449_v40, %s8529_s26  ;;  %v2393_v7 = vpop.permute.xlu1 %2392  ;;  %v2498_v30 = vld [vmem:[#allocation4 + $0x78] sm:$0xff] }
 0x347   : > { %2470 = vst.msk [vmem:[#allocation4 + $0x98] sm:$0xff] %vm2450_vm11, %v2393_v7  ;;  %8231 = vmatmul.mubr.msk.f32.gmra.mrb[30].mxu1 %vm2531_vm12, %v2498_v30  ;;  %v10539_v7 = vld [vmem:[#allocation2 + $0xfa] sm:$0xff] }
 0x348   : > { %v2399_v37 = vpop.permute.xlu0 %2398  ;;  %v2501_v12 = vld [vmem:[#allocation4 + $0x90] sm:$0xff]  ;;  %3286 = vst.msk [vmem:[#allocation4 + $0x78] sm:$0xff] %vm785_vm2, %v10455_v44  ;;  %3585 = vrot.lane.b32.xlu1 %v10459_v48, %s8529_s26  ;;  %8233 = vmatprep.mubr.msk.f32.mxu1 %vm2531_vm12, %v2499_v56 }
 0x349   : > { %2473 = vst.msk [vmem:[#allocation4 + $0xb0] sm:$0xff] %vm2450_vm11, %v2399_v37  ;;  %v10543_v37 = vld [vmem:[#allocation2 + $0x138] sm:$0xff] }
 0x34a   : > { %3289 = vst.msk [vmem:[#allocation4 + $0x90] sm:$0xff] %vm785_vm2, %v10463_v0  ;;  %3591 = vrot.lane.b32.xlu0 %v10469_v39, %s8529_s26  ;;  %v2397_v55 = vpop.permute.xlu1 %2396  ;;  %v2500_v31 = vld [vmem:[#allocation4 + $0x88] sm:$0xff] }
 0x34b   : > { %2472 = vst.msk [vmem:[#allocation4 + $0xa8] sm:$0xff] %vm2450_vm11, %v2397_v55  ;;  %8234 = vmatmul.mubr.msk.f32.gmra.mrb[32].mxu1 %vm2531_vm12, %v2500_v31 }
 0x34c   : > { %v2403_v45 = vpop.permute.xlu0 %2402  ;;  %v2503_v53 = vld [vmem:[#allocation4 + $0xa0] sm:$0xff]  ;;  %3288 = vst.msk [vmem:[#allocation4 + $0x88] sm:$0xff] %vm785_vm2, %v10475_v11  ;;  %3589 = vrot.lane.b32.xlu1 %v10479_v58, %s8529_s26  ;;  %8236 = vmatprep.mubr.msk.f32.mxu1 %vm2531_vm12, %v2501_v12 }
 0x34d   : > { %2475 = vst.msk [vmem:[#allocation4 + $0xc0] sm:$0xff] %vm2450_vm11, %v2403_v45  ;;  %v10549_v12 = vld [vmem:[#allocation2 + $0x122] sm:$0xff] }
 0x34e   : > { %3291 = vst.msk [vmem:[#allocation4 + $0xa0] sm:$0xff] %vm785_vm2, %v10483_v24  ;;  %3595 = vrot.lane.b32.xlu0 %v10489_v47, %s8529_s26  ;;  %v2401_v17 = vpop.permute.xlu1 %2400  ;;  %v2502_v62 = vld [vmem:[#allocation4 + $0x98] sm:$0xff]  ;;  %v10555_v45 = vld [vmem:[#allocation2 + $0x128] sm:$0xff] }
 0x34f   : > { %2474 = vst.msk [vmem:[#allocation4 + $0xb8] sm:$0xff] %vm2450_vm11, %v2401_v17  ;;  %8237 = vmatmul.mubr.msk.f32.gmra.mrb[34].mxu1 %vm2531_vm12, %v2502_v62  ;;  %v10559_v17 = vld [vmem:[#allocation2 + $0x112] sm:$0xff] }
 0x350   : > { %v2407_v20 = vpop.permute.xlu0 %2406  ;;  %v2505_v6 = vld [vmem:[#allocation4 + $0xb0] sm:$0xff]  ;;  %3290 = vst.msk [vmem:[#allocation4 + $0x98] sm:$0xff] %vm785_vm2, %v10495_v41  ;;  %3593 = vrot.lane.b32.xlu1 %v10499_v33, %s8529_s26  ;;  %8239 = vmatprep.mubr.msk.f32.mxu1 %vm2531_vm12, %v2503_v53 }
 0x351   : > { %2477 = vst.msk [vmem:[#allocation4 + $0xd0] sm:$0xff] %vm2450_vm11, %v2407_v20  ;;  %v10563_v20 = vld [vmem:[#allocation2 + $0x150] sm:$0xff] }
 0x352   : > { %3293 = vst.msk [vmem:[#allocation4 + $0xb0] sm:$0xff] %vm785_vm2, %v10503_v51  ;;  %3599 = vrot.lane.b32.xlu0 %v10509_v14, %s8529_s26  ;;  %v2405_v4 = vpop.permute.xlu1 %2404  ;;  %v2504_v25 = vld [vmem:[#allocation4 + $0xa8] sm:$0xff] }
 0x353   : > { %2476 = vst.msk [vmem:[#allocation4 + $0xc8] sm:$0xff] %vm2450_vm11, %v2405_v4  ;;  %8240 = vmatmul.mubr.msk.f32.gmra.mrb[36].mxu1 %vm2531_vm12, %v2504_v25 }
 0x354   : > { %v2411_v43 = vpop.permute.xlu0 %2410  ;;  %v2507_v61 = vld [vmem:[#allocation4 + $0xc0] sm:$0xff]  ;;  %3292 = vst.msk [vmem:[#allocation4 + $0xa8] sm:$0xff] %vm785_vm2, %v10515_v18  ;;  %3597 = vrot.lane.b32.xlu1 %v10519_v49, %s8529_s26  ;;  %8242 = vmatprep.mubr.msk.f32.mxu1 %vm2531_vm12, %v2505_v6 }
 0x355   : > { %2479 = vst.msk [vmem:[#allocation4 + $0xe0] sm:$0xff] %vm2450_vm11, %v2411_v43  ;;  %v10569_v6 = vld [vmem:[#allocation2 + $0x13a] sm:$0xff] }
 0x356   : > { %3295 = vst.msk [vmem:[#allocation4 + $0xc0] sm:$0xff] %vm785_vm2, %v10523_v42  ;;  %3603 = vrot.lane.b32.xlu0 %v10529_v35, %s8529_s26  ;;  %v2409_v1 = vpop.permute.xlu1 %2408  ;;  %v2506_v29 = vld [vmem:[#allocation4 + $0xb8] sm:$0xff]  ;;  %v10575_v43 = vld [vmem:[#allocation2 + $0x140] sm:$0xff] }
 0x357   : > { %2478 = vst.msk [vmem:[#allocation4 + $0xd8] sm:$0xff] %vm2450_vm11, %v2409_v1  ;;  %8243 = vmatmul.mubr.msk.f32.gmra.mrb[38].mxu1 %vm2531_vm12, %v2506_v29  ;;  %v10579_v1 = vld [vmem:[#allocation2 + $0x12a] sm:$0xff] }
 0x358   : > { %v2415_v56 = vpop.permute.xlu0 %2414  ;;  %v2509_v30 = vld [vmem:[#allocation4 + $0xd0] sm:$0xff]  ;;  %3294 = vst.msk [vmem:[#allocation4 + $0xb8] sm:$0xff] %vm785_vm2, %v10535_v23  ;;  %3601 = vrot.lane.b32.xlu1 %v10539_v7, %s8529_s26  ;;  %8245 = vmatprep.mubr.msk.f32.mxu1 %vm2531_vm12, %v2507_v61 }
 0x359   : > { %2481 = vst.msk [vmem:[#allocation4 + $0xf0] sm:$0xff] %vm2450_vm11, %v2415_v56  ;;  %v10583_v56 = vld [vmem:[#allocation2 + $0x168] sm:$0xff] }
 0x35a   : > { %3297 = vst.msk [vmem:[#allocation4 + $0xd0] sm:$0xff] %vm785_vm2, %v10543_v37  ;;  %3607 = vrot.lane.b32.xlu0 %v10549_v12, %s8529_s26  ;;  %v2413_v55 = vpop.permute.xlu1 %2412  ;;  %v2508_v31 = vld [vmem:[#allocation4 + $0xc8] sm:$0xff] }
 0x35b   : > { %2480 = vst.msk [vmem:[#allocation4 + $0xe8] sm:$0xff] %vm2450_vm11, %v2413_v55  ;;  %8246 = vmatmul.mubr.msk.f32.gmra.mrb[40].mxu1 %vm2531_vm12, %v2508_v31 }
 0x35c   : > { %v3368_v53 = vpop.permute.xlu0 %3367  ;;  %v2511_v62 = vld [vmem:[#allocation4 + $0xe0] sm:$0xff]  ;;  %3296 = vst.msk [vmem:[#allocation4 + $0xc8] sm:$0xff] %vm785_vm2, %v10555_v45  ;;  %3605 = vrot.lane.b32.xlu1 %v10559_v17, %s8529_s26  ;;  %8248 = vmatprep.mubr.msk.f32.mxu1 %vm2531_vm12, %v2509_v30  ;;  %v10589_v30 = vld [vmem:[#allocation2 + $0x152] sm:$0xff] }
 0x35d   : > { %3463 = vst.msk [vmem:[#allocation4] sm:$0xff] %vm1098_vm4, %v3368_v53  ;;  %v10595_v53 = vld [vmem:[#allocation2 + $0x158] sm:$0xff] }
 0x35e   : > { %3299 = vst.msk [vmem:[#allocation4 + $0xe0] sm:$0xff] %vm785_vm2, %v10563_v20  ;;  %3611 = vrot.lane.b32.xlu0 %v10569_v6, %s8529_s26  ;;  %v2417_v4 = vpop.permute.xlu1 %2416  ;;  %v2510_v25 = vld [vmem:[#allocation4 + $0xd8] sm:$0xff] }
 0x35f   : > { %2482 = vst.msk [vmem:[#allocation4 + $0xf8] sm:$0xff] %vm2450_vm11, %v2417_v4  ;;  %8249 = vmatmul.mubr.msk.f32.gmra.mrb[42].mxu1 %vm2531_vm12, %v2510_v25  ;;  %v10599_v25 = vld [vmem:[#allocation2 + $0x142] sm:$0xff] }
 0x360   : > { %v3372_v61 = vpop.permute.xlu0 %3371  ;;  %v2513_v29 = vld [vmem:[#allocation4 + $0xf0] sm:$0xff]  ;;  %3298 = vst.msk [vmem:[#allocation4 + $0xd8] sm:$0xff] %vm785_vm2, %v10575_v43  ;;  %3609 = vrot.lane.b32.xlu1 %v10579_v1, %s8529_s26  ;;  %8251 = vmatprep.mubr.msk.f32.mxu1 %vm2531_vm12, %v2511_v62 }
 0x361   : > { %3465 = vst.msk [vmem:[#allocation4 + $0x10] sm:$0xff] %vm1098_vm4, %v3372_v61  ;;  %v10606_v62 = vld [vmem:[#allocation2 + $0x16a] sm:$0xff] }
 0x362   : > { %3301 = vst.msk [vmem:[#allocation4 + $0xf0] sm:$0xff] %vm785_vm2, %v10583_v56  ;;  %3615 = vrot.lane.b32.xlu0 %v10589_v30, %s8529_s26  ;;  %v3370_v55 = vpop.permute.xlu1 %3369  ;;  %v2512_v31 = vld [vmem:[#allocation4 + $0xe8] sm:$0xff]  ;;  %13022 = vst [vmem:[#allocation8_spill] sm:$0xff] %v10606_v62 }
 0x363   : > { %3464 = vst.msk [vmem:[#allocation4 + $0x8] sm:$0xff] %vm1098_vm4, %v3370_v55  ;;  %8252 = vmatmul.mubr.msk.f32.gmra.mrb[44].mxu1 %vm2531_vm12, %v2512_v31  ;;  %v10611_v31 = vld [vmem:[#allocation2 + $0x170] sm:$0xff] }
 0x364   : > { %v3376_v4 = vpop.permute.xlu0 %3375  ;;  %3300 = vst.msk [vmem:[#allocation4 + $0xe8] sm:$0xff] %vm785_vm2, %v10595_v53  ;;  %3613 = vrot.lane.b32.xlu1 %v10599_v25, %s8529_s26  ;;  %8254 = vmatprep.mubr.msk.f32.mxu1 %vm2531_vm12, %v2513_v29 }
 0x365   : > { %3467 = vst.msk [vmem:[#allocation4 + $0x20] sm:$0xff] %vm1098_vm4, %v3376_v4  ;;  %v10615_v4 = vld [vmem:[#allocation2 + $0x15a] sm:$0xff] }
 0x366   : > { %3619 = vrot.lane.b32.xlu0 %v10606_v62, %s8529_s26  ;;  %v3374_v61 = vpop.permute.xlu1 %3373  ;;  %v2514_v55 = vld [vmem:[#allocation4 + $0xf8] sm:$0xff] }
 0x367   : > { %3466 = vst.msk [vmem:[#allocation4 + $0x18] sm:$0xff] %vm1098_vm4, %v3374_v61  ;;  %8255 = vmatmul.mubr.msk.f32.gmra.mrb[46].mxu1 %vm2531_vm12, %v2514_v55  ;;  %v10625_v62 = vld [vmem:[#allocation2 + $0x172] sm:$0xff] }
 0x368   : > { %v3380_v27 = vpop.permute.xlu0 %3379  ;;  %3302 = vst.msk [vmem:[#allocation4 + $0xf8] sm:$0xff] %vm785_vm2, %v10611_v31  ;;  %3617 = vrot.lane.b32.xlu1 %v10615_v4, %s8529_s26  ;;  %vm5939_vm2 = vcmask 64560  }
 0x369   : > { %3469 = vst.msk [vmem:[#allocation4 + $0x30] sm:$0xff] %vm1098_vm4, %v3380_v27 }
 0x36a   : > { %3751 = vrot.lane.b32.xlu0 %v10314_v21, %s8530_s29  ;;  %v3378_v29 = vpop.permute.xlu1 %3377 }
 0x36b   : > { %3468 = vst.msk [vmem:[#allocation4 + $0x28] sm:$0xff] %vm1098_vm4, %v3378_v29 }
 0x36c   : > { %v3384_v61 = vpop.permute.xlu0 %3383  ;;  %3621 = vrot.lane.b32.xlu1 %v10625_v62, %s8529_s26 }
 0x36d   : > { %3471 = vst.msk [vmem:[#allocation4 + $0x40] sm:$0xff] %vm1098_vm4, %v3384_v61 }
 0x36e   : > { %3755 = vrot.lane.b32.xlu0 %v10326_v28, %s8530_s29  ;;  %v3382_v27 = vpop.permute.xlu1 %3381 }
 0x36f   : > { %3470 = vst.msk [vmem:[#allocation4 + $0x38] sm:$0xff] %vm1098_vm4, %v3382_v27 }
 0x370   : > { %v3388_v55 = vpop.permute.xlu0 %3387  ;;  %3753 = vrot.lane.b32.xlu1 %v10338_v36, %s8530_s29 }
 0x371   : > { %3473 = vst.msk [vmem:[#allocation4 + $0x50] sm:$0xff] %vm1098_vm4, %v3388_v55 }
 0x372   : > { %3759 = vrot.lane.b32.xlu0 %v10344_v26, %s8530_s29  ;;  %v3386_v21 = vpop.permute.xlu1 %3385 }
 0x373   : > { %3472 = vst.msk [vmem:[#allocation4 + $0x48] sm:$0xff] %vm1098_vm4, %v3386_v21  ;;  %v3879_v21 = vld [vmem:[#allocation2 + $0x19] sm:$0xff] }
 0x374   : > { %v3392_v29 = vpop.permute.xlu0 %3391  ;;  %3757 = vrot.lane.b32.xlu1 %v10355_v54, %s8530_s29 }
 0x375   : > { %3475 = vst.msk [vmem:[#allocation4 + $0x60] sm:$0xff] %vm1098_vm4, %v3392_v29 }
 0x376   : > { %3763 = vrot.lane.b32.xlu0 %v10363_v63, %s8530_s29  ;;  %v3390_v28 = vpop.permute.xlu1 %3389 }
 0x377   : > { %3474 = vst.msk [vmem:[#allocation4 + $0x58] sm:$0xff] %vm1098_vm4, %v3390_v28 }
 0x378   : > { %v3396_v61 = vpop.permute.xlu0 %3395  ;;  %3761 = vrot.lane.b32.xlu1 %v10375_v59, %s8530_s29 }
 0x379   : > { %3477 = vst.msk [vmem:[#allocation4 + $0x70] sm:$0xff] %vm1098_vm4, %v3396_v61  ;;  %v10724_v61 = vld [vmem:[#allocation2 + $0x188] sm:$0xff] }
 0x37a   : > { %3767 = vrot.lane.b32.xlu0 %v10383_v2, %s8530_s29  ;;  %v3394_v36 = vpop.permute.xlu1 %3393 }
 0x37b   : > { %3476 = vst.msk [vmem:[#allocation4 + $0x68] sm:$0xff] %vm1098_vm4, %v3394_v36  ;;  %v10729_v36 = vld [vmem:[#allocation2 + $0x31] sm:$0xff] }
 0x37c   : > { %v3400_v26 = vpop.permute.xlu0 %3399  ;;  %3765 = vrot.lane.b32.xlu1 %v10395_v46, %s8530_s29 }
 0x37d   : > { %3479 = vst.msk [vmem:[#allocation4 + $0x80] sm:$0xff] %vm1098_vm4, %v3400_v26 }
 0x37e   : > { %3771 = vrot.lane.b32.xlu0 %v10403_v52, %s8530_s29  ;;  %v3398_v54 = vpop.permute.xlu1 %3397 }
 0x37f   : > { %3478 = vst.msk [vmem:[#allocation4 + $0x78] sm:$0xff] %vm1098_vm4, %v3398_v54 }
 0x380   : > { %v3404_v63 = vpop.permute.xlu0 %3403  ;;  %3769 = vrot.lane.b32.xlu1 %v10415_v32, %s8530_s29 }
 0x381   : > { %3481 = vst.msk [vmem:[#allocation4 + $0x90] sm:$0xff] %vm1098_vm4, %v3404_v63  ;;  %v3880_v63 = vld [vmem:[#allocation2 + $0x21] sm:$0xff] }
 0x382   : > { %3775 = vrot.lane.b32.xlu0 %v10423_v3, %s8530_s29  ;;  %v3402_v59 = vpop.permute.xlu1 %3401 }
 0x383   : > { %3480 = vst.msk [vmem:[#allocation4 + $0x88] sm:$0xff] %vm1098_vm4, %v3402_v59  ;;  %v10736_v59 = vld [vmem:[#allocation2 + $0x49] sm:$0xff] }
 0x384   : > { %v3408_v2 = vpop.permute.xlu0 %3407  ;;  %3773 = vrot.lane.b32.xlu1 %v10435_v13, %s8530_s29 }
 0x385   : > { %3483 = vst.msk [vmem:[#allocation4 + $0xa0] sm:$0xff] %vm1098_vm4, %v3408_v2 }
 0x386   : > { %3779 = vrot.lane.b32.xlu0 %v10443_v50, %s8530_s29  ;;  %v3406_v46 = vpop.permute.xlu1 %3405 }
 0x387   : > { %3482 = vst.msk [vmem:[#allocation4 + $0x98] sm:$0xff] %vm1098_vm4, %v3406_v46 }
 0x388   : > { %v3412_v52 = vpop.permute.xlu0 %3411  ;;  %3777 = vrot.lane.b32.xlu1 %v10455_v44, %s8530_s29 }
 0x389   : > { %3485 = vst.msk [vmem:[#allocation4 + $0xb0] sm:$0xff] %vm1098_vm4, %v3412_v52  ;;  %v10741_v52 = vld [vmem:[#allocation2 + $0x39] sm:$0xff] }
 0x38a   : > { %3783 = vrot.lane.b32.xlu0 %v10463_v0, %s8530_s29  ;;  %v3410_v32 = vpop.permute.xlu1 %3409 }
 0x38b   : > { %3484 = vst.msk [vmem:[#allocation4 + $0xa8] sm:$0xff] %vm1098_vm4, %v3410_v32  ;;  %v10746_v32 = vld [vmem:[#allocation2 + $0x61] sm:$0xff] }
 0x38c   : > { %v3416_v3 = vpop.permute.xlu0 %3415  ;;  %3781 = vrot.lane.b32.xlu1 %v10475_v11, %s8530_s29 }
 0x38d   : > { %3487 = vst.msk [vmem:[#allocation4 + $0xc0] sm:$0xff] %vm1098_vm4, %v3416_v3 }
 0x38e   : > { %3787 = vrot.lane.b32.xlu0 %v10483_v24, %s8530_s29  ;;  %v3414_v13 = vpop.permute.xlu1 %3413 }
 0x38f   : > { %3486 = vst.msk [vmem:[#allocation4 + $0xb8] sm:$0xff] %vm1098_vm4, %v3414_v13 }
 0x390   : > { %v3420_v50 = vpop.permute.xlu0 %3419  ;;  %3785 = vrot.lane.b32.xlu1 %v10495_v41, %s8530_s29 }
 0x391   : > { %3489 = vst.msk [vmem:[#allocation4 + $0xd0] sm:$0xff] %vm1098_vm4, %v3420_v50  ;;  %v10751_v50 = vld [vmem:[#allocation2 + $0x51] sm:$0xff] }
 0x392   : > { %3791 = vrot.lane.b32.xlu0 %v10503_v51, %s8530_s29  ;;  %v3418_v44 = vpop.permute.xlu1 %3417 }
 0x393   : > { %3488 = vst.msk [vmem:[#allocation4 + $0xc8] sm:$0xff] %vm1098_vm4, %v3418_v44  ;;  %v10756_v44 = vld [vmem:[#allocation2 + $0x79] sm:$0xff] }
 0x394   : > { %v3424_v0 = vpop.permute.xlu0 %3423  ;;  %3789 = vrot.lane.b32.xlu1 %v10515_v18, %s8530_s29 }
 0x395   : > { %3491 = vst.msk [vmem:[#allocation4 + $0xe0] sm:$0xff] %vm1098_vm4, %v3424_v0 }
 0x396   : > { %3795 = vrot.lane.b32.xlu0 %v10523_v42, %s8530_s29  ;;  %v3422_v11 = vpop.permute.xlu1 %3421 }
 0x397   : > { %3490 = vst.msk [vmem:[#allocation4 + $0xd8] sm:$0xff] %vm1098_vm4, %v3422_v11 }
 0x398   : > { %v3428_v24 = vpop.permute.xlu0 %3427  ;;  %3793 = vrot.lane.b32.xlu1 %v10535_v23, %s8530_s29 }
 0x399   : > { %3493 = vst.msk [vmem:[#allocation4 + $0xf0] sm:$0xff] %vm1098_vm4, %v3428_v24  ;;  %v10761_v24 = vld [vmem:[#allocation2 + $0x69] sm:$0xff] }
 0x39a   : > { %3799 = vrot.lane.b32.xlu0 %v10543_v37, %s8530_s29  ;;  %v3426_v41 = vpop.permute.xlu1 %3425  ;;  %v10710_v37 = vld [vmem:[#allocation2 + $0x180] sm:$0xff] }
 0x39b   : > { %3492 = vst.msk [vmem:[#allocation4 + $0xe8] sm:$0xff] %vm1098_vm4, %v3426_v41  ;;  %v10766_v41 = vld [vmem:[#allocation2 + $0x91] sm:$0xff] }
 0x39c   : > { %v3560_v51 = vpop.permute.xlu0 %3559  ;;  %3797 = vrot.lane.b32.xlu1 %v10555_v45, %s8530_s29 }
 0x39d   : > { %3655 = vst.msk [vmem:[#allocation4] sm:$0xff] %vm1291_vm5, %v3560_v51 }
 0x39e   : > { %3803 = vrot.lane.b32.xlu0 %v10563_v20, %s8530_s29  ;;  %v3430_v18 = vpop.permute.xlu1 %3429 }
 0x39f   : > { %3494 = vst.msk [vmem:[#allocation4 + $0xf8] sm:$0xff] %vm1098_vm4, %v3430_v18  ;;  %vm6132_vm4 = vcmask 80960  }
 0x3a0   : > { %v3564_v42 = vpop.permute.xlu0 %3563  ;;  %3801 = vrot.lane.b32.xlu1 %v10575_v43, %s8530_s29 }
 0x3a1   : > { %3657 = vst.msk [vmem:[#allocation4 + $0x10] sm:$0xff] %vm1291_vm5, %v3564_v42  ;;  %v10771_v42 = vld [vmem:[#allocation2 + $0x81] sm:$0xff] }
 0x3a2   : > { %3807 = vrot.lane.b32.xlu0 %v10583_v56, %s8530_s29  ;;  %v3562_v23 = vpop.permute.xlu1 %3561 }
 0x3a3   : > { %3656 = vst.msk [vmem:[#allocation4 + $0x8] sm:$0xff] %vm1291_vm5, %v3562_v23  ;;  %v10776_v23 = vld [vmem:[#allocation2 + $0xa9] sm:$0xff] }
 0x3a4   : > { %v3568_v45 = vpop.permute.xlu0 %3567  ;;  %3805 = vrot.lane.b32.xlu1 %v10595_v53, %s8530_s29 }
 0x3a5   : > { %3659 = vst.msk [vmem:[#allocation4 + $0x20] sm:$0xff] %vm1291_vm5, %v3568_v45 }
 0x3a6   : > { %3811 = vrot.lane.b32.xlu0 %v10710_v37, %s8530_s29  ;;  %v3566_v27 = vpop.permute.xlu1 %3565 }
 0x3a7   : > { %3658 = vst.msk [vmem:[#allocation4 + $0x18] sm:$0xff] %vm1291_vm5, %v3566_v27 }
 0x3a8   : > { %v3572_v55 = vpop.permute.xlu0 %3571  ;;  %3809 = vrot.lane.b32.xlu1 %v10611_v31, %s8530_s29 }
 0x3a9   : > { %3661 = vst.msk [vmem:[#allocation4 + $0x30] sm:$0xff] %vm1291_vm5, %v3572_v55  ;;  %v10781_v55 = vld [vmem:[#allocation2 + $0x99] sm:$0xff] }
 0x3aa   : > { %3943 = vrot.lane.b32.xlu0 %v3879_v21, %s8531_s30  ;;  %v3570_v29 = vpop.permute.xlu1 %3569  ;;  %v10786_v21 = vld [vmem:[#allocation2 + $0xc1] sm:$0xff] }
 0x3ab   : > { %3660 = vst.msk [vmem:[#allocation4 + $0x28] sm:$0xff] %vm1291_vm5, %v3570_v29 }
 0x3ac   : > { %v3576_v28 = vpop.permute.xlu0 %3575  ;;  %3813 = vrot.lane.b32.xlu1 %v10724_v61, %s8530_s29  ;;  %s8540_s29 = smov 12  }
 0x3ad   : > { %3663 = vst.msk [vmem:[#allocation4 + $0x40] sm:$0xff] %vm1291_vm5, %v3576_v28 }
 0x3ae   : > { %3947 = vrot.lane.b32.xlu0 %v10729_v36, %s8531_s30  ;;  %v3574_v26 = vpop.permute.xlu1 %3573 }
 0x3af   : > { %3662 = vst.msk [vmem:[#allocation4 + $0x38] sm:$0xff] %vm1291_vm5, %v3574_v26  ;;  %v10791_v26 = vld [vmem:[#allocation2 + $0xb1] sm:$0xff] }
 0x3b0   : > { %v3580_v54 = vpop.permute.xlu0 %3579  ;;  %3945 = vrot.lane.b32.xlu1 %v3880_v63, %s8531_s30 }
 0x3b1   : > { %3665 = vst.msk [vmem:[#allocation4 + $0x50] sm:$0xff] %vm1291_vm5, %v3580_v54  ;;  %v10796_v54 = vld [vmem:[#allocation2 + $0xd9] sm:$0xff] }
 0x3b2   : > { %3951 = vrot.lane.b32.xlu0 %v10736_v59, %s8531_s30  ;;  %v3578_v2 = vpop.permute.xlu1 %3577 }
 0x3b3   : > { %3664 = vst.msk [vmem:[#allocation4 + $0x48] sm:$0xff] %vm1291_vm5, %v3578_v2 }
 0x3b4   : > { %v3584_v46 = vpop.permute.xlu0 %3583  ;;  %3949 = vrot.lane.b32.xlu1 %v10741_v52, %s8531_s30 }
 0x3b5   : > { %3667 = vst.msk [vmem:[#allocation4 + $0x60] sm:$0xff] %vm1291_vm5, %v3584_v46  ;;  %v10801_v46 = vld [vmem:[#allocation2 + $0xc9] sm:$0xff] }
 0x3b6   : > { %3955 = vrot.lane.b32.xlu0 %v10746_v32, %s8531_s30  ;;  %v3582_v3 = vpop.permute.xlu1 %3581 }
 0x3b7   : > { %3666 = vst.msk [vmem:[#allocation4 + $0x58] sm:$0xff] %vm1291_vm5, %v3582_v3  ;;  %v10806_v3 = vld [vmem:[#allocation2 + $0xf1] sm:$0xff] }
 0x3b8   : > { %v3588_v13 = vpop.permute.xlu0 %3587  ;;  %3953 = vrot.lane.b32.xlu1 %v10751_v50, %s8531_s30 }
 0x3b9   : > { %3669 = vst.msk [vmem:[#allocation4 + $0x70] sm:$0xff] %vm1291_vm5, %v3588_v13 }
 0x3ba   : > { %3959 = vrot.lane.b32.xlu0 %v10756_v44, %s8531_s30  ;;  %v3586_v0 = vpop.permute.xlu1 %3585 }
 0x3bb   : > { %3668 = vst.msk [vmem:[#allocation4 + $0x68] sm:$0xff] %vm1291_vm5, %v3586_v0 }
 0x3bc   : > { %v3592_v11 = vpop.permute.xlu0 %3591  ;;  %3957 = vrot.lane.b32.xlu1 %v10761_v24, %s8531_s30 }
 0x3bd   : > { %3671 = vst.msk [vmem:[#allocation4 + $0x80] sm:$0xff] %vm1291_vm5, %v3592_v11  ;;  %v10811_v11 = vld [vmem:[#allocation2 + $0xe1] sm:$0xff] }
 0x3be   : > { %3963 = vrot.lane.b32.xlu0 %v10766_v41, %s8531_s30  ;;  %v3590_v51 = vpop.permute.xlu1 %3589 }
 0x3bf   : > { %3670 = vst.msk [vmem:[#allocation4 + $0x78] sm:$0xff] %vm1291_vm5, %v3590_v51  ;;  %v10816_v51 = vld [vmem:[#allocation2 + $0x109] sm:$0xff] }
 0x3c0   : > { %v3596_v18 = vpop.permute.xlu0 %3595  ;;  %3961 = vrot.lane.b32.xlu1 %v10771_v42, %s8531_s30 }
 0x3c1   : > { %3673 = vst.msk [vmem:[#allocation4 + $0x90] sm:$0xff] %vm1291_vm5, %v3596_v18 }
 0x3c2   : > { %3967 = vrot.lane.b32.xlu0 %v10776_v23, %s8531_s30  ;;  %v3594_v45 = vpop.permute.xlu1 %3593 }
 0x3c3   : > { %3672 = vst.msk [vmem:[#allocation4 + $0x88] sm:$0xff] %vm1291_vm5, %v3594_v45 }
 0x3c4   : > { %v3600_v27 = vpop.permute.xlu0 %3599  ;;  %3965 = vrot.lane.b32.xlu1 %v10781_v55, %s8531_s30 }
 0x3c5   : > { %3675 = vst.msk [vmem:[#allocation4 + $0xa0] sm:$0xff] %vm1291_vm5, %v3600_v27  ;;  %v10821_v27 = vld [vmem:[#allocation2 + $0xf9] sm:$0xff] }
 0x3c6   : > { %3971 = vrot.lane.b32.xlu0 %v10786_v21, %s8531_s30  ;;  %v3598_v29 = vpop.permute.xlu1 %3597 }
 0x3c7   : > { %3674 = vst.msk [vmem:[#allocation4 + $0x98] sm:$0xff] %vm1291_vm5, %v3598_v29  ;;  %v10826_v29 = vld [vmem:[#allocation2 + $0x121] sm:$0xff] }
 0x3c8   : > { %v3604_v28 = vpop.permute.xlu0 %3603  ;;  %3969 = vrot.lane.b32.xlu1 %v10791_v26, %s8531_s30 }
 0x3c9   : > { %3677 = vst.msk [vmem:[#allocation4 + $0xb0] sm:$0xff] %vm1291_vm5, %v3604_v28 }
 0x3ca   : > { %3975 = vrot.lane.b32.xlu0 %v10796_v54, %s8531_s30  ;;  %v3602_v63 = vpop.permute.xlu1 %3601 }
 0x3cb   : > { %3676 = vst.msk [vmem:[#allocation4 + $0xa8] sm:$0xff] %vm1291_vm5, %v3602_v63 }
 0x3cc   : > { %v3608_v2 = vpop.permute.xlu0 %3607  ;;  %3973 = vrot.lane.b32.xlu1 %v10801_v46, %s8531_s30 }
 0x3cd   : > { %3679 = vst.msk [vmem:[#allocation4 + $0xc0] sm:$0xff] %vm1291_vm5, %v3608_v2  ;;  %v10831_v2 = vld [vmem:[#allocation2 + $0x111] sm:$0xff] }
 0x3ce   : > { %3979 = vrot.lane.b32.xlu0 %v10806_v3, %s8531_s30  ;;  %v3606_v13 = vpop.permute.xlu1 %3605  ;;  %13023 = vst [vmem:[#allocation9_spill] sm:$0xff] %v10831_v2 }
 0x3cf   : > { %3678 = vst.msk [vmem:[#allocation4 + $0xb8] sm:$0xff] %vm1291_vm5, %v3606_v13  ;;  %v10836_v13 = vld [vmem:[#allocation2 + $0x139] sm:$0xff] }
 0x3d0   : > { %v3612_v0 = vpop.permute.xlu0 %3611  ;;  %3977 = vrot.lane.b32.xlu1 %v10811_v11, %s8531_s30  ;;  %13024 = vst [vmem:[#allocation10_spill] sm:$0xff] %v10836_v13 }
 0x3d1   : > { %3681 = vst.msk [vmem:[#allocation4 + $0xd0] sm:$0xff] %vm1291_vm5, %v3612_v0 }
 0x3d2   : > { %3983 = vrot.lane.b32.xlu0 %v10816_v51, %s8531_s30  ;;  %v3610_v18 = vpop.permute.xlu1 %3609 }
 0x3d3   : > { %3680 = vst.msk [vmem:[#allocation4 + $0xc8] sm:$0xff] %vm1291_vm5, %v3610_v18 }
 0x3d4   : > { %v3616_v45 = vpop.permute.xlu0 %3615  ;;  %3981 = vrot.lane.b32.xlu1 %v10821_v27, %s8531_s30 }
 0x3d5   : > { %3683 = vst.msk [vmem:[#allocation4 + $0xe0] sm:$0xff] %vm1291_vm5, %v3616_v45  ;;  %v10841_v45 = vld [vmem:[#allocation2 + $0x129] sm:$0xff] }
 0x3d6   : > { %3987 = vrot.lane.b32.xlu0 %v10826_v29, %s8531_s30  ;;  %v3614_v28 = vpop.permute.xlu1 %3613  ;;  %13025 = vst [vmem:[#allocation17_spill] sm:$0xff] %v10841_v45 }
 0x3d7   : > { %3682 = vst.msk [vmem:[#allocation4 + $0xd8] sm:$0xff] %vm1291_vm5, %v3614_v28  ;;  %v10846_v28 = vld [vmem:[#allocation2 + $0x151] sm:$0xff] }
 0x3d8   : > { %v3620_v63 = vpop.permute.xlu0 %3619  ;;  %3985 = vrot.lane.b32.xlu1 %v10831_v2, %s8531_s30  ;;  %13026 = vst [vmem:[#allocation18_spill] sm:$0xff] %v10846_v28  ;;  %v10851_v2 = vld [vmem:[#allocation2 + $0x141] sm:$0xff] }
 0x3d9   : > { %3685 = vst.msk [vmem:[#allocation4 + $0xf0] sm:$0xff] %vm1291_vm5, %v3620_v63 }
 0x3da   : > { %3991 = vrot.lane.b32.xlu0 %v10836_v13, %s8531_s30  ;;  %v3618_v0 = vpop.permute.xlu1 %3617 }
 0x3db   : > { %3684 = vst.msk [vmem:[#allocation4 + $0xe8] sm:$0xff] %vm1291_vm5, %v3618_v0  ;;  %v10856_v0 = vld [vmem:[#allocation2 + $0x169] sm:$0xff] }
 0x3dc   : > { %v3752_v18 = vpop.permute.xlu0 %3751  ;;  %3989 = vrot.lane.b32.xlu1 %v10841_v45, %s8531_s30  ;;  %13027 = vst [vmem:[#allocation72_spill] sm:$0xff] %v10856_v0  ;;  %v10861_v45 = vld [vmem:[#allocation2 + $0x159] sm:$0xff] }
 0x3dd   : > { %3847 = vst.msk [vmem:[#allocation4] sm:$0xff] %vm1484_vm6, %v3752_v18  ;;  %13028 = vst [vmem:[#allocation24_spill] sm:$0xff] %v10861_v45 }
 0x3de   : > { %3995 = vrot.lane.b32.xlu0 %v10846_v28, %s8531_s30  ;;  %v3622_v63 = vpop.permute.xlu1 %3621 }
 0x3df   : > { %3686 = vst.msk [vmem:[#allocation4 + $0xf8] sm:$0xff] %vm1291_vm5, %v3622_v63  ;;  %vm6325_vm5 = vcmask 97360  }
 0x3e0   : > { %v3756_v13 = vpop.permute.xlu0 %3755  ;;  %3993 = vrot.lane.b32.xlu1 %v10851_v2, %s8531_s30 }
 0x3e1   : > { %3849 = vst.msk [vmem:[#allocation4 + $0x10] sm:$0xff] %vm1484_vm6, %v3756_v13  ;;  %v10866_v13 = vld [vmem:[#allocation2 + $0x181] sm:$0xff] }
 0x3e2   : > { %3999 = vrot.lane.b32.xlu0 %v10856_v0, %s8531_s30  ;;  %v3754_v18 = vpop.permute.xlu1 %3753 }
 0x3e3   : > { %3848 = vst.msk [vmem:[#allocation4 + $0x8] sm:$0xff] %vm1484_vm6, %v3754_v18 }
 0x3e4   : > { %v3760_v28 = vpop.permute.xlu0 %3759  ;;  %3997 = vrot.lane.b32.xlu1 %v10861_v45, %s8531_s30  ;;  %v10877_v45 = vld [vmem:[#allocation2 + $0x189] sm:$0xff] }
 0x3e5   : > { %3851 = vst.msk [vmem:[#allocation4 + $0x20] sm:$0xff] %vm1484_vm6, %v3760_v28 }
 0x3e6   : > { %4003 = vrot.lane.b32.xlu0 %v10866_v13, %s8531_s30  ;;  %v3758_v63 = vpop.permute.xlu1 %3757 }
 0x3e7   : > { %3850 = vst.msk [vmem:[#allocation4 + $0x18] sm:$0xff] %vm1484_vm6, %v3758_v63 }
 0x3e8   : > { %v3764_v0 = vpop.permute.xlu0 %3763  ;;  %4001 = vrot.lane.b32.xlu1 %v10323_v19, %s8531_s30 }
 0x3e9   : > { %3853 = vst.msk [vmem:[#allocation4 + $0x30] sm:$0xff] %vm1484_vm6, %v3764_v0 }
 0x3ea   : > { %4135 = vrot.lane.b32.xlu0 %v10332_v38, %s8532_s12  ;;  %v3762_v28 = vpop.permute.xlu1 %3761 }
 0x3eb   : > { %3852 = vst.msk [vmem:[#allocation4 + $0x28] sm:$0xff] %vm1484_vm6, %v3762_v28 }
 0x3ec   : > { %v3768_v18 = vpop.permute.xlu0 %3767  ;;  %4005 = vrot.lane.b32.xlu1 %v10877_v45, %s8531_s30  ;;  %s12351_s30 = scalar_lea.vmem %s12851_s11, %s7956_s21 }
 0x3ed   : > { %3855 = vst.msk [vmem:[#allocation4 + $0x40] sm:$0xff] %vm1484_vm6, %v3768_v18 }
 0x3ee   : > { %4139 = vrot.lane.b32.xlu0 %v10349_v22, %s8532_s12  ;;  %v3766_v0 = vpop.permute.xlu1 %3765 }
 0x3ef   : > { %3854 = vst.msk [vmem:[#allocation4 + $0x38] sm:$0xff] %vm1484_vm6, %v3766_v0 }
 0x3f0   : > { %v3772_v19 = vpop.permute.xlu0 %3771  ;;  %4137 = vrot.lane.b32.xlu1 %v10359_v9, %s8532_s12 }
 0x3f1   : > { %3857 = vst.msk [vmem:[#allocation4 + $0x50] sm:$0xff] %vm1484_vm6, %v3772_v19 }
 0x3f2   : > { %4143 = vrot.lane.b32.xlu0 %v10369_v34, %s8532_s12  ;;  %v3770_v38 = vpop.permute.xlu1 %3769 }
 0x3f3   : > { %3856 = vst.msk [vmem:[#allocation4 + $0x48] sm:$0xff] %vm1484_vm6, %v3770_v38 }
 0x3f4   : > { %v3776_v63 = vpop.permute.xlu0 %3775  ;;  %4141 = vrot.lane.b32.xlu1 %v10379_v60, %s8532_s12 }
 0x3f5   : > { %3859 = vst.msk [vmem:[#allocation4 + $0x60] sm:$0xff] %vm1484_vm6, %v3776_v63 }
 0x3f6   : > { %4147 = vrot.lane.b32.xlu0 %v10389_v15, %s8532_s12  ;;  %v3774_v22 = vpop.permute.xlu1 %3773 }
 0x3f7   : > { %3858 = vst.msk [vmem:[#allocation4 + $0x58] sm:$0xff] %vm1484_vm6, %v3774_v22 }
 0x3f8   : > { %v3780_v28 = vpop.permute.xlu0 %3779  ;;  %4145 = vrot.lane.b32.xlu1 %v10399_v57, %s8532_s12 }
 0x3f9   : > { %3861 = vst.msk [vmem:[#allocation4 + $0x70] sm:$0xff] %vm1484_vm6, %v3780_v28 }
 0x3fa   : > { %4151 = vrot.lane.b32.xlu0 %v10409_v8, %s8532_s12  ;;  %v3778_v9 = vpop.permute.xlu1 %3777 }
 0x3fb   : > { %3860 = vst.msk [vmem:[#allocation4 + $0x68] sm:$0xff] %vm1484_vm6, %v3778_v9 }
 0x3fc   : > { %v3784_v34 = vpop.permute.xlu0 %3783  ;;  %4149 = vrot.lane.b32.xlu1 %v10419_v16, %s8532_s12 }
 0x3fd   : > { %3863 = vst.msk [vmem:[#allocation4 + $0x80] sm:$0xff] %vm1484_vm6, %v3784_v34 }
 0x3fe   : > { %4155 = vrot.lane.b32.xlu0 %v10429_v10, %s8532_s12  ;;  %v10908_v60 = vpop.f32.mrb[16].mxu1  ;;  %v3782_v15 = vpop.permute.xlu1 %3781 }
 0x3ff   : > { %13029 = vst [vmem:[#allocation25_spill] sm:$0xff] %v10908_v60  ;;  %3862 = vst.msk [vmem:[#allocation4 + $0x78] sm:$0xff] %vm1484_vm6, %v3782_v15  ;;  %v10911_v57 = vpop.f32.mrb[17].mxu1 }
 0x400   : > { %13030 = vst [vmem:[#allocation26_spill] sm:$0xff] %v10911_v57  ;;  %v3788_v8 = vpop.permute.xlu0 %3787  ;;  %4153 = vrot.lane.b32.xlu1 %v10439_v5, %s8532_s12 }
 0x401   : > { %3865 = vst.msk [vmem:[#allocation4 + $0x90] sm:$0xff] %vm1484_vm6, %v3788_v8 }
 0x402   : > { %4159 = vrot.lane.b32.xlu0 %v10449_v40, %s8532_s12  ;;  %v3786_v16 = vpop.permute.xlu1 %3785  ;;  %v10918_v18 = vpop.f32.mrb[18].mxu1 }
 0x403   : > { %13031 = vst [vmem:[#allocation30_spill] sm:$0xff] %v10918_v18  ;;  %3864 = vst.msk [vmem:[#allocation4 + $0x88] sm:$0xff] %vm1484_vm6, %v3786_v16  ;;  %v10921_v0 = vpop.f32.mrb[19].mxu1 }
 0x404   : > { %v3792_v10 = vpop.permute.xlu0 %3791  ;;  %13032 = vst [vmem:[#allocation6_spill] sm:$0xff] %v10921_v0  ;;  %4157 = vrot.lane.b32.xlu1 %v10459_v48, %s8532_s12 }
 0x405   : > { %3867 = vst.msk [vmem:[#allocation4 + $0xa0] sm:$0xff] %vm1484_vm6, %v3792_v10 }
 0x406   : > { %4163 = vrot.lane.b32.xlu0 %v10469_v39, %s8532_s12  ;;  %v3790_v5 = vpop.permute.xlu1 %3789  ;;  %v10928_v19 = vpop.f32.mrb[20].mxu1 }
 0x407   : > { %13033 = vst [vmem:[#allocation7_spill] sm:$0xff] %v10928_v19  ;;  %3866 = vst.msk [vmem:[#allocation4 + $0x98] sm:$0xff] %vm1484_vm6, %v3790_v5  ;;  %v10931_v38 = vpop.f32.mrb[21].mxu1 }
 0x408   : > { %v3796_v40 = vpop.permute.xlu0 %3795  ;;  %13034 = vst [vmem:[#allocation11_spill] sm:$0xff] %v10931_v38  ;;  %4161 = vrot.lane.b32.xlu1 %v10479_v58, %s8532_s12 }
 0x409   : > { %3869 = vst.msk [vmem:[#allocation4 + $0xb0] sm:$0xff] %vm1484_vm6, %v3796_v40 }
 0x40a   : > { %4167 = vrot.lane.b32.xlu0 %v10489_v47, %s8532_s12  ;;  %v3794_v48 = vpop.permute.xlu1 %3793  ;;  %v10938_v63 = vpop.f32.mrb[22].mxu1 }
 0x40b   : > { %13035 = vst [vmem:[#allocation12_spill] sm:$0xff] %v10938_v63  ;;  %3868 = vst.msk [vmem:[#allocation4 + $0xa8] sm:$0xff] %vm1484_vm6, %v3794_v48  ;;  %v10941_v22 = vpop.f32.mrb[23].mxu1 }
 0x40c   : > { %v3800_v39 = vpop.permute.xlu0 %3799  ;;  %13036 = vst [vmem:[#allocation13_spill] sm:$0xff] %v10941_v22  ;;  %4165 = vrot.lane.b32.xlu1 %v10499_v33, %s8532_s12 }
 0x40d   : > { %3871 = vst.msk [vmem:[#allocation4 + $0xc0] sm:$0xff] %vm1484_vm6, %v3800_v39  ;;  %v13047_v39 = vld [vmem:[#allocation8_spill] sm:$0xff] }
 0x40e   : > { %4171 = vrot.lane.b32.xlu0 %v10509_v14, %s8532_s12  ;;  %v3798_v58 = vpop.permute.xlu1 %3797  ;;  %v10948_v28 = vpop.f32.mrb[24].mxu1 }
 0x40f   : > { %13037 = vst [vmem:[#allocation14_spill] sm:$0xff] %v10948_v28  ;;  %3870 = vst.msk [vmem:[#allocation4 + $0xb8] sm:$0xff] %vm1484_vm6, %v3798_v58  ;;  %v10951_v9 = vpop.f32.mrb[25].mxu1 }
 0x410   : > { %v3804_v47 = vpop.permute.xlu0 %3803  ;;  %13038 = vst [vmem:[#allocation71_spill] sm:$0xff] %v10951_v9  ;;  %4169 = vrot.lane.b32.xlu1 %v10519_v49, %s8532_s12 }
 0x411   : > { %3873 = vst.msk [vmem:[#allocation4 + $0xd0] sm:$0xff] %vm1484_vm6, %v3804_v47 }
 0x412   : > { %4175 = vrot.lane.b32.xlu0 %v10529_v35, %s8532_s12  ;;  %v3802_v33 = vpop.permute.xlu1 %3801  ;;  %v10958_v34 = vpop.f32.mrb[26].mxu1 }
 0x413   : > { %13039 = vst [vmem:[#allocation31_spill] sm:$0xff] %v10958_v34  ;;  %3872 = vst.msk [vmem:[#allocation4 + $0xc8] sm:$0xff] %vm1484_vm6, %v3802_v33  ;;  %v10961_v15 = vpop.f32.mrb[27].mxu1  ;;  %v11006_v33 = vld [vmem:[#allocation2 + $0x182] sm:$0xff] }
 0x414   : > { %v3808_v14 = vpop.permute.xlu0 %3807  ;;  %13040 = vst [vmem:[#allocation19_spill] sm:$0xff] %v10961_v15  ;;  %4173 = vrot.lane.b32.xlu1 %v10539_v7, %s8532_s12 }
 0x415   : > { %3875 = vst.msk [vmem:[#allocation4 + $0xe0] sm:$0xff] %vm1484_vm6, %v3808_v14 }
 0x416   : > { %4179 = vrot.lane.b32.xlu0 %v10549_v12, %s8532_s12  ;;  %v3806_v49 = vpop.permute.xlu1 %3805  ;;  %v10968_v8 = vpop.f32.mrb[28].mxu1 }
 0x417   : > { %13041 = vst [vmem:[#allocation50_spill] sm:$0xff] %v10968_v8  ;;  %3874 = vst.msk [vmem:[#allocation4 + $0xd8] sm:$0xff] %vm1484_vm6, %v3806_v49  ;;  %v10971_v16 = vpop.f32.mrb[29].mxu1 }
 0x418   : > { %v3812_v35 = vpop.permute.xlu0 %3811  ;;  %13042 = vst [vmem:[#allocation37_spill] sm:$0xff] %v10971_v16  ;;  %4177 = vrot.lane.b32.xlu1 %v10559_v17, %s8532_s12 }
 0x419   : > { %3877 = vst.msk [vmem:[#allocation4 + $0xf0] sm:$0xff] %vm1484_vm6, %v3812_v35 }
 0x41a   : > { %4183 = vrot.lane.b32.xlu0 %v10569_v6, %s8532_s12  ;;  %v3810_v7 = vpop.permute.xlu1 %3809  ;;  %v10978_v10 = vpop.f32.mrb[30].mxu1 }
 0x41b   : > { %13043 = vst [vmem:[#allocation73_spill] sm:$0xff] %v10978_v10  ;;  %3876 = vst.msk [vmem:[#allocation4 + $0xe8] sm:$0xff] %vm1484_vm6, %v3810_v7  ;;  %v10981_v5 = vpop.f32.mrb[31].mxu1  ;;  %v4263_v7 = vld [vmem:[#allocation2 + $0x30] sm:$0xff] }
 0x41c   : > { %v3944_v12 = vpop.permute.xlu0 %3943  ;;  %13044 = vst [vmem:[#allocation20_spill] sm:$0xff] %v10981_v5  ;;  %4181 = vrot.lane.b32.xlu1 %v10579_v1, %s8532_s12 }
 0x41d   : > { %4039 = vst.msk [vmem:[#allocation4] sm:$0xff] %vm1677_vm7, %v3944_v12 }
 0x41e   : > { %4187 = vrot.lane.b32.xlu0 %v10589_v30, %s8532_s12  ;;  %v3814_v17 = vpop.permute.xlu1 %3813  ;;  %v10988_v40 = vpop.f32.mrb[32].mxu1 }
 0x41f   : > { %13045 = vst [vmem:[#allocation27_spill] sm:$0xff] %v10988_v40  ;;  %3878 = vst.msk [vmem:[#allocation4 + $0xf8] sm:$0xff] %vm1484_vm6, %v3814_v17  ;;  %v10991_v48 = vpop.f32.mrb[33].mxu1  ;;  %vm6519_vm6 = vcmask 113760  }
 0x420   : > { %v3948_v6 = vpop.permute.xlu0 %3947  ;;  %13046 = vst [vmem:[#allocation28_spill] sm:$0xff] %v10991_v48  ;;  %4185 = vrot.lane.b32.xlu1 %v10599_v25, %s8532_s12 }
 0x421   : > { %4041 = vst.msk [vmem:[#allocation4 + $0x10] sm:$0xff] %vm1677_vm7, %v3948_v6 }
 0x422   : > { %4191 = vrot.lane.b32.xlu0 %v13047_v39, %s8532_s12  ;;  %v3946_v1 = vpop.permute.xlu1 %3945  ;;  %v10998_v58 = vpop.f32.mrb[34].mxu1  ;;  %v11024_v39 = vld [vmem:[#allocation2 + $0x18a] sm:$0xff] }
 0x423   : > { %13048 = vst [vmem:[#allocation29_spill] sm:$0xff] %v10998_v58  ;;  %4040 = vst.msk [vmem:[#allocation4 + $0x8] sm:$0xff] %vm1677_vm7, %v3946_v1  ;;  %v11001_v47 = vpop.f32.mrb[35].mxu1  ;;  %v4265_v1 = vld [vmem:[#allocation2 + $0x48] sm:$0xff] }
 0x424   : > { %v3952_v30 = vpop.permute.xlu0 %3951  ;;  %13049 = vst [vmem:[#allocation32_spill] sm:$0xff] %v11001_v47  ;;  %4189 = vrot.lane.b32.xlu1 %v10615_v4, %s8532_s12 }
 0x425   : > { %4043 = vst.msk [vmem:[#allocation4 + $0x20] sm:$0xff] %vm1677_vm7, %v3952_v30 }
 0x426   : > { %4195 = vrot.lane.b32.xlu0 %v11006_v33, %s8532_s12  ;;  %v3950_v25 = vpop.permute.xlu1 %3949  ;;  %v11010_v14 = vpop.f32.mrb[36].mxu1 }
 0x427   : > { %13050 = vst [vmem:[#allocation44_spill] sm:$0xff] %v11010_v14  ;;  %4042 = vst.msk [vmem:[#allocation4 + $0x18] sm:$0xff] %vm1677_vm7, %v3950_v25  ;;  %v11013_v35 = vpop.f32.mrb[37].mxu1 }
 0x428   : > { %v3956_v49 = vpop.permute.xlu0 %3955  ;;  %13051 = vst [vmem:[#allocation33_spill] sm:$0xff] %v11013_v35  ;;  %4193 = vrot.lane.b32.xlu1 %v10625_v62, %s8532_s12 }
 0x429   : > { %4045 = vst.msk [vmem:[#allocation4 + $0x30] sm:$0xff] %vm1677_vm7, %v3956_v49 }
 0x42a   : > { %4327 = vrot.lane.b32.xlu0 %v4263_v7, %s8533_s15  ;;  %v3954_v4 = vpop.permute.xlu1 %3953  ;;  %v11019_v12 = vpop.f32.mrb[38].mxu1  ;;  %v4264_v7 = vld [vmem:[#allocation2 + $0x38] sm:$0xff] }
 0x42b   : > { %13052 = vst [vmem:[#allocation55_spill] sm:$0xff] %v11019_v12  ;;  %4044 = vst.msk [vmem:[#allocation4 + $0x28] sm:$0xff] %vm1677_vm7, %v3954_v4  ;;  %v11022_v6 = vpop.f32.mrb[39].mxu1  ;;  %v4267_v4 = vld [vmem:[#allocation2 + $0x60] sm:$0xff] }
 0x42c   : > { %v3960_v17 = vpop.permute.xlu0 %3959  ;;  %13053 = vst [vmem:[#allocation47_spill] sm:$0xff] %v11022_v6  ;;  %4197 = vrot.lane.b32.xlu1 %v11024_v39, %s8532_s12 }
 0x42d   : > { %4047 = vst.msk [vmem:[#allocation4 + $0x40] sm:$0xff] %vm1677_vm7, %v3960_v17 }
 0x42e   : > { %4331 = vrot.lane.b32.xlu0 %v4265_v1, %s8533_s15  ;;  %v3958_v62 = vpop.permute.xlu1 %3957  ;;  %v11030_v30 = vpop.f32.mrb[40].mxu1 }
 0x42f   : > { %13054 = vst [vmem:[#allocation56_spill] sm:$0xff] %v11030_v30  ;;  %4046 = vst.msk [vmem:[#allocation4 + $0x38] sm:$0xff] %vm1677_vm7, %v3958_v62  ;;  %v11033_v49 = vpop.f32.mrb[41].mxu1  ;;  %v4266_v62 = vld [vmem:[#allocation2 + $0x50] sm:$0xff] }
 0x430   : > { %v3964_v25 = vpop.permute.xlu0 %3963  ;;  %13055 = vst [vmem:[#allocation15_spill] sm:$0xff] %v11033_v49  ;;  %4329 = vrot.lane.b32.xlu1 %v4264_v7, %s8533_s15  ;;  %v4269_v49 = vld [vmem:[#allocation2 + $0x78] sm:$0xff] }
 0x431   : > { %4049 = vst.msk [vmem:[#allocation4 + $0x50] sm:$0xff] %vm1677_vm7, %v3964_v25 }
 0x432   : > { %4335 = vrot.lane.b32.xlu0 %v4267_v4, %s8533_s15  ;;  %v3962_v17 = vpop.permute.xlu1 %3961  ;;  %v11038_v6 = vpop.f32.mrb[42].mxu1 }
 0x433   : > { %13056 = vst [vmem:[#allocation16_spill] sm:$0xff] %v11038_v6  ;;  %4048 = vst.msk [vmem:[#allocation4 + $0x48] sm:$0xff] %vm1677_vm7, %v3962_v17  ;;  %v11041_v30 = vpop.f32.mrb[43].mxu1  ;;  %v4268_v17 = vld [vmem:[#allocation2 + $0x68] sm:$0xff] }
 0x434   : > { %v3968_v1 = vpop.permute.xlu0 %3967  ;;  %13057 = vst [vmem:[#allocation21_spill] sm:$0xff] %v11041_v30  ;;  %4333 = vrot.lane.b32.xlu1 %v4266_v62, %s8533_s15  ;;  %v4271_v30 = vld [vmem:[#allocation2 + $0x90] sm:$0xff] }
 0x435   : > { %4051 = vst.msk [vmem:[#allocation4 + $0x60] sm:$0xff] %vm1677_vm7, %v3968_v1 }
 0x436   : > { %4339 = vrot.lane.b32.xlu0 %v4269_v49, %s8533_s15  ;;  %v3966_v25 = vpop.permute.xlu1 %3965  ;;  %v11046_v7 = vpop.f32.mrb[44].mxu1 }
 0x437   : > { %13058 = vst [vmem:[#allocation22_spill] sm:$0xff] %v11046_v7  ;;  %4050 = vst.msk [vmem:[#allocation4 + $0x58] sm:$0xff] %vm1677_vm7, %v3966_v25  ;;  %v11049_v6 = vpop.f32.mrb[45].mxu1  ;;  %v4270_v25 = vld [vmem:[#allocation2 + $0x80] sm:$0xff] }
 0x438   : > { %v3972_v4 = vpop.permute.xlu0 %3971  ;;  %13059 = vst [vmem:[#allocation23_spill] sm:$0xff] %v11049_v6  ;;  %4337 = vrot.lane.b32.xlu1 %v4268_v17, %s8533_s15  ;;  %v4273_v6 = vld [vmem:[#allocation2 + $0xa8] sm:$0xff]  ;;  %v4272_v17 = vld [vmem:[#allocation2 + $0x98] sm:$0xff] }
 0x439   : > { %4053 = vst.msk [vmem:[#allocation4 + $0x70] sm:$0xff] %vm1677_vm7, %v3972_v4 }
 0x43a   : > { %4343 = vrot.lane.b32.xlu0 %v4271_v30, %s8533_s15  ;;  %v3970_v1 = vpop.permute.xlu1 %3969  ;;  %v11054_v62 = vpop.f32.mrb[46].mxu1 }
 0x43b   : > { %13060 = vst [vmem:[#allocation34_spill] sm:$0xff] %v11054_v62  ;;  %4052 = vst.msk [vmem:[#allocation4 + $0x68] sm:$0xff] %vm1677_vm7, %v3970_v1  ;;  %v11057_v7 = vpop.f32.mrb[47].mxu1  ;;  %v4275_v1 = vld [vmem:[#allocation2 + $0xc0] sm:$0xff] }
 0x43c   : > { %v3976_v49 = vpop.permute.xlu0 %3975  ;;  %13061 = vst [vmem:[#allocation35_spill] sm:$0xff] %v11057_v7  ;;  %4341 = vrot.lane.b32.xlu1 %v4270_v25, %s8533_s15  ;;  %v4274_v25 = vld [vmem:[#allocation2 + $0xb0] sm:$0xff] }
 0x43d   : > { %4055 = vst.msk [vmem:[#allocation4 + $0x80] sm:$0xff] %vm1677_vm7, %v3976_v49 }
 0x43e   : > { %4347 = vrot.lane.b32.xlu0 %v4273_v6, %s8533_s15  ;;  %v3974_v4 = vpop.permute.xlu1 %3973  ;;  %v4277_v6 = vld [vmem:[#allocation2 + $0xd8] sm:$0xff] }
 0x43f   : > { %4054 = vst.msk [vmem:[#allocation4 + $0x78] sm:$0xff] %vm1677_vm7, %v3974_v4 }
 0x440   : > { %v3980_v30 = vpop.permute.xlu0 %3979  ;;  %4345 = vrot.lane.b32.xlu1 %v4272_v17, %s8533_s15  ;;  %v4276_v17 = vld [vmem:[#allocation2 + $0xc8] sm:$0xff] }
 0x441   : > { %4057 = vst.msk [vmem:[#allocation4 + $0x90] sm:$0xff] %vm1677_vm7, %v3980_v30 }
 0x442   : > { %4351 = vrot.lane.b32.xlu0 %v4275_v1, %s8533_s15  ;;  %v3978_v7 = vpop.permute.xlu1 %3977  ;;  %v4279_v1 = vld [vmem:[#allocation2 + $0xf0] sm:$0xff] }
 0x443   : > { %4056 = vst.msk [vmem:[#allocation4 + $0x88] sm:$0xff] %vm1677_vm7, %v3978_v7 }
 0x444   : > { %v3984_v49 = vpop.permute.xlu0 %3983  ;;  %4349 = vrot.lane.b32.xlu1 %v4274_v25, %s8533_s15  ;;  %v4278_v25 = vld [vmem:[#allocation2 + $0xe0] sm:$0xff] }
 0x445   : > { %4059 = vst.msk [vmem:[#allocation4 + $0xa0] sm:$0xff] %vm1677_vm7, %v3984_v49 }
 0x446   : > { %4355 = vrot.lane.b32.xlu0 %v4277_v6, %s8533_s15  ;;  %v3982_v4 = vpop.permute.xlu1 %3981  ;;  %v4281_v6 = vld [vmem:[#allocation2 + $0x108] sm:$0xff] }
 0x447   : > { %4058 = vst.msk [vmem:[#allocation4 + $0x98] sm:$0xff] %vm1677_vm7, %v3982_v4 }
 0x448   : > { %v3988_v30 = vpop.permute.xlu0 %3987  ;;  %4353 = vrot.lane.b32.xlu1 %v4276_v17, %s8533_s15  ;;  %v4280_v17 = vld [vmem:[#allocation2 + $0xf8] sm:$0xff] }
 0x449   : > { %4061 = vst.msk [vmem:[#allocation4 + $0xb0] sm:$0xff] %vm1677_vm7, %v3988_v30 }
 0x44a   : > { %4359 = vrot.lane.b32.xlu0 %v4279_v1, %s8533_s15  ;;  %v3986_v7 = vpop.permute.xlu1 %3985  ;;  %v4283_v1 = vld [vmem:[#allocation2 + $0x120] sm:$0xff] }
 0x44b   : > { %4060 = vst.msk [vmem:[#allocation4 + $0xa8] sm:$0xff] %vm1677_vm7, %v3986_v7 }
 0x44c   : > { %v3992_v49 = vpop.permute.xlu0 %3991  ;;  %4357 = vrot.lane.b32.xlu1 %v4278_v25, %s8533_s15  ;;  %v4282_v25 = vld [vmem:[#allocation2 + $0x110] sm:$0xff] }
 0x44d   : > { %4063 = vst.msk [vmem:[#allocation4 + $0xc0] sm:$0xff] %vm1677_vm7, %v3992_v49 }
 0x44e   : > { %4363 = vrot.lane.b32.xlu0 %v4281_v6, %s8533_s15  ;;  %v3990_v4 = vpop.permute.xlu1 %3989  ;;  %v4285_v6 = vld [vmem:[#allocation2 + $0x138] sm:$0xff] }
 0x44f   : > { %4062 = vst.msk [vmem:[#allocation4 + $0xb8] sm:$0xff] %vm1677_vm7, %v3990_v4 }
 0x450   : > { %v3996_v30 = vpop.permute.xlu0 %3995  ;;  %4361 = vrot.lane.b32.xlu1 %v4280_v17, %s8533_s15  ;;  %v4284_v17 = vld [vmem:[#allocation2 + $0x128] sm:$0xff] }
 0x451   : > { %4065 = vst.msk [vmem:[#allocation4 + $0xd0] sm:$0xff] %vm1677_vm7, %v3996_v30 }
 0x452   : > { %4367 = vrot.lane.b32.xlu0 %v4283_v1, %s8533_s15  ;;  %v3994_v7 = vpop.permute.xlu1 %3993 }
 0x453   : > { %4064 = vst.msk [vmem:[#allocation4 + $0xc8] sm:$0xff] %vm1677_vm7, %v3994_v7 }
 0x454   : > { %v4000_v49 = vpop.permute.xlu0 %3999  ;;  %4365 = vrot.lane.b32.xlu1 %v4282_v25, %s8533_s15 }
 0x455   : > { %4067 = vst.msk [vmem:[#allocation4 + $0xe0] sm:$0xff] %vm1677_vm7, %v4000_v49 }
 0x456   : > { %4371 = vrot.lane.b32.xlu0 %v4285_v6, %s8533_s15  ;;  %v3998_v4 = vpop.permute.xlu1 %3997  ;;  %v4293_v6 = vld [vmem:[#allocation2 + $0x198] sm:$0xff] }
 0x457   : > { %4066 = vst.msk [vmem:[#allocation4 + $0xd8] sm:$0xff] %vm1677_vm7, %v3998_v4 }
 0x458   : > { %v4004_v30 = vpop.permute.xlu0 %4003  ;;  %4369 = vrot.lane.b32.xlu1 %v4284_v17, %s8533_s15 }
 0x459   : > { %4069 = vst.msk [vmem:[#allocation4 + $0xf0] sm:$0xff] %vm1677_vm7, %v4004_v30 }
 0x45a   : > { %4375 = vrot.lane.b32.xlu0 %v10563_v20, %s8533_s15  ;;  %v4002_v1 = vpop.permute.xlu1 %4001 }
 0x45b   : > { %4068 = vst.msk [vmem:[#allocation4 + $0xe8] sm:$0xff] %vm1677_vm7, %v4002_v1 }
 0x45c   : > { %v4136_v7 = vpop.permute.xlu0 %4135  ;;  %4373 = vrot.lane.b32.xlu1 %v10575_v43, %s8533_s15 }
 0x45d   : > { %4231 = vst.msk [vmem:[#allocation4] sm:$0xff] %vm1870_vm8, %v4136_v7 }
 0x45e   : > { %4379 = vrot.lane.b32.xlu0 %v10583_v56, %s8533_s15  ;;  %v4006_v49 = vpop.permute.xlu1 %4005 }
 0x45f   : > { %4070 = vst.msk [vmem:[#allocation4 + $0xf8] sm:$0xff] %vm1677_vm7, %v4006_v49  ;;  %vm6712_vm7 = vcmask 130160  }
 0x460   : > { %v4140_v25 = vpop.permute.xlu0 %4139  ;;  %4377 = vrot.lane.b32.xlu1 %v10595_v53, %s8533_s15  ;;  %v4871_v53 = vld [vmem:[%s12847_s7] sm:$0xff] }
 0x461   : > { %4233 = vst.msk [vmem:[#allocation4 + $0x10] sm:$0xff] %vm1870_vm8, %v4140_v25 }
 0x462   : > { %4383 = vrot.lane.b32.xlu0 %v10710_v37, %s8533_s15  ;;  %v4138_v20 = vpop.permute.xlu1 %4137  ;;  %v4872_v37 = vld [vmem:[%s12847_s7 + $0x8] sm:$0xff] }
 0x463   : > { %4232 = vst.msk [vmem:[#allocation4 + $0x8] sm:$0xff] %vm1870_vm8, %v4138_v20  ;;  %v8443_v30 = vpack.c.bf16 %v4872_v37, %v4871_v53 }
 0x464   : > { %v4144_v43 = vpop.permute.xlu0 %4143  ;;  %4381 = vrot.lane.b32.xlu1 %v10611_v31, %s8533_s15  ;;  %v4294_v31 = vld [vmem:[#allocation2 + $0x1a0] sm:$0xff] }
 0x465   : > { %4235 = vst.msk [vmem:[#allocation4 + $0x20] sm:$0xff] %vm1870_vm8, %v4144_v43  ;;  %8444 = vmatprep.subr.bf16.mxu1 %v8443_v30 }
 0x466   : > { %4387 = vrot.lane.b32.xlu0 %v4293_v6, %s8533_s15  ;;  %v4142_v56 = vpop.permute.xlu1 %4141  ;;  %8446 = vmatpush3.bf16.msra.mxu1 %v8443_v30 }
 0x467   : > { %4234 = vst.msk [vmem:[#allocation4 + $0x18] sm:$0xff] %vm1870_vm8, %v4142_v56 }
 0x468   : > { %v4148_v4 = vpop.permute.xlu0 %4147  ;;  %4385 = vrot.lane.b32.xlu1 %v10724_v61, %s8533_s15 }
 0x469   : > { %4237 = vst.msk [vmem:[#allocation4 + $0x30] sm:$0xff] %vm1870_vm8, %v4148_v4 }
 0x46a   : > { %4519 = vrot.lane.b32.xlu0 %v10729_v36, %s8534_s20  ;;  %v4146_v17 = vpop.permute.xlu1 %4145 }
 0x46b   : > { %4236 = vst.msk [vmem:[#allocation4 + $0x28] sm:$0xff] %vm1870_vm8, %v4146_v17 }
 0x46c   : > { %v4152_v1 = vpop.permute.xlu0 %4151  ;;  %4389 = vrot.lane.b32.xlu1 %v4294_v31, %s8533_s15  ;;  %v13063_v31 = vld [vmem:[#allocation10_spill] sm:$0xff] }
 0x46d   : > { %4239 = vst.msk [vmem:[#allocation4 + $0x40] sm:$0xff] %vm1870_vm8, %v4152_v1  ;;  %v13065_v1 = vld [vmem:[#allocation18_spill] sm:$0xff] }
 0x46e   : > { %4523 = vrot.lane.b32.xlu0 %v10736_v59, %s8534_s20  ;;  %v4150_v61 = vpop.permute.xlu1 %4149 }
 0x46f   : > { %4238 = vst.msk [vmem:[#allocation4 + $0x38] sm:$0xff] %vm1870_vm8, %v4150_v61 }
 0x470   : > { %v4156_v7 = vpop.permute.xlu0 %4155  ;;  %4521 = vrot.lane.b32.xlu1 %v10741_v52, %s8534_s20  ;;  %v4873_v52 = vld [vmem:[%s12847_s7 + $0x10] sm:$0xff] }
 0x471   : > { %4241 = vst.msk [vmem:[#allocation4 + $0x50] sm:$0xff] %vm1870_vm8, %v4156_v7 }
 0x472   : > { %4527 = vrot.lane.b32.xlu0 %v10746_v32, %s8534_s20  ;;  %v4154_v36 = vpop.permute.xlu1 %4153  ;;  %v4874_v32 = vld [vmem:[%s12847_s7 + $0x18] sm:$0xff] }
 0x473   : > { %4240 = vst.msk [vmem:[#allocation4 + $0x48] sm:$0xff] %vm1870_vm8, %v4154_v36  ;;  %v4879_v36 = vld [vmem:[%s12847_s7 + $0x40] sm:$0xff] }
 0x474   : > { %v4160_v49 = vpop.permute.xlu0 %4159  ;;  %4525 = vrot.lane.b32.xlu1 %v10751_v50, %s8534_s20  ;;  %v8447_v50 = vpack.c.bf16 %v4874_v32, %v4873_v52  ;;  %v13067_v52 = vld [vmem:[#allocation24_spill] sm:$0xff]  ;;  %v4485_v32 = vld [vmem:[#allocation2 + $0x199] sm:$0xff] }
 0x475   : > { %4243 = vst.msk [vmem:[#allocation4 + $0x60] sm:$0xff] %vm1870_vm8, %v4160_v49  ;;  %v13066_v49 = vld [vmem:[#allocation72_spill] sm:$0xff] }
 0x476   : > { %4531 = vrot.lane.b32.xlu0 %v10756_v44, %s8534_s20  ;;  %v4158_v59 = vpop.permute.xlu1 %4157  ;;  %8448 = vmatprep.subr.bf16.mxu1 %v8447_v50 }
 0x477   : > { %4242 = vst.msk [vmem:[#allocation4 + $0x58] sm:$0xff] %vm1870_vm8, %v4158_v59  ;;  %8450 = vmatpush3.bf16.msra.mxu1 %v8447_v50 }
 0x478   : > { %v4164_v25 = vpop.permute.xlu0 %4163  ;;  %4529 = vrot.lane.b32.xlu1 %v10761_v24, %s8534_s20 }
 0x479   : > { %4245 = vst.msk [vmem:[#allocation4 + $0x70] sm:$0xff] %vm1870_vm8, %v4164_v25 }
 0x47a   : > { %4535 = vrot.lane.b32.xlu0 %v10766_v41, %s8534_s20  ;;  %v4162_v44 = vpop.permute.xlu1 %4161 }
 0x47b   : > { %4244 = vst.msk [vmem:[#allocation4 + $0x68] sm:$0xff] %vm1870_vm8, %v4162_v44  ;;  %v4482_v44 = vld [vmem:[#allocation2 + $0x171] sm:$0xff] }
 0x47c   : > { %v4168_v20 = vpop.permute.xlu0 %4167  ;;  %4533 = vrot.lane.b32.xlu1 %v10771_v42, %s8534_s20  ;;  %v4875_v42 = vld [vmem:[%s12847_s7 + $0x20] sm:$0xff] }
 0x47d   : > { %4247 = vst.msk [vmem:[#allocation4 + $0x80] sm:$0xff] %vm1870_vm8, %v4168_v20 }
 0x47e   : > { %4539 = vrot.lane.b32.xlu0 %v10776_v23, %s8534_s20  ;;  %v4166_v6 = vpop.permute.xlu1 %4165  ;;  %v4876_v23 = vld [vmem:[%s12847_s7 + $0x28] sm:$0xff] }
 0x47f   : > { %4246 = vst.msk [vmem:[#allocation4 + $0x78] sm:$0xff] %vm1870_vm8, %v4166_v6 }
 0x480   : > { %v4172_v24 = vpop.permute.xlu0 %4171  ;;  %4537 = vrot.lane.b32.xlu1 %v10781_v55, %s8534_s20  ;;  %v8451_v55 = vpack.c.bf16 %v4876_v23, %v4875_v42  ;;  %v4649_v42 = vld [vmem:[#allocation2 + $0x4a] sm:$0xff] }
 0x481   : > { %4249 = vst.msk [vmem:[#allocation4 + $0x90] sm:$0xff] %vm1870_vm8, %v4172_v24  ;;  %v4486_v24 = vld [vmem:[#allocation2 + $0x1a1] sm:$0xff] }
 0x482   : > { %4543 = vrot.lane.b32.xlu0 %v10786_v21, %s8534_s20  ;;  %v4170_v41 = vpop.permute.xlu1 %4169  ;;  %8452 = vmatprep.subr.bf16.mxu1 %v8451_v55 }
 0x483   : > { %4248 = vst.msk [vmem:[#allocation4 + $0x88] sm:$0xff] %vm1870_vm8, %v4170_v41  ;;  %8454 = vmatpush3.bf16.msra.mxu1 %v8451_v55 }
 0x484   : > { %v4176_v43 = vpop.permute.xlu0 %4175  ;;  %4541 = vrot.lane.b32.xlu1 %v10791_v26, %s8534_s20 }
 0x485   : > { %4251 = vst.msk [vmem:[#allocation4 + $0xa0] sm:$0xff] %vm1870_vm8, %v4176_v43 }
 0x486   : > { %4547 = vrot.lane.b32.xlu0 %v10796_v54, %s8534_s20  ;;  %v4174_v21 = vpop.permute.xlu1 %4173 }
 0x487   : > { %4250 = vst.msk [vmem:[#allocation4 + $0x98] sm:$0xff] %vm1870_vm8, %v4174_v21  ;;  %v4651_v21 = vld [vmem:[#allocation2 + $0x62] sm:$0xff] }
 0x488   : > { %v4180_v56 = vpop.permute.xlu0 %4179  ;;  %4545 = vrot.lane.b32.xlu1 %v10801_v46, %s8534_s20 }
 0x489   : > { %4253 = vst.msk [vmem:[#allocation4 + $0xb0] sm:$0xff] %vm1870_vm8, %v4180_v56 }
 0x48a   : > { %4551 = vrot.lane.b32.xlu0 %v10806_v3, %s8534_s20  ;;  %v4178_v26 = vpop.permute.xlu1 %4177  ;;  %v4877_v3 = vld [vmem:[%s12847_s7 + $0x30] sm:$0xff] }
 0x48b   : > { %4252 = vst.msk [vmem:[#allocation4 + $0xa8] sm:$0xff] %vm1870_vm8, %v4178_v26 }
 0x48c   : > { %v4184_v4 = vpop.permute.xlu0 %4183  ;;  %4549 = vrot.lane.b32.xlu1 %v10811_v11, %s8534_s20  ;;  %v4878_v11 = vld [vmem:[%s12847_s7 + $0x38] sm:$0xff] }
 0x48d   : > { %4255 = vst.msk [vmem:[#allocation4 + $0xc0] sm:$0xff] %vm1870_vm8, %v4184_v4  ;;  %v4650_v4 = vld [vmem:[#allocation2 + $0x52] sm:$0xff] }
 0x48e   : > { %4555 = vrot.lane.b32.xlu0 %v10816_v51, %s8534_s20  ;;  %v4182_v54 = vpop.permute.xlu1 %4181  ;;  %v8455_v51 = vpack.c.bf16 %v4878_v11, %v4877_v3  ;;  %v4652_v11 = vld [vmem:[#allocation2 + $0x6a] sm:$0xff] }
 0x48f   : > { %4254 = vst.msk [vmem:[#allocation4 + $0xb8] sm:$0xff] %vm1870_vm8, %v4182_v54  ;;  %v4653_v54 = vld [vmem:[#allocation2 + $0x7a] sm:$0xff] }
 0x490   : > { %v4188_v46 = vpop.permute.xlu0 %4187  ;;  %4553 = vrot.lane.b32.xlu1 %v10821_v27, %s8534_s20  ;;  %8456 = vmatprep.subr.bf16.mxu1 %v8455_v51  ;;  %v13062_v27 = vld [vmem:[#allocation9_spill] sm:$0xff] }
 0x491   : > { %4257 = vst.msk [vmem:[#allocation4 + $0xd0] sm:$0xff] %vm1870_vm8, %v4188_v46  ;;  %8458 = vmatpush3.bf16.msra.mxu1 %v8455_v51  ;;  %v4655_v51 = vld [vmem:[#allocation2 + $0x92] sm:$0xff] }
 0x492   : > { %4559 = vrot.lane.b32.xlu0 %v10826_v29, %s8534_s20  ;;  %v4186_v53 = vpop.permute.xlu1 %4185  ;;  %v13064_v29 = vld [vmem:[#allocation17_spill] sm:$0xff]  ;;  %8323 = vmatprep.subr.mxu1 %v4879_v36 }
 0x493   : > { %4256 = vst.msk [vmem:[#allocation4 + $0xc8] sm:$0xff] %vm1870_vm8, %v4186_v53 }
 0x494   : > { %v4192_v37 = vpop.permute.xlu0 %4191  ;;  %4557 = vrot.lane.b32.xlu1 %v13062_v27, %s8534_s20  ;;  %v4654_v27 = vld [vmem:[#allocation2 + $0x82] sm:$0xff] }
 0x495   : > { %4259 = vst.msk [vmem:[#allocation4 + $0xe0] sm:$0xff] %vm1870_vm8, %v4192_v37  ;;  %8324 = vmatpush3.msra.mxu1 %v4879_v36  ;;  %v4658_v36 = vld [vmem:[#allocation2 + $0xb2] sm:$0xff] }
 0x496   : > { %4563 = vrot.lane.b32.xlu0 %v13063_v31, %s8534_s20  ;;  %v4190_v30 = vpop.permute.xlu1 %4189  ;;  %v4657_v31 = vld [vmem:[#allocation2 + $0xaa] sm:$0xff] }
 0x497   : > { %4258 = vst.msk [vmem:[#allocation4 + $0xd8] sm:$0xff] %vm1870_vm8, %v4190_v30 }
 0x498   : > { %v4196_v17 = vpop.permute.xlu0 %4195  ;;  %4561 = vrot.lane.b32.xlu1 %v13064_v29, %s8534_s20  ;;  %v4656_v29 = vld [vmem:[#allocation2 + $0x9a] sm:$0xff] }
 0x499   : > { %4261 = vst.msk [vmem:[#allocation4 + $0xf0] sm:$0xff] %vm1870_vm8, %v4196_v17 }
 0x49a   : > { %4567 = vrot.lane.b32.xlu0 %v13065_v1, %s8534_s20  ;;  %v4194_v61 = vpop.permute.xlu1 %4193  ;;  %v4659_v1 = vld [vmem:[#allocation2 + $0xc2] sm:$0xff] }
 0x49b   : > { %4260 = vst.msk [vmem:[#allocation4 + $0xe8] sm:$0xff] %vm1870_vm8, %v4194_v61 }
 0x49c   : > { %v4328_v7 = vpop.permute.xlu0 %4327  ;;  %4565 = vrot.lane.b32.xlu1 %v10851_v2, %s8534_s20 }
 0x49d   : > { %4423 = vst.msk [vmem:[#allocation4] sm:$0xff] %vm2064_vm9, %v4328_v7 }
 0x49e   : > { %4571 = vrot.lane.b32.xlu0 %v13066_v49, %s8534_s20  ;;  %v4198_v59 = vpop.permute.xlu1 %4197  ;;  %v4661_v49 = vld [vmem:[#allocation2 + $0xda] sm:$0xff] }
 0x49f   : > { %4262 = vst.msk [vmem:[#allocation4 + $0xf8] sm:$0xff] %vm1870_vm8, %v4198_v59  ;;  %vm6905_vm8 = vcmask 146560  }
 0x4a0   : > { %v4332_v25 = vpop.permute.xlu0 %4331  ;;  %4569 = vrot.lane.b32.xlu1 %v13067_v52, %s8534_s20  ;;  %v4660_v52 = vld [vmem:[#allocation2 + $0xca] sm:$0xff] }
 0x4a1   : > { %4425 = vst.msk [vmem:[#allocation4 + $0x10] sm:$0xff] %vm2064_vm9, %v4332_v25 }
 0x4a2   : > { %4575 = vrot.lane.b32.xlu0 %v10866_v13, %s8534_s20  ;;  %v4330_v2 = vpop.permute.xlu1 %4329  ;;  %v4647_v13 = vld [vmem:[#allocation2 + $0x32] sm:$0xff] }
 0x4a3   : > { %4424 = vst.msk [vmem:[#allocation4 + $0x8] sm:$0xff] %vm2064_vm9, %v4330_v2  ;;  %v4663_v2 = vld [vmem:[#allocation2 + $0xf2] sm:$0xff] }
 0x4a4   : > { %v4336_v50 = vpop.permute.xlu0 %4335  ;;  %4573 = vrot.lane.b32.xlu1 %v4482_v44, %s8534_s20  ;;  %v4662_v44 = vld [vmem:[#allocation2 + $0xe2] sm:$0xff] }
 0x4a5   : > { %4427 = vst.msk [vmem:[#allocation4 + $0x20] sm:$0xff] %vm2064_vm9, %v4336_v50 }
 0x4a6   : > { %4579 = vrot.lane.b32.xlu0 %v4485_v32, %s8534_s20  ;;  %v4334_v20 = vpop.permute.xlu1 %4333 }
 0x4a7   : > { %4426 = vst.msk [vmem:[#allocation4 + $0x18] sm:$0xff] %vm2064_vm9, %v4334_v20  ;;  %v4665_v20 = vld [vmem:[#allocation2 + $0x10a] sm:$0xff] }
 0x4a8   : > { %v4340_v6 = vpop.permute.xlu0 %4339  ;;  %4577 = vrot.lane.b32.xlu1 %v10877_v45, %s8534_s20  ;;  %v4648_v45 = vld [vmem:[#allocation2 + $0x3a] sm:$0xff] }
 0x4a9   : > { %4429 = vst.msk [vmem:[#allocation4 + $0x30] sm:$0xff] %vm2064_vm9, %v4340_v6 }
 0x4aa   : > { %4711 = vrot.lane.b32.xlu0 %v4647_v13, %s8535_s27  ;;  %v4338_v41 = vpop.permute.xlu1 %4337 }
 0x4ab   : > { %4428 = vst.msk [vmem:[#allocation4 + $0x28] sm:$0xff] %vm2064_vm9, %v4338_v41  ;;  %v4667_v41 = vld [vmem:[#allocation2 + $0x122] sm:$0xff] }
 0x4ac   : > { %v4344_v43 = vpop.permute.xlu0 %4343  ;;  %4581 = vrot.lane.b32.xlu1 %v4486_v24, %s8534_s20  ;;  %v4664_v24 = vld [vmem:[#allocation2 + $0xfa] sm:$0xff]  ;;  %s8536_s20 = smov 2  }
 0x4ad   : > { %4431 = vst.msk [vmem:[#allocation4 + $0x40] sm:$0xff] %vm2064_vm9, %v4344_v43 }
 0x4ae   : > { %4715 = vrot.lane.b32.xlu0 %v4649_v42, %s8535_s27  ;;  %v4342_v23 = vpop.permute.xlu1 %4341 }
 0x4af   : > { %4430 = vst.msk [vmem:[#allocation4 + $0x38] sm:$0xff] %vm2064_vm9, %v4342_v23  ;;  %v4666_v23 = vld [vmem:[#allocation2 + $0x112] sm:$0xff] }
 0x4b0   : > { %v4348_v55 = vpop.permute.xlu0 %4347  ;;  %4713 = vrot.lane.b32.xlu1 %v4648_v45, %s8535_s27 }
 0x4b1   : > { %4433 = vst.msk [vmem:[#allocation4 + $0x50] sm:$0xff] %vm2064_vm9, %v4348_v55  ;;  %v4669_v55 = vld [vmem:[#allocation2 + $0x13a] sm:$0xff] }
 0x4b2   : > { %4719 = vrot.lane.b32.xlu0 %v4651_v21, %s8535_s27  ;;  %v4346_v56 = vpop.permute.xlu1 %4345 }
 0x4b3   : > { %4432 = vst.msk [vmem:[#allocation4 + $0x48] sm:$0xff] %vm2064_vm9, %v4346_v56  ;;  %v4668_v56 = vld [vmem:[#allocation2 + $0x12a] sm:$0xff] }
 0x4b4   : > { %v4352_v26 = vpop.permute.xlu0 %4351  ;;  %4717 = vrot.lane.b32.xlu1 %v4650_v4, %s8535_s27 }
 0x4b5   : > { %4435 = vst.msk [vmem:[#allocation4 + $0x60] sm:$0xff] %vm2064_vm9, %v4352_v26  ;;  %v4671_v26 = vld [vmem:[#allocation2 + $0x152] sm:$0xff] }
 0x4b6   : > { %4723 = vrot.lane.b32.xlu0 %v4653_v54, %s8535_s27  ;;  %v4350_v46 = vpop.permute.xlu1 %4349 }
 0x4b7   : > { %4434 = vst.msk [vmem:[#allocation4 + $0x58] sm:$0xff] %vm2064_vm9, %v4350_v46  ;;  %v4670_v46 = vld [vmem:[#allocation2 + $0x142] sm:$0xff] }
 0x4b8   : > { %v4356_v3 = vpop.permute.xlu0 %4355  ;;  %4721 = vrot.lane.b32.xlu1 %v4652_v11, %s8535_s27 }
 0x4b9   : > { %4437 = vst.msk [vmem:[#allocation4 + $0x70] sm:$0xff] %vm2064_vm9, %v4356_v3  ;;  %v4673_v3 = vld [vmem:[#allocation2 + $0x16a] sm:$0xff] }
 0x4ba   : > { %4727 = vrot.lane.b32.xlu0 %v4655_v51, %s8535_s27  ;;  %v4354_v53 = vpop.permute.xlu1 %4353 }
 0x4bb   : > { %4436 = vst.msk [vmem:[#allocation4 + $0x68] sm:$0xff] %vm2064_vm9, %v4354_v53  ;;  %v4672_v53 = vld [vmem:[#allocation2 + $0x15a] sm:$0xff] }
 0x4bc   : > { %v4360_v37 = vpop.permute.xlu0 %4359  ;;  %4725 = vrot.lane.b32.xlu1 %v4654_v27, %s8535_s27 }
 0x4bd   : > { %4439 = vst.msk [vmem:[#allocation4 + $0x80] sm:$0xff] %vm2064_vm9, %v4360_v37 }
 0x4be   : > { %4731 = vrot.lane.b32.xlu0 %v4657_v31, %s8535_s27  ;;  %v4358_v30 = vpop.permute.xlu1 %4357  ;;  %v4674_v31 = vld [vmem:[#allocation2 + $0x172] sm:$0xff] }
 0x4bf   : > { %4438 = vst.msk [vmem:[#allocation4 + $0x78] sm:$0xff] %vm2064_vm9, %v4358_v30  ;;  %v4677_v30 = vld [vmem:[#allocation2 + $0x19a] sm:$0xff] }
 0x4c0   : > { %v4364_v17 = vpop.permute.xlu0 %4363  ;;  %4729 = vrot.lane.b32.xlu1 %v4656_v29, %s8535_s27 }
 0x4c1   : > { %4441 = vst.msk [vmem:[#allocation4 + $0x90] sm:$0xff] %vm2064_vm9, %v4364_v17 }
 0x4c2   : > { %4735 = vrot.lane.b32.xlu0 %v4659_v1, %s8535_s27  ;;  %v4362_v61 = vpop.permute.xlu1 %4361 }
 0x4c3   : > { %4440 = vst.msk [vmem:[#allocation4 + $0x88] sm:$0xff] %vm2064_vm9, %v4362_v61 }
 0x4c4   : > { %v4368_v7 = vpop.permute.xlu0 %4367  ;;  %4733 = vrot.lane.b32.xlu1 %v4658_v36, %s8535_s27 }
 0x4c5   : > { %4443 = vst.msk [vmem:[#allocation4 + $0xa0] sm:$0xff] %vm2064_vm9, %v4368_v7 }
 0x4c6   : > { %4739 = vrot.lane.b32.xlu0 %v4661_v49, %s8535_s27  ;;  %v4366_v59 = vpop.permute.xlu1 %4365 }
 0x4c7   : > { %4442 = vst.msk [vmem:[#allocation4 + $0x98] sm:$0xff] %vm2064_vm9, %v4366_v59 }
 0x4c8   : > { %v4372_v25 = vpop.permute.xlu0 %4371  ;;  %4737 = vrot.lane.b32.xlu1 %v4660_v52, %s8535_s27 }
 0x4c9   : > { %4445 = vst.msk [vmem:[#allocation4 + $0xb0] sm:$0xff] %vm2064_vm9, %v4372_v25 }
 0x4ca   : > { %4743 = vrot.lane.b32.xlu0 %v4663_v2, %s8535_s27  ;;  %v4370_v32 = vpop.permute.xlu1 %4369 }
 0x4cb   : > { %4444 = vst.msk [vmem:[#allocation4 + $0xa8] sm:$0xff] %vm2064_vm9, %v4370_v32 }
 0x4cc   : > { %v4376_v50 = vpop.permute.xlu0 %4375  ;;  %4741 = vrot.lane.b32.xlu1 %v4662_v44, %s8535_s27 }
 0x4cd   : > { %4447 = vst.msk [vmem:[#allocation4 + $0xc0] sm:$0xff] %vm2064_vm9, %v4376_v50 }
 0x4ce   : > { %4747 = vrot.lane.b32.xlu0 %v4665_v20, %s8535_s27  ;;  %v4374_v6 = vpop.permute.xlu1 %4373 }
 0x4cf   : > { %4446 = vst.msk [vmem:[#allocation4 + $0xb8] sm:$0xff] %vm2064_vm9, %v4374_v6 }
 0x4d0   : > { %v4380_v13 = vpop.permute.xlu0 %4379  ;;  %4745 = vrot.lane.b32.xlu1 %v4664_v24, %s8535_s27 }
 0x4d1   : > { %4449 = vst.msk [vmem:[#allocation4 + $0xd0] sm:$0xff] %vm2064_vm9, %v4380_v13 }
 0x4d2   : > { %4751 = vrot.lane.b32.xlu0 %v4667_v41, %s8535_s27  ;;  %v4378_v43 = vpop.permute.xlu1 %4377 }
 0x4d3   : > { %4448 = vst.msk [vmem:[#allocation4 + $0xc8] sm:$0xff] %vm2064_vm9, %v4378_v43 }
 0x4d4   : > { %v4384_v42 = vpop.permute.xlu0 %4383  ;;  %4749 = vrot.lane.b32.xlu1 %v4666_v23, %s8535_s27 }
 0x4d5   : > { %4451 = vst.msk [vmem:[#allocation4 + $0xe0] sm:$0xff] %vm2064_vm9, %v4384_v42 }
 0x4d6   : > { %4755 = vrot.lane.b32.xlu0 %v4669_v55, %s8535_s27  ;;  %v4382_v45 = vpop.permute.xlu1 %4381 }
 0x4d7   : > { %4450 = vst.msk [vmem:[#allocation4 + $0xd8] sm:$0xff] %vm2064_vm9, %v4382_v45 }
 0x4d8   : > { %v4388_v21 = vpop.permute.xlu0 %4387  ;;  %4753 = vrot.lane.b32.xlu1 %v4668_v56, %s8535_s27 }
 0x4d9   : > { %4453 = vst.msk [vmem:[#allocation4 + $0xf0] sm:$0xff] %vm2064_vm9, %v4388_v21 }
 0x4da   : > { %4759 = vrot.lane.b32.xlu0 %v4671_v26, %s8535_s27  ;;  %v4386_v4 = vpop.permute.xlu1 %4385 }
 0x4db   : > { %4452 = vst.msk [vmem:[#allocation4 + $0xe8] sm:$0xff] %vm2064_vm9, %v4386_v4 }
 0x4dc   : > { %v4520_v54 = vpop.permute.xlu0 %4519  ;;  %4757 = vrot.lane.b32.xlu1 %v4670_v46, %s8535_s27 }
 0x4dd   : > { %4615 = vst.msk [vmem:[#allocation4] sm:$0xff] %vm2257_vm10, %v4520_v54 }
 0x4de   : > { %4763 = vrot.lane.b32.xlu0 %v4673_v3, %s8535_s27  ;;  %v4390_v11 = vpop.permute.xlu1 %4389 }
 0x4df   : > { %4454 = vst.msk [vmem:[#allocation4 + $0xf8] sm:$0xff] %vm2064_vm9, %v4390_v11  ;;  %vm6980_vm9 = vcmask 146432  }
 0x4e0   : > { %v4524_v51 = vpop.permute.xlu0 %4523  ;;  %4761 = vrot.lane.b32.xlu1 %v4672_v53, %s8535_s27 }
 0x4e1   : > { %4617 = vst.msk [vmem:[#allocation4 + $0x10] sm:$0xff] %vm2257_vm10, %v4524_v51 }
 0x4e2   : > { %4767 = vrot.lane.b32.xlu0 %v11006_v33, %s8535_s27  ;;  %v4522_v37 = vpop.permute.xlu1 %4521  ;;  %v4678_v33 = vld [vmem:[#allocation2 + $0x1a2] sm:$0xff] }
 0x4e3   : > { %4616 = vst.msk [vmem:[#allocation4 + $0x8] sm:$0xff] %vm2257_vm10, %v4522_v37 }
 0x4e4   : > { %v4528_v27 = vpop.permute.xlu0 %4527  ;;  %4765 = vrot.lane.b32.xlu1 %v4674_v31, %s8535_s27 }
 0x4e5   : > { %4619 = vst.msk [vmem:[#allocation4 + $0x20] sm:$0xff] %vm2257_vm10, %v4528_v27 }
 0x4e6   : > { %4771 = vrot.lane.b32.xlu0 %v4677_v30, %s8535_s27  ;;  %v4526_v17 = vpop.permute.xlu1 %4525 }
 0x4e7   : > { %4618 = vst.msk [vmem:[#allocation4 + $0x18] sm:$0xff] %vm2257_vm10, %v4526_v17 }
 0x4e8   : > { %v4532_v29 = vpop.permute.xlu0 %4531  ;;  %4769 = vrot.lane.b32.xlu1 %v11024_v39, %s8535_s27 }
 0x4e9   : > { %4621 = vst.msk [vmem:[#allocation4 + $0x30] sm:$0xff] %vm2257_vm10, %v4532_v29 }
 0x4ea   : > { %v4530_v1 = vpop.permute.xlu1 %4529 }
 0x4eb   : > { %4620 = vst.msk [vmem:[#allocation4 + $0x28] sm:$0xff] %vm2257_vm10, %v4530_v1 }
 0x4ec   : > { %v4536_v61 = vpop.permute.xlu0 %4535  ;;  %4773 = vrot.lane.b32.xlu1 %v4678_v33, %s8535_s27 }
 0x4ed   : > { %4623 = vst.msk [vmem:[#allocation4 + $0x40] sm:$0xff] %vm2257_vm10, %v4536_v61 }
 0x4ee   : > { %v4534_v7 = vpop.permute.xlu1 %4533 }
 0x4ef   : > { %4622 = vst.msk [vmem:[#allocation4 + $0x38] sm:$0xff] %vm2257_vm10, %v4534_v7 }
 0x4f0   : > { %v4540_v36 = vpop.permute.xlu0 %4539 }
 0x4f1   : > { %4625 = vst.msk [vmem:[#allocation4 + $0x50] sm:$0xff] %vm2257_vm10, %v4540_v36 }
 0x4f2   : > { %v4538_v49 = vpop.permute.xlu1 %4537 }
 0x4f3   : > { %4624 = vst.msk [vmem:[#allocation4 + $0x48] sm:$0xff] %vm2257_vm10, %v4538_v49 }
 0x4f4   : > { %v4544_v59 = vpop.permute.xlu0 %4543 }
 0x4f5   : > { %4627 = vst.msk [vmem:[#allocation4 + $0x60] sm:$0xff] %vm2257_vm10, %v4544_v59 }
 0x4f6   : > { %v4542_v39 = vpop.permute.xlu1 %4541 }
 0x4f7   : > { %4626 = vst.msk [vmem:[#allocation4 + $0x58] sm:$0xff] %vm2257_vm10, %v4542_v39 }
 0x4f8   : > { %v4548_v25 = vpop.permute.xlu0 %4547 }
 0x4f9   : > { %4629 = vst.msk [vmem:[#allocation4 + $0x70] sm:$0xff] %vm2257_vm10, %v4548_v25 }
 0x4fa   : > { %v4546_v52 = vpop.permute.xlu1 %4545 }
 0x4fb   : > { %4628 = vst.msk [vmem:[#allocation4 + $0x68] sm:$0xff] %vm2257_vm10, %v4546_v52 }
 0x4fc   : > { %v4552_v2 = vpop.permute.xlu0 %4551 }
 0x4fd   : > { %4631 = vst.msk [vmem:[#allocation4 + $0x80] sm:$0xff] %vm2257_vm10, %v4552_v2 }
 0x4fe   : > { %v4550_v32 = vpop.permute.xlu1 %4549 }
 0x4ff   : > { %4630 = vst.msk [vmem:[#allocation4 + $0x78] sm:$0xff] %vm2257_vm10, %v4550_v32 }
 0x500   : > { %v4556_v50 = vpop.permute.xlu0 %4555 }
 0x501   : > { %4633 = vst.msk [vmem:[#allocation4 + $0x90] sm:$0xff] %vm2257_vm10, %v4556_v50 }
 0x502   : > { %v4554_v44 = vpop.permute.xlu1 %4553 }
 0x503   : > { %4632 = vst.msk [vmem:[#allocation4 + $0x88] sm:$0xff] %vm2257_vm10, %v4554_v44 }
 0x504   : > { %v4560_v20 = vpop.permute.xlu0 %4559 }
 0x505   : > { %4635 = vst.msk [vmem:[#allocation4 + $0xa0] sm:$0xff] %vm2257_vm10, %v4560_v20 }
 0x506   : > { %v4558_v6 = vpop.permute.xlu1 %4557 }
 0x507   : > { %4634 = vst.msk [vmem:[#allocation4 + $0x98] sm:$0xff] %vm2257_vm10, %v4558_v6 }
 0x508   : > { %v4564_v13 = vpop.permute.xlu0 %4563 }
 0x509   : > { %4637 = vst.msk [vmem:[#allocation4 + $0xb0] sm:$0xff] %vm2257_vm10, %v4564_v13 }
 0x50a   : > { %v4562_v24 = vpop.permute.xlu1 %4561 }
 0x50b   : > { %4636 = vst.msk [vmem:[#allocation4 + $0xa8] sm:$0xff] %vm2257_vm10, %v4562_v24 }
 0x50c   : > { %v4568_v41 = vpop.permute.xlu0 %4567 }
 0x50d   : > { %4639 = vst.msk [vmem:[#allocation4 + $0xc0] sm:$0xff] %vm2257_vm10, %v4568_v41 }
 0x50e   : > { %v4566_v43 = vpop.permute.xlu1 %4565 }
 0x50f   : > { %4638 = vst.msk [vmem:[#allocation4 + $0xb8] sm:$0xff] %vm2257_vm10, %v4566_v43 }
 0x510   : > { %v4572_v42 = vpop.permute.xlu0 %4571 }
 0x511   : > { %4641 = vst.msk [vmem:[#allocation4 + $0xd0] sm:$0xff] %vm2257_vm10, %v4572_v42 }
 0x512   : > { %v4570_v23 = vpop.permute.xlu1 %4569 }
 0x513   : > { %4640 = vst.msk [vmem:[#allocation4 + $0xc8] sm:$0xff] %vm2257_vm10, %v4570_v23 }
 0x514   : > { %v4576_v55 = vpop.permute.xlu0 %4575 }
 0x515   : > { %4643 = vst.msk [vmem:[#allocation4 + $0xe0] sm:$0xff] %vm2257_vm10, %v4576_v55 }
 0x516   : > { %v4574_v45 = vpop.permute.xlu1 %4573 }
 0x517   : > { %4642 = vst.msk [vmem:[#allocation4 + $0xd8] sm:$0xff] %vm2257_vm10, %v4574_v45 }
 0x518   : > { %v4580_v21 = vpop.permute.xlu0 %4579 }
 0x519   : > { %4645 = vst.msk [vmem:[#allocation4 + $0xf0] sm:$0xff] %vm2257_vm10, %v4580_v21 }
 0x51a   : > { %v4578_v56 = vpop.permute.xlu1 %4577 }
 0x51b   : > { %4644 = vst.msk [vmem:[#allocation4 + $0xe8] sm:$0xff] %vm2257_vm10, %v4578_v56 }
 0x51c   : > { %v4712_v26 = vpop.permute.xlu0 %4711 }
 0x51d   : > { %4807 = vst.msk [vmem:[#allocation4] sm:$0xff] %vm2450_vm11, %v4712_v26 }
 0x51e   : > { %v4582_v4 = vpop.permute.xlu1 %4581 }
 0x51f   : > { %4646 = vst.msk [vmem:[#allocation4 + $0xf8] sm:$0xff] %vm2257_vm10, %v4582_v4 }
 0x520   : > { %v4716_v54 = vpop.permute.xlu0 %4715 }
 0x521   : > { %4809 = vst.msk [vmem:[#allocation4 + $0x10] sm:$0xff] %vm2450_vm11, %v4716_v54 }
 0x522   : > { %v4714_v46 = vpop.permute.xlu1 %4713 }
 0x523   : > { %4808 = vst.msk [vmem:[#allocation4 + $0x8] sm:$0xff] %vm2450_vm11, %v4714_v46 }
 0x524   : > { %v4720_v3 = vpop.permute.xlu0 %4719  ;;  %v4839_v11 = vld [vmem:[#allocation4] sm:$0xff] }
 0x525   : > { %4811 = vst.msk [vmem:[#allocation4 + $0x20] sm:$0xff] %vm2450_vm11, %v4720_v3  ;;  %8325 = vmatprep.mubr.msk.f32.mxu1 %vm2531_vm12, %v4839_v11 }
 0x526   : > { %v4718_v51 = vpop.permute.xlu1 %4717 }
 0x527   : > { %4810 = vst.msk [vmem:[#allocation4 + $0x18] sm:$0xff] %vm2450_vm11, %v4718_v51 }
 0x528   : > { %v4724_v53 = vpop.permute.xlu0 %4723  ;;  %v4841_v30 = vld [vmem:[#allocation4 + $0x10] sm:$0xff] }
 0x529   : > { %4813 = vst.msk [vmem:[#allocation4 + $0x30] sm:$0xff] %vm2450_vm11, %v4724_v53 }
 0x52a   : > { %v4722_v37 = vpop.permute.xlu1 %4721  ;;  %v4840_v27 = vld [vmem:[#allocation4 + $0x8] sm:$0xff] }
 0x52b   : > { %4812 = vst.msk [vmem:[#allocation4 + $0x28] sm:$0xff] %vm2450_vm11, %v4722_v37  ;;  %8326 = vmatmul.mubr.msk.f32.vlgmr.msra.gmra.mrb[48].mxu1 %vm2531_vm12, %v4840_v27 }
 0x52c   : > { %v4728_v31 = vpop.permute.xlu0 %4727  ;;  %8328 = vmatprep.mubr.msk.f32.mxu1 %vm2531_vm12, %v4841_v30  ;;  %v4843_v1 = vld [vmem:[#allocation4 + $0x20] sm:$0xff] }
 0x52d   : > { %4815 = vst.msk [vmem:[#allocation4 + $0x40] sm:$0xff] %vm2450_vm11, %v4728_v31 }
 0x52e   : > { %v4726_v17 = vpop.permute.xlu1 %4725  ;;  %v4842_v29 = vld [vmem:[#allocation4 + $0x18] sm:$0xff] }
 0x52f   : > { %4814 = vst.msk [vmem:[#allocation4 + $0x38] sm:$0xff] %vm2450_vm11, %v4726_v17  ;;  %8329 = vmatmul.mubr.msk.f32.gmra.mrb[50].mxu1 %vm2531_vm12, %v4842_v29 }
 0x530   : > { %v4732_v33 = vpop.permute.xlu0 %4731  ;;  %8331 = vmatprep.mubr.msk.f32.mxu1 %vm2531_vm12, %v4843_v1  ;;  %v4845_v49 = vld [vmem:[#allocation4 + $0x30] sm:$0xff] }
 0x531   : > { %4817 = vst.msk [vmem:[#allocation4 + $0x50] sm:$0xff] %vm2450_vm11, %v4732_v33 }
 0x532   : > { %v4730_v61 = vpop.permute.xlu1 %4729  ;;  %v4844_v7 = vld [vmem:[#allocation4 + $0x28] sm:$0xff] }
 0x533   : > { %4816 = vst.msk [vmem:[#allocation4 + $0x48] sm:$0xff] %vm2450_vm11, %v4730_v61  ;;  %8332 = vmatmul.mubr.msk.f32.gmra.mrb[52].mxu1 %vm2531_vm12, %v4844_v7 }
 0x534   : > { %v4736_v36 = vpop.permute.xlu0 %4735  ;;  %8334 = vmatprep.mubr.msk.f32.mxu1 %vm2531_vm12, %v4845_v49  ;;  %v4847_v52 = vld [vmem:[#allocation4 + $0x40] sm:$0xff] }
 0x535   : > { %4819 = vst.msk [vmem:[#allocation4 + $0x60] sm:$0xff] %vm2450_vm11, %v4736_v36 }
 0x536   : > { %v4734_v59 = vpop.permute.xlu1 %4733  ;;  %v4846_v39 = vld [vmem:[#allocation4 + $0x38] sm:$0xff] }
 0x537   : > { %4818 = vst.msk [vmem:[#allocation4 + $0x58] sm:$0xff] %vm2450_vm11, %v4734_v59  ;;  %8335 = vmatmul.mubr.msk.f32.gmra.mrb[54].mxu1 %vm2531_vm12, %v4846_v39 }
 0x538   : > { %v4740_v25 = vpop.permute.xlu0 %4739  ;;  %8337 = vmatprep.mubr.msk.f32.mxu1 %vm2531_vm12, %v4847_v52  ;;  %v4849_v44 = vld [vmem:[#allocation4 + $0x50] sm:$0xff] }
 0x539   : > { %4821 = vst.msk [vmem:[#allocation4 + $0x70] sm:$0xff] %vm2450_vm11, %v4740_v25 }
 0x53a   : > { %v4738_v2 = vpop.permute.xlu1 %4737  ;;  %v4848_v32 = vld [vmem:[#allocation4 + $0x48] sm:$0xff] }
 0x53b   : > { %4820 = vst.msk [vmem:[#allocation4 + $0x68] sm:$0xff] %vm2450_vm11, %v4738_v2  ;;  %8338 = vmatmul.mubr.msk.f32.gmra.mrb[56].mxu1 %vm2531_vm12, %v4848_v32  ;;  %v13068_v32 = vmov 0.0  }
 0x53c   : > { %v4744_v50 = vpop.permute.xlu0 %4743  ;;  %8340 = vmatprep.mubr.msk.f32.mxu1 %vm2531_vm12, %v4849_v44  ;;  %v4851_v24 = vld [vmem:[#allocation4 + $0x60] sm:$0xff]  ;;  %5246 = vst.msk [vmem:[#allocation3 + $0x20] sm:$0xff] %vm5240_vm13, %v13068_v32  ;;  %5241 = vst.msk [vmem:[#allocation3] sm:$0xff] %vm5240_vm13, %v13068_v32 }
 0x53d   : > { %4823 = vst.msk [vmem:[#allocation4 + $0x80] sm:$0xff] %vm2450_vm11, %v4744_v50 }
 0x53e   : > { %v4742_v20 = vpop.permute.xlu1 %4741  ;;  %v4850_v6 = vld [vmem:[#allocation4 + $0x58] sm:$0xff]  ;;  %5247 = vst.msk [vmem:[#allocation3 + $0x28] sm:$0x3] %vm5243_vm14, %v13068_v32  ;;  %5244 = vst.msk [vmem:[#allocation3 + $0x10] sm:$0x3] %vm5243_vm14, %v13068_v32 }
 0x53f   : > { %4822 = vst.msk [vmem:[#allocation4 + $0x78] sm:$0xff] %vm2450_vm11, %v4742_v20  ;;  %8341 = vmatmul.mubr.msk.f32.gmra.mrb[58].mxu1 %vm2531_vm12, %v4850_v6 }
 0x540   : > { %v4748_v13 = vpop.permute.xlu0 %4747  ;;  %8343 = vmatprep.mubr.msk.f32.mxu1 %vm2531_vm12, %v4851_v24  ;;  %v4853_v23 = vld [vmem:[#allocation4 + $0x70] sm:$0xff]  ;;  %5242 = vst.msk [vmem:[#allocation3 + $0x8] sm:$0xff] %vm5240_vm13, %v13068_v32  ;;  %5245 = vst.msk [vmem:[#allocation3 + $0x18] sm:$0xff] %vm5240_vm13, %v13068_v32 }
 0x541   : > { %4825 = vst.msk [vmem:[#allocation4 + $0x90] sm:$0xff] %vm2450_vm11, %v4748_v13  ;;  %v11504_v13 = vld [vmem:[%s12848_s8] ss:$0 sm:$0xff] }
 0x542   : > { %v4746_v41 = vpop.permute.xlu1 %4745  ;;  %v4852_v43 = vld [vmem:[#allocation4 + $0x68] sm:$0xff]  ;;  %5248 = vst.msk [vmem:[#allocation3 + $0x30] sm:$0xff] %vm5240_vm13, %v13068_v32  ;;  %5249 = vst.msk [vmem:[#allocation3 + $0x38] sm:$0xff] %vm5240_vm13, %v13068_v32 }
 0x543   : > { %4824 = vst.msk [vmem:[#allocation4 + $0x88] sm:$0xff] %vm2450_vm11, %v4746_v41  ;;  %8344 = vmatmul.mubr.msk.f32.gmra.mrb[60].mxu1 %vm2531_vm12, %v4852_v43  ;;  %v5329_v6 = vld [vmem:[#allocation3] sm:$0xff] }
 0x544   : > { %v4752_v42 = vpop.permute.xlu0 %4751  ;;  %8346 = vmatprep.mubr.msk.f32.mxu1 %vm2531_vm12, %v4853_v23  ;;  %v4855_v56 = vld [vmem:[#allocation4 + $0x80] sm:$0xff]  ;;  %5250 = vst.msk [vmem:[#allocation3 + $0x40] sm:$0x3] %vm5243_vm14, %v13068_v32  ;;  %5253 = vst.msk [vmem:[#allocation3 + $0x58] sm:$0x3] %vm5243_vm14, %v13068_v32 }
 0x545   : > { %4827 = vst.msk [vmem:[#allocation4 + $0xa0] sm:$0xff] %vm2450_vm11, %v4752_v42 }
 0x546   : > { %v4750_v55 = vpop.permute.xlu1 %4749  ;;  %v4854_v45 = vld [vmem:[#allocation4 + $0x78] sm:$0xff]  ;;  %5251 = vst.msk [vmem:[#allocation3 + $0x48] sm:$0xff] %vm5240_vm13, %v13068_v32  ;;  %5252 = vst.msk [vmem:[#allocation3 + $0x50] sm:$0xff] %vm5240_vm13, %v13068_v32 }
 0x547   : > { %4826 = vst.msk [vmem:[#allocation4 + $0x98] sm:$0xff] %vm2450_vm11, %v4750_v55  ;;  %8347 = vmatmul.mubr.msk.f32.gmra.mrb[62].mxu1 %vm2531_vm12, %v4854_v45  ;;  %v5394_v50 = vld [vmem:[#allocation3 + $0x9] sm:$0xff]  ;;  %v5393_v44 = vld [vmem:[#allocation3 + $0x1] sm:$0xff] }
 0x548   : > { %v4756_v21 = vpop.permute.xlu0 %4755  ;;  %8349 = vmatprep.mubr.msk.f32.mxu1 %vm2531_vm12, %v4855_v56  ;;  %v4857_v46 = vld [vmem:[#allocation4 + $0x90] sm:$0xff]  ;;  %5254 = vst.msk [vmem:[#allocation3 + $0x60] sm:$0xff] %vm5240_vm13, %v13068_v32  ;;  %5255 = vst.msk [vmem:[#allocation3 + $0x68] sm:$0xff] %vm5240_vm13, %v13068_v32  ;;  %5459 = vrot.lane.b32.xlu1 %v5394_v50, %s8536_s20  ;;  %v5330_v20 = vld [vmem:[#allocation3 + $0x8] sm:$0xff] }
 0x549   : > { %4829 = vst.msk [vmem:[#allocation4 + $0xb0] sm:$0xff] %vm2450_vm11, %v4756_v21  ;;  %5457 = vrot.lane.b32.xlu0 %v5393_v44, %s8536_s20 }
 0x54a   : > { %v4754_v26 = vpop.permute.xlu1 %4753  ;;  %v4856_v4 = vld [vmem:[#allocation4 + $0x88] sm:$0xff]  ;;  %5256 = vst.msk [vmem:[#allocation3 + $0x70] sm:$0x3] %vm5243_vm14, %v13068_v32  ;;  %5259 = vst.msk [vmem:[#allocation3 + $0x88] sm:$0x3] %vm5243_vm14, %v13068_v32 }
 0x54b   : > { %4828 = vst.msk [vmem:[#allocation4 + $0xa8] sm:$0xff] %vm2450_vm11, %v4754_v26  ;;  %8350 = vmatmul.mubr.msk.f32.gmra.mrb[64].mxu1 %vm2531_vm12, %v4856_v4 }
 0x54c   : > { %v4760_v54 = vpop.permute.xlu0 %4759  ;;  %8352 = vmatprep.mubr.msk.f32.mxu1 %vm2531_vm12, %v4857_v46  ;;  %v4859_v53 = vld [vmem:[#allocation4 + $0xa0] sm:$0xff]  ;;  %5257 = vst.msk [vmem:[#allocation3 + $0x78] sm:$0xff] %vm5240_vm13, %v13068_v32  ;;  %5258 = vst.msk [vmem:[#allocation3 + $0x80] sm:$0xff] %vm5240_vm13, %v13068_v32 }
 0x54d   : > { %4831 = vst.msk [vmem:[#allocation4 + $0xc0] sm:$0xff] %vm2450_vm11, %v4760_v54 }
 0x54e   : > { %v4758_v3 = vpop.permute.xlu1 %4757  ;;  %v4858_v11 = vld [vmem:[#allocation4 + $0x98] sm:$0xff]  ;;  %5260 = vst.msk [vmem:[#allocation3 + $0x90] sm:$0xff] %vm5240_vm13, %v13068_v32  ;;  %5261 = vst.msk [vmem:[#allocation3 + $0x98] sm:$0xff] %vm5240_vm13, %v13068_v32 }
 0x54f   : > { %4830 = vst.msk [vmem:[#allocation4 + $0xb8] sm:$0xff] %vm2450_vm11, %v4758_v3  ;;  %8353 = vmatmul.mubr.msk.f32.gmra.mrb[66].mxu1 %vm2531_vm12, %v4858_v11 }
 0x550   : > { %v4764_v51 = vpop.permute.xlu0 %4763  ;;  %8355 = vmatprep.mubr.msk.f32.mxu1 %vm2531_vm12, %v4859_v53  ;;  %v4861_v30 = vld [vmem:[#allocation4 + $0xb0] sm:$0xff]  ;;  %5262 = vst.msk [vmem:[#allocation3 + $0xa0] sm:$0x3] %vm5243_vm14, %v13068_v32  ;;  %5265 = vst.msk [vmem:[#allocation3 + $0xb8] sm:$0x3] %vm5243_vm14, %v13068_v32 }
 0x551   : > { %4833 = vst.msk [vmem:[#allocation4 + $0xd0] sm:$0xff] %vm2450_vm11, %v4764_v51 }
 0x552   : > { %v4762_v37 = vpop.permute.xlu1 %4761  ;;  %v4860_v27 = vld [vmem:[#allocation4 + $0xa8] sm:$0xff]  ;;  %5263 = vst.msk [vmem:[#allocation3 + $0xa8] sm:$0xff] %vm5240_vm13, %v13068_v32  ;;  %5264 = vst.msk [vmem:[#allocation3 + $0xb0] sm:$0xff] %vm5240_vm13, %v13068_v32 }
 0x553   : > { %4832 = vst.msk [vmem:[#allocation4 + $0xc8] sm:$0xff] %vm2450_vm11, %v4762_v37  ;;  %8356 = vmatmul.mubr.msk.f32.gmra.mrb[68].mxu1 %vm2531_vm12, %v4860_v27 }
 0x554   : > { %v4768_v31 = vpop.permute.xlu0 %4767  ;;  %8358 = vmatprep.mubr.msk.f32.mxu1 %vm2531_vm12, %v4861_v30  ;;  %v4863_v33 = vld [vmem:[#allocation4 + $0xc0] sm:$0xff]  ;;  %5266 = vst.msk [vmem:[#allocation3 + $0xc0] sm:$0xff] %vm5240_vm13, %v13068_v32  ;;  %5267 = vst.msk [vmem:[#allocation3 + $0xc8] sm:$0xff] %vm5240_vm13, %v13068_v32 }
 0x555   : > { %4835 = vst.msk [vmem:[#allocation4 + $0xe0] sm:$0xff] %vm2450_vm11, %v4768_v31 }
 0x556   : > { %v4766_v17 = vpop.permute.xlu1 %4765  ;;  %v4862_v29 = vld [vmem:[#allocation4 + $0xb8] sm:$0xff]  ;;  %5268 = vst.msk [vmem:[#allocation3 + $0xd0] sm:$0x3] %vm5243_vm14, %v13068_v32  ;;  %5271 = vst.msk [vmem:[#allocation3 + $0xe8] sm:$0x3] %vm5243_vm14, %v13068_v32 }
 0x557   : > { %4834 = vst.msk [vmem:[#allocation4 + $0xd8] sm:$0xff] %vm2450_vm11, %v4766_v17  ;;  %8359 = vmatmul.mubr.msk.f32.gmra.mrb[70].mxu1 %vm2531_vm12, %v4862_v29 }
 0x558   : > { %v4772_v1 = vpop.permute.xlu0 %4771  ;;  %8361 = vmatprep.mubr.msk.f32.mxu1 %vm2531_vm12, %v4863_v33  ;;  %v4865_v36 = vld [vmem:[#allocation4 + $0xd0] sm:$0xff]  ;;  %5269 = vst.msk [vmem:[#allocation3 + $0xd8] sm:$0xff] %vm5240_vm13, %v13068_v32  ;;  %5270 = vst.msk [vmem:[#allocation3 + $0xe0] sm:$0xff] %vm5240_vm13, %v13068_v32 }
 0x559   : > { %4837 = vst.msk [vmem:[#allocation4 + $0xf0] sm:$0xff] %vm2450_vm11, %v4772_v1 }
 0x55a   : > { %v4770_v61 = vpop.permute.xlu1 %4769  ;;  %v4864_v7 = vld [vmem:[#allocation4 + $0xc8] sm:$0xff]  ;;  %5272 = vst.msk [vmem:[#allocation3 + $0xf0] sm:$0xff] %vm5240_vm13, %v13068_v32  ;;  %5273 = vst.msk [vmem:[#allocation3 + $0xf8] sm:$0xff] %vm5240_vm13, %v13068_v32 }
 0x55b   : > { %4836 = vst.msk [vmem:[#allocation4 + $0xe8] sm:$0xff] %vm2450_vm11, %v4770_v61  ;;  %8362 = vmatmul.mubr.msk.f32.gmra.mrb[72].mxu1 %vm2531_vm12, %v4864_v7 }
 0x55c   : > { %8364 = vmatprep.mubr.msk.f32.mxu1 %vm2531_vm12, %v4865_v36  ;;  %v4867_v39 = vld [vmem:[#allocation4 + $0xe0] sm:$0xff]  ;;  %5274 = vst.msk [vmem:[#allocation3 + $0x100] sm:$0x3] %vm5243_vm14, %v13068_v32  ;;  %5277 = vst.msk [vmem:[#allocation3 + $0x118] sm:$0x3] %vm5243_vm14, %v13068_v32 }
 0x55d   : > { %5275 = vst.msk [vmem:[#allocation3 + $0x108] sm:$0xff] %vm5240_vm13, %v13068_v32  ;;  %5276 = vst.msk [vmem:[#allocation3 + $0x110] sm:$0xff] %vm5240_vm13, %v13068_v32 }
 0x55e   : > { %v4866_v49 = vld [vmem:[#allocation4 + $0xd8] sm:$0xff]  ;;  %v4774_v59 = vpop.permute.xlu1 %4773  ;;  %5278 = vst.msk [vmem:[#allocation3 + $0x120] sm:$0xff] %vm5240_vm13, %v13068_v32  ;;  %5279 = vst.msk [vmem:[#allocation3 + $0x128] sm:$0xff] %vm5240_vm13, %v13068_v32 }
 0x55f   : > { %8365 = vmatmul.mubr.msk.f32.gmra.mrb[74].mxu1 %vm2531_vm12, %v4866_v49  ;;  %4838 = vst.msk [vmem:[#allocation4 + $0xf8] sm:$0xff] %vm2450_vm11, %v4774_v59 }
 0x560   : > { %8367 = vmatprep.mubr.msk.f32.mxu1 %vm2531_vm12, %v4867_v39  ;;  %v4869_v25 = vld [vmem:[#allocation4 + $0xf0] sm:$0xff]  ;;  %5280 = vst.msk [vmem:[#allocation3 + $0x130] sm:$0x3] %vm5243_vm14, %v13068_v32  ;;  %5283 = vst.msk [vmem:[#allocation3 + $0x148] sm:$0x3] %vm5243_vm14, %v13068_v32 }
 0x561   : > { %5281 = vst.msk [vmem:[#allocation3 + $0x138] sm:$0xff] %vm5240_vm13, %v13068_v32  ;;  %5282 = vst.msk [vmem:[#allocation3 + $0x140] sm:$0xff] %vm5240_vm13, %v13068_v32 }
 0x562   : > { %v4868_v52 = vld [vmem:[#allocation4 + $0xe8] sm:$0xff]  ;;  %5284 = vst.msk [vmem:[#allocation3 + $0x150] sm:$0xff] %vm5240_vm13, %v13068_v32  ;;  %5285 = vst.msk [vmem:[#allocation3 + $0x158] sm:$0xff] %vm5240_vm13, %v13068_v32 }
 0x563   : > { %8368 = vmatmul.mubr.msk.f32.gmra.mrb[76].mxu1 %vm2531_vm12, %v4868_v52  ;;  %5286 = vst.msk [vmem:[#allocation3 + $0x160] sm:$0x3] %vm5243_vm14, %v13068_v32  ;;  %5289 = vst.msk [vmem:[#allocation3 + $0x178] sm:$0x3] %vm5243_vm14, %v13068_v32 }
 0x564   : > { %8370 = vmatprep.mubr.msk.f32.mxu1 %vm2531_vm12, %v4869_v25  ;;  %5287 = vst.msk [vmem:[#allocation3 + $0x168] sm:$0xff] %vm5240_vm13, %v13068_v32  ;;  %5288 = vst.msk [vmem:[#allocation3 + $0x170] sm:$0xff] %vm5240_vm13, %v13068_v32 }
 0x565   : > { %5290 = vst.msk [vmem:[#allocation3 + $0x180] sm:$0xff] %vm5240_vm13, %v13068_v32  ;;  %5291 = vst.msk [vmem:[#allocation3 + $0x188] sm:$0xff] %vm5240_vm13, %v13068_v32 }
 0x566   : > { %v4870_v2 = vld [vmem:[#allocation4 + $0xf8] sm:$0xff]  ;;  %5292 = vst.msk [vmem:[#allocation3 + $0x190] sm:$0x3] %vm5243_vm14, %v13068_v32  ;;  %5295 = vst.msk [vmem:[#allocation3 + $0x1a8] sm:$0x3] %vm5243_vm14, %v13068_v32 }
 0x567   : > { %8371 = vmatmul.mubr.msk.f32.gmra.mrb[78].mxu1 %vm2531_vm12, %v4870_v2  ;;  %5293 = vst.msk [vmem:[#allocation3 + $0x198] sm:$0xff] %vm5240_vm13, %v13068_v32  ;;  %5294 = vst.msk [vmem:[#allocation3 + $0x1a0] sm:$0xff] %vm5240_vm13, %v13068_v32 }
 0x568   : > { %5362 = vst.msk [vmem:[#allocation5 + $0x8] sm:$0xff] %vm5240_vm13, %v5330_v20  ;;  %5361 = vst.msk [vmem:[#allocation5] sm:$0xff] %vm5240_vm13, %v5329_v6 }
 0x5ba   : > { %v5460_v41 = vpop.permute.xlu1 %5459 }
 0x5bb   : > { %5555 = vst.msk [vmem:[#allocation5 + $0x8] sm:$0xff] %vm5553_vm15, %v5460_v41  ;;  %v5458_v23 = vpop.permute.xlu0 %5457 }
 0x5bc   : > { %5554 = vst.msk [vmem:[#allocation5] sm:$0xff] %vm5553_vm15, %v5458_v23 }
 0x5fe   : > { %v8327_v24 = vpop.f32.mrb[48].mxu1 }
 0x5ff   : > { %v5055_v43 = vadd.f32 %v8327_v24, %v11504_v13  ;;  %v5049_v42 = vpop.f32.mrb[49].mxu1 }
 0x600   : > { %v5050_v55 = vadd.f32 %v11504_v13, %v5049_v42 }
 0x601   : > { %v5209_v45 = vmax.f32 %v5055_v43, 0.0 }
 0x602   : > { %v5208_v21 = vmax.f32 %v5050_v55, 0.0  ;;  %v8330_v56 = vpop.f32.mrb[50].mxu1 }
 0x603   : > { %5298 = vst.msk [vmem:[#allocation3 + $0x21] sm:$0xff] %vm5240_vm13, %v5209_v45  ;;  %v5065_v26 = vadd.f32 %v8330_v56, %v11504_v13  ;;  %v5059_v4 = vpop.f32.mrb[51].mxu1 }
 0x604   : > { %5297 = vst.msk [vmem:[#allocation3 + $0x19] sm:$0xff] %vm5240_vm13, %v5208_v21  ;;  %v5060_v54 = vadd.f32 %v11504_v13, %v5059_v4 }
 0x605   : > { %v5211_v46 = vmax.f32 %v5065_v26, 0.0 }
 0x606   : > { %v5210_v3 = vmax.f32 %v5060_v54, 0.0  ;;  %v8333_v11 = vpop.f32.mrb[52].mxu1 }
 0x607   : > { %5300 = vst.msk [vmem:[#allocation3 + $0x39] sm:$0xff] %vm5240_vm13, %v5211_v46  ;;  %v5075_v51 = vadd.f32 %v8333_v11, %v11504_v13  ;;  %v5069_v53 = vpop.f32.mrb[53].mxu1 }
 0x608   : > { %5299 = vst.msk [vmem:[#allocation3 + $0x31] sm:$0xff] %vm5240_vm13, %v5210_v3  ;;  %v5070_v37 = vadd.f32 %v11504_v13, %v5069_v53 }
 0x609   : > { %v5213_v27 = vmax.f32 %v5075_v51, 0.0 }
 0x60a   : > { %v5212_v31 = vmax.f32 %v5070_v37, 0.0  ;;  %v8336_v30 = vpop.f32.mrb[54].mxu1  ;;  %v11518_v17 = vld [vmem:[#allocation3 + $0x21] sm:$0xff] }
 0x60b   : > { %5302 = vst.msk [vmem:[#allocation3 + $0x51] sm:$0xff] %vm5240_vm13, %v5213_v27  ;;  %v5085_v29 = vadd.f32 %v8336_v30, %v11504_v13  ;;  %5463 = vrot.lane.b32.xlu1 %v11518_v17, %s8536_s20  ;;  %v5079_v33 = vpop.f32.mrb[55].mxu1  ;;  %v11524_v1 = vld [vmem:[#allocation3 + $0x19] sm:$0xff] }
 0x60c   : > { %v11526_v61 = vld [vmem:[#allocation3 + $0x20] sm:$0xff]  ;;  %5301 = vst.msk [vmem:[#allocation3 + $0x49] sm:$0xff] %vm5240_vm13, %v5212_v31  ;;  %v5080_v7 = vadd.f32 %v11504_v13, %v5079_v33  ;;  %5461 = vrot.lane.b32.xlu0 %v11524_v1, %s8536_s20  ;;  %v11534_v36 = vld [vmem:[#allocation3 + $0x18] sm:$0xff] }
 0x60d   : > { %5364 = vst.msk [vmem:[#allocation5 + $0x18] sm:$0xff] %vm5240_vm13, %v11526_v61  ;;  %v5215_v49 = vmax.f32 %v5085_v29, 0.0  ;;  %5363 = vst.msk [vmem:[#allocation5 + $0x10] sm:$0xff] %vm5240_vm13, %v11534_v36 }
 0x60e   : > { %v5214_v59 = vmax.f32 %v5080_v7, 0.0  ;;  %v8339_v39 = vpop.f32.mrb[56].mxu1  ;;  %v11538_v25 = vld [vmem:[#allocation3 + $0x39] sm:$0xff] }
 0x60f   : > { %5304 = vst.msk [vmem:[#allocation3 + $0x69] sm:$0xff] %vm5240_vm13, %v5215_v49  ;;  %v5095_v52 = vadd.f32 %v8339_v39, %v11504_v13  ;;  %5467 = vrot.lane.b32.xlu1 %v11538_v25, %s8536_s20  ;;  %v5089_v2 = vpop.f32.mrb[57].mxu1  ;;  %v11544_v32 = vld [vmem:[#allocation3 + $0x31] sm:$0xff] }
 0x610   : > { %v11546_v50 = vld [vmem:[#allocation3 + $0x38] sm:$0xff]  ;;  %5303 = vst.msk [vmem:[#allocation3 + $0x61] sm:$0xff] %vm5240_vm13, %v5214_v59  ;;  %v5090_v44 = vadd.f32 %v11504_v13, %v5089_v2  ;;  %5465 = vrot.lane.b32.xlu0 %v11544_v32, %s8536_s20  ;;  %v11554_v20 = vld [vmem:[#allocation3 + $0x30] sm:$0xff] }
 0x611   : > { %5366 = vst.msk [vmem:[#allocation5 + $0x28] sm:$0xff] %vm5240_vm13, %v11546_v50  ;;  %v5217_v6 = vmax.f32 %v5095_v52, 0.0  ;;  %5365 = vst.msk [vmem:[#allocation5 + $0x20] sm:$0xff] %vm5240_vm13, %v11554_v20 }
 0x612   : > { %v5216_v24 = vmax.f32 %v5090_v44, 0.0  ;;  %v8342_v41 = vpop.f32.mrb[58].mxu1  ;;  %v11558_v43 = vld [vmem:[#allocation3 + $0x51] sm:$0xff] }
 0x613   : > { %5306 = vst.msk [vmem:[#allocation3 + $0x81] sm:$0xff] %vm5240_vm13, %v5217_v6  ;;  %v5105_v42 = vadd.f32 %v8342_v41, %v11504_v13  ;;  %5471 = vrot.lane.b32.xlu1 %v11558_v43, %s8536_s20  ;;  %v5099_v23 = vpop.f32.mrb[59].mxu1  ;;  %v11564_v55 = vld [vmem:[#allocation3 + $0x49] sm:$0xff] }
 0x614   : > { %v11566_v45 = vld [vmem:[#allocation3 + $0x50] sm:$0xff]  ;;  %5305 = vst.msk [vmem:[#allocation3 + $0x79] sm:$0xff] %vm5240_vm13, %v5216_v24  ;;  %v5100_v21 = vadd.f32 %v11504_v13, %v5099_v23  ;;  %5469 = vrot.lane.b32.xlu0 %v11564_v55, %s8536_s20  ;;  %v11574_v56 = vld [vmem:[#allocation3 + $0x48] sm:$0xff] }
 0x615   : > { %5368 = vst.msk [vmem:[#allocation5 + $0x38] sm:$0xff] %vm5240_vm13, %v11566_v45  ;;  %v5219_v26 = vmax.f32 %v5105_v42, 0.0  ;;  %5367 = vst.msk [vmem:[#allocation5 + $0x30] sm:$0xff] %vm5240_vm13, %v11574_v56 }
 0x616   : > { %v5218_v4 = vmax.f32 %v5100_v21, 0.0  ;;  %v8345_v54 = vpop.f32.mrb[60].mxu1  ;;  %v11578_v46 = vld [vmem:[#allocation3 + $0x69] sm:$0xff] }
 0x617   : > { %5308 = vst.msk [vmem:[#allocation3 + $0x99] sm:$0xff] %vm5240_vm13, %v5219_v26  ;;  %v5115_v3 = vadd.f32 %v8345_v54, %v11504_v13  ;;  %5475 = vrot.lane.b32.xlu1 %v11578_v46, %s8536_s20  ;;  %v5109_v11 = vpop.f32.mrb[61].mxu1  ;;  %v11584_v51 = vld [vmem:[#allocation3 + $0x61] sm:$0xff] }
 0x618   : > { %v11586_v53 = vld [vmem:[#allocation3 + $0x68] sm:$0xff]  ;;  %5307 = vst.msk [vmem:[#allocation3 + $0x91] sm:$0xff] %vm5240_vm13, %v5218_v4  ;;  %v5110_v37 = vadd.f32 %v11504_v13, %v5109_v11  ;;  %5473 = vrot.lane.b32.xlu0 %v11584_v51, %s8536_s20  ;;  %v11594_v27 = vld [vmem:[#allocation3 + $0x60] sm:$0xff] }
 0x619   : > { %5370 = vst.msk [vmem:[#allocation5 + $0x48] sm:$0xff] %vm5240_vm13, %v11586_v53  ;;  %v5221_v31 = vmax.f32 %v5115_v3, 0.0  ;;  %5369 = vst.msk [vmem:[#allocation5 + $0x40] sm:$0xff] %vm5240_vm13, %v11594_v27  ;;  %v11818_v19 = vld [vmem:[#allocation3 + $0x62] sm:$0xff] }
 0x61a   : > { %v5220_v30 = vmax.f32 %v5110_v37, 0.0  ;;  %v8348_v29 = vpop.f32.mrb[62].mxu1  ;;  %v11598_v33 = vld [vmem:[#allocation3 + $0x81] sm:$0xff]  ;;  %13072 = vst [vmem:[#allocation53_spill] sm:$0xff] %v11818_v19 }
 0x61b   : > { %5310 = vst.msk [vmem:[#allocation3 + $0xb1] sm:$0xff] %vm5240_vm13, %v5221_v31  ;;  %v5125_v7 = vadd.f32 %v8348_v29, %v11504_v13  ;;  %5479 = vrot.lane.b32.xlu1 %v11598_v33, %s8536_s20  ;;  %v5119_v49 = vpop.f32.mrb[63].mxu1  ;;  %v11604_v59 = vld [vmem:[#allocation3 + $0x79] sm:$0xff]  ;;  %v11822_v0 = vld [vmem:[#allocation3 + $0x82] sm:$0xff] }
 0x61c   : > { %v11606_v39 = vld [vmem:[#allocation3 + $0x80] sm:$0xff]  ;;  %5309 = vst.msk [vmem:[#allocation3 + $0xa9] sm:$0xff] %vm5240_vm13, %v5220_v30  ;;  %v5120_v52 = vadd.f32 %v11504_v13, %v5119_v49  ;;  %5477 = vrot.lane.b32.xlu0 %v11604_v59, %s8536_s20  ;;  %v11614_v2 = vld [vmem:[#allocation3 + $0x78] sm:$0xff]  ;;  %13073 = vst [vmem:[#allocation65_spill] sm:$0xff] %v11822_v0 }
 0x61d   : > { %5372 = vst.msk [vmem:[#allocation5 + $0x58] sm:$0xff] %vm5240_vm13, %v11606_v39  ;;  %v5223_v44 = vmax.f32 %v5125_v7, 0.0  ;;  %5371 = vst.msk [vmem:[#allocation5 + $0x50] sm:$0xff] %vm5240_vm13, %v11614_v2  ;;  %v11826_v18 = vld [vmem:[#allocation3 + $0x7a] sm:$0xff] }
 0x61e   : > { %v5222_v6 = vmax.f32 %v5120_v52, 0.0  ;;  %v8351_v24 = vpop.f32.mrb[64].mxu1  ;;  %v11618_v41 = vld [vmem:[#allocation3 + $0x99] sm:$0xff]  ;;  %13074 = vst [vmem:[#allocation60_spill] sm:$0xff] %v11826_v18 }
 0x61f   : > { %5312 = vst.msk [vmem:[#allocation3 + $0xc9] sm:$0xff] %vm5240_vm13, %v5223_v44  ;;  %v5135_v42 = vadd.f32 %v8351_v24, %v11504_v13  ;;  %5483 = vrot.lane.b32.xlu1 %v11618_v41, %s8536_s20  ;;  %v5129_v23 = vpop.f32.mrb[65].mxu1  ;;  %v11624_v21 = vld [vmem:[#allocation3 + $0x91] sm:$0xff]  ;;  %v11830_v57 = vld [vmem:[#allocation3 + $0x9a] sm:$0xff] }
 0x620   : > { %v11626_v26 = vld [vmem:[#allocation3 + $0x98] sm:$0xff]  ;;  %5311 = vst.msk [vmem:[#allocation3 + $0xc1] sm:$0xff] %vm5240_vm13, %v5222_v6  ;;  %v5130_v4 = vadd.f32 %v11504_v13, %v5129_v23  ;;  %5481 = vrot.lane.b32.xlu0 %v11624_v21, %s8536_s20  ;;  %v11634_v54 = vld [vmem:[#allocation3 + $0x90] sm:$0xff]  ;;  %13075 = vst [vmem:[#allocation67_spill] sm:$0xff] %v11830_v57 }
 0x621   : > { %5374 = vst.msk [vmem:[#allocation5 + $0x68] sm:$0xff] %vm5240_vm13, %v11626_v26  ;;  %v5225_v3 = vmax.f32 %v5135_v42, 0.0  ;;  %5373 = vst.msk [vmem:[#allocation5 + $0x60] sm:$0xff] %vm5240_vm13, %v11634_v54  ;;  %v11834_v60 = vld [vmem:[#allocation3 + $0x92] sm:$0xff] }
 0x622   : > { %v5224_v11 = vmax.f32 %v5130_v4, 0.0  ;;  %v8354_v37 = vpop.f32.mrb[66].mxu1  ;;  %v11638_v31 = vld [vmem:[#allocation3 + $0xb1] sm:$0xff]  ;;  %13076 = vst [vmem:[#allocation36_spill] sm:$0xff] %v11834_v60 }
 0x623   : > { %5314 = vst.msk [vmem:[#allocation3 + $0xe1] sm:$0xff] %vm5240_vm13, %v5225_v3  ;;  %v5145_v30 = vadd.f32 %v8354_v37, %v11504_v13  ;;  %5487 = vrot.lane.b32.xlu1 %v11638_v31, %s8536_s20  ;;  %v5139_v29 = vpop.f32.mrb[67].mxu1  ;;  %v11644_v7 = vld [vmem:[#allocation3 + $0xa9] sm:$0xff] }
 0x624   : > { %v11646_v49 = vld [vmem:[#allocation3 + $0xb0] sm:$0xff]  ;;  %5313 = vst.msk [vmem:[#allocation3 + $0xd9] sm:$0xff] %vm5240_vm13, %v5224_v11  ;;  %v5140_v52 = vadd.f32 %v11504_v13, %v5139_v29  ;;  %5485 = vrot.lane.b32.xlu0 %v11644_v7, %s8536_s20  ;;  %v11654_v44 = vld [vmem:[#allocation3 + $0xa8] sm:$0xff] }
 0x625   : > { %5376 = vst.msk [vmem:[#allocation5 + $0x78] sm:$0xff] %vm5240_vm13, %v11646_v49  ;;  %v5227_v6 = vmax.f32 %v5145_v30, 0.0  ;;  %5375 = vst.msk [vmem:[#allocation5 + $0x70] sm:$0xff] %vm5240_vm13, %v11654_v44 }
 0x626   : > { %v5226_v24 = vmax.f32 %v5140_v52, 0.0  ;;  %v8357_v42 = vpop.f32.mrb[68].mxu1  ;;  %v11658_v23 = vld [vmem:[#allocation3 + $0xc9] sm:$0xff] }
 0x627   : > { %5316 = vst.msk [vmem:[#allocation3 + $0xf9] sm:$0xff] %vm5240_vm13, %v5227_v6  ;;  %v5155_v4 = vadd.f32 %v8357_v42, %v11504_v13  ;;  %5491 = vrot.lane.b32.xlu1 %v11658_v23, %s8536_s20  ;;  %v5149_v3 = vpop.f32.mrb[69].mxu1  ;;  %v11664_v11 = vld [vmem:[#allocation3 + $0xc1] sm:$0xff] }
 0x628   : > { %v11666_v37 = vld [vmem:[#allocation3 + $0xc8] sm:$0xff]  ;;  %5315 = vst.msk [vmem:[#allocation3 + $0xf1] sm:$0xff] %vm5240_vm13, %v5226_v24  ;;  %v5150_v30 = vadd.f32 %v11504_v13, %v5149_v3  ;;  %5489 = vrot.lane.b32.xlu0 %v11664_v11, %s8536_s20  ;;  %v11674_v29 = vld [vmem:[#allocation3 + $0xc0] sm:$0xff] }
 0x629   : > { %5378 = vst.msk [vmem:[#allocation5 + $0x88] sm:$0xff] %vm5240_vm13, %v11666_v37  ;;  %v5229_v52 = vmax.f32 %v5155_v4, 0.0  ;;  %5377 = vst.msk [vmem:[#allocation5 + $0x80] sm:$0xff] %vm5240_vm13, %v11674_v29 }
 0x62a   : > { %v5228_v6 = vmax.f32 %v5150_v30, 0.0  ;;  %v8360_v42 = vpop.f32.mrb[70].mxu1  ;;  %v11678_v62 = vld [vmem:[#allocation3 + $0xe1] sm:$0xff] }
 0x62b   : > { %5318 = vst.msk [vmem:[#allocation3 + $0x111] sm:$0xff] %vm5240_vm13, %v5229_v52  ;;  %v5165_v24 = vadd.f32 %v8360_v42, %v11504_v13  ;;  %5495 = vrot.lane.b32.xlu1 %v11678_v62, %s8536_s20  ;;  %v5159_v3 = vpop.f32.mrb[71].mxu1  ;;  %v11684_v12 = vld [vmem:[#allocation3 + $0xd9] sm:$0xff] }
 0x62c   : > { %v11686_v35 = vld [vmem:[#allocation3 + $0xe0] sm:$0xff]  ;;  %5317 = vst.msk [vmem:[#allocation3 + $0x109] sm:$0xff] %vm5240_vm13, %v5228_v6  ;;  %v5160_v4 = vadd.f32 %v11504_v13, %v5159_v3  ;;  %5493 = vrot.lane.b32.xlu0 %v11684_v12, %s8536_s20  ;;  %v11694_v30 = vld [vmem:[#allocation3 + $0xd8] sm:$0xff] }
 0x62d   : > { %5380 = vst.msk [vmem:[#allocation5 + $0x98] sm:$0xff] %vm5240_vm13, %v11686_v35  ;;  %v5231_v52 = vmax.f32 %v5165_v24, 0.0  ;;  %5379 = vst.msk [vmem:[#allocation5 + $0x90] sm:$0xff] %vm5240_vm13, %v11694_v30 }
 0x62e   : > { %v5230_v42 = vmax.f32 %v5160_v4, 0.0  ;;  %v8363_v14 = vpop.f32.mrb[72].mxu1  ;;  %v11698_v47 = vld [vmem:[#allocation3 + $0xf9] sm:$0xff] }
 0x62f   : > { %5320 = vst.msk [vmem:[#allocation3 + $0x129] sm:$0xff] %vm5240_vm13, %v5231_v52  ;;  %v5175_v6 = vadd.f32 %v8363_v14, %v11504_v13  ;;  %5499 = vrot.lane.b32.xlu1 %v11698_v47, %s8536_s20  ;;  %v5169_v3 = vpop.f32.mrb[73].mxu1  ;;  %v11704_v58 = vld [vmem:[#allocation3 + $0xf1] sm:$0xff] }
 0x630   : > { %v11706_v48 = vld [vmem:[#allocation3 + $0xf8] sm:$0xff]  ;;  %5319 = vst.msk [vmem:[#allocation3 + $0x121] sm:$0xff] %vm5240_vm13, %v5230_v42  ;;  %v5170_v24 = vadd.f32 %v11504_v13, %v5169_v3  ;;  %5497 = vrot.lane.b32.xlu0 %v11704_v58, %s8536_s20  ;;  %v11714_v4 = vld [vmem:[#allocation3 + $0xf0] sm:$0xff] }
 0x631   : > { %5382 = vst.msk [vmem:[#allocation5 + $0xa8] sm:$0xff] %vm5240_vm13, %v11706_v48  ;;  %v5233_v14 = vmax.f32 %v5175_v6, 0.0  ;;  %5381 = vst.msk [vmem:[#allocation5 + $0xa0] sm:$0xff] %vm5240_vm13, %v11714_v4 }
 0x632   : > { %v5232_v52 = vmax.f32 %v5170_v24, 0.0  ;;  %v8366_v40 = vpop.f32.mrb[74].mxu1  ;;  %v11718_v5 = vld [vmem:[#allocation3 + $0x111] sm:$0xff] }
 0x633   : > { %5322 = vst.msk [vmem:[#allocation3 + $0x141] sm:$0xff] %vm5240_vm13, %v5233_v14  ;;  %v5185_v42 = vadd.f32 %v8366_v40, %v11504_v13  ;;  %5503 = vrot.lane.b32.xlu1 %v11718_v5, %s8536_s20  ;;  %v5179_v3 = vpop.f32.mrb[75].mxu1  ;;  %v11724_v10 = vld [vmem:[#allocation3 + $0x109] sm:$0xff] }
 0x634   : > { %v11726_v16 = vld [vmem:[#allocation3 + $0x110] sm:$0xff]  ;;  %5321 = vst.msk [vmem:[#allocation3 + $0x139] sm:$0xff] %vm5240_vm13, %v5232_v52  ;;  %v5180_v6 = vadd.f32 %v11504_v13, %v5179_v3  ;;  %5501 = vrot.lane.b32.xlu0 %v11724_v10, %s8536_s20  ;;  %v11734_v24 = vld [vmem:[#allocation3 + $0x108] sm:$0xff] }
 0x635   : > { %5384 = vst.msk [vmem:[#allocation5 + $0xb8] sm:$0xff] %vm5240_vm13, %v11726_v16  ;;  %v5235_v40 = vmax.f32 %v5185_v42, 0.0  ;;  %5383 = vst.msk [vmem:[#allocation5 + $0xb0] sm:$0xff] %vm5240_vm13, %v11734_v24 }
 0x636   : > { %v5234_v14 = vmax.f32 %v5180_v6, 0.0  ;;  %v8369_v8 = vpop.f32.mrb[76].mxu1  ;;  %v5418_v15 = vld [vmem:[#allocation3 + $0x129] sm:$0xff] }
 0x637   : > { %5324 = vst.msk [vmem:[#allocation3 + $0x159] sm:$0xff] %vm5240_vm13, %v5235_v40  ;;  %v5195_v52 = vadd.f32 %v8369_v8, %v11504_v13  ;;  %5507 = vrot.lane.b32.xlu1 %v5418_v15, %s8536_s20  ;;  %v5189_v3 = vpop.f32.mrb[77].mxu1  ;;  %v5417_v34 = vld [vmem:[#allocation3 + $0x121] sm:$0xff] }
 0x638   : > { %v11741_v9 = vld [vmem:[#allocation3 + $0x128] sm:$0xff]  ;;  %5323 = vst.msk [vmem:[#allocation3 + $0x151] sm:$0xff] %vm5240_vm13, %v5234_v14  ;;  %v5190_v42 = vadd.f32 %v11504_v13, %v5189_v3  ;;  %5505 = vrot.lane.b32.xlu0 %v5417_v34, %s8536_s20  ;;  %v11748_v6 = vld [vmem:[#allocation3 + $0x120] sm:$0xff] }
 0x639   : > { %5386 = vst.msk [vmem:[#allocation5 + $0xc8] sm:$0xff] %vm5240_vm13, %v11741_v9  ;;  %v5237_v40 = vmax.f32 %v5195_v52, 0.0  ;;  %5385 = vst.msk [vmem:[#allocation5 + $0xc0] sm:$0xff] %vm5240_vm13, %v11748_v6 }
 0x63a   : > { %v5236_v15 = vmax.f32 %v5190_v42, 0.0  ;;  %v5420_v8 = vld [vmem:[#allocation3 + $0x141] sm:$0xff]  ;;  %v8372_v28 = vpop.f32.mrb[78].mxu1 }
 0x63b   : > { %5326 = vst.msk [vmem:[#allocation3 + $0x171] sm:$0xff] %vm5240_vm13, %v5237_v40  ;;  %5511 = vrot.lane.b32.xlu1 %v5420_v8, %s8536_s20  ;;  %v5419_v14 = vld [vmem:[#allocation3 + $0x139] sm:$0xff]  ;;  %v5205_v34 = vadd.f32 %v8372_v28, %v11504_v13  ;;  %v5199_v22 = vpop.f32.mrb[79].mxu1 }
 0x63c   : > { %v11754_v3 = vld [vmem:[#allocation3 + $0x140] sm:$0xff]  ;;  %5325 = vst.msk [vmem:[#allocation3 + $0x169] sm:$0xff] %vm5240_vm13, %v5236_v15  ;;  %5509 = vrot.lane.b32.xlu0 %v5419_v14, %s8536_s20  ;;  %v11761_v52 = vld [vmem:[#allocation3 + $0x138] sm:$0xff]  ;;  %v5200_v42 = vadd.f32 %v11504_v13, %v5199_v22 }
 0x63d   : > { %5388 = vst.msk [vmem:[#allocation5 + $0xd8] sm:$0xff] %vm5240_vm13, %v11754_v3  ;;  %5387 = vst.msk [vmem:[#allocation5 + $0xd0] sm:$0xff] %vm5240_vm13, %v11761_v52  ;;  %v5239_v40 = vmax.f32 %v5205_v34, 0.0  ;;  %v5587_v34 = vld [vmem:[#allocation3 + $0xa] sm:$0xff] }
 0x63e   : > { %v5422_v8 = vld [vmem:[#allocation3 + $0x159] sm:$0xff]  ;;  %v5238_v63 = vmax.f32 %v5200_v42, 0.0 }
 0x63f   : > { %5515 = vrot.lane.b32.xlu1 %v5422_v8, %s8536_s20  ;;  %v5421_v28 = vld [vmem:[#allocation3 + $0x151] sm:$0xff]  ;;  %5328 = vst.msk [vmem:[#allocation3 + $0x189] sm:$0xff] %vm5240_vm13, %v5239_v40  ;;  %v5586_v40 = vld [vmem:[#allocation3 + $0x2] sm:$0xff]  ;;  %v11794_v8 = vld [vmem:[#allocation3 + $0x1a] sm:$0xff] }
 0x640   : > { %v11767_v38 = vld [vmem:[#allocation3 + $0x158] sm:$0xff]  ;;  %5513 = vrot.lane.b32.xlu0 %v5421_v28, %s8536_s20  ;;  %v11773_v15 = vld [vmem:[#allocation3 + $0x150] sm:$0xff]  ;;  %5327 = vst.msk [vmem:[#allocation3 + $0x181] sm:$0xff] %vm5240_vm13, %v5238_v63  ;;  %v11790_v63 = vld [vmem:[#allocation3 + $0x22] sm:$0xff] }
 0x641   : > { %5390 = vst.msk [vmem:[#allocation5 + $0xe8] sm:$0xff] %vm5240_vm13, %v11767_v38  ;;  %5389 = vst.msk [vmem:[#allocation5 + $0xe0] sm:$0xff] %vm5240_vm13, %v11773_v15  ;;  %v11798_v28 = vld [vmem:[#allocation3 + $0x3a] sm:$0xff] }
 0x642   : > { %v5424_v22 = vld [vmem:[#allocation3 + $0x171] sm:$0xff] }
 0x643   : > { %5519 = vrot.lane.b32.xlu1 %v5424_v22, %s8536_s20  ;;  %v5423_v13 = vld [vmem:[#allocation3 + $0x169] sm:$0xff]  ;;  %v11802_v22 = vld [vmem:[#allocation3 + $0x32] sm:$0xff] }
 0x644   : > { %v11779_v14 = vld [vmem:[#allocation3 + $0x170] sm:$0xff]  ;;  %5517 = vrot.lane.b32.xlu0 %v5423_v13, %s8536_s20  ;;  %v11784_v42 = vld [vmem:[#allocation3 + $0x168] sm:$0xff] }
 0x645   : > { %5392 = vst.msk [vmem:[#allocation5 + $0xf8] sm:$0xff] %vm5240_vm13, %v11779_v14  ;;  %5391 = vst.msk [vmem:[#allocation5 + $0xf0] sm:$0xff] %vm5240_vm13, %v11784_v42  ;;  %v11806_v13 = vld [vmem:[#allocation3 + $0x52] sm:$0xff] }
 0x646   : > { %13069 = vst [vmem:[#allocation51_spill] sm:$0xff] %v11806_v13 }
 0x647   : > { %5652 = vrot.lane.b32.xlu1 %v5587_v34, %s8537_s19  ;;  %v11810_v34 = vld [vmem:[#allocation3 + $0x4a] sm:$0xff] }
 0x648   : > { %5650 = vrot.lane.b32.xlu0 %v5586_v40, %s8537_s19  ;;  %13070 = vst [vmem:[#allocation45_spill] sm:$0xff] %v11810_v34  ;;  %v11814_v40 = vld [vmem:[#allocation3 + $0x6a] sm:$0xff] }
 0x649   : > { %13071 = vst [vmem:[#allocation59_spill] sm:$0xff] %v11814_v40 }
 0x64b   : > { %5656 = vrot.lane.b32.xlu1 %v11790_v63, %s8537_s19 }
 0x64c   : > { %5654 = vrot.lane.b32.xlu0 %v11794_v8, %s8537_s19 }
 0x64f   : > { %5660 = vrot.lane.b32.xlu1 %v11798_v28, %s8537_s19 }
 0x650   : > { %5658 = vrot.lane.b32.xlu0 %v11802_v22, %s8537_s19 }
 0x653   : > { %5664 = vrot.lane.b32.xlu1 %v11806_v13, %s8537_s19  ;;  %v5605_v13 = vld [vmem:[#allocation3 + $0xe2] sm:$0xff] }
 0x654   : > { %5662 = vrot.lane.b32.xlu0 %v11810_v34, %s8537_s19  ;;  %v5607_v34 = vld [vmem:[#allocation3 + $0xfa] sm:$0xff] }
 0x657   : > { %5668 = vrot.lane.b32.xlu1 %v11814_v40, %s8537_s19  ;;  %v5601_v40 = vld [vmem:[#allocation3 + $0xb2] sm:$0xff] }
 0x658   : > { %5666 = vrot.lane.b32.xlu0 %v11818_v19, %s8537_s19  ;;  %v5600_v19 = vld [vmem:[#allocation3 + $0xaa] sm:$0xff] }
 0x65b   : > { %5672 = vrot.lane.b32.xlu1 %v11822_v0, %s8537_s19  ;;  %v5603_v0 = vld [vmem:[#allocation3 + $0xca] sm:$0xff] }
 0x65c   : > { %5670 = vrot.lane.b32.xlu0 %v11826_v18, %s8537_s19  ;;  %v5602_v18 = vld [vmem:[#allocation3 + $0xc2] sm:$0xff] }
 0x65f   : > { %5676 = vrot.lane.b32.xlu1 %v11830_v57, %s8537_s19  ;;  %v5604_v57 = vld [vmem:[#allocation3 + $0xda] sm:$0xff] }
 0x660   : > { %5674 = vrot.lane.b32.xlu0 %v11834_v60, %s8537_s19  ;;  %v5606_v60 = vld [vmem:[#allocation3 + $0xf2] sm:$0xff] }
 0x663   : > { %5680 = vrot.lane.b32.xlu1 %v5601_v40, %s8537_s19  ;;  %v5609_v40 = vld [vmem:[#allocation3 + $0x112] sm:$0xff] }
 0x664   : > { %5678 = vrot.lane.b32.xlu0 %v5600_v19, %s8537_s19  ;;  %v5608_v19 = vld [vmem:[#allocation3 + $0x10a] sm:$0xff] }
 0x667   : > { %5684 = vrot.lane.b32.xlu1 %v5603_v0, %s8537_s19  ;;  %v5611_v0 = vld [vmem:[#allocation3 + $0x12a] sm:$0xff] }
 0x668   : > { %5682 = vrot.lane.b32.xlu0 %v5602_v18, %s8537_s19  ;;  %v5610_v18 = vld [vmem:[#allocation3 + $0x122] sm:$0xff] }
 0x66b   : > { %5688 = vrot.lane.b32.xlu1 %v5605_v13, %s8537_s19  ;;  %v5613_v13 = vld [vmem:[#allocation3 + $0x142] sm:$0xff] }
 0x66c   : > { %5686 = vrot.lane.b32.xlu0 %v5604_v57, %s8537_s19  ;;  %v5612_v57 = vld [vmem:[#allocation3 + $0x13a] sm:$0xff] }
 0x66f   : > { %5692 = vrot.lane.b32.xlu1 %v5607_v34, %s8537_s19 }
 0x670   : > { %5690 = vrot.lane.b32.xlu0 %v5606_v60, %s8537_s19 }
 0x673   : > { %5696 = vrot.lane.b32.xlu1 %v5609_v40, %s8537_s19  ;;  %v5615_v40 = vld [vmem:[#allocation3 + $0x15a] sm:$0xff] }
 0x674   : > { %5694 = vrot.lane.b32.xlu0 %v5608_v19, %s8537_s19  ;;  %v5614_v19 = vld [vmem:[#allocation3 + $0x152] sm:$0xff] }
 0x677   : > { %5700 = vrot.lane.b32.xlu1 %v5611_v0, %s8537_s19 }
 0x678   : > { %5698 = vrot.lane.b32.xlu0 %v5610_v18, %s8537_s19 }
 0x67b   : > { %5704 = vrot.lane.b32.xlu1 %v5613_v13, %s8537_s19  ;;  %v5617_v13 = vld [vmem:[#allocation3 + $0x172] sm:$0xff] }
 0x67c   : > { %5702 = vrot.lane.b32.xlu0 %v5612_v57, %s8537_s19  ;;  %v5616_v57 = vld [vmem:[#allocation3 + $0x16a] sm:$0xff] }
 0x67d   : > { %v5464_v34 = vpop.permute.xlu1 %5463 }
 0x67e   : > { %5557 = vst.msk [vmem:[#allocation5 + $0x18] sm:$0xff] %vm5553_vm15, %v5464_v34  ;;  %v5462_v60 = vpop.permute.xlu0 %5461 }
 0x67f   : > { %5556 = vst.msk [vmem:[#allocation5 + $0x10] sm:$0xff] %vm5553_vm15, %v5462_v60  ;;  %5708 = vrot.lane.b32.xlu1 %v5615_v40, %s8537_s19 }
 0x680   : > { %5706 = vrot.lane.b32.xlu0 %v5614_v19, %s8537_s19 }
 0x681   : > { %v5468_v0 = vpop.permute.xlu1 %5467 }
 0x682   : > { %5559 = vst.msk [vmem:[#allocation5 + $0x28] sm:$0xff] %vm5553_vm15, %v5468_v0  ;;  %v5466_v18 = vpop.permute.xlu0 %5465 }
 0x683   : > { %5558 = vst.msk [vmem:[#allocation5 + $0x20] sm:$0xff] %vm5553_vm15, %v5466_v18  ;;  %5712 = vrot.lane.b32.xlu1 %v5617_v13, %s8537_s19 }
 0x684   : > { %5710 = vrot.lane.b32.xlu0 %v5616_v57, %s8537_s19 }
 0x685   : > { %v5472_v34 = vpop.permute.xlu1 %5471 }
 0x686   : > { %5561 = vst.msk [vmem:[#allocation5 + $0x38] sm:$0xff] %vm5553_vm15, %v5472_v34  ;;  %v5470_v60 = vpop.permute.xlu0 %5469 }
 0x687   : > { %5560 = vst.msk [vmem:[#allocation5 + $0x30] sm:$0xff] %vm5553_vm15, %v5470_v60  ;;  %5845 = vrot.lane.b32.xlu1 %v11526_v61, %s8538_s22 }
 0x688   : > { %5843 = vrot.lane.b32.xlu0 %v11534_v36, %s8538_s22 }
 0x689   : > { %v5476_v40 = vpop.permute.xlu1 %5475 }
 0x68a   : > { %5563 = vst.msk [vmem:[#allocation5 + $0x48] sm:$0xff] %vm5553_vm15, %v5476_v40  ;;  %v5474_v19 = vpop.permute.xlu0 %5473 }
 0x68b   : > { %5562 = vst.msk [vmem:[#allocation5 + $0x40] sm:$0xff] %vm5553_vm15, %v5474_v19  ;;  %5849 = vrot.lane.b32.xlu1 %v11546_v50, %s8538_s22 }
 0x68c   : > { %5847 = vrot.lane.b32.xlu0 %v11554_v20, %s8538_s22 }
 0x68d   : > { %v5480_v0 = vpop.permute.xlu1 %5479 }
 0x68e   : > { %5565 = vst.msk [vmem:[#allocation5 + $0x58] sm:$0xff] %vm5553_vm15, %v5480_v0  ;;  %v5478_v18 = vpop.permute.xlu0 %5477 }
 0x68f   : > { %5564 = vst.msk [vmem:[#allocation5 + $0x50] sm:$0xff] %vm5553_vm15, %v5478_v18  ;;  %5853 = vrot.lane.b32.xlu1 %v11566_v45, %s8538_s22 }
 0x690   : > { %5851 = vrot.lane.b32.xlu0 %v11574_v56, %s8538_s22 }
 0x691   : > { %v5484_v61 = vpop.permute.xlu1 %5483 }
 0x692   : > { %5567 = vst.msk [vmem:[#allocation5 + $0x68] sm:$0xff] %vm5553_vm15, %v5484_v61  ;;  %v5482_v36 = vpop.permute.xlu0 %5481 }
 0x693   : > { %5566 = vst.msk [vmem:[#allocation5 + $0x60] sm:$0xff] %vm5553_vm15, %v5482_v36  ;;  %5857 = vrot.lane.b32.xlu1 %v11586_v53, %s8538_s22 }
 0x694   : > { %5855 = vrot.lane.b32.xlu0 %v11594_v27, %s8538_s22 }
 0x695   : > { %v5488_v13 = vpop.permute.xlu1 %5487 }
 0x696   : > { %5569 = vst.msk [vmem:[#allocation5 + $0x78] sm:$0xff] %vm5553_vm15, %v5488_v13  ;;  %v5486_v57 = vpop.permute.xlu0 %5485 }
 0x697   : > { %5568 = vst.msk [vmem:[#allocation5 + $0x70] sm:$0xff] %vm5553_vm15, %v5486_v57  ;;  %5861 = vrot.lane.b32.xlu1 %v11606_v39, %s8538_s22 }
 0x698   : > { %5859 = vrot.lane.b32.xlu0 %v11614_v2, %s8538_s22 }
 0x699   : > { %v5492_v34 = vpop.permute.xlu1 %5491 }
 0x69a   : > { %5571 = vst.msk [vmem:[#allocation5 + $0x88] sm:$0xff] %vm5553_vm15, %v5492_v34  ;;  %v5490_v60 = vpop.permute.xlu0 %5489 }
 0x69b   : > { %5570 = vst.msk [vmem:[#allocation5 + $0x80] sm:$0xff] %vm5553_vm15, %v5490_v60  ;;  %5865 = vrot.lane.b32.xlu1 %v11626_v26, %s8538_s22 }
 0x69c   : > { %5863 = vrot.lane.b32.xlu0 %v11634_v54, %s8538_s22 }
 0x69d   : > { %v5496_v40 = vpop.permute.xlu1 %5495 }
 0x69e   : > { %5573 = vst.msk [vmem:[#allocation5 + $0x98] sm:$0xff] %vm5553_vm15, %v5496_v40  ;;  %v5494_v19 = vpop.permute.xlu0 %5493 }
 0x69f   : > { %5572 = vst.msk [vmem:[#allocation5 + $0x90] sm:$0xff] %vm5553_vm15, %v5494_v19  ;;  %5869 = vrot.lane.b32.xlu1 %v11646_v49, %s8538_s22 }
 0x6a0   : > { %5867 = vrot.lane.b32.xlu0 %v11654_v44, %s8538_s22 }
 0x6a1   : > { %v5500_v0 = vpop.permute.xlu1 %5499 }
 0x6a2   : > { %5575 = vst.msk [vmem:[#allocation5 + $0xa8] sm:$0xff] %vm5553_vm15, %v5500_v0  ;;  %v5498_v18 = vpop.permute.xlu0 %5497 }
 0x6a3   : > { %5574 = vst.msk [vmem:[#allocation5 + $0xa0] sm:$0xff] %vm5553_vm15, %v5498_v18  ;;  %5873 = vrot.lane.b32.xlu1 %v11666_v37, %s8538_s22 }
 0x6a4   : > { %5871 = vrot.lane.b32.xlu0 %v11674_v29, %s8538_s22 }
 0x6a5   : > { %v5504_v61 = vpop.permute.xlu1 %5503 }
 0x6a6   : > { %5577 = vst.msk [vmem:[#allocation5 + $0xb8] sm:$0xff] %vm5553_vm15, %v5504_v61  ;;  %v5502_v36 = vpop.permute.xlu0 %5501 }
 0x6a7   : > { %5576 = vst.msk [vmem:[#allocation5 + $0xb0] sm:$0xff] %vm5553_vm15, %v5502_v36  ;;  %5877 = vrot.lane.b32.xlu1 %v11686_v35, %s8538_s22 }
 0x6a8   : > { %5875 = vrot.lane.b32.xlu0 %v11694_v30, %s8538_s22 }
 0x6a9   : > { %v5508_v13 = vpop.permute.xlu1 %5507 }
 0x6aa   : > { %5579 = vst.msk [vmem:[#allocation5 + $0xc8] sm:$0xff] %vm5553_vm15, %v5508_v13  ;;  %v5506_v57 = vpop.permute.xlu0 %5505  ;;  %v5809_v13 = vld [vmem:[#allocation3 + $0x180] sm:$0xff] }
 0x6ab   : > { %5578 = vst.msk [vmem:[#allocation5 + $0xc0] sm:$0xff] %vm5553_vm15, %v5506_v57  ;;  %5881 = vrot.lane.b32.xlu1 %v11706_v48, %s8538_s22 }
 0x6ac   : > { %5879 = vrot.lane.b32.xlu0 %v11714_v4, %s8538_s22 }
 0x6ad   : > { %v5512_v34 = vpop.permute.xlu1 %5511 }
 0x6ae   : > { %5581 = vst.msk [vmem:[#allocation5 + $0xd8] sm:$0xff] %vm5553_vm15, %v5512_v34  ;;  %v5510_v60 = vpop.permute.xlu0 %5509 }
 0x6af   : > { %5580 = vst.msk [vmem:[#allocation5 + $0xd0] sm:$0xff] %vm5553_vm15, %v5510_v60  ;;  %5885 = vrot.lane.b32.xlu1 %v11726_v16, %s8538_s22 }
 0x6b0   : > { %5883 = vrot.lane.b32.xlu0 %v11734_v24, %s8538_s22 }
 0x6b1   : > { %v5516_v40 = vpop.permute.xlu1 %5515 }
 0x6b2   : > { %5583 = vst.msk [vmem:[#allocation5 + $0xe8] sm:$0xff] %vm5553_vm15, %v5516_v40  ;;  %v5514_v19 = vpop.permute.xlu0 %5513 }
 0x6b3   : > { %5582 = vst.msk [vmem:[#allocation5 + $0xe0] sm:$0xff] %vm5553_vm15, %v5514_v19  ;;  %5889 = vrot.lane.b32.xlu1 %v11741_v9, %s8538_s22  ;;  %v6553_v19 = vld [vmem:[#allocation3 + $0x39] sm:$0xff] }
 0x6b4   : > { %5887 = vrot.lane.b32.xlu0 %v11748_v6, %s8538_s22 }
 0x6b5   : > { %v5520_v0 = vpop.permute.xlu1 %5519 }
 0x6b6   : > { %5585 = vst.msk [vmem:[#allocation5 + $0xf8] sm:$0xff] %vm5553_vm15, %v5520_v0  ;;  %v5518_v18 = vpop.permute.xlu0 %5517 }
 0x6b7   : > { %5584 = vst.msk [vmem:[#allocation5 + $0xf0] sm:$0xff] %vm5553_vm15, %v5518_v18  ;;  %5893 = vrot.lane.b32.xlu1 %v11754_v3, %s8538_s22 }
 0x6b8   : > { %5891 = vrot.lane.b32.xlu0 %v11761_v52, %s8538_s22  ;;  %v5810_v52 = vld [vmem:[#allocation3 + $0x188] sm:$0xff] }
 0x6b9   : > { %v5653_v61 = vpop.permute.xlu1 %5652 }
 0x6ba   : > { %5748 = vst.msk [vmem:[#allocation5 + $0x8] sm:$0xff] %vm5746_vm0, %v5653_v61  ;;  %v5651_v9 = vpop.permute.xlu0 %5650 }
 0x6bb   : > { %5747 = vst.msk [vmem:[#allocation5] sm:$0xff] %vm5746_vm0, %v5651_v9  ;;  %5897 = vrot.lane.b32.xlu1 %v11767_v38, %s8538_s22 }
 0x6bc   : > { %5895 = vrot.lane.b32.xlu0 %v11773_v15, %s8538_s22 }
 0x6bd   : > { %v5657_v6 = vpop.permute.xlu1 %5656 }
 0x6be   : > { %5750 = vst.msk [vmem:[#allocation5 + $0x18] sm:$0xff] %vm5746_vm0, %v5657_v6  ;;  %v5655_v3 = vpop.permute.xlu0 %5654 }
 0x6bf   : > { %5749 = vst.msk [vmem:[#allocation5 + $0x10] sm:$0xff] %vm5746_vm0, %v5655_v3  ;;  %5901 = vrot.lane.b32.xlu1 %v11779_v14, %s8538_s22 }
 0x6c0   : > { %5899 = vrot.lane.b32.xlu0 %v11784_v42, %s8538_s22 }
 0x6c1   : > { %v5661_v36 = vpop.permute.xlu1 %5660 }
 0x6c2   : > { %5752 = vst.msk [vmem:[#allocation5 + $0x28] sm:$0xff] %vm5746_vm0, %v5661_v36  ;;  %v5659_v38 = vpop.permute.xlu0 %5658  ;;  %v6555_v36 = vld [vmem:[#allocation3 + $0x51] sm:$0xff] }
 0x6c3   : > { %5751 = vst.msk [vmem:[#allocation5 + $0x20] sm:$0xff] %vm5746_vm0, %v5659_v38  ;;  %5905 = vrot.lane.b32.xlu1 %v5810_v52, %s8538_s22 }
 0x6c4   : > { %5903 = vrot.lane.b32.xlu0 %v5809_v13, %s8538_s22 }
 0x6c5   : > { %v5665_v15 = vpop.permute.xlu1 %5664 }
 0x6c6   : > { %5754 = vst.msk [vmem:[#allocation5 + $0x38] sm:$0xff] %vm5746_vm0, %v5665_v15  ;;  %v5663_v57 = vpop.permute.xlu0 %5662 }
 0x6c7   : > { %5753 = vst.msk [vmem:[#allocation5 + $0x30] sm:$0xff] %vm5746_vm0, %v5663_v57  ;;  %6038 = vrot.lane.b32.xlu1 %v11518_v17, %s8528_s25  ;;  %v13078_v57 = vld [vmem:[#allocation51_spill] sm:$0xff] }
 0x6c8   : > { %6036 = vrot.lane.b32.xlu0 %v11524_v1, %s8528_s25 }
 0x6c9   : > { %v5669_v14 = vpop.permute.xlu1 %5668 }
 0x6ca   : > { %5756 = vst.msk [vmem:[#allocation5 + $0x48] sm:$0xff] %vm5746_vm0, %v5669_v14  ;;  %v5667_v42 = vpop.permute.xlu0 %5666 }
 0x6cb   : > { %5755 = vst.msk [vmem:[#allocation5 + $0x40] sm:$0xff] %vm5746_vm0, %v5667_v42  ;;  %6042 = vrot.lane.b32.xlu1 %v11538_v25, %s8528_s25 }
 0x6cc   : > { %6040 = vrot.lane.b32.xlu0 %v11544_v32, %s8528_s25 }
 0x6cd   : > { %v5673_v34 = vpop.permute.xlu1 %5672 }
 0x6ce   : > { %5758 = vst.msk [vmem:[#allocation5 + $0x58] sm:$0xff] %vm5746_vm0, %v5673_v34  ;;  %v5671_v60 = vpop.permute.xlu0 %5670 }
 0x6cf   : > { %5757 = vst.msk [vmem:[#allocation5 + $0x50] sm:$0xff] %vm5746_vm0, %v5671_v60  ;;  %6046 = vrot.lane.b32.xlu1 %v11558_v43, %s8528_s25 }
 0x6d0   : > { %6044 = vrot.lane.b32.xlu0 %v11564_v55, %s8528_s25 }
 0x6d1   : > { %v5677_v17 = vpop.permute.xlu1 %5676 }
 0x6d2   : > { %5760 = vst.msk [vmem:[#allocation5 + $0x68] sm:$0xff] %vm5746_vm0, %v5677_v17  ;;  %v5675_v1 = vpop.permute.xlu0 %5674  ;;  %v6557_v17 = vld [vmem:[#allocation3 + $0x69] sm:$0xff] }
 0x6d3   : > { %5759 = vst.msk [vmem:[#allocation5 + $0x60] sm:$0xff] %vm5746_vm0, %v5675_v1  ;;  %6050 = vrot.lane.b32.xlu1 %v11578_v46, %s8528_s25  ;;  %v6556_v1 = vld [vmem:[#allocation3 + $0x61] sm:$0xff] }
 0x6d4   : > { %6048 = vrot.lane.b32.xlu0 %v11584_v51, %s8528_s25 }
 0x6d5   : > { %v5681_v25 = vpop.permute.xlu1 %5680 }
 0x6d6   : > { %5762 = vst.msk [vmem:[#allocation5 + $0x78] sm:$0xff] %vm5746_vm0, %v5681_v25  ;;  %v5679_v32 = vpop.permute.xlu0 %5678 }
 0x6d7   : > { %5761 = vst.msk [vmem:[#allocation5 + $0x70] sm:$0xff] %vm5746_vm0, %v5679_v32  ;;  %6054 = vrot.lane.b32.xlu1 %v11598_v33, %s8528_s25 }
 0x6d8   : > { %6052 = vrot.lane.b32.xlu0 %v11604_v59, %s8528_s25 }
 0x6d9   : > { %v5685_v43 = vpop.permute.xlu1 %5684 }
 0x6da   : > { %5764 = vst.msk [vmem:[#allocation5 + $0x88] sm:$0xff] %vm5746_vm0, %v5685_v43  ;;  %v5683_v55 = vpop.permute.xlu0 %5682 }
 0x6db   : > { %5763 = vst.msk [vmem:[#allocation5 + $0x80] sm:$0xff] %vm5746_vm0, %v5683_v55  ;;  %6058 = vrot.lane.b32.xlu1 %v11618_v41, %s8528_s25  ;;  %v13080_v55 = vld [vmem:[#allocation59_spill] sm:$0xff] }
 0x6dc   : > { %6056 = vrot.lane.b32.xlu0 %v11624_v21, %s8528_s25 }
 0x6dd   : > { %v5689_v46 = vpop.permute.xlu1 %5688 }
 0x6de   : > { %5766 = vst.msk [vmem:[#allocation5 + $0x98] sm:$0xff] %vm5746_vm0, %v5689_v46  ;;  %v5687_v51 = vpop.permute.xlu0 %5686 }
 0x6df   : > { %5765 = vst.msk [vmem:[#allocation5 + $0x90] sm:$0xff] %vm5746_vm0, %v5687_v51  ;;  %6062 = vrot.lane.b32.xlu1 %v11638_v31, %s8528_s25 }
 0x6e0   : > { %6060 = vrot.lane.b32.xlu0 %v11644_v7, %s8528_s25 }
 0x6e1   : > { %v5693_v33 = vpop.permute.xlu1 %5692 }
 0x6e2   : > { %5768 = vst.msk [vmem:[#allocation5 + $0xa8] sm:$0xff] %vm5746_vm0, %v5693_v33  ;;  %v5691_v59 = vpop.permute.xlu0 %5690 }
 0x6e3   : > { %5767 = vst.msk [vmem:[#allocation5 + $0xa0] sm:$0xff] %vm5746_vm0, %v5691_v59  ;;  %6066 = vrot.lane.b32.xlu1 %v11658_v23, %s8528_s25 }
 0x6e4   : > { %6064 = vrot.lane.b32.xlu0 %v11664_v11, %s8528_s25 }
 0x6e5   : > { %v5697_v41 = vpop.permute.xlu1 %5696 }
 0x6e6   : > { %5770 = vst.msk [vmem:[#allocation5 + $0xb8] sm:$0xff] %vm5746_vm0, %v5697_v41  ;;  %v5695_v21 = vpop.permute.xlu0 %5694  ;;  %v6559_v41 = vld [vmem:[#allocation3 + $0x81] sm:$0xff] }
 0x6e7   : > { %5769 = vst.msk [vmem:[#allocation5 + $0xb0] sm:$0xff] %vm5746_vm0, %v5695_v21  ;;  %6070 = vrot.lane.b32.xlu1 %v11678_v62, %s8528_s25  ;;  %v6558_v21 = vld [vmem:[#allocation3 + $0x79] sm:$0xff] }
 0x6e8   : > { %6068 = vrot.lane.b32.xlu0 %v11684_v12, %s8528_s25 }
 0x6e9   : > { %v5701_v31 = vpop.permute.xlu1 %5700 }
 0x6ea   : > { %5772 = vst.msk [vmem:[#allocation5 + $0xc8] sm:$0xff] %vm5746_vm0, %v5701_v31  ;;  %v5699_v7 = vpop.permute.xlu0 %5698 }
 0x6eb   : > { %5771 = vst.msk [vmem:[#allocation5 + $0xc0] sm:$0xff] %vm5746_vm0, %v5699_v7  ;;  %6074 = vrot.lane.b32.xlu1 %v11698_v47, %s8528_s25  ;;  %v6971_v47 = vld [vmem:[%s12849_s9 + $0x8] sm:$0xff] }
 0x6ec   : > { %6072 = vrot.lane.b32.xlu0 %v11704_v58, %s8528_s25 }
 0x6ed   : > { %v5705_v23 = vpop.permute.xlu1 %5704 }
 0x6ee   : > { %5774 = vst.msk [vmem:[#allocation5 + $0xd8] sm:$0xff] %vm5746_vm0, %v5705_v23  ;;  %v5703_v11 = vpop.permute.xlu0 %5702 }
 0x6ef   : > { %5773 = vst.msk [vmem:[#allocation5 + $0xd0] sm:$0xff] %vm5746_vm0, %v5703_v11  ;;  %6078 = vrot.lane.b32.xlu1 %v11718_v5, %s8528_s25  ;;  %v13082_v11 = vld [vmem:[#allocation65_spill] sm:$0xff] }
 0x6f0   : > { %6076 = vrot.lane.b32.xlu0 %v11724_v10, %s8528_s25  ;;  %v6970_v10 = vld [vmem:[%s12849_s9] sm:$0xff] }
 0x6f1   : > { %v5709_v12 = vpop.permute.xlu1 %5708 }
 0x6f2   : > { %5776 = vst.msk [vmem:[#allocation5 + $0xe8] sm:$0xff] %vm5746_vm0, %v5709_v12  ;;  %v5707_v62 = vpop.permute.xlu0 %5706 }
 0x6f3   : > { %5775 = vst.msk [vmem:[#allocation5 + $0xe0] sm:$0xff] %vm5746_vm0, %v5707_v62  ;;  %6231 = vrot.lane.b32.xlu1 %v11790_v63, %s8539_s23 }
 0x6f4   : > { %6229 = vrot.lane.b32.xlu0 %v11794_v8, %s8539_s23  ;;  %v8459_v8 = vpack.c.bf16 %v6971_v47, %v6970_v10  ;;  %v6561_v10 = vld [vmem:[#allocation3 + $0x99] sm:$0xff]  ;;  %v6560_v47 = vld [vmem:[#allocation3 + $0x91] sm:$0xff] }
 0x6f5   : > { %v5713_v58 = vpop.permute.xlu1 %5712 }
 0x6f6   : > { %5778 = vst.msk [vmem:[#allocation5 + $0xf8] sm:$0xff] %vm5746_vm0, %v5713_v58  ;;  %v5711_v5 = vpop.permute.xlu0 %5710  ;;  %8460 = vmatprep.subr.bf16.mxu0 %v8459_v8 }
 0x6f7   : > { %5777 = vst.msk [vmem:[#allocation5 + $0xf0] sm:$0xff] %vm5746_vm0, %v5711_v5  ;;  %6425 = vrot.lane.b32.xlu1 %v11546_v50, %s8540_s29  ;;  %v6552_v50 = vld [vmem:[#allocation3 + $0x31] sm:$0xff]  ;;  %8462 = vmatpush3.bf16.msra.mxu0 %v8459_v8 }
 0x6f8   : > { %6423 = vrot.lane.b32.xlu0 %v11554_v20, %s8540_s29  ;;  %v6972_v20 = vld [vmem:[%s12849_s9 + $0x10] sm:$0x3] }
 0x6f9   : > { %v5846_v63 = vpop.permute.xlu1 %5845  ;;  %8377 = vmatprep.subr.msk.mxu0 %vm7077_vm3, %v6972_v20 }
 0x6fa   : > { %5941 = vst.msk [vmem:[#allocation5 + $0x8] sm:$0xff] %vm5939_vm2, %v5846_v63  ;;  %v5844_v40 = vpop.permute.xlu0 %5843 }
 0x6fb   : > { %5940 = vst.msk [vmem:[#allocation5] sm:$0xff] %vm5939_vm2, %v5844_v40  ;;  %6618 = vrot.lane.b32.xlu1 %v6553_v19, %s8541_s13  ;;  %8378 = vmatpush3.msk.msra.mxu0 %vm7077_vm3, %v6972_v20  ;;  %v13084_v19 = vld [vmem:[#allocation67_spill] sm:$0xff] }
 0x6fc   : > { %6616 = vrot.lane.b32.xlu0 %v6552_v50, %s8541_s13  ;;  %v6754_v50 = vld [vmem:[#allocation3 + $0x9a] sm:$0xff] }
 0x6fd   : > { %v5850_v0 = vpop.permute.xlu1 %5849 }
 0x6fe   : > { %5943 = vst.msk [vmem:[#allocation5 + $0x18] sm:$0xff] %vm5939_vm2, %v5850_v0  ;;  %v5848_v18 = vpop.permute.xlu0 %5847 }
 0x6ff   : > { %5942 = vst.msk [vmem:[#allocation5 + $0x10] sm:$0xff] %vm5939_vm2, %v5848_v18  ;;  %6233 = vrot.lane.b32.xlu1 %v11802_v22, %s8539_s23 }
 0x700   : > { %6809 = vrot.lane.b32.xlu0 %v11802_v22, %s8529_s26 }
 0x701   : > { %v5854_v61 = vpop.permute.xlu1 %5853 }
 0x702   : > { %5945 = vst.msk [vmem:[#allocation5 + $0x28] sm:$0xff] %vm5939_vm2, %v5854_v61  ;;  %v5852_v9 = vpop.permute.xlu0 %5851 }
 0x703   : > { %5944 = vst.msk [vmem:[#allocation5 + $0x20] sm:$0xff] %vm5939_vm2, %v5852_v9  ;;  %6235 = vrot.lane.b32.xlu1 %v11798_v28, %s8539_s23  ;;  %v6563_v9 = vld [vmem:[#allocation3 + $0xb1] sm:$0xff] }
 0x704   : > { %6811 = vrot.lane.b32.xlu0 %v11798_v28, %s8529_s26  ;;  %v6554_v28 = vld [vmem:[#allocation3 + $0x49] sm:$0xff] }
 0x705   : > { %v5858_v6 = vpop.permute.xlu1 %5857 }
 0x706   : > { %5947 = vst.msk [vmem:[#allocation5 + $0x38] sm:$0xff] %vm5939_vm2, %v5858_v6  ;;  %v5856_v3 = vpop.permute.xlu0 %5855  ;;  %v6562_v6 = vld [vmem:[#allocation3 + $0xa9] sm:$0xff] }
 0x707   : > { %5946 = vst.msk [vmem:[#allocation5 + $0x30] sm:$0xff] %vm5939_vm2, %v5856_v3  ;;  %6429 = vrot.lane.b32.xlu1 %v11566_v45, %s8540_s29  ;;  %v13077_v45 = vld [vmem:[#allocation45_spill] sm:$0xff] }
 0x708   : > { %6427 = vrot.lane.b32.xlu0 %v11574_v56, %s8540_s29 }
 0x709   : > { %v5862_v22 = vpop.permute.xlu1 %5861 }
 0x70a   : > { %5949 = vst.msk [vmem:[#allocation5 + $0x48] sm:$0xff] %vm5939_vm2, %v5862_v22  ;;  %v5860_v52 = vpop.permute.xlu0 %5859 }
 0x70b   : > { %5948 = vst.msk [vmem:[#allocation5 + $0x40] sm:$0xff] %vm5939_vm2, %v5860_v52  ;;  %6622 = vrot.lane.b32.xlu1 %v6555_v36, %s8541_s13  ;;  %v6178_v36 = vld [vmem:[#allocation3 + $0xb2] sm:$0xff] }
 0x70c   : > { %6620 = vrot.lane.b32.xlu0 %v6554_v28, %s8541_s13 }
 0x70d   : > { %v5866_v13 = vpop.permute.xlu1 %5865 }
 0x70e   : > { %5951 = vst.msk [vmem:[#allocation5 + $0x58] sm:$0xff] %vm5939_vm2, %v5866_v13  ;;  %v5864_v38 = vpop.permute.xlu0 %5863 }
 0x70f   : > { %5950 = vst.msk [vmem:[#allocation5 + $0x50] sm:$0xff] %vm5939_vm2, %v5864_v38  ;;  %6237 = vrot.lane.b32.xlu1 %v13077_v45, %s8539_s23 }
 0x710   : > { %6813 = vrot.lane.b32.xlu0 %v13077_v45, %s8529_s26 }
 0x711   : > { %v5870_v56 = vpop.permute.xlu1 %5869 }
 0x712   : > { %5953 = vst.msk [vmem:[#allocation5 + $0x68] sm:$0xff] %vm5939_vm2, %v5870_v56  ;;  %v5868_v15 = vpop.permute.xlu0 %5867  ;;  %v6565_v56 = vld [vmem:[#allocation3 + $0xc9] sm:$0xff] }
 0x713   : > { %5952 = vst.msk [vmem:[#allocation5 + $0x60] sm:$0xff] %vm5939_vm2, %v5868_v15  ;;  %6239 = vrot.lane.b32.xlu1 %v13078_v57, %s8539_s23  ;;  %v6564_v15 = vld [vmem:[#allocation3 + $0xc1] sm:$0xff] }
 0x714   : > { %6815 = vrot.lane.b32.xlu0 %v13078_v57, %s8529_s26 }
 0x715   : > { %v5874_v14 = vpop.permute.xlu1 %5873 }
 0x716   : > { %5955 = vst.msk [vmem:[#allocation5 + $0x78] sm:$0xff] %vm5939_vm2, %v5874_v14  ;;  %v5872_v42 = vpop.permute.xlu0 %5871 }
 0x717   : > { %5954 = vst.msk [vmem:[#allocation5 + $0x70] sm:$0xff] %vm5939_vm2, %v5872_v42  ;;  %6433 = vrot.lane.b32.xlu1 %v11586_v53, %s8540_s29  ;;  %v13079_v53 = vld [vmem:[#allocation53_spill] sm:$0xff] }
 0x718   : > { %6431 = vrot.lane.b32.xlu0 %v11594_v27, %s8540_s29 }
 0x719   : > { %v5878_v34 = vpop.permute.xlu1 %5877 }
 0x71a   : > { %5957 = vst.msk [vmem:[#allocation5 + $0x88] sm:$0xff] %vm5939_vm2, %v5878_v34  ;;  %v5876_v60 = vpop.permute.xlu0 %5875  ;;  %v6180_v34 = vld [vmem:[#allocation3 + $0xca] sm:$0xff] }
 0x71b   : > { %5956 = vst.msk [vmem:[#allocation5 + $0x80] sm:$0xff] %vm5939_vm2, %v5876_v60  ;;  %6626 = vrot.lane.b32.xlu1 %v6557_v17, %s8541_s13 }
 0x71c   : > { %6624 = vrot.lane.b32.xlu0 %v6556_v1, %s8541_s13 }
 0x71d   : > { %v5882_v25 = vpop.permute.xlu1 %5881 }
 0x71e   : > { %5959 = vst.msk [vmem:[#allocation5 + $0x98] sm:$0xff] %vm5939_vm2, %v5882_v25  ;;  %v5880_v32 = vpop.permute.xlu0 %5879 }
 0x71f   : > { %5958 = vst.msk [vmem:[#allocation5 + $0x90] sm:$0xff] %vm5939_vm2, %v5880_v32  ;;  %6241 = vrot.lane.b32.xlu1 %v13079_v53, %s8539_s23  ;;  %v6567_v32 = vld [vmem:[#allocation3 + $0xe1] sm:$0xff] }
 0x720   : > { %6817 = vrot.lane.b32.xlu0 %v13079_v53, %s8529_s26  ;;  %v6566_v53 = vld [vmem:[#allocation3 + $0xd9] sm:$0xff] }
 0x721   : > { %v5886_v27 = vpop.permute.xlu1 %5885 }
 0x722   : > { %5961 = vst.msk [vmem:[#allocation5 + $0xa8] sm:$0xff] %vm5939_vm2, %v5886_v27  ;;  %v5884_v43 = vpop.permute.xlu0 %5883 }
 0x723   : > { %5960 = vst.msk [vmem:[#allocation5 + $0xa0] sm:$0xff] %vm5939_vm2, %v5884_v43  ;;  %6243 = vrot.lane.b32.xlu1 %v13080_v55, %s8539_s23  ;;  %v6181_v43 = vld [vmem:[#allocation3 + $0xda] sm:$0xff] }
 0x724   : > { %6819 = vrot.lane.b32.xlu0 %v13080_v55, %s8529_s26 }
 0x725   : > { %v5890_v46 = vpop.permute.xlu1 %5889 }
 0x726   : > { %5963 = vst.msk [vmem:[#allocation5 + $0xb8] sm:$0xff] %vm5939_vm2, %v5890_v46  ;;  %v5888_v51 = vpop.permute.xlu0 %5887  ;;  %v6182_v46 = vld [vmem:[#allocation3 + $0xe2] sm:$0xff] }
 0x727   : > { %5962 = vst.msk [vmem:[#allocation5 + $0xb0] sm:$0xff] %vm5939_vm2, %v5888_v51  ;;  %6437 = vrot.lane.b32.xlu1 %v11606_v39, %s8540_s29  ;;  %v13081_v39 = vld [vmem:[#allocation60_spill] sm:$0xff] }
 0x728   : > { %6435 = vrot.lane.b32.xlu0 %v11614_v2, %s8540_s29 }
 0x729   : > { %v5894_v33 = vpop.permute.xlu1 %5893 }
 0x72a   : > { %5965 = vst.msk [vmem:[#allocation5 + $0xc8] sm:$0xff] %vm5939_vm2, %v5894_v33  ;;  %v5892_v59 = vpop.permute.xlu0 %5891 }
 0x72b   : > { %5964 = vst.msk [vmem:[#allocation5 + $0xc0] sm:$0xff] %vm5939_vm2, %v5892_v59  ;;  %6630 = vrot.lane.b32.xlu1 %v6559_v41, %s8541_s13 }
 0x72c   : > { %6628 = vrot.lane.b32.xlu0 %v6558_v21, %s8541_s13  ;;  %v6569_v21 = vld [vmem:[#allocation3 + $0xf9] sm:$0xff] }
 0x72d   : > { %v5898_v31 = vpop.permute.xlu1 %5897 }
 0x72e   : > { %5967 = vst.msk [vmem:[#allocation5 + $0xd8] sm:$0xff] %vm5939_vm2, %v5898_v31  ;;  %v5896_v7 = vpop.permute.xlu0 %5895 }
 0x72f   : > { %5966 = vst.msk [vmem:[#allocation5 + $0xd0] sm:$0xff] %vm5939_vm2, %v5896_v7  ;;  %6245 = vrot.lane.b32.xlu1 %v13081_v39, %s8539_s23  ;;  %v6568_v7 = vld [vmem:[#allocation3 + $0xf1] sm:$0xff] }
 0x730   : > { %6821 = vrot.lane.b32.xlu0 %v13081_v39, %s8529_s26  ;;  %v6183_v39 = vld [vmem:[#allocation3 + $0xf2] sm:$0xff] }
 0x731   : > { %v5902_v2 = vpop.permute.xlu1 %5901 }
 0x732   : > { %5969 = vst.msk [vmem:[#allocation5 + $0xe8] sm:$0xff] %vm5939_vm2, %v5902_v2  ;;  %v5900_v23 = vpop.permute.xlu0 %5899 }
 0x733   : > { %5968 = vst.msk [vmem:[#allocation5 + $0xe0] sm:$0xff] %vm5939_vm2, %v5900_v23  ;;  %6247 = vrot.lane.b32.xlu1 %v13082_v11, %s8539_s23 }
 0x734   : > { %6823 = vrot.lane.b32.xlu0 %v13082_v11, %s8529_s26 }
 0x735   : > { %v5906_v12 = vpop.permute.xlu1 %5905 }
 0x736   : > { %5971 = vst.msk [vmem:[#allocation5 + $0xf8] sm:$0xff] %vm5939_vm2, %v5906_v12  ;;  %v5904_v62 = vpop.permute.xlu0 %5903  ;;  %v6184_v12 = vld [vmem:[#allocation3 + $0xfa] sm:$0xff] }
 0x737   : > { %5970 = vst.msk [vmem:[#allocation5 + $0xf0] sm:$0xff] %vm5939_vm2, %v5904_v62  ;;  %6441 = vrot.lane.b32.xlu1 %v11626_v26, %s8540_s29 }
 0x738   : > { %6439 = vrot.lane.b32.xlu0 %v11634_v54, %s8540_s29  ;;  %v13083_v54 = vld [vmem:[#allocation36_spill] sm:$0xff] }
 0x739   : > { %v6039_v58 = vpop.permute.xlu1 %6038 }
 0x73a   : > { %6134 = vst.msk [vmem:[#allocation5 + $0x8] sm:$0xff] %vm6132_vm4, %v6039_v58  ;;  %v6037_v5 = vpop.permute.xlu0 %6036 }
 0x73b   : > { %6133 = vst.msk [vmem:[#allocation5] sm:$0xff] %vm6132_vm4, %v6037_v5  ;;  %6634 = vrot.lane.b32.xlu1 %v6561_v10, %s8541_s13 }
 0x73c   : > { %6632 = vrot.lane.b32.xlu0 %v6560_v47, %s8541_s13  ;;  %v6571_v47 = vld [vmem:[#allocation3 + $0x111] sm:$0xff] }
 0x73d   : > { %v6043_v63 = vpop.permute.xlu1 %6042 }
 0x73e   : > { %6136 = vst.msk [vmem:[#allocation5 + $0x18] sm:$0xff] %vm6132_vm4, %v6043_v63  ;;  %v6041_v26 = vpop.permute.xlu0 %6040 }
 0x73f   : > { %6135 = vst.msk [vmem:[#allocation5 + $0x10] sm:$0xff] %vm6132_vm4, %v6041_v26  ;;  %6249 = vrot.lane.b32.xlu1 %v13083_v54, %s8539_s23  ;;  %v6570_v26 = vld [vmem:[#allocation3 + $0x109] sm:$0xff] }
 0x740   : > { %6825 = vrot.lane.b32.xlu0 %v13083_v54, %s8529_s26 }
 0x741   : > { %v6047_v8 = vpop.permute.xlu1 %6046 }
 0x742   : > { %6138 = vst.msk [vmem:[#allocation5 + $0x28] sm:$0xff] %vm6132_vm4, %v6047_v8  ;;  %v6045_v40 = vpop.permute.xlu0 %6044 }
 0x743   : > { %6137 = vst.msk [vmem:[#allocation5 + $0x20] sm:$0xff] %vm6132_vm4, %v6045_v40  ;;  %6251 = vrot.lane.b32.xlu1 %v13084_v19, %s8539_s23 }
 0x744   : > { %6827 = vrot.lane.b32.xlu0 %v6754_v50, %s8529_s26  ;;  %v6186_v50 = vld [vmem:[#allocation3 + $0x112] sm:$0xff] }
 0x745   : > { %v6051_v20 = vpop.permute.xlu1 %6050 }
 0x746   : > { %6140 = vst.msk [vmem:[#allocation5 + $0x38] sm:$0xff] %vm6132_vm4, %v6051_v20  ;;  %v6049_v0 = vpop.permute.xlu0 %6048 }
 0x747   : > { %6139 = vst.msk [vmem:[#allocation5 + $0x30] sm:$0xff] %vm6132_vm4, %v6049_v0  ;;  %6445 = vrot.lane.b32.xlu1 %v11646_v49, %s8540_s29  ;;  %v6177_v49 = vld [vmem:[#allocation3 + $0xaa] sm:$0xff] }
 0x748   : > { %6443 = vrot.lane.b32.xlu0 %v11654_v44, %s8540_s29 }
 0x749   : > { %v6055_v18 = vpop.permute.xlu1 %6054 }
 0x74a   : > { %6142 = vst.msk [vmem:[#allocation5 + $0x48] sm:$0xff] %vm6132_vm4, %v6055_v18  ;;  %v6053_v61 = vpop.permute.xlu0 %6052  ;;  %v6380_v18 = vld [vmem:[#allocation3 + $0x128] sm:$0xff] }
 0x74b   : > { %6141 = vst.msk [vmem:[#allocation5 + $0x40] sm:$0xff] %vm6132_vm4, %v6053_v61  ;;  %6638 = vrot.lane.b32.xlu1 %v6563_v9, %s8541_s13  ;;  %v6379_v61 = vld [vmem:[#allocation3 + $0x120] sm:$0xff] }
 0x74c   : > { %6636 = vrot.lane.b32.xlu0 %v6562_v6, %s8541_s13 }
 0x74d   : > { %v6059_v3 = vpop.permute.xlu1 %6058 }
 0x74e   : > { %6144 = vst.msk [vmem:[#allocation5 + $0x58] sm:$0xff] %vm6132_vm4, %v6059_v3  ;;  %v6057_v22 = vpop.permute.xlu0 %6056  ;;  %v5994_v3 = vld [vmem:[#allocation3 + $0x121] sm:$0xff] }
 0x74f   : > { %6143 = vst.msk [vmem:[#allocation5 + $0x50] sm:$0xff] %vm6132_vm4, %v6057_v22  ;;  %6253 = vrot.lane.b32.xlu1 %v6177_v49, %s8539_s23 }
 0x750   : > { %6829 = vrot.lane.b32.xlu0 %v6177_v49, %s8529_s26 }
 0x751   : > { %v6063_v44 = vpop.permute.xlu1 %6062 }
 0x752   : > { %6146 = vst.msk [vmem:[#allocation5 + $0x68] sm:$0xff] %vm6132_vm4, %v6063_v44  ;;  %v6061_v52 = vpop.permute.xlu0 %6060 }
 0x753   : > { %6145 = vst.msk [vmem:[#allocation5 + $0x60] sm:$0xff] %vm6132_vm4, %v6061_v52  ;;  %6255 = vrot.lane.b32.xlu1 %v6178_v36, %s8539_s23  ;;  %v6765_v52 = vld [vmem:[#allocation3 + $0x122] sm:$0xff] }
 0x754   : > { %6831 = vrot.lane.b32.xlu0 %v6178_v36, %s8529_s26 }
 0x755   : > { %v6067_v28 = vpop.permute.xlu1 %6066 }
 0x756   : > { %6148 = vst.msk [vmem:[#allocation5 + $0x78] sm:$0xff] %vm6132_vm4, %v6067_v28  ;;  %v6065_v13 = vpop.permute.xlu0 %6064  ;;  %v6573_v28 = vld [vmem:[#allocation3 + $0x129] sm:$0xff] }
 0x757   : > { %6147 = vst.msk [vmem:[#allocation5 + $0x70] sm:$0xff] %vm6132_vm4, %v6065_v13  ;;  %6449 = vrot.lane.b32.xlu1 %v11666_v37, %s8540_s29  ;;  %v6179_v37 = vld [vmem:[#allocation3 + $0xc2] sm:$0xff] }
 0x758   : > { %6447 = vrot.lane.b32.xlu0 %v11674_v29, %s8540_s29 }
 0x759   : > { %v6071_v38 = vpop.permute.xlu1 %6070 }
 0x75a   : > { %6150 = vst.msk [vmem:[#allocation5 + $0x88] sm:$0xff] %vm6132_vm4, %v6071_v38  ;;  %v6069_v45 = vpop.permute.xlu0 %6068 }
 0x75b   : > { %6149 = vst.msk [vmem:[#allocation5 + $0x80] sm:$0xff] %vm6132_vm4, %v6069_v45  ;;  %6642 = vrot.lane.b32.xlu1 %v6565_v56, %s8541_s13 }
 0x75c   : > { %6640 = vrot.lane.b32.xlu0 %v6564_v15, %s8541_s13  ;;  %v6188_v15 = vld [vmem:[#allocation3 + $0x12a] sm:$0xff] }
 0x75d   : > { %v6075_v57 = vpop.permute.xlu1 %6074 }
 0x75e   : > { %6152 = vst.msk [vmem:[#allocation5 + $0x98] sm:$0xff] %vm6132_vm4, %v6075_v57  ;;  %v6073_v14 = vpop.permute.xlu0 %6072 }
 0x75f   : > { %6151 = vst.msk [vmem:[#allocation5 + $0x90] sm:$0xff] %vm6132_vm4, %v6073_v14  ;;  %6257 = vrot.lane.b32.xlu1 %v6179_v37, %s8539_s23 }
 0x760   : > { %6833 = vrot.lane.b32.xlu0 %v6179_v37, %s8529_s26  ;;  %v6382_v37 = vld [vmem:[#allocation3 + $0x140] sm:$0xff] }
 0x761   : > { %v6079_v29 = vpop.permute.xlu1 %6078 }
 0x762   : > { %6154 = vst.msk [vmem:[#allocation5 + $0xa8] sm:$0xff] %vm6132_vm4, %v6079_v29  ;;  %v6077_v42 = vpop.permute.xlu0 %6076 }
 0x763   : > { %6153 = vst.msk [vmem:[#allocation5 + $0xa0] sm:$0xff] %vm6132_vm4, %v6077_v42  ;;  %6259 = vrot.lane.b32.xlu1 %v6180_v34, %s8539_s23  ;;  %v6381_v42 = vld [vmem:[#allocation3 + $0x138] sm:$0xff] }
 0x764   : > { %6835 = vrot.lane.b32.xlu0 %v6180_v34, %s8529_s26 }
 0x765   : > { %v6232_v60 = vpop.permute.xlu1 %6231 }
 0x766   : > { %6327 = vst.msk [vmem:[#allocation5 + $0x8] sm:$0xff] %vm6325_vm5, %v6232_v60  ;;  %v6230_v17 = vpop.permute.xlu0 %6229 }
 0x767   : > { %6326 = vst.msk [vmem:[#allocation5] sm:$0xff] %vm6325_vm5, %v6230_v17  ;;  %6453 = vrot.lane.b32.xlu1 %v11686_v35, %s8540_s29  ;;  %v5996_v17 = vld [vmem:[#allocation3 + $0x139] sm:$0xff] }
 0x768   : > { %6451 = vrot.lane.b32.xlu0 %v11694_v30, %s8540_s29 }
 0x769   : > { %v6426_v1 = vpop.permute.xlu1 %6425 }
 0x76a   : > { %6521 = vst.msk [vmem:[#allocation5 + $0x8] sm:$0xff] %vm6519_vm6, %v6426_v1  ;;  %v6424_v25 = vpop.permute.xlu0 %6423 }
 0x76b   : > { %6520 = vst.msk [vmem:[#allocation5] sm:$0xff] %vm6519_vm6, %v6424_v25  ;;  %6646 = vrot.lane.b32.xlu1 %v6567_v32, %s8541_s13 }
 0x76c   : > { %6644 = vrot.lane.b32.xlu0 %v6566_v53, %s8541_s13  ;;  %v6767_v53 = vld [vmem:[#allocation3 + $0x13a] sm:$0xff] }
 0x76d   : > { %v6619_v27 = vpop.permute.xlu1 %6618 }
 0x76e   : > { %6714 = vst.msk [vmem:[#allocation5 + $0x8] sm:$0xff] %vm6712_vm7, %v6619_v27  ;;  %v6617_v35 = vpop.permute.xlu0 %6616  ;;  %v6575_v27 = vld [vmem:[#allocation3 + $0x141] sm:$0xff] }
 0x76f   : > { %6713 = vst.msk [vmem:[#allocation5] sm:$0xff] %vm6712_vm7, %v6617_v35  ;;  %6261 = vrot.lane.b32.xlu1 %v6181_v43, %s8539_s23 }
 0x770   : > { %6837 = vrot.lane.b32.xlu0 %v6181_v43, %s8529_s26 }
 0x771   : > { %v6234_v30 = vpop.permute.xlu1 %6233 }
 0x772   : > { %6328 = vst.msk [vmem:[#allocation5 + $0x10] sm:$0xff] %vm6325_vm5, %v6234_v30  ;;  %v6810_v55 = vpop.permute.xlu0 %6809 }
 0x773   : > { %6906 = vst.msk [vmem:[#allocation5] sm:$0xff] %vm6905_vm8, %v6810_v55  ;;  %6263 = vrot.lane.b32.xlu1 %v6182_v46, %s8539_s23 }
 0x774   : > { %6839 = vrot.lane.b32.xlu0 %v6182_v46, %s8529_s26  ;;  %v6190_v46 = vld [vmem:[#allocation3 + $0x142] sm:$0xff] }
 0x775   : > { %v6236_v51 = vpop.permute.xlu1 %6235 }
 0x776   : > { %6329 = vst.msk [vmem:[#allocation5 + $0x18] sm:$0xff] %vm6325_vm5, %v6236_v51  ;;  %v6812_v33 = vpop.permute.xlu0 %6811 }
 0x777   : > { %6907 = vst.msk [vmem:[#allocation5 + $0x8] sm:$0xff] %vm6905_vm8, %v6812_v33  ;;  %6457 = vrot.lane.b32.xlu1 %v11706_v48, %s8540_s29 }
 0x778   : > { %6455 = vrot.lane.b32.xlu0 %v11714_v4, %s8540_s29 }
 0x779   : > { %v6430_v59 = vpop.permute.xlu1 %6429 }
 0x77a   : > { %6523 = vst.msk [vmem:[#allocation5 + $0x18] sm:$0xff] %vm6519_vm6, %v6430_v59  ;;  %v6428_v41 = vpop.permute.xlu0 %6427  ;;  %v6938_v31 = vld [vmem:[#allocation5] sm:$0xff] }
 0x77b   : > { %6522 = vst.msk [vmem:[#allocation5 + $0x10] sm:$0xff] %vm6519_vm6, %v6428_v41  ;;  %6650 = vrot.lane.b32.xlu1 %v6569_v21, %s8541_s13  ;;  %8379 = vmatprep.mubr.msk.f32.mxu0 %vm6980_vm9, %v6938_v31  ;;  %v6384_v41 = vld [vmem:[#allocation3 + $0x158] sm:$0xff]  ;;  %v6383_v31 = vld [vmem:[#allocation3 + $0x150] sm:$0xff] }
 0x77c   : > { %6648 = vrot.lane.b32.xlu0 %v6568_v7, %s8541_s13 }
 0x77d   : > { %v6623_v48 = vpop.permute.xlu1 %6622 }
 0x77e   : > { %6716 = vst.msk [vmem:[#allocation5 + $0x18] sm:$0xff] %vm6712_vm7, %v6623_v48  ;;  %v6621_v4 = vpop.permute.xlu0 %6620  ;;  %v6939_v2 = vld [vmem:[#allocation5 + $0x8] sm:$0xff] }
 0x77f   : > { %6715 = vst.msk [vmem:[#allocation5 + $0x10] sm:$0xff] %vm6712_vm7, %v6621_v4  ;;  %6265 = vrot.lane.b32.xlu1 %v6183_v39, %s8539_s23  ;;  %8380 = vmatmul.mubr.msk.f32.vlgmr.msra.gmra.mrb[48].mxu0 %vm6980_vm9, %v6939_v2  ;;  %v5998_v4 = vld [vmem:[#allocation3 + $0x151] sm:$0xff] }
 0x780   : > { %6841 = vrot.lane.b32.xlu0 %v6183_v39, %s8529_s26 }
 0x781   : > { %v6238_v23 = vpop.permute.xlu1 %6237 }
 0x782   : > { %6330 = vst.msk [vmem:[#allocation5 + $0x20] sm:$0xff] %vm6325_vm5, %v6238_v23  ;;  %v6814_v11 = vpop.permute.xlu0 %6813  ;;  %v6769_v23 = vld [vmem:[#allocation3 + $0x152] sm:$0xff] }
 0x783   : > { %6908 = vst.msk [vmem:[#allocation5 + $0x10] sm:$0xff] %vm6905_vm8, %v6814_v11  ;;  %6267 = vrot.lane.b32.xlu1 %v6184_v12, %s8539_s23  ;;  %v6577_v11 = vld [vmem:[#allocation3 + $0x159] sm:$0xff] }
 0x784   : > { %6843 = vrot.lane.b32.xlu0 %v6184_v12, %s8529_s26 }
 0x785   : > { %v6240_v62 = vpop.permute.xlu1 %6239 }
 0x786   : > { %6331 = vst.msk [vmem:[#allocation5 + $0x28] sm:$0xff] %vm6325_vm5, %v6240_v62  ;;  %v6816_v58 = vpop.permute.xlu0 %6815 }
 0x787   : > { %6909 = vst.msk [vmem:[#allocation5 + $0x18] sm:$0xff] %vm6905_vm8, %v6816_v58  ;;  %6461 = vrot.lane.b32.xlu1 %v11726_v16, %s8540_s29 }
 0x788   : > { %6459 = vrot.lane.b32.xlu0 %v11734_v24, %s8540_s29  ;;  %v6185_v24 = vld [vmem:[#allocation3 + $0x10a] sm:$0xff] }
 0x789   : > { %v6434_v5 = vpop.permute.xlu1 %6433 }
 0x78a   : > { %6525 = vst.msk [vmem:[#allocation5 + $0x28] sm:$0xff] %vm6519_vm6, %v6434_v5  ;;  %v6432_v10 = vpop.permute.xlu0 %6431  ;;  %v6940_v63 = vld [vmem:[#allocation5 + $0x10] sm:$0xff] }
 0x78b   : > { %6524 = vst.msk [vmem:[#allocation5 + $0x20] sm:$0xff] %vm6519_vm6, %v6432_v10  ;;  %6654 = vrot.lane.b32.xlu1 %v6571_v47, %s8541_s13  ;;  %8382 = vmatprep.mubr.msk.f32.mxu0 %vm6980_vm9, %v6940_v63  ;;  %v6192_v47 = vld [vmem:[#allocation3 + $0x15a] sm:$0xff] }
 0x78c   : > { %6652 = vrot.lane.b32.xlu0 %v6570_v26, %s8541_s13 }
 0x78d   : > { %v6627_v54 = vpop.permute.xlu1 %6626 }
 0x78e   : > { %6718 = vst.msk [vmem:[#allocation5 + $0x28] sm:$0xff] %vm6712_vm7, %v6627_v54  ;;  %v6625_v16 = vpop.permute.xlu0 %6624  ;;  %v6941_v8 = vld [vmem:[#allocation5 + $0x18] sm:$0xff] }
 0x78f   : > { %6717 = vst.msk [vmem:[#allocation5 + $0x20] sm:$0xff] %vm6712_vm7, %v6625_v16  ;;  %6269 = vrot.lane.b32.xlu1 %v6185_v24, %s8539_s23  ;;  %8383 = vmatmul.mubr.msk.f32.gmra.mrb[50].mxu0 %vm6980_vm9, %v6941_v8  ;;  %v6386_v16 = vld [vmem:[#allocation3 + $0x170] sm:$0xff] }
 0x790   : > { %6845 = vrot.lane.b32.xlu0 %v6185_v24, %s8529_s26  ;;  %v6385_v24 = vld [vmem:[#allocation3 + $0x168] sm:$0xff] }
 0x791   : > { %v6242_v40 = vpop.permute.xlu1 %6241 }
 0x792   : > { %6332 = vst.msk [vmem:[#allocation5 + $0x30] sm:$0xff] %vm6325_vm5, %v6242_v40  ;;  %v6818_v19 = vpop.permute.xlu0 %6817 }
 0x793   : > { %6910 = vst.msk [vmem:[#allocation5 + $0x20] sm:$0xff] %vm6905_vm8, %v6818_v19  ;;  %6271 = vrot.lane.b32.xlu1 %v6186_v50, %s8539_s23  ;;  %v6000_v19 = vld [vmem:[#allocation3 + $0x169] sm:$0xff] }
 0x794   : > { %6847 = vrot.lane.b32.xlu0 %v6186_v50, %s8529_s26 }
 0x795   : > { %v6244_v20 = vpop.permute.xlu1 %6243 }
 0x796   : > { %6333 = vst.msk [vmem:[#allocation5 + $0x38] sm:$0xff] %vm6325_vm5, %v6244_v20  ;;  %v6820_v0 = vpop.permute.xlu0 %6819 }
 0x797   : > { %6911 = vst.msk [vmem:[#allocation5 + $0x28] sm:$0xff] %vm6905_vm8, %v6820_v0  ;;  %6465 = vrot.lane.b32.xlu1 %v6380_v18, %s8540_s29  ;;  %v6771_v0 = vld [vmem:[#allocation3 + $0x16a] sm:$0xff] }
 0x798   : > { %6463 = vrot.lane.b32.xlu0 %v6379_v61, %s8540_s29  ;;  %v6579_v61 = vld [vmem:[#allocation3 + $0x171] sm:$0xff] }
 0x799   : > { %v6438_v9 = vpop.permute.xlu1 %6437 }
 0x79a   : > { %6527 = vst.msk [vmem:[#allocation5 + $0x38] sm:$0xff] %vm6519_vm6, %v6438_v9  ;;  %v6436_v6 = vpop.permute.xlu0 %6435  ;;  %v6942_v22 = vld [vmem:[#allocation5 + $0x20] sm:$0xff] }
 0x79b   : > { %6526 = vst.msk [vmem:[#allocation5 + $0x30] sm:$0xff] %vm6519_vm6, %v6436_v6  ;;  %6080 = vrot.lane.b32.xlu1 %v5994_v3, %s8528_s25  ;;  %8385 = vmatprep.mubr.msk.f32.mxu0 %vm6980_vm9, %v6942_v22 }
 0x79c   : > { %6656 = vrot.lane.b32.xlu0 %v5994_v3, %s8541_s13 }
 0x79d   : > { %v6631_v49 = vpop.permute.xlu1 %6630 }
 0x79e   : > { %6720 = vst.msk [vmem:[#allocation5 + $0x38] sm:$0xff] %vm6712_vm7, %v6631_v49  ;;  %v6629_v44 = vpop.permute.xlu0 %6628  ;;  %v6943_v36 = vld [vmem:[#allocation5 + $0x28] sm:$0xff] }
 0x79f   : > { %6719 = vst.msk [vmem:[#allocation5 + $0x30] sm:$0xff] %vm6712_vm7, %v6629_v44  ;;  %6849 = vrot.lane.b32.xlu1 %v6765_v52, %s8529_s26  ;;  %8386 = vmatmul.mubr.msk.f32.gmra.mrb[52].mxu0 %vm6980_vm9, %v6943_v36  ;;  %v6194_v44 = vld [vmem:[#allocation3 + $0x172] sm:$0xff] }
 0x7a0   : > { %6658 = vrot.lane.b32.xlu0 %v6573_v28, %s8541_s13 }
 0x7a1   : > { %v6246_v13 = vpop.permute.xlu1 %6245 }
 0x7a2   : > { %6334 = vst.msk [vmem:[#allocation5 + $0x40] sm:$0xff] %vm6325_vm5, %v6246_v13  ;;  %v6822_v38 = vpop.permute.xlu0 %6821  ;;  %v6387_v13 = vld [vmem:[#allocation3 + $0x180] sm:$0xff] }
 0x7a3   : > { %6912 = vst.msk [vmem:[#allocation5 + $0x30] sm:$0xff] %vm6905_vm8, %v6822_v38  ;;  %6273 = vrot.lane.b32.xlu1 %v6765_v52, %s8539_s23 }
 0x7a4   : > { %6082 = vrot.lane.b32.xlu0 %v6573_v28, %s8528_s25  ;;  %v6388_v28 = vld [vmem:[#allocation3 + $0x188] sm:$0xff] }
 0x7a5   : > { %v6248_v45 = vpop.permute.xlu1 %6247 }
 0x7a6   : > { %6335 = vst.msk [vmem:[#allocation5 + $0x48] sm:$0xff] %vm6325_vm5, %v6248_v45  ;;  %v6824_v56 = vpop.permute.xlu0 %6823 }
 0x7a7   : > { %6913 = vst.msk [vmem:[#allocation5 + $0x38] sm:$0xff] %vm6905_vm8, %v6824_v56  ;;  %6275 = vrot.lane.b32.xlu1 %v6188_v15, %s8539_s23  ;;  %v6002_v56 = vld [vmem:[#allocation3 + $0x181] sm:$0xff] }
 0x7a8   : > { %6851 = vrot.lane.b32.xlu0 %v6188_v15, %s8529_s26 }
 0x7a9   : > { %v6442_v57 = vpop.permute.xlu1 %6441 }
 0x7aa   : > { %6529 = vst.msk [vmem:[#allocation5 + $0x48] sm:$0xff] %vm6519_vm6, %v6442_v57  ;;  %v6440_v14 = vpop.permute.xlu0 %6439  ;;  %v6944_v29 = vld [vmem:[#allocation5 + $0x30] sm:$0xff] }
 0x7ab   : > { %6528 = vst.msk [vmem:[#allocation5 + $0x40] sm:$0xff] %vm6519_vm6, %v6440_v14  ;;  %6469 = vrot.lane.b32.xlu1 %v6382_v37, %s8540_s29  ;;  %8388 = vmatprep.mubr.msk.f32.mxu0 %vm6980_vm9, %v6944_v29  ;;  %v6773_v37 = vld [vmem:[#allocation3 + $0x182] sm:$0xff] }
 0x7ac   : > { %6467 = vrot.lane.b32.xlu0 %v6381_v42, %s8540_s29  ;;  %v6581_v42 = vld [vmem:[#allocation3 + $0x189] sm:$0xff] }
 0x7ad   : > { %v6635_v34 = vpop.permute.xlu1 %6634 }
 0x7ae   : > { %6722 = vst.msk [vmem:[#allocation5 + $0x48] sm:$0xff] %vm6712_vm7, %v6635_v34  ;;  %v6633_v60 = vpop.permute.xlu0 %6632  ;;  %v6945_v1 = vld [vmem:[#allocation5 + $0x38] sm:$0xff] }
 0x7af   : > { %6721 = vst.msk [vmem:[#allocation5 + $0x40] sm:$0xff] %vm6712_vm7, %v6633_v60  ;;  %6084 = vrot.lane.b32.xlu1 %v5996_v17, %s8528_s25  ;;  %8389 = vmatmul.mubr.msk.f32.gmra.mrb[54].mxu0 %vm6980_vm9, %v6945_v1 }
 0x7b0   : > { %6660 = vrot.lane.b32.xlu0 %v5996_v17, %s8541_s13 }
 0x7b1   : > { %v6250_v25 = vpop.permute.xlu1 %6249 }
 0x7b2   : > { %6336 = vst.msk [vmem:[#allocation5 + $0x50] sm:$0xff] %vm6325_vm5, %v6250_v25  ;;  %v6826_v32 = vpop.permute.xlu0 %6825  ;;  %v6196_v25 = vld [vmem:[#allocation3 + $0x18a] sm:$0xff] }
 0x7b3   : > { %6914 = vst.msk [vmem:[#allocation5 + $0x40] sm:$0xff] %vm6905_vm8, %v6826_v32  ;;  %6853 = vrot.lane.b32.xlu1 %v6767_v53, %s8529_s26  ;;  %v6390_v32 = vld [vmem:[#allocation3 + $0x1a0] sm:$0xff] }
 0x7b4   : > { %6662 = vrot.lane.b32.xlu0 %v6575_v27, %s8541_s13 }
 0x7b5   : > { %v6252_v35 = vpop.permute.xlu1 %6251 }
 0x7b6   : > { %6337 = vst.msk [vmem:[#allocation5 + $0x58] sm:$0xff] %vm6325_vm5, %v6252_v35  ;;  %v6828_v43 = vpop.permute.xlu0 %6827  ;;  %v6389_v35 = vld [vmem:[#allocation3 + $0x198] sm:$0xff] }
 0x7b7   : > { %6915 = vst.msk [vmem:[#allocation5 + $0x48] sm:$0xff] %vm6905_vm8, %v6828_v43  ;;  %6277 = vrot.lane.b32.xlu1 %v6767_v53, %s8539_s23  ;;  %v7339_v53 = vld [vmem:[%s8625_s24 + $0x8] sm:$0xff] }
 0x7b8   : > { %6086 = vrot.lane.b32.xlu0 %v6575_v27, %s8528_s25  ;;  %7371 = vst.msk [vmem:[%s12351_s30 + $0x8] sm:$0xff] %vm427_vm1, %v7339_v53 }
 0x7b9   : > { %v6446_v30 = vpop.permute.xlu1 %6445 }
 0x7ba   : > { %6531 = vst.msk [vmem:[#allocation5 + $0x58] sm:$0xff] %vm6519_vm6, %v6446_v30  ;;  %v6444_v55 = vpop.permute.xlu0 %6443  ;;  %v6946_v51 = vld [vmem:[#allocation5 + $0x40] sm:$0xff] }
 0x7bb   : > { %6530 = vst.msk [vmem:[#allocation5 + $0x50] sm:$0xff] %vm6519_vm6, %v6444_v55  ;;  %6279 = vrot.lane.b32.xlu1 %v6190_v46, %s8539_s23  ;;  %8391 = vmatprep.mubr.msk.f32.mxu0 %vm6980_vm9, %v6946_v51  ;;  %v7338_v55 = vld [vmem:[%s8625_s24] sm:$0xff]  ;;  %v6583_v51 = vld [vmem:[#allocation3 + $0x1a1] sm:$0xff] }
 0x7bc   : > { %6855 = vrot.lane.b32.xlu0 %v6190_v46, %s8529_s26  ;;  %7370 = vst.msk [vmem:[%s12351_s30] sm:$0xff] %vm427_vm1, %v7338_v55  ;;  %v7341_v46 = vld [vmem:[%s8625_s24 + $0x18] sm:$0xff]  ;;  %v7350_v55 = vld [vmem:[%s8625_s24 + $0x60] sm:$0xff] }
 0x7bd   : > { %v6639_v33 = vpop.permute.xlu1 %6638  ;;  %7373 = vst.msk [vmem:[%s12351_s30 + $0x18] sm:$0xff] %vm427_vm1, %v7341_v46  ;;  %7382 = vst.msk [vmem:[%s12351_s30 + $0x60] sm:$0xff] %vm427_vm1, %v7350_v55 }
 0x7be   : > { %6724 = vst.msk [vmem:[#allocation5 + $0x58] sm:$0xff] %vm6712_vm7, %v6639_v33  ;;  %v6637_v59 = vpop.permute.xlu0 %6636  ;;  %v6947_v21 = vld [vmem:[#allocation5 + $0x48] sm:$0xff] }
 0x7bf   : > { %6723 = vst.msk [vmem:[#allocation5 + $0x50] sm:$0xff] %vm6712_vm7, %v6637_v59  ;;  %6473 = vrot.lane.b32.xlu1 %v6384_v41, %s8540_s29  ;;  %8392 = vmatmul.mubr.msk.f32.gmra.mrb[56].mxu0 %vm6980_vm9, %v6947_v21  ;;  %v6582_v59 = vld [vmem:[#allocation3 + $0x199] sm:$0xff]  ;;  %v12374_v41 = vld [vmem:[%s12844_s4] ss:$0 sm:$0xff] }
 0x7c0   : > { %6471 = vrot.lane.b32.xlu0 %v6383_v31, %s8540_s29 }
 0x7c1   : > { %v6254_v7 = vpop.permute.xlu1 %6253 }
 0x7c2   : > { %6338 = vst.msk [vmem:[#allocation5 + $0x60] sm:$0xff] %vm6325_vm5, %v6254_v7  ;;  %v6830_v48 = vpop.permute.xlu0 %6829  ;;  %v7340_v7 = vld [vmem:[%s8625_s24 + $0x10] sm:$0xff] }
 0x7c3   : > { %6916 = vst.msk [vmem:[#allocation5 + $0x50] sm:$0xff] %vm6905_vm8, %v6830_v48  ;;  %6088 = vrot.lane.b32.xlu1 %v5998_v4, %s8528_s25  ;;  %v6776_v48 = vld [vmem:[#allocation3 + $0x1a2] sm:$0xff] }
 0x7c4   : > { %6664 = vrot.lane.b32.xlu0 %v5998_v4, %s8541_s13  ;;  %7372 = vst.msk [vmem:[%s12351_s30 + $0x10] sm:$0xff] %vm427_vm1, %v7340_v7  ;;  %v7343_v4 = vld [vmem:[%s8625_s24 + $0x28] sm:$0xff] }
 0x7c5   : > { %v6256_v39 = vpop.permute.xlu1 %6255  ;;  %7375 = vst.msk [vmem:[%s12351_s30 + $0x28] sm:$0xff] %vm427_vm1, %v7343_v4  ;;  %v7355_v7 = vld [vmem:[%s8625_s24 + $0x88] sm:$0xff]  ;;  %v13097_v4 = vld [vmem:[#allocation50_spill] sm:$0xff] }
 0x7c6   : > { %6339 = vst.msk [vmem:[#allocation5 + $0x68] sm:$0xff] %vm6325_vm5, %v6256_v39  ;;  %v6832_v2 = vpop.permute.xlu0 %6831  ;;  %v13085_v39 = vld [vmem:[#allocation25_spill] sm:$0xff] }
 0x7c7   : > { %6917 = vst.msk [vmem:[#allocation5 + $0x58] sm:$0xff] %vm6905_vm8, %v6832_v2  ;;  %6857 = vrot.lane.b32.xlu1 %v6769_v23, %s8529_s26  ;;  %v2700_v2 = vadd.f32 %v13085_v39, %v12374_v41  ;;  %v2760_v39 = vadd.f32 %v13097_v4, %v12374_v41  ;;  %v13109_v4 = vld [vmem:[#allocation56_spill] sm:$0xff] }
 0x7c8   : > { %6666 = vrot.lane.b32.xlu0 %v6577_v11, %s8541_s13  ;;  %7387 = vst.msk [vmem:[%s12351_s30 + $0x88] sm:$0xff] %vm427_vm1, %v7355_v7  ;;  %v7367_v7 = vld [vmem:[%s8625_s24 + $0xe8] sm:$0xff] }
 0x7c9   : > { %v6450_v12 = vpop.permute.xlu1 %6449  ;;  %7399 = vst.msk [vmem:[%s12351_s30 + $0xe8] sm:$0xff] %vm427_vm1, %v7367_v7 }
 0x7ca   : > { %6533 = vst.msk [vmem:[#allocation5 + $0x68] sm:$0xff] %vm6519_vm6, %v6450_v12  ;;  %v6448_v62 = vpop.permute.xlu0 %6447  ;;  %v6948_v58 = vld [vmem:[#allocation5 + $0x50] sm:$0xff]  ;;  %v13086_v12 = vld [vmem:[#allocation26_spill] sm:$0xff] }
 0x7cb   : > { %6532 = vst.msk [vmem:[#allocation5 + $0x60] sm:$0xff] %vm6519_vm6, %v6448_v62  ;;  %6281 = vrot.lane.b32.xlu1 %v6769_v23, %s8539_s23  ;;  %8394 = vmatprep.mubr.msk.f32.mxu0 %vm6980_vm9, %v6948_v58  ;;  %v2695_v62 = vadd.f32 %v12374_v41, %v13086_v12  ;;  %v13098_v12 = vld [vmem:[#allocation37_spill] sm:$0xff] }
 0x7cc   : > { %6090 = vrot.lane.b32.xlu0 %v6577_v11, %s8528_s25  ;;  %v6775_v11 = vld [vmem:[#allocation3 + $0x19a] sm:$0xff] }
 0x7cd   : > { %v6643_v5 = vpop.permute.xlu1 %6642 }
 0x7ce   : > { %6726 = vst.msk [vmem:[#allocation5 + $0x68] sm:$0xff] %vm6712_vm7, %v6643_v5  ;;  %v6641_v10 = vpop.permute.xlu0 %6640  ;;  %v6949_v63 = vld [vmem:[#allocation5 + $0x58] sm:$0xff]  ;;  %v2854_v5 = vmax.f32 %v2700_v2, 0.0 }
 0x7cf   : > { %6725 = vst.msk [vmem:[#allocation5 + $0x60] sm:$0xff] %vm6712_vm7, %v6641_v10  ;;  %6283 = vrot.lane.b32.xlu1 %v6192_v47, %s8539_s23  ;;  %8395 = vmatmul.mubr.msk.f32.gmra.mrb[58].mxu0 %vm6980_vm9, %v6949_v63  ;;  %v13087_v10 = vld [vmem:[#allocation30_spill] sm:$0xff] }
 0x7d0   : > { %6859 = vrot.lane.b32.xlu0 %v6192_v47, %s8529_s26  ;;  %v2710_v47 = vadd.f32 %v13087_v10, %v12374_v41  ;;  %v7357_v10 = vld [vmem:[%s8625_s24 + $0x98] sm:$0xff] }
 0x7d1   : > { %v6258_v26 = vpop.permute.xlu1 %6257  ;;  %7389 = vst.msk [vmem:[%s12351_s30 + $0x98] sm:$0xff] %vm427_vm1, %v7357_v10 }
 0x7d2   : > { %6340 = vst.msk [vmem:[#allocation5 + $0x70] sm:$0xff] %vm6325_vm5, %v6258_v26  ;;  %v6834_v54 = vpop.permute.xlu0 %6833  ;;  %v7342_v26 = vld [vmem:[%s8625_s24 + $0x20] sm:$0xff] }
 0x7d3   : > { %6918 = vst.msk [vmem:[#allocation5 + $0x60] sm:$0xff] %vm6905_vm8, %v6834_v54  ;;  %6477 = vrot.lane.b32.xlu1 %v6386_v16, %s8540_s29  ;;  %v2853_v54 = vmax.f32 %v2695_v62, 0.0  ;;  %v13088_v16 = vld [vmem:[#allocation6_spill] sm:$0xff]  ;;  %v2755_v62 = vadd.f32 %v12374_v41, %v13098_v12 }
 0x7d4   : > { %6475 = vrot.lane.b32.xlu0 %v6385_v24, %s8540_s29  ;;  %v2705_v24 = vadd.f32 %v12374_v41, %v13088_v16  ;;  %7374 = vst.msk [vmem:[%s12351_s30 + $0x20] sm:$0xff] %vm427_vm1, %v7342_v26 }
 0x7d5   : > { %v6260_v8 = vpop.permute.xlu1 %6259  ;;  %v2865_v16 = vmax.f32 %v2755_v62, 0.0 }
 0x7d6   : > { %6341 = vst.msk [vmem:[#allocation5 + $0x78] sm:$0xff] %vm6325_vm5, %v6260_v8  ;;  %v6836_v40 = vpop.permute.xlu0 %6835 }
 0x7d7   : > { %6919 = vst.msk [vmem:[#allocation5 + $0x68] sm:$0xff] %vm6905_vm8, %v6836_v40  ;;  %6092 = vrot.lane.b32.xlu1 %v6000_v19, %s8528_s25  ;;  %v7345_v40 = vld [vmem:[%s8625_s24 + $0x38] sm:$0xff] }
 0x7d8   : > { %6668 = vrot.lane.b32.xlu0 %v6000_v19, %s8541_s13  ;;  %v7344_v19 = vld [vmem:[%s8625_s24 + $0x30] sm:$0xff]  ;;  %7377 = vst.msk [vmem:[%s12351_s30 + $0x38] sm:$0xff] %vm427_vm1, %v7345_v40 }
 0x7d9   : > { %v6454_v50 = vpop.permute.xlu1 %6453  ;;  %7376 = vst.msk [vmem:[%s12351_s30 + $0x30] sm:$0xff] %vm427_vm1, %v7344_v19  ;;  %v7356_v19 = vld [vmem:[%s8625_s24 + $0x90] sm:$0xff] }
 0x7da   : > { %6535 = vst.msk [vmem:[#allocation5 + $0x78] sm:$0xff] %vm6519_vm6, %v6454_v50  ;;  %v6452_v20 = vpop.permute.xlu0 %6451  ;;  %v6950_v18 = vld [vmem:[#allocation5 + $0x60] sm:$0xff]  ;;  %v7347_v50 = vld [vmem:[%s8625_s24 + $0x48] sm:$0xff] }
 0x7db   : > { %6534 = vst.msk [vmem:[#allocation5 + $0x70] sm:$0xff] %vm6519_vm6, %v6452_v20  ;;  %6861 = vrot.lane.b32.xlu1 %v6771_v0, %s8529_s26  ;;  %8397 = vmatprep.mubr.msk.f32.mxu0 %vm6980_vm9, %v6950_v18  ;;  %v2856_v20 = vmax.f32 %v2710_v47, 0.0  ;;  %v2866_v47 = vmax.f32 %v2760_v39, 0.0  ;;  %v2820_v39 = vadd.f32 %v13109_v4, %v12374_v41 }
 0x7dc   : > { %6670 = vrot.lane.b32.xlu0 %v6579_v61, %s8541_s13  ;;  %7379 = vst.msk [vmem:[%s12351_s30 + $0x48] sm:$0xff] %vm427_vm1, %v7347_v50  ;;  %7388 = vst.msk [vmem:[%s12351_s30 + $0x90] sm:$0xff] %vm427_vm1, %v7356_v19  ;;  %v7359_v50 = vld [vmem:[%s8625_s24 + $0xa8] sm:$0xff] }
 0x7dd   : > { %v6647_v9 = vpop.permute.xlu1 %6646  ;;  %7391 = vst.msk [vmem:[%s12351_s30 + $0xa8] sm:$0xff] %vm427_vm1, %v7359_v50  ;;  %v7368_v19 = vld [vmem:[%s8625_s24 + $0xf0] sm:$0xff] }
 0x7de   : > { %6728 = vst.msk [vmem:[#allocation5 + $0x78] sm:$0xff] %vm6712_vm7, %v6647_v9  ;;  %v6645_v6 = vpop.permute.xlu0 %6644  ;;  %v6951_v3 = vld [vmem:[#allocation5 + $0x68] sm:$0xff]  ;;  %v2855_v9 = vmax.f32 %v2705_v24, 0.0  ;;  %v13100_v24 = vld [vmem:[#allocation20_spill] sm:$0xff] }
 0x7df   : > { %6727 = vst.msk [vmem:[#allocation5 + $0x70] sm:$0xff] %vm6712_vm7, %v6645_v6  ;;  %6285 = vrot.lane.b32.xlu1 %v6771_v0, %s8539_s23  ;;  %8398 = vmatmul.mubr.msk.f32.gmra.mrb[60].mxu0 %vm6980_vm9, %v6951_v3  ;;  %v13089_v0 = vld [vmem:[#allocation7_spill] sm:$0xff] }
 0x7e0   : > { %6094 = vrot.lane.b32.xlu0 %v6579_v61, %s8528_s25  ;;  %v2720_v18 = vadd.f32 %v13089_v0, %v12374_v41  ;;  %v13090_v6 = vld [vmem:[#allocation11_spill] sm:$0xff]  ;;  %7400 = vst.msk [vmem:[%s12351_s30 + $0xf0] sm:$0xff] %vm427_vm1, %v7368_v19 }
 0x7e1   : > { %v6262_v22 = vpop.permute.xlu1 %6261  ;;  %v2715_v3 = vadd.f32 %v12374_v41, %v13090_v6  ;;  %v13101_v0 = vld [vmem:[#allocation27_spill] sm:$0xff]  ;;  %v13102_v6 = vld [vmem:[#allocation28_spill] sm:$0xff] }
 0x7e2   : > { %6342 = vst.msk [vmem:[#allocation5 + $0x80] sm:$0xff] %vm6325_vm5, %v6262_v22  ;;  %v6838_v49 = vpop.permute.xlu0 %6837 }
 0x7e3   : > { %6920 = vst.msk [vmem:[#allocation5 + $0x70] sm:$0xff] %vm6905_vm8, %v6838_v49  ;;  %6287 = vrot.lane.b32.xlu1 %v6194_v44, %s8539_s23 }
 0x7e4   : > { %6863 = vrot.lane.b32.xlu0 %v6194_v44, %s8529_s26  ;;  %v7346_v44 = vld [vmem:[%s8625_s24 + $0x40] sm:$0xff] }
 0x7e5   : > { %v6264_v52 = vpop.permute.xlu1 %6263  ;;  %7378 = vst.msk [vmem:[%s12351_s30 + $0x40] sm:$0xff] %vm427_vm1, %v7346_v44 }
 0x7e6   : > { %6343 = vst.msk [vmem:[#allocation5 + $0x88] sm:$0xff] %vm6325_vm5, %v6264_v52  ;;  %v6840_v36 = vpop.permute.xlu0 %6839  ;;  %v7349_v52 = vld [vmem:[%s8625_s24 + $0x58] sm:$0xff] }
 0x7e7   : > { %6921 = vst.msk [vmem:[#allocation5 + $0x78] sm:$0xff] %vm6905_vm8, %v6840_v36  ;;  %6481 = vrot.lane.b32.xlu1 %v6388_v28, %s8540_s29  ;;  %v2858_v36 = vmax.f32 %v2720_v18, 0.0  ;;  %v13091_v28 = vld [vmem:[#allocation12_spill] sm:$0xff]  ;;  %v2780_v18 = vadd.f32 %v13101_v0, %v12374_v41 }
 0x7e8   : > { %6479 = vrot.lane.b32.xlu0 %v6387_v13, %s8540_s29  ;;  %7381 = vst.msk [vmem:[%s12351_s30 + $0x58] sm:$0xff] %vm427_vm1, %v7349_v52  ;;  %v2730_v13 = vadd.f32 %v13091_v28, %v12374_v41  ;;  %v13103_v52 = vld [vmem:[#allocation29_spill] sm:$0xff] }
 0x7e9   : > { %v6458_v38 = vpop.permute.xlu1 %6457  ;;  %v2870_v44 = vmax.f32 %v2780_v18, 0.0 }
 0x7ea   : > { %6537 = vst.msk [vmem:[#allocation5 + $0x88] sm:$0xff] %vm6519_vm6, %v6458_v38  ;;  %v6456_v45 = vpop.permute.xlu0 %6455  ;;  %v6952_v15 = vld [vmem:[#allocation5 + $0x70] sm:$0xff] }
 0x7eb   : > { %6536 = vst.msk [vmem:[#allocation5 + $0x80] sm:$0xff] %vm6519_vm6, %v6456_v45  ;;  %6096 = vrot.lane.b32.xlu1 %v6002_v56, %s8528_s25  ;;  %8400 = vmatprep.mubr.msk.f32.mxu0 %vm6980_vm9, %v6952_v15  ;;  %v2857_v45 = vmax.f32 %v2715_v3, 0.0  ;;  %v2775_v3 = vadd.f32 %v12374_v41, %v13102_v6 }
 0x7ec   : > { %6672 = vrot.lane.b32.xlu0 %v6002_v56, %s8541_s13  ;;  %v13092_v56 = vld [vmem:[#allocation13_spill] sm:$0xff] }
 0x7ed   : > { %v6651_v57 = vpop.permute.xlu1 %6650  ;;  %v2725_v15 = vadd.f32 %v12374_v41, %v13092_v56 }
 0x7ee   : > { %6730 = vst.msk [vmem:[#allocation5 + $0x88] sm:$0xff] %vm6712_vm7, %v6651_v57  ;;  %v6649_v14 = vpop.permute.xlu0 %6648  ;;  %v6953_v29 = vld [vmem:[#allocation5 + $0x78] sm:$0xff] }
 0x7ef   : > { %6729 = vst.msk [vmem:[#allocation5 + $0x80] sm:$0xff] %vm6712_vm7, %v6649_v14  ;;  %6865 = vrot.lane.b32.xlu1 %v6773_v37, %s8529_s26  ;;  %8401 = vmatmul.mubr.msk.f32.gmra.mrb[62].mxu0 %vm6980_vm9, %v6953_v29  ;;  %v7351_v29 = vld [vmem:[%s8625_s24 + $0x68] sm:$0xff] }
 0x7f0   : > { %6674 = vrot.lane.b32.xlu0 %v6581_v42, %s8541_s13  ;;  %7383 = vst.msk [vmem:[%s12351_s30 + $0x68] sm:$0xff] %vm427_vm1, %v7351_v29 }
 0x7f1   : > { %v6266_v34 = vpop.permute.xlu1 %6265 }
 0x7f2   : > { %6344 = vst.msk [vmem:[#allocation5 + $0x90] sm:$0xff] %vm6325_vm5, %v6266_v34  ;;  %v6842_v60 = vpop.permute.xlu0 %6841  ;;  %v13093_v34 = vld [vmem:[#allocation14_spill] sm:$0xff] }
 0x7f3   : > { %6922 = vst.msk [vmem:[#allocation5 + $0x80] sm:$0xff] %vm6905_vm8, %v6842_v60  ;;  %6289 = vrot.lane.b32.xlu1 %v6773_v37, %s8539_s23  ;;  %v7348_v37 = vld [vmem:[%s8625_s24 + $0x50] sm:$0xff]  ;;  %v2740_v60 = vadd.f32 %v13093_v34, %v12374_v41 }
 0x7f4   : > { %6098 = vrot.lane.b32.xlu0 %v6581_v42, %s8528_s25  ;;  %7380 = vst.msk [vmem:[%s12351_s30 + $0x50] sm:$0xff] %vm427_vm1, %v7348_v37  ;;  %v2860_v42 = vmax.f32 %v2730_v13, 0.0  ;;  %v7358_v13 = vld [vmem:[%s8625_s24 + $0xa0] sm:$0xff]  ;;  %v7363_v37 = vld [vmem:[%s8625_s24 + $0xc8] sm:$0xff] }
 0x7f5   : > { %v6268_v17 = vpop.permute.xlu1 %6267  ;;  %7390 = vst.msk [vmem:[%s12351_s30 + $0xa0] sm:$0xff] %vm427_vm1, %v7358_v13  ;;  %7395 = vst.msk [vmem:[%s12351_s30 + $0xc8] sm:$0xff] %vm427_vm1, %v7363_v37 }
 0x7f6   : > { %6345 = vst.msk [vmem:[#allocation5 + $0x98] sm:$0xff] %vm6325_vm5, %v6268_v17  ;;  %v6844_v1 = vpop.permute.xlu0 %6843 }
 0x7f7   : > { %6923 = vst.msk [vmem:[#allocation5 + $0x88] sm:$0xff] %vm6905_vm8, %v6844_v1  ;;  %6291 = vrot.lane.b32.xlu1 %v6196_v25, %s8539_s23  ;;  %v2859_v1 = vmax.f32 %v2725_v15, 0.0 }
 0x7f8   : > { %6867 = vrot.lane.b32.xlu0 %v6196_v25, %s8529_s26  ;;  %v13094_v25 = vld [vmem:[#allocation71_spill] sm:$0xff] }
 0x7f9   : > { %v6462_v27 = vpop.permute.xlu1 %6461 }
 0x7fa   : > { %6539 = vst.msk [vmem:[#allocation5 + $0x98] sm:$0xff] %vm6519_vm6, %v6462_v27  ;;  %v6460_v43 = vpop.permute.xlu0 %6459  ;;  %v6954_v30 = vld [vmem:[#allocation5 + $0x80] sm:$0xff]  ;;  %v2862_v27 = vmax.f32 %v2740_v60, 0.0 }
 0x7fb   : > { %6538 = vst.msk [vmem:[#allocation5 + $0x90] sm:$0xff] %vm6519_vm6, %v6460_v43  ;;  %6485 = vrot.lane.b32.xlu1 %v6390_v32, %s8540_s29  ;;  %8403 = vmatprep.mubr.msk.f32.mxu0 %vm6980_vm9, %v6954_v30  ;;  %v2735_v32 = vadd.f32 %v12374_v41, %v13094_v25 }
 0x7fc   : > { %6483 = vrot.lane.b32.xlu0 %v6389_v35, %s8540_s29  ;;  %v13095_v35 = vld [vmem:[#allocation31_spill] sm:$0xff] }
 0x7fd   : > { %v6655_v33 = vpop.permute.xlu1 %6654  ;;  %v2750_v43 = vadd.f32 %v13095_v35, %v12374_v41  ;;  %v2861_v46 = vmax.f32 %v2735_v32, 0.0 }
 0x7fe   : > { %6732 = vst.msk [vmem:[#allocation5 + $0x98] sm:$0xff] %vm6712_vm7, %v6655_v33  ;;  %v6653_v21 = vpop.permute.xlu0 %6652  ;;  %v6955_v31 = vld [vmem:[#allocation5 + $0x88] sm:$0xff] }
 0x7ff   : > { %6731 = vst.msk [vmem:[#allocation5 + $0x90] sm:$0xff] %vm6712_vm7, %v6653_v21  ;;  %6678 = vrot.lane.b32.xlu1 %v6583_v51, %s8541_s13  ;;  %8404 = vmatmul.mubr.msk.f32.gmra.mrb[64].mxu0 %vm6980_vm9, %v6955_v31  ;;  %v13096_v51 = vld [vmem:[#allocation19_spill] sm:$0xff]  ;;  %v7353_v21 = vld [vmem:[%s8625_s24 + $0x78] sm:$0xff]  ;;  %v7352_v31 = vld [vmem:[%s8625_s24 + $0x70] sm:$0xff] }
 0x800   : > { %6676 = vrot.lane.b32.xlu0 %v6582_v59, %s8541_s13  ;;  %v2745_v33 = vadd.f32 %v12374_v41, %v13096_v51  ;;  %7385 = vst.msk [vmem:[%s12351_s30 + $0x78] sm:$0xff] %vm427_vm1, %v7353_v21  ;;  %7384 = vst.msk [vmem:[%s12351_s30 + $0x70] sm:$0xff] %vm427_vm1, %v7352_v31  ;;  %v7364_v31 = vld [vmem:[%s8625_s24 + $0xd0] sm:$0xff] }
 0x801   : > { %v6270_v23 = vpop.permute.xlu1 %6269  ;;  %7396 = vst.msk [vmem:[%s12351_s30 + $0xd0] sm:$0xff] %vm427_vm1, %v7364_v31 }
 0x802   : > { %6346 = vst.msk [vmem:[#allocation5 + $0xa0] sm:$0xff] %vm6325_vm5, %v6270_v23  ;;  %v6846_v58 = vpop.permute.xlu0 %6845 }
 0x803   : > { %6924 = vst.msk [vmem:[#allocation5 + $0x90] sm:$0xff] %vm6905_vm8, %v6846_v58  ;;  %6871 = vrot.lane.b32.xlu1 %v6776_v48, %s8529_s26  ;;  %v2864_v48 = vmax.f32 %v2750_v43, 0.0  ;;  %v13107_v43 = vld [vmem:[#allocation55_spill] sm:$0xff] }
 0x804   : > { %6869 = vrot.lane.b32.xlu0 %v6775_v11, %s8529_s26  ;;  %v2863_v11 = vmax.f32 %v2745_v33, 0.0  ;;  %v13108_v33 = vld [vmem:[#allocation47_spill] sm:$0xff] }
 0x805   : > { %v6272_v63 = vpop.permute.xlu1 %6271 }
 0x806   : > { %6347 = vst.msk [vmem:[#allocation5 + $0xa8] sm:$0xff] %vm6325_vm5, %v6272_v63  ;;  %v6848_v8 = vpop.permute.xlu0 %6847  ;;  %v13099_v63 = vld [vmem:[#allocation73_spill] sm:$0xff] }
 0x807   : > { %6925 = vst.msk [vmem:[#allocation5 + $0x98] sm:$0xff] %vm6905_vm8, %v6848_v8  ;;  %7436 = vrot.lane.b32.xlu1 %v2854_v5, %s8537_s19  ;;  %v7354_v5 = vld [vmem:[%s8625_s24 + $0x80] sm:$0xff]  ;;  %v2770_v26 = vadd.f32 %v13099_v63, %v12374_v41  ;;  %v2765_v8 = vadd.f32 %v12374_v41, %v13100_v24 }
 0x808   : > { %7434 = vrot.lane.b32.xlu0 %v2853_v54, %s8537_s19  ;;  %7386 = vst.msk [vmem:[%s12351_s30 + $0x80] sm:$0xff] %vm427_vm1, %v7354_v5  ;;  %v13111_v5 = vld [vmem:[#allocation16_spill] sm:$0xff]  ;;  %v7366_v63 = vld [vmem:[%s8625_s24 + $0xe0] sm:$0xff] }
 0x809   : > { %v6466_v61 = vpop.permute.xlu1 %6465  ;;  %v2830_v10 = vadd.f32 %v13111_v5, %v12374_v41  ;;  %7398 = vst.msk [vmem:[%s12351_s30 + $0xe0] sm:$0xff] %vm427_vm1, %v7366_v63 }
 0x80a   : > { %6541 = vst.msk [vmem:[#allocation5 + $0xa8] sm:$0xff] %vm6519_vm6, %v6466_v61  ;;  %v6464_v22 = vpop.permute.xlu0 %6463  ;;  %v6956_v49 = vld [vmem:[#allocation5 + $0x90] sm:$0xff] }
 0x80b   : > { %6540 = vst.msk [vmem:[#allocation5 + $0xa0] sm:$0xff] %vm6519_vm6, %v6464_v22  ;;  %7440 = vrot.lane.b32.xlu1 %v2856_v20, %s8537_s19  ;;  %8406 = vmatprep.mubr.msk.f32.mxu0 %vm6980_vm9, %v6956_v49  ;;  %v2868_v20 = vmax.f32 %v2770_v26, 0.0  ;;  %v2880_v50 = vmax.f32 %v2830_v10, 0.0 }
 0x80c   : > { %7438 = vrot.lane.b32.xlu0 %v2855_v9, %s8537_s19  ;;  %v2867_v9 = vmax.f32 %v2765_v8, 0.0 }
 0x80d   : > { %v6081_v38 = vpop.permute.xlu1 %6080 }
 0x80e   : > { %6155 = vst.msk [vmem:[#allocation5 + $0xb0] sm:$0xff] %vm6132_vm4, %v6081_v38  ;;  %v6657_v57 = vpop.permute.xlu0 %6656  ;;  %v6957_v14 = vld [vmem:[#allocation5 + $0x98] sm:$0xff]  ;;  %v2869_v38 = vmax.f32 %v2775_v3, 0.0 }
 0x80f   : > { %6733 = vst.msk [vmem:[#allocation5 + $0xa0] sm:$0xff] %vm6712_vm7, %v6657_v57  ;;  %7444 = vrot.lane.b32.xlu1 %v2858_v36, %s8537_s19  ;;  %8407 = vmatmul.mubr.msk.f32.gmra.mrb[66].mxu0 %vm6980_vm9, %v6957_v14  ;;  %v2790_v36 = vadd.f32 %v13103_v52, %v12374_v41  ;;  %v7361_v57 = vld [vmem:[%s8625_s24 + $0xb8] sm:$0xff]  ;;  %v7360_v14 = vld [vmem:[%s8625_s24 + $0xb0] sm:$0xff] }
 0x810   : > { %7442 = vrot.lane.b32.xlu0 %v2857_v45, %s8537_s19  ;;  %v13104_v45 = vld [vmem:[#allocation32_spill] sm:$0xff]  ;;  %7393 = vst.msk [vmem:[%s12351_s30 + $0xb8] sm:$0xff] %vm427_vm1, %v7361_v57  ;;  %7392 = vst.msk [vmem:[%s12351_s30 + $0xb0] sm:$0xff] %vm427_vm1, %v7360_v14 }
 0x811   : > { %v6850_v17 = vpop.permute.xlu1 %6849  ;;  %v2785_v56 = vadd.f32 %v12374_v41, %v13104_v45  ;;  %v2872_v29 = vmax.f32 %v2790_v36, 0.0 }
 0x812   : > { %6926 = vst.msk [vmem:[#allocation5 + $0xa0] sm:$0xff] %vm6905_vm8, %v6850_v17  ;;  %v6659_v53 = vpop.permute.xlu0 %6658 }
 0x813   : > { %6734 = vst.msk [vmem:[#allocation5 + $0xa8] sm:$0xff] %vm6712_vm7, %v6659_v53  ;;  %7448 = vrot.lane.b32.xlu1 %v2860_v42, %s8537_s19  ;;  %v13105_v42 = vld [vmem:[#allocation44_spill] sm:$0xff]  ;;  %v2871_v17 = vmax.f32 %v2785_v56, 0.0  ;;  %v7362_v53 = vld [vmem:[%s8625_s24 + $0xc0] sm:$0xff] }
 0x814   : > { %7446 = vrot.lane.b32.xlu0 %v2859_v1, %s8537_s19  ;;  %v2800_v34 = vadd.f32 %v13105_v42, %v12374_v41  ;;  %v13106_v1 = vld [vmem:[#allocation33_spill] sm:$0xff]  ;;  %7394 = vst.msk [vmem:[%s12351_s30 + $0xc0] sm:$0xff] %vm427_vm1, %v7362_v53 }
 0x815   : > { %v6274_v30 = vpop.permute.xlu1 %6273  ;;  %v2795_v25 = vadd.f32 %v12374_v41, %v13106_v1  ;;  %v12617_v1 = vld [vmem:[%s12850_s10] ss:$0 sm:$0xff] }
 0x816   : > { %6348 = vst.msk [vmem:[#allocation5 + $0xb0] sm:$0xff] %vm6325_vm5, %v6274_v30  ;;  %v6083_v59 = vpop.permute.xlu0 %6082  ;;  %v2874_v35 = vmax.f32 %v2800_v34, 0.0  ;;  %v2810_v30 = vadd.f32 %v13107_v43, %v12374_v41 }
 0x817   : > { %6156 = vst.msk [vmem:[#allocation5 + $0xb8] sm:$0xff] %vm6132_vm4, %v6083_v59  ;;  %7452 = vrot.lane.b32.xlu1 %v2862_v27, %s8537_s19  ;;  %v7365_v27 = vld [vmem:[%s8625_s24 + $0xd8] sm:$0xff]  ;;  %v2873_v51 = vmax.f32 %v2795_v25, 0.0  ;;  %v2805_v59 = vadd.f32 %v12374_v41, %v13108_v33 }
 0x818   : > { %7450 = vrot.lane.b32.xlu0 %v2861_v46, %s8537_s19  ;;  %7397 = vst.msk [vmem:[%s12351_s30 + $0xd8] sm:$0xff] %vm427_vm1, %v7365_v27 }
 0x819   : > { %v6276_v2 = vpop.permute.xlu1 %6275  ;;  %v6958_v23 = vld [vmem:[#allocation5 + $0xa0] sm:$0xff] }
 0x81a   : > { %6349 = vst.msk [vmem:[#allocation5 + $0xb8] sm:$0xff] %vm6325_vm5, %v6276_v2  ;;  %v6852_v58 = vpop.permute.xlu0 %6851  ;;  %8409 = vmatprep.mubr.msk.f32.mxu0 %vm6980_vm9, %v6958_v23  ;;  %v2875_v23 = vmax.f32 %v2805_v59, 0.0 }
 0x81b   : > { %6927 = vst.msk [vmem:[#allocation5 + $0xa8] sm:$0xff] %vm6905_vm8, %v6852_v58  ;;  %7456 = vrot.lane.b32.xlu1 %v2864_v48, %s8537_s19  ;;  %v2876_v48 = vmax.f32 %v2810_v30, 0.0  ;;  %v2878_v58 = vmax.f32 %v2820_v39, 0.0 }
 0x81c   : > { %7454 = vrot.lane.b32.xlu0 %v2863_v11, %s8537_s19  ;;  %v13110_v11 = vld [vmem:[#allocation15_spill] sm:$0xff] }
 0x81d   : > { %v6470_v54 = vpop.permute.xlu1 %6469  ;;  %v2815_v12 = vadd.f32 %v12374_v41, %v13110_v11 }
 0x81e   : > { %6543 = vst.msk [vmem:[#allocation5 + $0xb8] sm:$0xff] %vm6519_vm6, %v6470_v54  ;;  %v6468_v40 = vpop.permute.xlu0 %6467  ;;  %v13112_v54 = vld [vmem:[#allocation21_spill] sm:$0xff] }
 0x81f   : > { %6542 = vst.msk [vmem:[#allocation5 + $0xb0] sm:$0xff] %vm6519_vm6, %v6468_v40  ;;  %7460 = vrot.lane.b32.xlu1 %v2866_v47, %s8537_s19  ;;  %v2877_v26 = vmax.f32 %v2815_v12, 0.0  ;;  %v7369_v40 = vld [vmem:[%s8625_s24 + $0xf8] sm:$0xff] }
 0x820   : > { %7458 = vrot.lane.b32.xlu0 %v2865_v16, %s8537_s19  ;;  %v2825_v16 = vadd.f32 %v12374_v41, %v13112_v54  ;;  %7401 = vst.msk [vmem:[%s12351_s30 + $0xf8] sm:$0xff] %vm427_vm1, %v7369_v40 }
 0x821   : > { %v6085_v61 = vpop.permute.xlu1 %6084 }
 0x822   : > { %6157 = vst.msk [vmem:[#allocation5 + $0xc0] sm:$0xff] %vm6132_vm4, %v6085_v61  ;;  %v6661_v22 = vpop.permute.xlu0 %6660  ;;  %v6959_v49 = vld [vmem:[#allocation5 + $0xa8] sm:$0xff]  ;;  %v2879_v61 = vmax.f32 %v2825_v16, 0.0 }
 0x823   : > { %6735 = vst.msk [vmem:[#allocation5 + $0xb0] sm:$0xff] %vm6712_vm7, %v6661_v22  ;;  %7464 = vrot.lane.b32.xlu1 %v2868_v20, %s8537_s19  ;;  %8410 = vmatmul.mubr.msk.f32.gmra.mrb[68].mxu0 %vm6980_vm9, %v6959_v49  ;;  %v13113_v20 = vld [vmem:[#allocation22_spill] sm:$0xff] }
 0x824   : > { %7462 = vrot.lane.b32.xlu0 %v2867_v9, %s8537_s19  ;;  %v2840_v0 = vadd.f32 %v13113_v20, %v12374_v41  ;;  %v13114_v9 = vld [vmem:[#allocation23_spill] sm:$0xff]  ;;  %v13115_v49 = vld [vmem:[#allocation34_spill] sm:$0xff] }
 0x825   : > { %v6854_v28 = vpop.permute.xlu1 %6853  ;;  %v2835_v6 = vadd.f32 %v12374_v41, %v13114_v9 }
 0x826   : > { %6928 = vst.msk [vmem:[#allocation5 + $0xb0] sm:$0xff] %vm6905_vm8, %v6854_v28  ;;  %v6663_v15 = vpop.permute.xlu0 %6662  ;;  %v2882_v22 = vmax.f32 %v2840_v0, 0.0  ;;  %v13116_v28 = vld [vmem:[#allocation35_spill] sm:$0xff] }
 0x827   : > { %6736 = vst.msk [vmem:[#allocation5 + $0xb8] sm:$0xff] %vm6712_vm7, %v6663_v15  ;;  %7468 = vrot.lane.b32.xlu1 %v2870_v44, %s8537_s19  ;;  %v2850_v44 = vadd.f32 %v13115_v49, %v12374_v41  ;;  %v2881_v36 = vmax.f32 %v2835_v6, 0.0  ;;  %v2845_v13 = vadd.f32 %v12374_v41, %v13116_v28 }
 0x828   : > { %7466 = vrot.lane.b32.xlu0 %v2869_v38, %s8537_s19 }
 0x829   : > { %v6278_v60 = vpop.permute.xlu1 %6277  ;;  %v2884_v45 = vmax.f32 %v2850_v44, 0.0  ;;  %v2883_v57 = vmax.f32 %v2845_v13, 0.0 }
 0x82a   : > { %6350 = vst.msk [vmem:[#allocation5 + $0xc0] sm:$0xff] %vm6325_vm5, %v6278_v60  ;;  %v6087_v32 = vpop.permute.xlu0 %6086 }
 0x82b   : > { %6158 = vst.msk [vmem:[#allocation5 + $0xc8] sm:$0xff] %vm6132_vm4, %v6087_v32  ;;  %7472 = vrot.lane.b32.xlu1 %v2872_v29, %s8537_s19 }
 0x82c   : > { %7470 = vrot.lane.b32.xlu0 %v2871_v17, %s8537_s19 }
 0x82d   : > { %v6280_v55 = vpop.permute.xlu1 %6279  ;;  %v6960_v46 = vld [vmem:[#allocation5 + $0xb0] sm:$0xff] }
 0x82e   : > { %6351 = vst.msk [vmem:[#allocation5 + $0xc8] sm:$0xff] %vm6325_vm5, %v6280_v55  ;;  %v6856_v21 = vpop.permute.xlu0 %6855  ;;  %8412 = vmatprep.mubr.msk.f32.mxu0 %vm6980_vm9, %v6960_v46 }
 0x82f   : > { %6929 = vst.msk [vmem:[#allocation5 + $0xb8] sm:$0xff] %vm6905_vm8, %v6856_v21  ;;  %7476 = vrot.lane.b32.xlu1 %v2874_v35, %s8537_s19 }
 0x830   : > { %7474 = vrot.lane.b32.xlu0 %v2873_v51, %s8537_s19 }
 0x831   : > { %v6474_v2 = vpop.permute.xlu1 %6473 }
 0x832   : > { %6545 = vst.msk [vmem:[#allocation5 + $0xc8] sm:$0xff] %vm6519_vm6, %v6474_v2  ;;  %v6472_v62 = vpop.permute.xlu0 %6471 }
 0x833   : > { %6544 = vst.msk [vmem:[#allocation5 + $0xc0] sm:$0xff] %vm6519_vm6, %v6472_v62  ;;  %7480 = vrot.lane.b32.xlu1 %v2876_v48, %s8537_s19 }
 0x834   : > { %7478 = vrot.lane.b32.xlu0 %v2875_v23, %s8537_s19 }
 0x835   : > { %v6089_v47 = vpop.permute.xlu1 %6088 }
 0x836   : > { %6159 = vst.msk [vmem:[#allocation5 + $0xd0] sm:$0xff] %vm6132_vm4, %v6089_v47  ;;  %v6665_v24 = vpop.permute.xlu0 %6664  ;;  %v6961_v8 = vld [vmem:[#allocation5 + $0xb8] sm:$0xff] }
 0x837   : > { %6737 = vst.msk [vmem:[#allocation5 + $0xc0] sm:$0xff] %vm6712_vm7, %v6665_v24  ;;  %7484 = vrot.lane.b32.xlu1 %v2878_v58, %s8537_s19  ;;  %8413 = vmatmul.mubr.msk.f32.gmra.mrb[70].mxu0 %vm6980_vm9, %v6961_v8 }
 0x838   : > { %7482 = vrot.lane.b32.xlu0 %v2877_v26, %s8537_s19 }
 0x839   : > { %v6858_v18 = vpop.permute.xlu1 %6857 }
 0x83a   : > { %6930 = vst.msk [vmem:[#allocation5 + $0xc0] sm:$0xff] %vm6905_vm8, %v6858_v18  ;;  %v6667_v3 = vpop.permute.xlu0 %6666 }
 0x83b   : > { %6738 = vst.msk [vmem:[#allocation5 + $0xc8] sm:$0xff] %vm6712_vm7, %v6667_v3  ;;  %7488 = vrot.lane.b32.xlu1 %v2880_v50, %s8537_s19 }
 0x83c   : > { %7486 = vrot.lane.b32.xlu0 %v2879_v61, %s8537_s19 }
 0x83d   : > { %v6282_v52 = vpop.permute.xlu1 %6281 }
 0x83e   : > { %6352 = vst.msk [vmem:[#allocation5 + $0xd0] sm:$0xff] %vm6325_vm5, %v6282_v52  ;;  %v6091_v38 = vpop.permute.xlu0 %6090 }
 0x83f   : > { %6160 = vst.msk [vmem:[#allocation5 + $0xd8] sm:$0xff] %vm6132_vm4, %v6091_v38  ;;  %7492 = vrot.lane.b32.xlu1 %v2882_v22, %s8537_s19 }
 0x840   : > { %7490 = vrot.lane.b32.xlu0 %v2881_v36, %s8537_s19 }
 0x841   : > { %v6284_v56 = vpop.permute.xlu1 %6283  ;;  %v6962_v15 = vld [vmem:[#allocation5 + $0xc0] sm:$0xff] }
 0x842   : > { %6353 = vst.msk [vmem:[#allocation5 + $0xd8] sm:$0xff] %vm6325_vm5, %v6284_v56  ;;  %v6860_v14 = vpop.permute.xlu0 %6859  ;;  %8415 = vmatprep.mubr.msk.f32.mxu0 %vm6980_vm9, %v6962_v15 }
 0x843   : > { %6931 = vst.msk [vmem:[#allocation5 + $0xc8] sm:$0xff] %vm6905_vm8, %v6860_v14  ;;  %7496 = vrot.lane.b32.xlu1 %v2884_v45, %s8537_s19 }
 0x844   : > { %7494 = vrot.lane.b32.xlu0 %v2883_v57, %s8537_s19 }
 0x845   : > { %v6478_v41 = vpop.permute.xlu1 %6477 }
 0x846   : > { %6547 = vst.msk [vmem:[#allocation5 + $0xd8] sm:$0xff] %vm6519_vm6, %v6478_v41  ;;  %v6476_v37 = vpop.permute.xlu0 %6475 }
 0x847   : > { %6546 = vst.msk [vmem:[#allocation5 + $0xd0] sm:$0xff] %vm6519_vm6, %v6476_v37 }
 0x849   : > { %v6093_v29 = vpop.permute.xlu1 %6092 }
 0x84a   : > { %6161 = vst.msk [vmem:[#allocation5 + $0xe0] sm:$0xff] %vm6132_vm4, %v6093_v29  ;;  %v6669_v42 = vpop.permute.xlu0 %6668  ;;  %v6963_v34 = vld [vmem:[#allocation5 + $0xc8] sm:$0xff] }
 0x84b   : > { %6739 = vst.msk [vmem:[#allocation5 + $0xd0] sm:$0xff] %vm6712_vm7, %v6669_v42  ;;  %8416 = vmatmul.mubr.msk.f32.gmra.mrb[72].mxu0 %vm6980_vm9, %v6963_v34 }
 0x84d   : > { %v6862_v60 = vpop.permute.xlu1 %6861 }
 0x84e   : > { %6932 = vst.msk [vmem:[#allocation5 + $0xd0] sm:$0xff] %vm6905_vm8, %v6862_v60  ;;  %v6671_v17 = vpop.permute.xlu0 %6670 }
 0x84f   : > { %6740 = vst.msk [vmem:[#allocation5 + $0xd8] sm:$0xff] %vm6712_vm7, %v6671_v17 }
 0x851   : > { %v6286_v25 = vpop.permute.xlu1 %6285 }
 0x852   : > { %6354 = vst.msk [vmem:[#allocation5 + $0xe0] sm:$0xff] %vm6325_vm5, %v6286_v25  ;;  %v8381_v32 = vpop.f32.mrb[48].mxu0  ;;  %v6095_v53 = vpop.permute.xlu0 %6094 }
 0x853   : > { %v7153_v27 = vadd.f32 %v8381_v32, %v12617_v1  ;;  %6162 = vst.msk [vmem:[#allocation5 + $0xe8] sm:$0xff] %vm6132_vm4, %v6095_v53  ;;  %v7147_v35 = vpop.f32.mrb[49].mxu0 }
 0x854   : > { %v7148_v43 = vadd.f32 %v12617_v1, %v7147_v35 }
 0x855   : > { %v7307_v30 = vmax.f32 %v7153_v27, 0.0  ;;  %v6288_v55 = vpop.permute.xlu1 %6287  ;;  %v6964_v46 = vld [vmem:[#allocation5 + $0xd0] sm:$0xff] }
 0x856   : > { %v7306_v51 = vmax.f32 %v7148_v43, 0.0  ;;  %6355 = vst.msk [vmem:[#allocation5 + $0xe8] sm:$0xff] %vm6325_vm5, %v6288_v55  ;;  %v6864_v33 = vpop.permute.xlu0 %6863  ;;  %8418 = vmatprep.mubr.msk.f32.mxu0 %vm6980_vm9, %v6964_v46 }
 0x857   : > { %6933 = vst.msk [vmem:[#allocation5 + $0xd8] sm:$0xff] %vm6905_vm8, %v6864_v33  ;;  %7596 = vrot.lane.b32.xlu1 %v7307_v30, %s8538_s22 }
 0x858   : > { %7594 = vrot.lane.b32.xlu0 %v7306_v51, %s8538_s22 }
 0x859   : > { %v6482_v59 = vpop.permute.xlu1 %6481 }
 0x85a   : > { %6549 = vst.msk [vmem:[#allocation5 + $0xe8] sm:$0xff] %vm6519_vm6, %v6482_v59  ;;  %v6480_v21 = vpop.permute.xlu0 %6479 }
 0x85b   : > { %6548 = vst.msk [vmem:[#allocation5 + $0xe0] sm:$0xff] %vm6519_vm6, %v6480_v21 }
 0x85d   : > { %v6097_v31 = vpop.permute.xlu1 %6096 }
 0x85e   : > { %6163 = vst.msk [vmem:[#allocation5 + $0xf0] sm:$0xff] %vm6132_vm4, %v6097_v31  ;;  %v6673_v7 = vpop.permute.xlu0 %6672  ;;  %v6965_v48 = vld [vmem:[#allocation5 + $0xd8] sm:$0xff] }
 0x85f   : > { %6741 = vst.msk [vmem:[#allocation5 + $0xe0] sm:$0xff] %vm6712_vm7, %v6673_v7  ;;  %8419 = vmatmul.mubr.msk.f32.gmra.mrb[74].mxu0 %vm6980_vm9, %v6965_v48 }
 0x861   : > { %v6866_v4 = vpop.permute.xlu1 %6865 }
 0x862   : > { %6934 = vst.msk [vmem:[#allocation5 + $0xe0] sm:$0xff] %vm6905_vm8, %v6866_v4  ;;  %v6675_v39 = vpop.permute.xlu0 %6674  ;;  %v8384_v2 = vpop.f32.mrb[50].mxu0 }
 0x863   : > { %6742 = vst.msk [vmem:[#allocation5 + $0xe8] sm:$0xff] %vm6712_vm7, %v6675_v39  ;;  %v7163_v23 = vadd.f32 %v8384_v2, %v12617_v1  ;;  %v7157_v11 = vpop.f32.mrb[51].mxu0 }
 0x864   : > { %v7158_v12 = vadd.f32 %v12617_v1, %v7157_v11 }
 0x865   : > { %v7309_v62 = vmax.f32 %v7163_v23, 0.0  ;;  %v6290_v58 = vpop.permute.xlu1 %6289 }
 0x866   : > { %v7308_v5 = vmax.f32 %v7158_v12, 0.0  ;;  %6356 = vst.msk [vmem:[#allocation5 + $0xf0] sm:$0xff] %vm6325_vm5, %v6290_v58  ;;  %v6099_v10 = vpop.permute.xlu0 %6098 }
 0x867   : > { %6164 = vst.msk [vmem:[#allocation5 + $0xf8] sm:$0xff] %vm6132_vm4, %v6099_v10  ;;  %7600 = vrot.lane.b32.xlu1 %v7309_v62, %s8538_s22 }
 0x868   : > { %7598 = vrot.lane.b32.xlu0 %v7308_v5, %s8538_s22 }
 0x869   : > { %v6292_v47 = vpop.permute.xlu1 %6291  ;;  %v6966_v63 = vld [vmem:[#allocation5 + $0xe0] sm:$0xff] }
 0x86a   : > { %6357 = vst.msk [vmem:[#allocation5 + $0xf8] sm:$0xff] %vm6325_vm5, %v6292_v47  ;;  %v6868_v26 = vpop.permute.xlu0 %6867  ;;  %8421 = vmatprep.mubr.msk.f32.mxu0 %vm6980_vm9, %v6966_v63 }
 0x86b   : > { %6935 = vst.msk [vmem:[#allocation5 + $0xe8] sm:$0xff] %vm6905_vm8, %v6868_v26 }
 0x86d   : > { %v6486_v54 = vpop.permute.xlu1 %6485 }
 0x86e   : > { %6551 = vst.msk [vmem:[#allocation5 + $0xf8] sm:$0xff] %vm6519_vm6, %v6486_v54  ;;  %v6484_v16 = vpop.permute.xlu0 %6483 }
 0x86f   : > { %6550 = vst.msk [vmem:[#allocation5 + $0xf0] sm:$0xff] %vm6519_vm6, %v6484_v16 }
 0x871   : > { %v6679_v24 = vpop.permute.xlu1 %6678 }
 0x872   : > { %6744 = vst.msk [vmem:[#allocation5 + $0xf8] sm:$0xff] %vm6712_vm7, %v6679_v24  ;;  %v6677_v8 = vpop.permute.xlu0 %6676  ;;  %v8387_v40 = vpop.f32.mrb[52].mxu0  ;;  %v6967_v19 = vld [vmem:[#allocation5 + $0xe8] sm:$0xff] }
 0x873   : > { %6743 = vst.msk [vmem:[#allocation5 + $0xf0] sm:$0xff] %vm6712_vm7, %v6677_v8  ;;  %v7173_v50 = vadd.f32 %v8387_v40, %v12617_v1  ;;  %v7167_v20 = vpop.f32.mrb[53].mxu0  ;;  %8422 = vmatmul.mubr.msk.f32.gmra.mrb[76].mxu0 %vm6980_vm9, %v6967_v19 }
 0x874   : > { %v7168_v0 = vadd.f32 %v12617_v1, %v7167_v20 }
 0x875   : > { %v7311_v18 = vmax.f32 %v7173_v50, 0.0  ;;  %v6872_v61 = vpop.permute.xlu1 %6871 }
 0x876   : > { %v7310_v9 = vmax.f32 %v7168_v0, 0.0  ;;  %6937 = vst.msk [vmem:[#allocation5 + $0xf8] sm:$0xff] %vm6905_vm8, %v6872_v61  ;;  %v6870_v6 = vpop.permute.xlu0 %6869 }
 0x877   : > { %6936 = vst.msk [vmem:[#allocation5 + $0xf0] sm:$0xff] %vm6905_vm8, %v6870_v6  ;;  %7604 = vrot.lane.b32.xlu1 %v7311_v18, %s8538_s22 }
 0x878   : > { %7602 = vrot.lane.b32.xlu0 %v7310_v9, %s8538_s22 }
 0x879   : > { %v7437_v3 = vpop.permute.xlu1 %7436 }
 0x87a   : > { %7531 = vst.msk [vmem:[%s12351_s30 + $0x8] sm:$0xff] %vm5746_vm0, %v7437_v3  ;;  %v7435_v22 = vpop.permute.xlu0 %7434 }
 0x87b   : > { %7530 = vst.msk [vmem:[%s12351_s30] sm:$0xff] %vm5746_vm0, %v7435_v22 }
 0x87d   : > { %v7441_v49 = vpop.permute.xlu1 %7440  ;;  %v6969_v44 = vld [vmem:[#allocation5 + $0xf8] sm:$0xff] }
 0x87e   : > { %7533 = vst.msk [vmem:[%s12351_s30 + $0x18] sm:$0xff] %vm5746_vm0, %v7441_v49  ;;  %v7439_v52 = vpop.permute.xlu0 %7438  ;;  %v6968_v36 = vld [vmem:[#allocation5 + $0xf0] sm:$0xff] }
 0x87f   : > { %7532 = vst.msk [vmem:[%s12351_s30 + $0x10] sm:$0xff] %vm5746_vm0, %v7439_v52  ;;  %8424 = vmatprep.mubr.msk.f32.mxu0 %vm6980_vm9, %v6968_v36 }
 0x880   : > { %8425 = vmatmul.mubr.msk.f32.gmra.mrb[78].mxu0 %vm6980_vm9, %v6969_v44 }
 0x881   : > { %v7445_v28 = vpop.permute.xlu1 %7444 }
 0x882   : > { %7535 = vst.msk [vmem:[%s12351_s30 + $0x28] sm:$0xff] %vm5746_vm0, %v7445_v28  ;;  %v8390_v13 = vpop.f32.mrb[54].mxu0  ;;  %v7443_v38 = vpop.permute.xlu0 %7442 }
 0x883   : > { %v7183_v45 = vadd.f32 %v8390_v13, %v12617_v1  ;;  %7534 = vst.msk [vmem:[%s12351_s30 + $0x20] sm:$0xff] %vm5746_vm0, %v7443_v38  ;;  %v7177_v56 = vpop.f32.mrb[55].mxu0 }
 0x884   : > { %v7178_v15 = vadd.f32 %v12617_v1, %v7177_v56 }
 0x885   : > { %v7313_v57 = vmax.f32 %v7183_v45, 0.0  ;;  %v7449_v14 = vpop.permute.xlu1 %7448 }
 0x886   : > { %v7312_v41 = vmax.f32 %v7178_v15, 0.0  ;;  %7537 = vst.msk [vmem:[%s12351_s30 + $0x38] sm:$0xff] %vm5746_vm0, %v7449_v14  ;;  %v7447_v37 = vpop.permute.xlu0 %7446 }
 0x887   : > { %7536 = vst.msk [vmem:[%s12351_s30 + $0x30] sm:$0xff] %vm5746_vm0, %v7447_v37  ;;  %7608 = vrot.lane.b32.xlu1 %v7313_v57, %s8538_s22 }
 0x888   : > { %7606 = vrot.lane.b32.xlu0 %v7312_v41, %s8538_s22 }
 0x889   : > { %v7453_v29 = vpop.permute.xlu1 %7452 }
 0x88a   : > { %7539 = vst.msk [vmem:[%s12351_s30 + $0x48] sm:$0xff] %vm5746_vm0, %v7453_v29  ;;  %v7451_v42 = vpop.permute.xlu0 %7450 }
 0x88b   : > { %7538 = vst.msk [vmem:[%s12351_s30 + $0x40] sm:$0xff] %vm5746_vm0, %v7451_v42 }
 0x88d   : > { %v7457_v34 = vpop.permute.xlu1 %7456 }
 0x88e   : > { %7541 = vst.msk [vmem:[%s12351_s30 + $0x58] sm:$0xff] %vm5746_vm0, %v7457_v34  ;;  %v7455_v60 = vpop.permute.xlu0 %7454 }
 0x88f   : > { %7540 = vst.msk [vmem:[%s12351_s30 + $0x50] sm:$0xff] %vm5746_vm0, %v7455_v60 }
 0x891   : > { %v7461_v17 = vpop.permute.xlu1 %7460 }
 0x892   : > { %7543 = vst.msk [vmem:[%s12351_s30 + $0x68] sm:$0xff] %vm5746_vm0, %v7461_v17  ;;  %v8393_v25 = vpop.f32.mrb[56].mxu0  ;;  %v7459_v32 = vpop.permute.xlu0 %7458 }
 0x893   : > { %v7193_v53 = vadd.f32 %v8393_v25, %v12617_v1  ;;  %7542 = vst.msk [vmem:[%s12351_s30 + $0x60] sm:$0xff] %vm5746_vm0, %v7459_v32  ;;  %v7187_v27 = vpop.f32.mrb[57].mxu0 }
 0x894   : > { %v7188_v35 = vadd.f32 %v12617_v1, %v7187_v27 }
 0x895   : > { %v7315_v43 = vmax.f32 %v7193_v53, 0.0  ;;  %v7465_v30 = vpop.permute.xlu1 %7464 }
 0x896   : > { %v7314_v55 = vmax.f32 %v7188_v35, 0.0  ;;  %7545 = vst.msk [vmem:[%s12351_s30 + $0x78] sm:$0xff] %vm5746_vm0, %v7465_v30  ;;  %v7463_v46 = vpop.permute.xlu0 %7462 }
 0x897   : > { %7544 = vst.msk [vmem:[%s12351_s30 + $0x70] sm:$0xff] %vm5746_vm0, %v7463_v46  ;;  %7612 = vrot.lane.b32.xlu1 %v7315_v43, %s8538_s22 }
 0x898   : > { %7610 = vrot.lane.b32.xlu0 %v7314_v55, %s8538_s22 }
 0x899   : > { %v7469_v51 = vpop.permute.xlu1 %7468 }
 0x89a   : > { %7547 = vst.msk [vmem:[%s12351_s30 + $0x88] sm:$0xff] %vm5746_vm0, %v7469_v51  ;;  %v7467_v33 = vpop.permute.xlu0 %7466 }
 0x89b   : > { %7546 = vst.msk [vmem:[%s12351_s30 + $0x80] sm:$0xff] %vm5746_vm0, %v7467_v33 }
 0x89d   : > { %v7473_v59 = vpop.permute.xlu1 %7472 }
 0x89e   : > { %7549 = vst.msk [vmem:[%s12351_s30 + $0x98] sm:$0xff] %vm5746_vm0, %v7473_v59  ;;  %v7471_v21 = vpop.permute.xlu0 %7470 }
 0x89f   : > { %7548 = vst.msk [vmem:[%s12351_s30 + $0x90] sm:$0xff] %vm5746_vm0, %v7471_v21 }
 0x8a1   : > { %v7477_v31 = vpop.permute.xlu1 %7476 }
 0x8a2   : > { %7551 = vst.msk [vmem:[%s12351_s30 + $0xa8] sm:$0xff] %vm5746_vm0, %v7477_v31  ;;  %v8396_v7 = vpop.f32.mrb[58].mxu0  ;;  %v7475_v48 = vpop.permute.xlu0 %7474 }
 0x8a3   : > { %v7203_v4 = vadd.f32 %v8396_v7, %v12617_v1  ;;  %7550 = vst.msk [vmem:[%s12351_s30 + $0xa0] sm:$0xff] %vm5746_vm0, %v7475_v48  ;;  %v7197_v39 = vpop.f32.mrb[59].mxu0 }
 0x8a4   : > { %v7198_v2 = vadd.f32 %v12617_v1, %v7197_v39 }
 0x8a5   : > { %v7317_v23 = vmax.f32 %v7203_v4, 0.0  ;;  %v7481_v11 = vpop.permute.xlu1 %7480 }
 0x8a6   : > { %v7316_v12 = vmax.f32 %v7198_v2, 0.0  ;;  %7553 = vst.msk [vmem:[%s12351_s30 + $0xb8] sm:$0xff] %vm5746_vm0, %v7481_v11  ;;  %v7479_v62 = vpop.permute.xlu0 %7478 }
 0x8a7   : > { %7552 = vst.msk [vmem:[%s12351_s30 + $0xb0] sm:$0xff] %vm5746_vm0, %v7479_v62  ;;  %7616 = vrot.lane.b32.xlu1 %v7317_v23, %s8538_s22 }
 0x8a8   : > { %7614 = vrot.lane.b32.xlu0 %v7316_v12, %s8538_s22 }
 0x8a9   : > { %v7485_v58 = vpop.permute.xlu1 %7484 }
 0x8aa   : > { %7555 = vst.msk [vmem:[%s12351_s30 + $0xc8] sm:$0xff] %vm5746_vm0, %v7485_v58  ;;  %v7483_v5 = vpop.permute.xlu0 %7482 }
 0x8ab   : > { %7554 = vst.msk [vmem:[%s12351_s30 + $0xc0] sm:$0xff] %vm5746_vm0, %v7483_v5 }
 0x8ad   : > { %v7489_v10 = vpop.permute.xlu1 %7488 }
 0x8ae   : > { %7557 = vst.msk [vmem:[%s12351_s30 + $0xd8] sm:$0xff] %vm5746_vm0, %v7489_v10  ;;  %v7487_v47 = vpop.permute.xlu0 %7486 }
 0x8af   : > { %7556 = vst.msk [vmem:[%s12351_s30 + $0xd0] sm:$0xff] %vm5746_vm0, %v7487_v47 }
 0x8b1   : > { %v7493_v63 = vpop.permute.xlu1 %7492 }
 0x8b2   : > { %7559 = vst.msk [vmem:[%s12351_s30 + $0xe8] sm:$0xff] %vm5746_vm0, %v7493_v63  ;;  %v8399_v26 = vpop.f32.mrb[60].mxu0  ;;  %v7491_v54 = vpop.permute.xlu0 %7490 }
 0x8b3   : > { %v7213_v16 = vadd.f32 %v8399_v26, %v12617_v1  ;;  %7558 = vst.msk [vmem:[%s12351_s30 + $0xe0] sm:$0xff] %vm5746_vm0, %v7491_v54  ;;  %v7207_v24 = vpop.f32.mrb[61].mxu0 }
 0x8b4   : > { %v7208_v8 = vadd.f32 %v12617_v1, %v7207_v24 }
 0x8b5   : > { %v7319_v40 = vmax.f32 %v7213_v16, 0.0  ;;  %v7497_v19 = vpop.permute.xlu1 %7496 }
 0x8b6   : > { %v7318_v50 = vmax.f32 %v7208_v8, 0.0  ;;  %7561 = vst.msk [vmem:[%s12351_s30 + $0xf8] sm:$0xff] %vm5746_vm0, %v7497_v19  ;;  %v7495_v20 = vpop.permute.xlu0 %7494 }
 0x8b7   : > { %7560 = vst.msk [vmem:[%s12351_s30 + $0xf0] sm:$0xff] %vm5746_vm0, %v7495_v20  ;;  %7620 = vrot.lane.b32.xlu1 %v7319_v40, %s8538_s22 }
 0x8b8   : > { %7618 = vrot.lane.b32.xlu0 %v7318_v50, %s8538_s22 }
 0x8c2   : > { %v8402_v0 = vpop.f32.mrb[62].mxu0 }
 0x8c3   : > { %v7223_v18 = vadd.f32 %v8402_v0, %v12617_v1  ;;  %v7217_v61 = vpop.f32.mrb[63].mxu0 }
 0x8c4   : > { %v7218_v9 = vadd.f32 %v12617_v1, %v7217_v61 }
 0x8c5   : > { %v7321_v6 = vmax.f32 %v7223_v18, 0.0 }
 0x8c6   : > { %v7320_v3 = vmax.f32 %v7218_v9, 0.0 }
 0x8c7   : > { %7624 = vrot.lane.b32.xlu1 %v7321_v6, %s8538_s22 }
 0x8c8   : > { %7622 = vrot.lane.b32.xlu0 %v7320_v3, %s8538_s22 }
 0x8c9   : > { %v7597_v22 = vpop.permute.xlu1 %7596 }
 0x8ca   : > { %7691 = vst.msk [vmem:[%s12351_s30 + $0x8] sm:$0xff] %vm5939_vm2, %v7597_v22  ;;  %v7595_v49 = vpop.permute.xlu0 %7594 }
 0x8cb   : > { %7690 = vst.msk [vmem:[%s12351_s30] sm:$0xff] %vm5939_vm2, %v7595_v49 }
 0x8d2   : > { %v8405_v44 = vpop.f32.mrb[64].mxu0 }
 0x8d3   : > { %v7233_v52 = vadd.f32 %v8405_v44, %v12617_v1  ;;  %v7227_v36 = vpop.f32.mrb[65].mxu0 }
 0x8d4   : > { %v7228_v28 = vadd.f32 %v12617_v1, %v7227_v36 }
 0x8d5   : > { %v7323_v13 = vmax.f32 %v7233_v52, 0.0 }
 0x8d6   : > { %v7322_v38 = vmax.f32 %v7228_v28, 0.0 }
 0x8d7   : > { %7628 = vrot.lane.b32.xlu1 %v7323_v13, %s8538_s22 }
 0x8d8   : > { %7626 = vrot.lane.b32.xlu0 %v7322_v38, %s8538_s22 }
 0x8d9   : > { %v7601_v45 = vpop.permute.xlu1 %7600 }
 0x8da   : > { %7693 = vst.msk [vmem:[%s12351_s30 + $0x18] sm:$0xff] %vm5939_vm2, %v7601_v45  ;;  %v7599_v56 = vpop.permute.xlu0 %7598 }
 0x8db   : > { %7692 = vst.msk [vmem:[%s12351_s30 + $0x10] sm:$0xff] %vm5939_vm2, %v7599_v56 }
 0x8e2   : > { %v8408_v15 = vpop.f32.mrb[66].mxu0 }
 0x8e3   : > { %v7243_v57 = vadd.f32 %v8408_v15, %v12617_v1  ;;  %v7237_v14 = vpop.f32.mrb[67].mxu0 }
 0x8e4   : > { %v7238_v41 = vadd.f32 %v12617_v1, %v7237_v14 }
 0x8e5   : > { %v7325_v37 = vmax.f32 %v7243_v57, 0.0 }
 0x8e6   : > { %v7324_v29 = vmax.f32 %v7238_v41, 0.0 }
 0x8e7   : > { %7632 = vrot.lane.b32.xlu1 %v7325_v37, %s8538_s22 }
 0x8e8   : > { %7630 = vrot.lane.b32.xlu0 %v7324_v29, %s8538_s22 }
 0x8e9   : > { %v7605_v42 = vpop.permute.xlu1 %7604 }
 0x8ea   : > { %7695 = vst.msk [vmem:[%s12351_s30 + $0x28] sm:$0xff] %vm5939_vm2, %v7605_v42  ;;  %v7603_v34 = vpop.permute.xlu0 %7602 }
 0x8eb   : > { %7694 = vst.msk [vmem:[%s12351_s30 + $0x20] sm:$0xff] %vm5939_vm2, %v7603_v34 }
 0x8f6   : > { %v8411_v60 = vpop.f32.mrb[68].mxu0 }
 0x8f7   : > { %v7253_v17 = vadd.f32 %v8411_v60, %v12617_v1  ;;  %v7247_v25 = vpop.f32.mrb[69].mxu0 }
 0x8f8   : > { %v7248_v32 = vadd.f32 %v12617_v1, %v7247_v25 }
 0x8f9   : > { %v7327_v53 = vmax.f32 %v7253_v17, 0.0  ;;  %v7609_v27 = vpop.permute.xlu1 %7608 }
 0x8fa   : > { %v7326_v35 = vmax.f32 %v7248_v32, 0.0  ;;  %7697 = vst.msk [vmem:[%s12351_s30 + $0x38] sm:$0xff] %vm5939_vm2, %v7609_v27  ;;  %v7607_v43 = vpop.permute.xlu0 %7606 }
 0x8fb   : > { %7696 = vst.msk [vmem:[%s12351_s30 + $0x30] sm:$0xff] %vm5939_vm2, %v7607_v43  ;;  %7636 = vrot.lane.b32.xlu1 %v7327_v53, %s8538_s22 }
 0x8fc   : > { %7634 = vrot.lane.b32.xlu0 %v7326_v35, %s8538_s22 }
 0x909   : > { %v7613_v30 = vpop.permute.xlu1 %7612 }
 0x90a   : > { %7699 = vst.msk [vmem:[%s12351_s30 + $0x48] sm:$0xff] %vm5939_vm2, %v7613_v30  ;;  %v8414_v55 = vpop.f32.mrb[70].mxu0  ;;  %v7611_v46 = vpop.permute.xlu0 %7610 }
 0x90b   : > { %v7263_v51 = vadd.f32 %v8414_v55, %v12617_v1  ;;  %7698 = vst.msk [vmem:[%s12351_s30 + $0x40] sm:$0xff] %vm5939_vm2, %v7611_v46  ;;  %v7257_v33 = vpop.f32.mrb[71].mxu0 }
 0x90c   : > { %v7258_v59 = vadd.f32 %v12617_v1, %v7257_v33 }
 0x90d   : > { %v7329_v21 = vmax.f32 %v7263_v51, 0.0 }
 0x90e   : > { %v7328_v31 = vmax.f32 %v7258_v59, 0.0 }
 0x90f   : > { %7640 = vrot.lane.b32.xlu1 %v7329_v21, %s8538_s22 }
 0x910   : > { %7638 = vrot.lane.b32.xlu0 %v7328_v31, %s8538_s22 }
 0x919   : > { %v7617_v7 = vpop.permute.xlu1 %7616 }
 0x91a   : > { %7701 = vst.msk [vmem:[%s12351_s30 + $0x58] sm:$0xff] %vm5939_vm2, %v7617_v7  ;;  %v7615_v48 = vpop.permute.xlu0 %7614 }
 0x91b   : > { %7700 = vst.msk [vmem:[%s12351_s30 + $0x50] sm:$0xff] %vm5939_vm2, %v7615_v48 }
 0x91e   : > { %v8417_v4 = vpop.f32.mrb[72].mxu0 }
 0x91f   : > { %v7273_v39 = vadd.f32 %v8417_v4, %v12617_v1  ;;  %v7267_v2 = vpop.f32.mrb[73].mxu0 }
 0x920   : > { %v7268_v23 = vadd.f32 %v12617_v1, %v7267_v2 }
 0x921   : > { %v7331_v11 = vmax.f32 %v7273_v39, 0.0 }
 0x922   : > { %v7330_v12 = vmax.f32 %v7268_v23, 0.0 }
 0x923   : > { %7644 = vrot.lane.b32.xlu1 %v7331_v11, %s8538_s22 }
 0x924   : > { %7642 = vrot.lane.b32.xlu0 %v7330_v12, %s8538_s22 }
 0x929   : > { %v7621_v62 = vpop.permute.xlu1 %7620 }
 0x92a   : > { %7703 = vst.msk [vmem:[%s12351_s30 + $0x68] sm:$0xff] %vm5939_vm2, %v7621_v62  ;;  %v7619_v58 = vpop.permute.xlu0 %7618 }
 0x92b   : > { %7702 = vst.msk [vmem:[%s12351_s30 + $0x60] sm:$0xff] %vm5939_vm2, %v7619_v58 }
 0x932   : > { %v8420_v5 = vpop.f32.mrb[74].mxu0 }
 0x933   : > { %v7283_v10 = vadd.f32 %v8420_v5, %v12617_v1  ;;  %v7277_v47 = vpop.f32.mrb[75].mxu0 }
 0x934   : > { %v7278_v63 = vadd.f32 %v12617_v1, %v7277_v47 }
 0x935   : > { %v7333_v26 = vmax.f32 %v7283_v10, 0.0 }
 0x936   : > { %v7332_v54 = vmax.f32 %v7278_v63, 0.0 }
 0x937   : > { %7648 = vrot.lane.b32.xlu1 %v7333_v26, %s8538_s22 }
 0x938   : > { %7646 = vrot.lane.b32.xlu0 %v7332_v54, %s8538_s22 }
 0x939   : > { %v7625_v16 = vpop.permute.xlu1 %7624 }
 0x93a   : > { %7705 = vst.msk [vmem:[%s12351_s30 + $0x78] sm:$0xff] %vm5939_vm2, %v7625_v16  ;;  %v7623_v24 = vpop.permute.xlu0 %7622 }
 0x93b   : > { %7704 = vst.msk [vmem:[%s12351_s30 + $0x70] sm:$0xff] %vm5939_vm2, %v7623_v24 }
 0x946   : > { %v8423_v8 = vpop.f32.mrb[76].mxu0 }
 0x947   : > { %v7293_v40 = vadd.f32 %v8423_v8, %v12617_v1  ;;  %v7287_v19 = vpop.f32.mrb[77].mxu0 }
 0x948   : > { %v7288_v50 = vadd.f32 %v12617_v1, %v7287_v19 }
 0x949   : > { %v7335_v20 = vmax.f32 %v7293_v40, 0.0  ;;  %v7629_v0 = vpop.permute.xlu1 %7628 }
 0x94a   : > { %v7334_v18 = vmax.f32 %v7288_v50, 0.0  ;;  %7707 = vst.msk [vmem:[%s12351_s30 + $0x88] sm:$0xff] %vm5939_vm2, %v7629_v0  ;;  %v7627_v61 = vpop.permute.xlu0 %7626 }
 0x94b   : > { %7706 = vst.msk [vmem:[%s12351_s30 + $0x80] sm:$0xff] %vm5939_vm2, %v7627_v61  ;;  %7652 = vrot.lane.b32.xlu1 %v7335_v20, %s8538_s22 }
 0x94c   : > { %7650 = vrot.lane.b32.xlu0 %v7334_v18, %s8538_s22 }
 0x953   : > { %v8426_v9 = vpop.f32.mrb[78].mxu0 }
 0x954   : > { %v7303_v6 = vadd.f32 %v8426_v9, %v12617_v1  ;;  %v7297_v3 = vpop.f32.mrb[79].mxu0 }
 0x955   : > { %v7298_v22 = vadd.f32 %v12617_v1, %v7297_v3 }
 0x956   : > { %v7337_v49 = vmax.f32 %v7303_v6, 0.0 }
 0x957   : > { %v7336_v44 = vmax.f32 %v7298_v22, 0.0 }
 0x958   : > { %7656 = vrot.lane.b32.xlu1 %v7337_v49, %s8538_s22 }
 0x959   : > { %v7633_v52 = vpop.permute.xlu1 %7632  ;;  %7654 = vrot.lane.b32.xlu0 %v7336_v44, %s8538_s22 }
 0x95a   : > { %7709 = vst.msk [vmem:[%s12351_s30 + $0x98] sm:$0xff] %vm5939_vm2, %v7633_v52  ;;  %v7631_v36 = vpop.permute.xlu0 %7630 }
 0x95b   : > { %7708 = vst.msk [vmem:[%s12351_s30 + $0x90] sm:$0xff] %vm5939_vm2, %v7631_v36 }
 0x96d   : > { %v7637_v28 = vpop.permute.xlu1 %7636 }
 0x96e   : > { %7711 = vst.msk [vmem:[%s12351_s30 + $0xa8] sm:$0xff] %vm5939_vm2, %v7637_v28  ;;  %v7635_v1 = vpop.permute.xlu0 %7634 }
 0x96f   : > { %7710 = vst.msk [vmem:[%s12351_s30 + $0xa0] sm:$0xff] %vm5939_vm2, %v7635_v1 }
 0x981   : > { %v7641_v13 = vpop.permute.xlu1 %7640 }
 0x982   : > { %7713 = vst.msk [vmem:[%s12351_s30 + $0xb8] sm:$0xff] %vm5939_vm2, %v7641_v13  ;;  %v7639_v38 = vpop.permute.xlu0 %7638 }
 0x983   : > { %7712 = vst.msk [vmem:[%s12351_s30 + $0xb0] sm:$0xff] %vm5939_vm2, %v7639_v38 }
 0x995   : > { %v7645_v45 = vpop.permute.xlu1 %7644 }
 0x996   : > { %7715 = vst.msk [vmem:[%s12351_s30 + $0xc8] sm:$0xff] %vm5939_vm2, %v7645_v45  ;;  %v7643_v56 = vpop.permute.xlu0 %7642 }
 0x997   : > { %7714 = vst.msk [vmem:[%s12351_s30 + $0xc0] sm:$0xff] %vm5939_vm2, %v7643_v56 }
 0x9a9   : > { %v7649_v15 = vpop.permute.xlu1 %7648 }
 0x9aa   : > { %7717 = vst.msk [vmem:[%s12351_s30 + $0xd8] sm:$0xff] %vm5939_vm2, %v7649_v15  ;;  %v7647_v57 = vpop.permute.xlu0 %7646 }
 0x9ab   : > { %7716 = vst.msk [vmem:[%s12351_s30 + $0xd0] sm:$0xff] %vm5939_vm2, %v7647_v57 }
 0x9bd   : > { %v7653_v14 = vpop.permute.xlu1 %7652 }
 0x9be   : > { %7719 = vst.msk [vmem:[%s12351_s30 + $0xe8] sm:$0xff] %vm5939_vm2, %v7653_v14  ;;  %v7651_v41 = vpop.permute.xlu0 %7650 }
 0x9bf   : > { %7718 = vst.msk [vmem:[%s12351_s30 + $0xe0] sm:$0xff] %vm5939_vm2, %v7651_v41 }
 0x9ca   : > { %v7657_v37 = vpop.permute.xlu1 %7656 }
 0x9cb   : > { %7721 = vst.msk [vmem:[%s12351_s30 + $0xf8] sm:$0xff] %vm5939_vm2, %v7657_v37  ;;  %v7655_v29 = vpop.permute.xlu0 %7654 }
 0x9cc   : > { %7720 = vst.msk [vmem:[%s12351_s30 + $0xf0] sm:$0xff] %vm5939_vm2, %v7655_v29 }
 0x9cd PF: > { %s21_s17 = sadd.s32 1, %s8525_s17  }
 0x9ce   : > { %p18_p4 = scmp.ge.s32.totalorder %s21_s17, 4  }
 0x9d0   :  { %20 = sbr.rel (!%p18_p4) target bundleno = 1 (0x1), region = 98 }

</bundles_post_ra>
